<compile_context>
chip_gen: v5e
topology: v5e:2x2
jax: 0.10.0
libtpu: 0.0.40
codegen_flags: <defaults>
</compile_context>

<pallas_src>
import functools
from functools import reduce
from operator import mul

import jax
import jax.numpy as jnp
from jax.experimental import pallas as pl
from jax.experimental.pallas import tpu as pltpu


def _round_up(n, m):
    return ((n + m - 1) // m) * m


def _generator_kernel(z_ref,
                      w1_ref, b1_ref,
                      w2_ref,
                      w3_ref,
                      w4_hbm,
                      w5_hbm,
                      b5_ref,
                      o_ref,
                      w4_vmem, w5_vmem, dma_sems,
                      *, eps, slope):
    """Whole fused MLP generator: all activations stay in VMEM / vregs.

    z_ref : (B, latent) f32        w*_ref / w*_vmem : (In, Out) bf16
    b*_ref: (1, Out) f32           o_ref : (B, Out_padded) f32
    w4_hbm / w5_hbm live in HBM (pl.ANY) and are DMA'd manually so their
    transfer overlaps layers 1-3.
    """
    # Kick off the late-layer weight DMAs immediately.
    cp4 = pltpu.make_async_copy(w4_hbm, w4_vmem, dma_sems.at[0])
    cp5 = pltpu.make_async_copy(w5_hbm, w5_vmem, dma_sems.at[1])
    cp4.start()
    cp5.start()

    def linear(x_f32, w, b=None):
        # bf16 MXU matmul with f32 accumulation; bias add (if any) in f32.
        h = jnp.dot(x_f32.astype(w.dtype), w, preferred_element_type=jnp.float32)
        if b is not None:
            h = h + b
        return h

    def leaky(h):
        return jnp.where(h > 0, h, slope * h)

    def batchnorm(h):
        # Training-mode BatchNorm1d: full-batch mean + biased variance, eps=0.8.
        # Single-pass variance E[h^2] - mean^2, clamped at 0 for safety.
        mean = jnp.mean(h, axis=0, keepdims=True)
        mean_sq = jnp.mean(h * h, axis=0, keepdims=True)
        var = jnp.maximum(mean_sq - mean * mean, 0.0)
        return (h - mean) * jax.lax.rsqrt(var + eps)

    # Layers 2-4: Linear bias is cancelled exactly by the BN mean subtraction,
    # so those biases are omitted (bit-exact vs. the PyTorch module).
    h = leaky(linear(z_ref[...], w1_ref[...], b1_ref[...]))
    h = leaky(batchnorm(linear(h, w2_ref[...])))
    h = leaky(batchnorm(linear(h, w3_ref[...])))

    cp4.wait()
    h = leaky(batchnorm(linear(h, w4_vmem[...])))

    cp5.wait()
    h = jnp.tanh(linear(h, w5_vmem[...], b5_ref[...]))

    o_ref[...] = h.astype(o_ref.dtype)


def init_generator_params(key, latent_dim, img_shape):
    """Deterministic init matching PyTorch Linear defaults
    (uniform in [-1/sqrt(fan_in), +1/sqrt(fan_in)]).  BN gamma/beta are 1/0
    (identity, folded away).  Biases of layers 2-4 are dropped because they
    cancel against training-mode BatchNorm.

    Weights are bf16 (halves weight DMA; matmuls accumulate in f32).  The last
    layer's output features are zero-padded to a multiple of 128 so the
    kernel's output store is lane-dense; the wrapper slices the padding off.
    Returns (w1, b1, w2, w3, w4, w5, b5).
    """
    img_numel = reduce(mul, img_shape)
    padded_numel = _round_up(img_numel, 128)
    dims = [latent_dim, 128, 256, 512, 1024, img_numel]

    weights, biases = [], []
    for i in range(len(dims) - 1):
        fan_in, fan_out = dims[i], dims[i + 1]
        key, kw, kb = jax.random.split(key, 3)
        bound = 1.0 / jnp.sqrt(jnp.float32(fan_in))
        w = jax.random.uniform(kw, (fan_in, fan_out), jnp.float32, -bound, bound)
        b = jax.random.uniform(kb, (1, fan_out), jnp.float32, -bound, bound)
        if i == len(dims) - 2 and padded_numel != img_numel:
            w = jnp.pad(w, ((0, 0), (0, padded_numel - img_numel)))
            b = jnp.pad(b, ((0, 0), (0, padded_numel - img_numel)))
        weights.append(w.astype(jnp.bfloat16))
        biases.append(b.astype(jnp.float32))

    w1, w2, w3, w4, w5 = weights
    b1, _, _, _, b5 = biases          # b2..b4 cancel against BatchNorm
    return (w1, b1, w2, w3, w4, w5, b5)


def generator_forward(z, params, img_shape):
    """z: (B, latent_dim) float32 -> images (B, *img_shape) float32."""
    batch, latent_dim = z.shape
    img_numel = reduce(mul, img_shape)
    w1, b1, w2, w3, w4, w5, b5 = params
    padded_numel = w5.shape[1]

    kernel = functools.partial(_generator_kernel, eps=0.8, slope=0.2)
    vmem_spec = pl.BlockSpec(memory_space=pltpu.MemorySpace.VMEM)
    hbm_spec = pl.BlockSpec(memory_space=pl.ANY)

    dims = [latent_dim, 128, 256, 512, 1024, padded_numel]
    flops = 2 * batch * sum(dims[i] * dims[i + 1] for i in range(5))
    weight_bytes = sum(int(w.size) * w.dtype.itemsize for w in (w1, w2, w3, w4, w5))
    bytes_accessed = weight_bytes + batch * (latent_dim + padded_numel) * 4
    transcendentals = batch * padded_numel + (256 + 512 + 1024)  # tanh + rsqrt

    out = pl.pallas_call(
        kernel,
        out_shape=jax.ShapeDtypeStruct((batch, padded_numel), jnp.float32),
        in_specs=[vmem_spec,            # z
                  vmem_spec, vmem_spec,  # w1, b1
                  vmem_spec,            # w2
                  vmem_spec,            # w3
                  hbm_spec,             # w4 (manual DMA, overlapped)
                  hbm_spec,             # w5 (manual DMA, overlapped)
                  vmem_spec],           # b5
        out_specs=vmem_spec,
        scratch_shapes=[pltpu.VMEM(w4.shape, w4.dtype),
                        pltpu.VMEM(w5.shape, w5.dtype),
                        pltpu.SemaphoreType.DMA((2,))],
        cost_estimate=pl.CostEstimate(flops=flops,
                                      transcendentals=transcendentals,
                                      bytes_accessed=bytes_accessed),
    )(z, w1, b1, w2, w3, w4, w5, b5)

    return out[:, :img_numel].reshape((batch,) + tuple(img_shape))


if __name__ == "__main__":
    latent_dim = 32
    img_shape = (1, 16, 16)   # (C, H, W) -> output is NCHW
    batch = 64                # larger batch amortizes the weight DMA stream

    key = jax.random.PRNGKey(0)
    key_z, key_p = jax.random.split(key)

    z = jax.random.normal(key_z, (batch, latent_dim), dtype=jnp.float32)
    params = init_generator_params(key_p, latent_dim, img_shape)

    imgs = generator_forward(z, params, img_shape)
    jax.block_until_ready(imgs)

    assert imgs.shape == (batch,) + img_shape
    assert bool(jnp.all(jnp.isfinite(imgs)))
    assert bool(jnp.all(jnp.abs(imgs) <= 1.0))  # tanh output range
    print("KERNEL_OK")
</pallas_src>

<mosaic_0001>
module attributes {stable_mosaic.version = 11 : i64} {
  func.func @_generator_kernel(%arg0: memref<64x32xf32, #tpu.memory_space<vmem>>, %arg1: memref<32x128xbf16, #tpu.memory_space<vmem>>, %arg2: memref<1x128xf32, #tpu.memory_space<vmem>>, %arg3: memref<128x256xbf16, #tpu.memory_space<vmem>>, %arg4: memref<256x512xbf16, #tpu.memory_space<vmem>>, %arg5: memref<512x1024xbf16, #tpu.memory_space<any>>, %arg6: memref<1024x256xbf16, #tpu.memory_space<any>>, %arg7: memref<1x256xf32, #tpu.memory_space<vmem>>, %arg8: memref<64x256xf32, #tpu.memory_space<vmem>>, %arg9: memref<512x1024xbf16, #tpu.memory_space<vmem>>, %arg10: memref<1024x256xbf16, #tpu.memory_space<vmem>>, %arg11: memref<2x!tpu.dma_semaphore, #tpu.memory_space<semaphore_mem>>) attributes {dimension_semantics = [], scalar_prefetch = 0 : i64, scratch_operands = 3 : i64, tpu.core_type = #tpu.core_type<tc>} {
    %c0_i32 = arith.constant 0 : i32
    %0 = tpu.memref_slice %arg11[%c0_i32] : memref<2x!tpu.dma_semaphore, #tpu.memory_space<semaphore_mem>> -> memref<1x!tpu.dma_semaphore, #tpu.memory_space<semaphore_mem>>
    %1 = tpu.memref_squeeze %0 : memref<1x!tpu.dma_semaphore, #tpu.memory_space<semaphore_mem>> -> memref<!tpu.dma_semaphore, #tpu.memory_space<semaphore_mem>>
    tpu.enqueue_dma source(%arg5 : memref<512x1024xbf16, #tpu.memory_space<any>>) target(%arg9 : memref<512x1024xbf16, #tpu.memory_space<vmem>>) target_semaphore(%1 : memref<!tpu.dma_semaphore, #tpu.memory_space<semaphore_mem>>)
    %c1_i32 = arith.constant 1 : i32
    %2 = tpu.memref_slice %arg11[%c1_i32] : memref<2x!tpu.dma_semaphore, #tpu.memory_space<semaphore_mem>> -> memref<1x!tpu.dma_semaphore, #tpu.memory_space<semaphore_mem>>
    %3 = tpu.memref_squeeze %2 : memref<1x!tpu.dma_semaphore, #tpu.memory_space<semaphore_mem>> -> memref<!tpu.dma_semaphore, #tpu.memory_space<semaphore_mem>>
    tpu.enqueue_dma source(%arg6 : memref<1024x256xbf16, #tpu.memory_space<any>>) target(%arg10 : memref<1024x256xbf16, #tpu.memory_space<vmem>>) target_semaphore(%3 : memref<!tpu.dma_semaphore, #tpu.memory_space<semaphore_mem>>)
    %c0 = arith.constant 0 : index
    %c0_0 = arith.constant 0 : index
    %4 = vector.load %arg0[%c0, %c0_0] : memref<64x32xf32, #tpu.memory_space<vmem>>, vector<64x32xf32>
    %c0_1 = arith.constant 0 : index
    %c0_2 = arith.constant 0 : index
    %5 = vector.load %arg1[%c0_1, %c0_2] : memref<32x128xbf16, #tpu.memory_space<vmem>>, vector<32x128xbf16>
    %c0_3 = arith.constant 0 : index
    %c0_4 = arith.constant 0 : index
    %6 = vector.load %arg2[%c0_3, %c0_4] : memref<1x128xf32, #tpu.memory_space<vmem>>, vector<1x128xf32>
    %7 = arith.truncf %4 : vector<64x32xf32> to vector<64x32xbf16>
    %cst = arith.constant dense<0.000000e+00> : vector<64x128xf32>
    %8 = tpu.matmul %7, %5, %cst {dimension_numbers = #tpu.dot_dimension_numbers<[1], [0], [0], [1], [0, 0, 1, 1], [], []>} : vector<64x32xbf16>, vector<32x128xbf16>, vector<64x128xf32> -> vector<64x128xf32>
    %9 = vector.broadcast %6 : vector<1x128xf32> to vector<64x128xf32>
    %10 = arith.addf %8, %9 : vector<64x128xf32>
    %cst_5 = arith.constant 0.000000e+00 : f32
    %11 = vector.broadcast %cst_5 : f32 to vector<64x128xf32>
    %12 = arith.cmpf ogt, %10, %11 : vector<64x128xf32>
    %cst_6 = arith.constant 2.000000e-01 : f32
    %13 = vector.broadcast %cst_6 : f32 to vector<64x128xf32>
    %14 = arith.mulf %13, %10 : vector<64x128xf32>
    %15 = arith.select %12, %10, %14 : vector<64x128xi1>, vector<64x128xf32>
    %c0_7 = arith.constant 0 : index
    %c0_8 = arith.constant 0 : index
    %16 = vector.load %arg3[%c0_7, %c0_8] : memref<128x256xbf16, #tpu.memory_space<vmem>>, vector<128x256xbf16>
    %17 = arith.truncf %15 : vector<64x128xf32> to vector<64x128xbf16>
    %cst_9 = arith.constant dense<0.000000e+00> : vector<64x256xf32>
    %18 = tpu.matmul %17, %16, %cst_9 {dimension_numbers = #tpu.dot_dimension_numbers<[1], [0], [0], [1], [0, 0, 1, 1], [], []>} : vector<64x128xbf16>, vector<128x256xbf16>, vector<64x256xf32> -> vector<64x256xf32>
    %cst_10 = arith.constant dense<0.000000e+00> : vector<256xf32>
    %19 = vector.multi_reduction <add>, %18, %cst_10 [0] : vector<64x256xf32> to vector<256xf32>
    %20 = vector.shape_cast %19 : vector<256xf32> to vector<1x256xf32>
    %cst_11 = arith.constant 6.400000e+01 : f32
    %21 = vector.broadcast %cst_11 : f32 to vector<1x256xf32>
    %22 = arith.divf %20, %21 : vector<1x256xf32>
    %23 = arith.mulf %18, %18 : vector<64x256xf32>
    %cst_12 = arith.constant dense<0.000000e+00> : vector<256xf32>
    %24 = vector.multi_reduction <add>, %23, %cst_12 [0] : vector<64x256xf32> to vector<256xf32>
    %25 = vector.shape_cast %24 : vector<256xf32> to vector<1x256xf32>
    %cst_13 = arith.constant 6.400000e+01 : f32
    %26 = vector.broadcast %cst_13 : f32 to vector<1x256xf32>
    %27 = arith.divf %25, %26 : vector<1x256xf32>
    %28 = arith.mulf %22, %22 : vector<1x256xf32>
    %29 = arith.subf %27, %28 : vector<1x256xf32>
    %cst_14 = arith.constant 0.000000e+00 : f32
    %30 = vector.broadcast %cst_14 : f32 to vector<1x256xf32>
    %31 = arith.maximumf %29, %30 : vector<1x256xf32>
    %32 = vector.broadcast %22 : vector<1x256xf32> to vector<64x256xf32>
    %33 = arith.subf %18, %32 : vector<64x256xf32>
    %cst_15 = arith.constant 8.000000e-01 : f32
    %34 = vector.broadcast %cst_15 : f32 to vector<1x256xf32>
    %35 = arith.addf %31, %34 : vector<1x256xf32>
    %36 = math.rsqrt %35 : vector<1x256xf32>
    %37 = vector.broadcast %36 : vector<1x256xf32> to vector<64x256xf32>
    %38 = arith.mulf %33, %37 : vector<64x256xf32>
    %cst_16 = arith.constant 0.000000e+00 : f32
    %39 = vector.broadcast %cst_16 : f32 to vector<64x256xf32>
    %40 = arith.cmpf ogt, %38, %39 : vector<64x256xf32>
    %cst_17 = arith.constant 2.000000e-01 : f32
    %41 = vector.broadcast %cst_17 : f32 to vector<64x256xf32>
    %42 = arith.mulf %41, %38 : vector<64x256xf32>
    %43 = arith.select %40, %38, %42 : vector<64x256xi1>, vector<64x256xf32>
    %c0_18 = arith.constant 0 : index
    %c0_19 = arith.constant 0 : index
    %44 = vector.load %arg4[%c0_18, %c0_19] : memref<256x512xbf16, #tpu.memory_space<vmem>>, vector<256x512xbf16>
    %45 = arith.truncf %43 : vector<64x256xf32> to vector<64x256xbf16>
    %cst_20 = arith.constant dense<0.000000e+00> : vector<64x512xf32>
    %46 = tpu.matmul %45, %44, %cst_20 {dimension_numbers = #tpu.dot_dimension_numbers<[1], [0], [0], [1], [0, 0, 1, 1], [], []>} : vector<64x256xbf16>, vector<256x512xbf16>, vector<64x512xf32> -> vector<64x512xf32>
    %cst_21 = arith.constant dense<0.000000e+00> : vector<512xf32>
    %47 = vector.multi_reduction <add>, %46, %cst_21 [0] : vector<64x512xf32> to vector<512xf32>
    %48 = vector.shape_cast %47 : vector<512xf32> to vector<1x512xf32>
    %cst_22 = arith.constant 6.400000e+01 : f32
    %49 = vector.broadcast %cst_22 : f32 to vector<1x512xf32>
    %50 = arith.divf %48, %49 : vector<1x512xf32>
    %51 = arith.mulf %46, %46 : vector<64x512xf32>
    %cst_23 = arith.constant dense<0.000000e+00> : vector<512xf32>
    %52 = vector.multi_reduction <add>, %51, %cst_23 [0] : vector<64x512xf32> to vector<512xf32>
    %53 = vector.shape_cast %52 : vector<512xf32> to vector<1x512xf32>
    %cst_24 = arith.constant 6.400000e+01 : f32
    %54 = vector.broadcast %cst_24 : f32 to vector<1x512xf32>
    %55 = arith.divf %53, %54 : vector<1x512xf32>
    %56 = arith.mulf %50, %50 : vector<1x512xf32>
    %57 = arith.subf %55, %56 : vector<1x512xf32>
    %cst_25 = arith.constant 0.000000e+00 : f32
    %58 = vector.broadcast %cst_25 : f32 to vector<1x512xf32>
    %59 = arith.maximumf %57, %58 : vector<1x512xf32>
    %60 = vector.broadcast %50 : vector<1x512xf32> to vector<64x512xf32>
    %61 = arith.subf %46, %60 : vector<64x512xf32>
    %cst_26 = arith.constant 8.000000e-01 : f32
    %62 = vector.broadcast %cst_26 : f32 to vector<1x512xf32>
    %63 = arith.addf %59, %62 : vector<1x512xf32>
    %64 = math.rsqrt %63 : vector<1x512xf32>
    %65 = vector.broadcast %64 : vector<1x512xf32> to vector<64x512xf32>
    %66 = arith.mulf %61, %65 : vector<64x512xf32>
    %cst_27 = arith.constant 0.000000e+00 : f32
    %67 = vector.broadcast %cst_27 : f32 to vector<64x512xf32>
    %68 = arith.cmpf ogt, %66, %67 : vector<64x512xf32>
    %cst_28 = arith.constant 2.000000e-01 : f32
    %69 = vector.broadcast %cst_28 : f32 to vector<64x512xf32>
    %70 = arith.mulf %69, %66 : vector<64x512xf32>
    %71 = arith.select %68, %66, %70 : vector<64x512xi1>, vector<64x512xf32>
    %c0_i32_29 = arith.constant 0 : i32
    %72 = tpu.memref_slice %arg11[%c0_i32_29] : memref<2x!tpu.dma_semaphore, #tpu.memory_space<semaphore_mem>> -> memref<1x!tpu.dma_semaphore, #tpu.memory_space<semaphore_mem>>
    %73 = tpu.memref_squeeze %72 : memref<1x!tpu.dma_semaphore, #tpu.memory_space<semaphore_mem>> -> memref<!tpu.dma_semaphore, #tpu.memory_space<semaphore_mem>>
    tpu.wait_dma2 semaphore(%73 : memref<!tpu.dma_semaphore, #tpu.memory_space<semaphore_mem>>) src(%arg5 : memref<512x1024xbf16, #tpu.memory_space<any>>) dst(%arg9 : memref<512x1024xbf16, #tpu.memory_space<vmem>>)
    %c0_30 = arith.constant 0 : index
    %c0_31 = arith.constant 0 : index
    %74 = vector.load %arg9[%c0_30, %c0_31] : memref<512x1024xbf16, #tpu.memory_space<vmem>>, vector<512x1024xbf16>
    %75 = arith.truncf %71 : vector<64x512xf32> to vector<64x512xbf16>
    %cst_32 = arith.constant dense<0.000000e+00> : vector<64x1024xf32>
    %76 = tpu.matmul %75, %74, %cst_32 {dimension_numbers = #tpu.dot_dimension_numbers<[1], [0], [0], [1], [0, 0, 1, 1], [], []>} : vector<64x512xbf16>, vector<512x1024xbf16>, vector<64x1024xf32> -> vector<64x1024xf32>
    %cst_33 = arith.constant dense<0.000000e+00> : vector<1024xf32>
    %77 = vector.multi_reduction <add>, %76, %cst_33 [0] : vector<64x1024xf32> to vector<1024xf32>
    %78 = vector.shape_cast %77 : vector<1024xf32> to vector<1x1024xf32>
    %cst_34 = arith.constant 6.400000e+01 : f32
    %79 = vector.broadcast %cst_34 : f32 to vector<1x1024xf32>
    %80 = arith.divf %78, %79 : vector<1x1024xf32>
    %81 = arith.mulf %76, %76 : vector<64x1024xf32>
    %cst_35 = arith.constant dense<0.000000e+00> : vector<1024xf32>
    %82 = vector.multi_reduction <add>, %81, %cst_35 [0] : vector<64x1024xf32> to vector<1024xf32>
    %83 = vector.shape_cast %82 : vector<1024xf32> to vector<1x1024xf32>
    %cst_36 = arith.constant 6.400000e+01 : f32
    %84 = vector.broadcast %cst_36 : f32 to vector<1x1024xf32>
    %85 = arith.divf %83, %84 : vector<1x1024xf32>
    %86 = arith.mulf %80, %80 : vector<1x1024xf32>
    %87 = arith.subf %85, %86 : vector<1x1024xf32>
    %cst_37 = arith.constant 0.000000e+00 : f32
    %88 = vector.broadcast %cst_37 : f32 to vector<1x1024xf32>
    %89 = arith.maximumf %87, %88 : vector<1x1024xf32>
    %90 = vector.broadcast %80 : vector<1x1024xf32> to vector<64x1024xf32>
    %91 = arith.subf %76, %90 : vector<64x1024xf32>
    %cst_38 = arith.constant 8.000000e-01 : f32
    %92 = vector.broadcast %cst_38 : f32 to vector<1x1024xf32>
    %93 = arith.addf %89, %92 : vector<1x1024xf32>
    %94 = math.rsqrt %93 : vector<1x1024xf32>
    %95 = vector.broadcast %94 : vector<1x1024xf32> to vector<64x1024xf32>
    %96 = arith.mulf %91, %95 : vector<64x1024xf32>
    %cst_39 = arith.constant 0.000000e+00 : f32
    %97 = vector.broadcast %cst_39 : f32 to vector<64x1024xf32>
    %98 = arith.cmpf ogt, %96, %97 : vector<64x1024xf32>
    %cst_40 = arith.constant 2.000000e-01 : f32
    %99 = vector.broadcast %cst_40 : f32 to vector<64x1024xf32>
    %100 = arith.mulf %99, %96 : vector<64x1024xf32>
    %101 = arith.select %98, %96, %100 : vector<64x1024xi1>, vector<64x1024xf32>
    %c1_i32_41 = arith.constant 1 : i32
    %102 = tpu.memref_slice %arg11[%c1_i32_41] : memref<2x!tpu.dma_semaphore, #tpu.memory_space<semaphore_mem>> -> memref<1x!tpu.dma_semaphore, #tpu.memory_space<semaphore_mem>>
    %103 = tpu.memref_squeeze %102 : memref<1x!tpu.dma_semaphore, #tpu.memory_space<semaphore_mem>> -> memref<!tpu.dma_semaphore, #tpu.memory_space<semaphore_mem>>
    tpu.wait_dma2 semaphore(%103 : memref<!tpu.dma_semaphore, #tpu.memory_space<semaphore_mem>>) src(%arg6 : memref<1024x256xbf16, #tpu.memory_space<any>>) dst(%arg10 : memref<1024x256xbf16, #tpu.memory_space<vmem>>)
    %c0_42 = arith.constant 0 : index
    %c0_43 = arith.constant 0 : index
    %104 = vector.load %arg10[%c0_42, %c0_43] : memref<1024x256xbf16, #tpu.memory_space<vmem>>, vector<1024x256xbf16>
    %c0_44 = arith.constant 0 : index
    %c0_45 = arith.constant 0 : index
    %105 = vector.load %arg7[%c0_44, %c0_45] : memref<1x256xf32, #tpu.memory_space<vmem>>, vector<1x256xf32>
    %106 = arith.truncf %101 : vector<64x1024xf32> to vector<64x1024xbf16>
    %cst_46 = arith.constant dense<0.000000e+00> : vector<64x256xf32>
    %107 = tpu.matmul %106, %104, %cst_46 {dimension_numbers = #tpu.dot_dimension_numbers<[1], [0], [0], [1], [0, 0, 1, 1], [], []>} : vector<64x1024xbf16>, vector<1024x256xbf16>, vector<64x256xf32> -> vector<64x256xf32>
    %108 = vector.broadcast %105 : vector<1x256xf32> to vector<64x256xf32>
    %109 = arith.addf %107, %108 : vector<64x256xf32>
    %110 = math.tanh %109 : vector<64x256xf32>
    %c0_47 = arith.constant 0 : index
    %c0_48 = arith.constant 0 : index
    %111 = vector.load %arg8[%c0_47, %c0_48] : memref<64x256xf32, #tpu.memory_space<vmem>>, vector<64x256xf32>
    tpu.vector_store %arg8[%c0_47, %c0_48], %110 {strides = array<i32>} : memref<64x256xf32, #tpu.memory_space<vmem>>, vector<64x256xf32>,
    return
  }
}

</mosaic_0001>

<bundles_post_ra>
// kernel: tpu_custom_call.1
= control target key start
LH: loop header
LB: loop body
LE: loop exit
PB: predicated region body
PF: predicated region fallthrough
CT: control target
= control target key end

     0   :  { %13 = vsyncpa [#allocation6], 0  ;;  %s10760_s0 = inlined_call_operand.vmem [shape: f32[64,32], index: 0, kind: input, shape index: {}]   ;;  %s10761_s1 = inlined_call_operand.vmem [shape: bf16[32,128], index: 1, kind: input, shape index: {}]   ;;  %s10762_s2 = inlined_call_operand.vmem [shape: f32[1,128], index: 2, kind: input, shape index: {}]   ;;  %s10763_s3 = inlined_call_operand.hbm [shape: bf16[128,256], index: 3, kind: input, shape index: {}]   ;;  %s10764_s4 = inlined_call_operand.hbm [shape: bf16[256,512], index: 4, kind: input, shape index: {}]   ;;  %s10765_s5 = inlined_call_operand.hbm [shape: bf16[512,1024], index: 5, kind: input, shape index: {}]   ;;  %s10766_s6 = inlined_call_operand.hbm [shape: bf16[1024,256], index: 6, kind: input, shape index: {}]   ;;  %s10767_s7 = inlined_call_operand.vmem [shape: f32[1,256], index: 7, kind: input, shape index: {}]   ;;  %s10768_s8 = inlined_call_operand.hbm [shape: f32[64,256], index: 8, kind: output, shape index: {}]  }
   0x1   :  { %14 = vsyncpa [#allocation9], 0 }
   0x2   :  { %15 = vsyncpa [#allocation7], 0  ;;  %s26_s29 = sshll.u32 %s10763_s3, 4  ;;  %s8611_s30 = smov [#allocation5]   ;;  %s27_s29 = int_to_ptr.hbm [resolvable:$true] %s26_s29 }
   0x3   :  { %s28_s9 = sshll.u32 %s8611_s30, 4  ;;  %s39_s12 = sshll.u32 %s10764_s4, 4  ;;  %s29_s9 = int_to_ptr.vmem [resolvable:$true] %s28_s9  ;;  %s40_s12 = int_to_ptr.hbm [resolvable:$true] %s39_s12 }
   0x4   :  { %s8612_s13 = smov 128   ;;  %s8613_s14 = smov 8  }
   0x5   :  { %34 = dma.hbm_to_vmem [thread:$0]  %s27_s29, 2048, %s29_s9, [#allocation6], %s8612_s13, %s8612_s13, %s8613_s14  }
   0x6   :  { %s8614_s15 = smov [#allocation8]   ;;  %s8615_s17 = smov 256  }
   0x7   :  { %s41_s16 = sshll.u32 %s8614_s15, 4  ;;  %s8616_s18 = smov 16   ;;  %s42_s16 = int_to_ptr.vmem [resolvable:$true] %s41_s16 }
   0x8   :  { %47 = dma.hbm_to_vmem [thread:$0]  %s40_s12, 8192, %s42_s16, [#allocation9], %s8615_s17, %s8615_s17, %s8616_s18  }
   0x9   :  { %8601 = dma.done.wait [#allocation6], 2048  }
   0xa   :  { %8602 = vsyncadd [#allocation6], 4294965248 }
   0xb   :  { %8603 = dma.done.wait [#allocation9], 8192  }
   0xc   :  { %8604 = vsyncadd [#allocation9], 4294959104  ;;  %v7927_v0 = vld [vmem:[%s10761_s1 + $0x8] sm:$0xff]  ;;  %v7926_v1 = vld [vmem:[%s10761_s1] sm:$0xff]  ;;  %vm118_vm0 = vcmask 261120   ;;  %s66_s16 = sshll.u32 %s10765_s5, 4  ;;  %s67_s16 = int_to_ptr.hbm [resolvable:$true] %s66_s16 }
   0xd   :  { %137 = vmatpush.bf16.msra.mxu0 %v7927_v0  ;;  %v86_v2 = vld [vmem:[%s10760_s0] sm:$0xff]  ;;  %v87_v3 = vld [vmem:[%s10760_s0 + $0x8] sm:$0xff]  ;;  %v88_v5 = vld [vmem:[%s10760_s0 + $0x10] sm:$0xff]  ;;  %s8618_s3 = smov [#allocation2]   ;;  %s80_s21 = sshll.u32 %s10766_s6, 4  ;;  %s81_s21 = int_to_ptr.hbm [resolvable:$true] %s80_s21 }
   0xe   :  { %v99_v4 = vpack.c.bf16 %v87_v3, %v86_v2  ;;  %v89_v6 = vld [vmem:[%s10760_s0 + $0x18] sm:$0xff]  ;;  %v6126_v8 = vld [vmem:[#allocation5 + $0x70] sm:$0xf]  ;;  %v7942_v10 = vld [vmem:[#allocation5 + $0x74] sm:$0xf]  ;;  %s68_s19 = sshll.u32 %s8618_s3, 4  ;;  %s69_s19 = int_to_ptr.vmem [resolvable:$true] %s68_s19 }
   0xf   :  { %v100_v7 = vpack.c.bf16 %v89_v6, %v88_v5  ;;  %v7943_v9 = vld [vmem:[#allocation5 + $0x74] sm:$0xf0]  ;;  %v6128_v12 = vld [vmem:[#allocation5 + $0x78] sm:$0xf0]  ;;  %v6118_v13 = vld [vmem:[#allocation5 + $0x60] sm:$0xf] }
  0x10   :  { %v6127_v11 = vor.u32 %v7943_v9, %v6126_v8  ;;  %v7941_v14 = vld [vmem:[#allocation5 + $0x64] sm:$0xf0]  ;;  %v6131_v15 = vor.u32 %v7942_v10, %v6128_v12  ;;  %v7940_v16 = vld [vmem:[#allocation5 + $0x64] sm:$0xf]  ;;  %v6120_v17 = vld [vmem:[#allocation5 + $0x68] sm:$0xf0] }
  0x11   :  { %138 = vmatpush.bf16.msra.mxu0 %v7926_v1  ;;  %v6119_v18 = vor.u32 %v7941_v14, %v6118_v13  ;;  %v6123_v19 = vor.u32 %v7940_v16, %v6120_v17  ;;  %v6110_v20 = vld [vmem:[#allocation5 + $0x50] sm:$0xf]  ;;  %v7939_v21 = vld [vmem:[#allocation5 + $0x54] sm:$0xf0]  ;;  %v7938_v22 = vld [vmem:[#allocation5 + $0x54] sm:$0xf] }
  0x12   :  { %284 = vmatpush.bf16.msra.mxu1 %v6127_v11  ;;  %8392 = vmatpush.bf16.msra.mxu3 %v6127_v11  ;;  %v6112_v23 = vld [vmem:[#allocation5 + $0x58] sm:$0xf0]  ;;  %v6111_v24 = vor.u32 %v7939_v21, %v6110_v20  ;;  %v90_v25 = vld [vmem:[%s10760_s0 + $0x20] sm:$0xff]  ;;  %v7937_v28 = vld [vmem:[#allocation5 + $0x44] sm:$0xf0]  ;;  %s8619_s5 = smov [#allocation3]  }
  0x13   :  { %313 = vmatpush.bf16.msra.mxu2 %v6131_v15  ;;  %v6115_v26 = vor.u32 %v7938_v22, %v6112_v23  ;;  %v6102_v27 = vld [vmem:[#allocation5 + $0x40] sm:$0xf]  ;;  %v91_v29 = vld [vmem:[%s10760_s0 + $0x28] sm:$0xff]  ;;  %v7936_v30 = vld [vmem:[#allocation5 + $0x44] sm:$0xf]  ;;  %s82_s22 = sshll.u32 %s8619_s5, 4  ;;  %s83_s22 = int_to_ptr.vmem [resolvable:$true] %s82_s22 }
  0x14   :  { %6064 = vmatmul.msk.bf16.vlgmr.msra.gmra.mxu0 %vm118_vm0, %v99_v4  ;;  %v6104_v31 = vld [vmem:[#allocation5 + $0x48] sm:$0xf0]  ;;  %v6103_v32 = vor.u32 %v7937_v28, %v6102_v27  ;;  %v101_v33 = vpack.c.bf16 %v91_v29, %v90_v25  ;;  %v92_v35 = vld [vmem:[%s10760_s0 + $0x30] sm:$0xff]  ;;  %v93_v36 = vld [vmem:[%s10760_s0 + $0x38] sm:$0xff]  ;;  %71 = dma.hbm_to_vmem [thread:$0]  %s67_s16, 32768, %s69_s19, [#allocation4] }
  0x15   :  { %v6107_v34 = vor.u32 %v7936_v30, %v6104_v31  ;;  %v102_v37 = vpack.c.bf16 %v93_v36, %v92_v35  ;;  %v6094_v38 = vld [vmem:[#allocation5 + $0x30] sm:$0xf]  ;;  %v7935_v39 = vld [vmem:[#allocation5 + $0x34] sm:$0xf0]  ;;  %v7934_v40 = vld [vmem:[#allocation5 + $0x34] sm:$0xf] }
  0x16   :  { %285 = vmatpush.bf16.msra.mxu1 %v6119_v18  ;;  %8393 = vmatpush.bf16.msra.mxu3 %v6119_v18  ;;  %v6095_v41 = vor.u32 %v7935_v39, %v6094_v38  ;;  %v6096_v42 = vld [vmem:[#allocation5 + $0x38] sm:$0xf0]  ;;  %v6086_v44 = vld [vmem:[#allocation5 + $0x20] sm:$0xf]  ;;  %v7933_v45 = vld [vmem:[#allocation5 + $0x24] sm:$0xf0] }
  0x17   :  { %314 = vmatpush.bf16.msra.mxu2 %v6123_v19  ;;  %v6099_v43 = vor.u32 %v7934_v40, %v6096_v42  ;;  %v7932_v46 = vld [vmem:[#allocation5 + $0x24] sm:$0xf]  ;;  %v6087_v47 = vor.u32 %v7933_v45, %v6086_v44  ;;  %v6088_v48 = vld [vmem:[#allocation5 + $0x28] sm:$0xf0]  ;;  %v6078_v50 = vld [vmem:[#allocation5 + $0x10] sm:$0xf] }
  0x18   :  { %v6091_v49 = vor.u32 %v7932_v46, %v6088_v48  ;;  %v7931_v51 = vld [vmem:[#allocation5 + $0x14] sm:$0xf0]  ;;  %v7930_v52 = vld [vmem:[#allocation5 + $0x14] sm:$0xf]  ;;  %v6080_v54 = vld [vmem:[#allocation5 + $0x18] sm:$0xf0] }
  0x19   :  { %v6079_v53 = vor.u32 %v7931_v51, %v6078_v50  ;;  %v6083_v55 = vor.u32 %v7930_v52, %v6080_v54  ;;  %v6070_v56 = vld [vmem:[#allocation5] sm:$0xf]  ;;  %v7929_v57 = vld [vmem:[#allocation5 + $0x4] sm:$0xf0]  ;;  %v7928_v58 = vld [vmem:[#allocation5 + $0x4] sm:$0xf] }
  0x1a   :  { %286 = vmatpush.bf16.msra.mxu1 %v6111_v24  ;;  %8394 = vmatpush.bf16.msra.mxu3 %v6111_v24  ;;  %v6071_v59 = vor.u32 %v7929_v57, %v6070_v56  ;;  %v6072_v60 = vld [vmem:[#allocation5 + $0x8] sm:$0xf0]  ;;  %v8418_v63 = vld [vmem:[%s10762_s2] ss:$0 sm:$0xff]  ;;  %v8004_v38 = vld [vmem:[#allocation8 + $0x1e4] sm:$0xf] }
  0x1b   :  { %315 = vmatpush.bf16.msra.mxu2 %v6115_v26  ;;  %v6075_v61 = vor.u32 %v7928_v58, %v6072_v60  ;;  %v6376_v39 = vld [vmem:[#allocation8 + $0x1f0] sm:$0xf0]  ;;  %v6374_v42 = vld [vmem:[#allocation8 + $0x1e0] sm:$0xf]  ;;  %v8000_v44 = vld [vmem:[#allocation8 + $0x1c4] sm:$0xf] }
  0x1c   :  { %v6379_v40 = vor.u32 %v8004_v38, %v6376_v39  ;;  %v6360_v46 = vld [vmem:[#allocation8 + $0x1d0] sm:$0xf0]  ;;  %v6246_v58 = vld [vmem:[#allocation8 + $0xe0] sm:$0xf]  ;;  %v7972_v60 = vld [vmem:[#allocation8 + $0xe4] sm:$0xf] }
  0x1d   :  { %v6363_v48 = vor.u32 %v8000_v44, %v6360_v46  ;;  %v6344_v38 = vld [vmem:[#allocation8 + $0x1b0] sm:$0xf0]  ;;  %v6342_v39 = vld [vmem:[#allocation8 + $0x1a0] sm:$0xf]  ;;  %85 = dma.hbm_to_vmem [thread:$0]  %s81_s21, 16384, %s83_s22, [#allocation4 + $0x1] }
  0x1e   :  { %287 = vmatpush.bf16.msra.mxu1 %v6103_v32  ;;  %8395 = vmatpush.bf16.msra.mxu3 %v6103_v32  ;;  %v6214_v46 = vld [vmem:[#allocation8 + $0xa0] sm:$0xf] }
  0x1f   :  { %316 = vmatpush.bf16.msra.mxu2 %v6107_v34 }
  0x22   :  { %288 = vmatpush.bf16.msra.mxu1 %v6095_v41  ;;  %8396 = vmatpush.bf16.msra.mxu3 %v6095_v41 }
  0x23   :  { %317 = vmatpush.bf16.msra.mxu2 %v6099_v43  ;;  %v8006_v43 = vld [vmem:[#allocation8 + $0x1ec] sm:$0xf0] }
  0x24   :  { %6065 = vmatmul.msk.bf16.gmra.mxu0 %vm118_vm0, %v100_v7  ;;  %v6375_v45 = vor.u32 %v8006_v43, %v6374_v42 }
  0x26   :  { %289 = vmatpush.bf16.msra.mxu1 %v6087_v47  ;;  %8397 = vmatpush.bf16.msra.mxu3 %v6087_v47 }
  0x27   :  { %318 = vmatpush.bf16.msra.mxu2 %v6091_v49  ;;  %950 = vmatpush.bf16.msrb.mxu0 %v6375_v45  ;;  %v7998_v45 = vld [vmem:[#allocation8 + $0x1ac] sm:$0xf0] }
  0x2a   :  { %290 = vmatpush.bf16.msra.mxu1 %v6079_v53  ;;  %8398 = vmatpush.bf16.msra.mxu3 %v6079_v53  ;;  %v8617_v53 = vmov 64.0  }
  0x2b   :  { %319 = vmatpush.bf16.msra.mxu2 %v6083_v55  ;;  %8419 = vrcp.f32 %v8617_v53 }
  0x2e   :  { %291 = vmatpush.bf16.msra.mxu1 %v6071_v59  ;;  %8399 = vmatpush.bf16.msra.mxu3 %v6071_v59  ;;  %v7974_v59 = vld [vmem:[#allocation8 + $0xec] sm:$0xf0] }
  0x2f   :  { %320 = vmatpush.bf16.msra.mxu2 %v6075_v61 }
  0x33   :  { %1008 = vmatpush.bf16.msrb.mxu2 %v6379_v40 }
  0x34   :  { %6066 = vmatmul.msk.bf16.gmra.mxu0 %vm118_vm0, %v101_v33 }
  0x37   :  { %1009 = vmatpush.bf16.msrb.mxu2 %v6363_v48  ;;  %v7966_v48 = vld [vmem:[#allocation8 + $0xac] sm:$0xf0] }
  0x44   :  { %6067 = vmatmul.msk.bf16.gmra.mxu0 %vm118_vm0, %v102_v37 }
  0x91   :  { %v140_v62 = vpop.f32.mrf.mxu0 }
  0x92   :  { %v141_v0 = vadd.f32 %v8418_v63, %v140_v62 }
  0x94   :  { %v168_v2 = vmul.f32 0.2, %v141_v0  ;;  %vm160_vm1 = vcmp.gt.f32.partialorder %v141_v0, 0.0 }
  0x96   :  { %v176_v5 = vsel %vm160_vm1, %v141_v0, %v168_v2  ;;  %v6247_v0 = vor.u32 %v7974_v59, %v6246_v58  ;;  %v6215_v58 = vor.u32 %v7966_v48, %v6214_v46  ;;  %v7964_v59 = vld [vmem:[#allocation8 + $0xa4] sm:$0xf] }
  0x97   :  { %v7956_v48 = vld [vmem:[#allocation8 + $0x64] sm:$0xf] }
  0x98   :  { %921 = vmatpush.bf16.msrb.mxu3 %v6247_v0 }
  0x99   :  { %v142_v1 = vpop.f32.mrf.mxu0 }
  0x9a   :  { %v143_v3 = vadd.f32 %v8418_v63, %v142_v1  ;;  %v6248_v1 = vld [vmem:[#allocation8 + $0xf0] sm:$0xf0] }
  0x9c   :  { %v169_v4 = vmul.f32 0.2, %v143_v3  ;;  %vm161_vm2 = vcmp.gt.f32.partialorder %v143_v3, 0.0 }
  0x9e   :  { %v177_v6 = vsel %vm161_vm2, %v143_v3, %v169_v4  ;;  %v6251_v4 = vor.u32 %v7972_v60, %v6248_v1  ;;  %v6216_v60 = vld [vmem:[#allocation8 + $0xb0] sm:$0xf0] }
  0x9f   :  { %v200_v7 = vpack.c.bf16 %v177_v6, %v176_v5  ;;  %v6219_v1 = vor.u32 %v7964_v59, %v6216_v60 }
  0xa0   :  { %979 = vmatpush.bf16.msrb.mxu1 %v6251_v4  ;;  %v7992_v4 = vld [vmem:[#allocation8 + $0x184] sm:$0xf] }
  0xa1   :  { %v145_v8 = vpop.f32.mrf.mxu0  ;;  %292 = vmatmul.bf16.vlgmr.msra.gmra.mxu1 %v200_v7  ;;  %321 = vmatmul.bf16.vlgmr.msra.gmra.mxu2 %v200_v7 }
  0xa2   :  { %v146_v9 = vadd.f32 %v8418_v63, %v145_v8  ;;  %v8752_v8 = vpop.eup %8419 }
  0xa3   :  { %vm373_vm9 = vweird.f32 %v8752_v8 }
  0xa4   :  { %v170_v11 = vmul.f32 0.2, %v146_v9  ;;  %vm162_vm3 = vcmp.gt.f32.partialorder %v146_v9, 0.0 }
  0xa6   :  { %v178_v14 = vsel %vm162_vm3, %v146_v9, %v170_v11 }
  0xa9   :  { %v147_v10 = vpop.f32.mrf.mxu0 }
  0xaa   :  { %v148_v12 = vadd.f32 %v8418_v63, %v147_v10 }
  0xac   :  { %v171_v13 = vmul.f32 0.2, %v148_v12  ;;  %vm163_vm4 = vcmp.gt.f32.partialorder %v148_v12, 0.0 }
  0xae   :  { %v179_v15 = vsel %vm163_vm4, %v148_v12, %v171_v13  ;;  %v6358_v12 = vld [vmem:[#allocation8 + $0x1c0] sm:$0xf]  ;;  %v8002_v13 = vld [vmem:[#allocation8 + $0x1cc] sm:$0xf0] }
  0xaf   :  { %v201_v16 = vpack.c.bf16 %v179_v15, %v178_v14  ;;  %v6230_v14 = vld [vmem:[#allocation8 + $0xc0] sm:$0xf] }
  0xb1   :  { %v150_v17 = vpop.f32.mrf.mxu0  ;;  %297 = vmatmul.bf16.gmra.mxu1 %v201_v16  ;;  %326 = vmatmul.bf16.gmra.mxu2 %v201_v16 }
  0xb2   :  { %v151_v18 = vadd.f32 %v8418_v63, %v150_v17 }
  0xb4   :  { %v172_v20 = vmul.f32 0.2, %v151_v18  ;;  %vm164_vm5 = vcmp.gt.f32.partialorder %v151_v18, 0.0 }
  0xb6   :  { %v180_v23 = vsel %vm164_vm5, %v151_v18, %v172_v20  ;;  %v6359_v18 = vor.u32 %v8002_v13, %v6358_v12  ;;  %v7968_v20 = vld [vmem:[#allocation8 + $0xc4] sm:$0xf]  ;;  %v6198_v12 = vld [vmem:[#allocation8 + $0x80] sm:$0xf]  ;;  %v7962_v13 = vld [vmem:[#allocation8 + $0x8c] sm:$0xf0] }
  0xb8   :  { %951 = vmatpush.bf16.msrb.mxu0 %v6359_v18  ;;  %v7960_v18 = vld [vmem:[#allocation8 + $0x84] sm:$0xf] }
  0xb9   :  { %v152_v19 = vpop.f32.mrf.mxu0 }
  0xba   :  { %v153_v21 = vadd.f32 %v8418_v63, %v152_v19  ;;  %v7970_v19 = vld [vmem:[#allocation8 + $0xcc] sm:$0xf0] }
  0xbc   :  { %v173_v22 = vmul.f32 0.2, %v153_v21  ;;  %vm165_vm6 = vcmp.gt.f32.partialorder %v153_v21, 0.0 }
  0xbe   :  { %v181_v24 = vsel %vm165_vm6, %v153_v21, %v173_v22  ;;  %v6232_v21 = vld [vmem:[#allocation8 + $0xd0] sm:$0xf0] }
  0xbf   :  { %v202_v25 = vpack.c.bf16 %v181_v24, %v180_v23  ;;  %v6231_v24 = vor.u32 %v7970_v19, %v6230_v14  ;;  %v6200_v19 = vld [vmem:[#allocation8 + $0x90] sm:$0xf0] }
  0xc1   :  { %v155_v26 = vpop.f32.mrf.mxu0  ;;  %302 = vmatmul.bf16.vlgmr.msra.gmra.mxu3 %v202_v25  ;;  %331 = vmatmul.bf16.gmra.mxu2 %v202_v25  ;;  %v6235_v25 = vor.u32 %v7968_v20, %v6232_v21 }
  0xc2   :  { %v156_v27 = vadd.f32 %v8418_v63, %v155_v26  ;;  %922 = vmatpush.bf16.msrb.mxu3 %v6231_v24 }
  0xc3   :  { %980 = vmatpush.bf16.msrb.mxu1 %v6235_v25  ;;  %v6203_v25 = vor.u32 %v7960_v18, %v6200_v19 }
  0xc4   :  { %v174_v29 = vmul.f32 0.2, %v156_v27  ;;  %vm166_vm7 = vcmp.gt.f32.partialorder %v156_v27, 0.0 }
  0xc6   :  { %v182_v32 = vsel %vm166_vm7, %v156_v27, %v174_v29  ;;  %923 = vmatpush.bf16.msrb.mxu3 %v6215_v58 }
  0xc7   :  { %981 = vmatpush.bf16.msrb.mxu1 %v6219_v1  ;;  %v7984_v1 = vld [vmem:[#allocation8 + $0x144] sm:$0xf] }
  0xc9   :  { %v157_v28 = vpop.f32.mrf.mxu0 }
  0xca   :  { %v158_v30 = vadd.f32 %v8418_v63, %v157_v28 }
  0xcb   :  { %982 = vmatpush.bf16.msrb.mxu1 %v6203_v25  ;;  %v6280_v25 = vld [vmem:[#allocation8 + $0x130] sm:$0xf0] }
  0xcc   :  { %v175_v31 = vmul.f32 0.2, %v158_v30  ;;  %vm167_vm8 = vcmp.gt.f32.partialorder %v158_v30, 0.0 }
  0xce   :  { %v183_v33 = vsel %vm167_vm8, %v158_v30, %v175_v31  ;;  %v8770_v30 = vmul.f32 64.0, %v8752_v8 }
  0xcf   :  { %v203_v34 = vpack.c.bf16 %v183_v33, %v182_v32 }
  0xd1   :  { %307 = vmatmul.bf16.gmra.mxu3 %v203_v34  ;;  %336 = vmatmul.bf16.gmra.mxu2 %v203_v34  ;;  %v7996_v34 = vld [vmem:[#allocation8 + $0x1a4] sm:$0xf] }
  0xd2   :  { %v6347_v44 = vor.u32 %v7996_v34, %v6344_v38  ;;  %v6312_v34 = vld [vmem:[#allocation8 + $0x170] sm:$0xf0]  ;;  %v6310_v38 = vld [vmem:[#allocation8 + $0x160] sm:$0xf] }
  0xd4   :  { %1010 = vmatpush.bf16.msrb.mxu2 %v6347_v44 }
 0x11e   :  { %v8716_v37 = vpop.f32.mrf.mxu1 }
 0x11f   :  { %v377_v61 = vmul.f32 %v8716_v37, %v8716_v37 }
 0x124   :  { %v8712_v35 = vpop.f32.mrf.mxu2 }
 0x125   :  { %v378_v2 = vmul.f32 %v8712_v35, %v8712_v35 }
 0x126   :  { %v8720_v47 = vpop.f32.mrf.mxu1 }
 0x127   :  { %v379_v54 = vmul.f32 %v8720_v47, %v8720_v47  ;;  %v342_v5 = vadd.f32 %v8720_v47, %v8716_v37 }
 0x129   :  { %v393_v6 = vadd.f32 %v379_v54, %v377_v61 }
 0x12c   :  { %v8714_v36 = vpop.f32.mrf.mxu2 }
 0x12d   :  { %v380_v57 = vmul.f32 %v8714_v36, %v8714_v36  ;;  %v355_v7 = vadd.f32 %v8714_v36, %v8712_v35 }
 0x12e   :  { %v8724_v50 = vpop.f32.mrf.mxu1 }
 0x12f   :  { %v381_v62 = vmul.f32 %v8724_v50, %v8724_v50  ;;  %v406_v9 = vadd.f32 %v380_v57, %v378_v2  ;;  %v343_v15 = vadd.f32 %v342_v5, %v8724_v50  ;;  %v6343_v57 = vor.u32 %v7998_v45, %v6342_v39  ;;  %v6328_v5 = vld [vmem:[#allocation8 + $0x190] sm:$0xf0] }
 0x131   :  { %v394_v16 = vadd.f32 %v393_v6, %v381_v62  ;;  %952 = vmatpush.bf16.msrb.mxu0 %v6343_v57  ;;  %v6326_v6 = vld [vmem:[#allocation8 + $0x180] sm:$0xf] }
 0x134   :  { %v8718_v41 = vpop.f32.mrf.mxu2 }
 0x135   :  { %v382_v3 = vmul.f32 %v8718_v41, %v8718_v41  ;;  %v356_v17 = vadd.f32 %v355_v7, %v8718_v41 }
 0x136   :  { %v8742_v63 = vpop.f32.mrf.mxu1 }
 0x137   :  { %v383_v10 = vmul.f32 %v8742_v63, %v8742_v63  ;;  %v407_v22 = vadd.f32 %v406_v9, %v382_v3  ;;  %v344_v26 = vadd.f32 %v343_v15, %v8742_v63 }
 0x139   :  { %v395_v31 = vadd.f32 %v394_v16, %v383_v10  ;;  %v6331_v10 = vor.u32 %v7992_v4, %v6328_v5  ;;  %v6294_v4 = vld [vmem:[#allocation8 + $0x140] sm:$0xf]  ;;  %v7986_v5 = vld [vmem:[#allocation8 + $0x14c] sm:$0xf0] }
 0x13b   :  { %1011 = vmatpush.bf16.msrb.mxu2 %v6331_v10 }
 0x13c   :  { %v8722_v49 = vpop.f32.mrf.mxu2 }
 0x13d   :  { %v384_v11 = vmul.f32 %v8722_v49, %v8722_v49  ;;  %v357_v32 = vadd.f32 %v356_v17, %v8722_v49  ;;  %v6199_v17 = vor.u32 %v7962_v13, %v6198_v12  ;;  %v7954_v12 = vld [vmem:[#allocation8 + $0x4c] sm:$0xf0]  ;;  %v7952_v13 = vld [vmem:[#allocation8 + $0x44] sm:$0xf] }
 0x13f   :  { %v408_v33 = vadd.f32 %v407_v22, %v384_v11  ;;  %v7994_v11 = vld [vmem:[#allocation8 + $0x18c] sm:$0xf0]  ;;  %924 = vmatpush.bf16.msrb.mxu3 %v6199_v17  ;;  %v6168_v17 = vld [vmem:[#allocation8 + $0x50] sm:$0xf0] }
 0x140   :  { %v6327_v16 = vor.u32 %v7994_v11, %v6326_v6  ;;  %v6166_v6 = vld [vmem:[#allocation8 + $0x40] sm:$0xf] }
 0x142   :  { %953 = vmatpush.bf16.msrb.mxu0 %v6327_v16  ;;  %v6167_v16 = vor.u32 %v7954_v12, %v6166_v6  ;;  %v7944_v6 = vld [vmem:[#allocation8 + $0x4] sm:$0xf] }
 0x144   :  { %v8726_v51 = vpop.f32.mrf.mxu3  ;;  %v8728_v52 = vpop.f32.mrf.mxu2 }
 0x145   :  { %v385_v23 = vmul.f32 %v8726_v51, %v8726_v51  ;;  %v386_v27 = vmul.f32 %v8728_v52, %v8728_v52  ;;  %v345_v40 = vadd.f32 %v344_v26, %v8726_v51  ;;  %v358_v54 = vadd.f32 %v357_v32, %v8728_v52 }
 0x147   :  { %v396_v53 = vadd.f32 %v395_v31, %v385_v23  ;;  %v409_v61 = vadd.f32 %v408_v33, %v386_v27  ;;  %v370_v23 = vsub.f32 1.0, %v8770_v30  ;;  %v7988_v33 = vld [vmem:[#allocation8 + $0x164] sm:$0xf]  ;;  %v7990_v30 = vld [vmem:[#allocation8 + $0x16c] sm:$0xf0] }
 0x148   :  { %v6315_v39 = vor.u32 %v7988_v33, %v6312_v34  ;;  %v6311_v57 = vor.u32 %v7990_v30, %v6310_v38  ;;  %v6150_v33 = vld [vmem:[#allocation8 + $0x20] sm:$0xf] }
 0x14a   :  { %1012 = vmatpush.bf16.msrb.mxu2 %v6315_v39  ;;  %954 = vmatpush.bf16.msrb.mxu0 %v6311_v57 }
 0x14c   :  { %v8732_v55 = vpop.f32.mrf.mxu3  ;;  %v8734_v56 = vpop.f32.mrf.mxu2 }
 0x14d   :  { %v387_v42 = vmul.f32 %v8732_v55, %v8732_v55  ;;  %v388_v43 = vmul.f32 %v8734_v56, %v8734_v56  ;;  %v346_v2 = vadd.f32 %v345_v40, %v8732_v55  ;;  %v359_v3 = vadd.f32 %v358_v54, %v8734_v56  ;;  %v6182_v40 = vld [vmem:[#allocation8 + $0x60] sm:$0xf] }
 0x14e   :  { %v371_v54 = vmul.f32 %v8752_v8, %v370_v23  ;;  %v7980_v23 = vld [vmem:[#allocation8 + $0x124] sm:$0xf] }
 0x14f   :  { %v397_v7 = vadd.f32 %v396_v53, %v387_v42  ;;  %v410_v9 = vadd.f32 %v409_v61, %v388_v43  ;;  %v7958_v42 = vld [vmem:[#allocation8 + $0x6c] sm:$0xf0]  ;;  %v6184_v53 = vld [vmem:[#allocation8 + $0x70] sm:$0xf0] }
 0x150   :  { %v6183_v58 = vor.u32 %v7958_v42, %v6182_v40  ;;  %v6187_v59 = vor.u32 %v7956_v48, %v6184_v53  ;;  %v7950_v40 = vld [vmem:[#allocation8 + $0x2c] sm:$0xf0]  ;;  %v7948_v42 = vld [vmem:[#allocation8 + $0x24] sm:$0xf] }
 0x152   :  { %925 = vmatpush.bf16.msrb.mxu3 %v6183_v58  ;;  %983 = vmatpush.bf16.msrb.mxu1 %v6187_v59  ;;  %v7976_v58 = vld [vmem:[#allocation8 + $0x104] sm:$0xf]  ;;  %v6264_v59 = vld [vmem:[#allocation8 + $0x110] sm:$0xf0] }
 0x154   :  { %v8765_v28 = vpop.f32.mrf.mxu3  ;;  %v8767_v29 = vpop.f32.mrf.mxu2 }
 0x155   :  { %v389_v62 = vmul.f32 %v8765_v28, %v8765_v28  ;;  %v390_v0 = vmul.f32 %v8767_v29, %v8767_v29  ;;  %v347_v14 = vadd.f32 %v346_v2, %v8765_v28  ;;  %v360_v15 = vadd.f32 %v359_v3, %v8767_v29  ;;  %v6296_v2 = vld [vmem:[#allocation8 + $0x150] sm:$0xf0] }
 0x156   :  { %v6299_v3 = vor.u32 %v7984_v1, %v6296_v2  ;;  %926 = vmatpush.bf16.msrb.mxu3 %v6167_v16  ;;  %v6262_v1 = vld [vmem:[#allocation8 + $0x100] sm:$0xf] }
 0x157   :  { %v398_v20 = vadd.f32 %v397_v7, %v389_v62  ;;  %v411_v21 = vadd.f32 %v410_v9, %v390_v0 }
 0x158   :  { %1013 = vmatpush.bf16.msrb.mxu2 %v6299_v3 }
 0x15c   :  { %v8787_v22 = vpop.f32.mrf.mxu3  ;;  %v8790_v24 = vpop.f32.mrf.mxu2 }
 0x15d   :  { %v348_v26 = vadd.f32 %v347_v14, %v8787_v22  ;;  %v391_v27 = vmul.f32 %v8787_v22, %v8787_v22  ;;  %v361_v31 = vadd.f32 %v360_v15, %v8790_v24  ;;  %v392_v32 = vmul.f32 %v8790_v24, %v8790_v24 }
 0x15e   :  { %v372_v14 = vadd.f32 %v8752_v8, %v371_v54  ;;  %v6295_v15 = vor.u32 %v7986_v5, %v6294_v4  ;;  %v7978_v5 = vld [vmem:[#allocation8 + $0x10c] sm:$0xf0] }
 0x15f   :  { %v349_v43 = vrot.slane %v348_v26, 4  ;;  %v399_v44 = vadd.f32 %v398_v20, %v391_v27  ;;  %v362_v45 = vrot.slane %v361_v31, 4  ;;  %v412_v46 = vadd.f32 %v411_v21, %v392_v32  ;;  %v7982_v32 = vld [vmem:[#allocation8 + $0x12c] sm:$0xf0] }
 0x160   :  { %955 = vmatpush.bf16.msrb.mxu0 %v6295_v15  ;;  %v6171_v27 = vor.u32 %v7952_v13, %v6168_v17 }
 0x161   :  { %v350_v60 = vadd.f32 %v349_v43, %v348_v26  ;;  %v400_v61 = vrot.slane %v399_v44, 4  ;;  %v363_v62 = vadd.f32 %v362_v45, %v361_v31  ;;  %v413_v0 = vrot.slane %v412_v46, 4  ;;  %v6278_v31 = vld [vmem:[#allocation8 + $0x120] sm:$0xf] }
 0x162   :  { %v6283_v26 = vor.u32 %v7980_v23, %v6280_v25  ;;  %v8804_v43 = vsel %vm373_vm9, %v8752_v8, %v372_v14  ;;  %984 = vmatpush.bf16.msrb.mxu1 %v6171_v27  ;;  %v6151_v45 = vor.u32 %v7950_v40, %v6150_v33  ;;  %v8005_v25 = vld [vmem:[#allocation8 + $0x1ec] sm:$0xf]  ;;  %v8007_v33 = vld [vmem:[#allocation8 + $0x1f4] sm:$0xf0] }
 0x163   :  { %v351_v7 = vrot.slane %v350_v60, 2  ;;  %v401_v9 = vadd.f32 %v400_v61, %v399_v44  ;;  %v364_v10 = vrot.slane %v363_v62, 2  ;;  %v414_v11 = vadd.f32 %v413_v0, %v412_v46  ;;  %v6152_v46 = vld [vmem:[#allocation8 + $0x30] sm:$0xf0]  ;;  %v7946_v0 = vld [vmem:[#allocation8 + $0xc] sm:$0xf0] }
 0x164   :  { %1014 = vmatpush.bf16.msrb.mxu2 %v6283_v26  ;;  %v6279_v44 = vor.u32 %v7982_v32, %v6278_v31  ;;  %927 = vmatpush.bf16.msrb.mxu3 %v6151_v45  ;;  %v6155_v61 = vor.u32 %v7948_v42, %v6152_v46  ;;  %v6384_v26 = vld [vmem:[#allocation8 + $0x1f8] sm:$0xf0]  ;;  %v6382_v32 = vld [vmem:[#allocation8 + $0x1e8] sm:$0xf]  ;;  %v7973_v40 = vld [vmem:[#allocation8 + $0xec] sm:$0xf] }
 0x165   :  { %v352_v18 = vadd.f32 %v351_v7, %v350_v60  ;;  %v402_v19 = vrot.slane %v401_v9, 2  ;;  %v365_v20 = vadd.f32 %v364_v10, %v363_v62  ;;  %v415_v21 = vrot.slane %v414_v11, 2  ;;  %v6134_v62 = vld [vmem:[#allocation8] sm:$0xf]  ;;  %v6136_v7 = vld [vmem:[#allocation8 + $0x10] sm:$0xf0] }
 0x166   :  { %956 = vmatpush.bf16.msrb.mxu0 %v6279_v44  ;;  %v6267_v60 = vor.u32 %v7976_v58, %v6264_v59  ;;  %985 = vmatpush.bf16.msrb.mxu1 %v6155_v61  ;;  %v6263_v10 = vor.u32 %v7978_v5, %v6262_v1  ;;  %v6387_v31 = vor.u32 %v8005_v25, %v6384_v26  ;;  %v6256_v42 = vld [vmem:[#allocation8 + $0xf8] sm:$0xf0]  ;;  %v6238_v45 = vld [vmem:[#allocation8 + $0xc8] sm:$0xf]  ;;  %v7971_v46 = vld [vmem:[#allocation8 + $0xd4] sm:$0xf0] }
 0x167   :  { %v353_v34 = vrot.slane %v352_v18, 1  ;;  %v403_v38 = vadd.f32 %v402_v19, %v401_v9  ;;  %v366_v39 = vrot.slane %v365_v20, 1  ;;  %v416_v30 = vadd.f32 %v415_v21, %v414_v11  ;;  %v6254_v19 = vld [vmem:[#allocation8 + $0xe8] sm:$0xf]  ;;  %v8003_v58 = vld [vmem:[#allocation8 + $0x1d4] sm:$0xf0] }
 0x168   :  { %1015 = vmatpush.bf16.msrb.mxu2 %v6267_v60  ;;  %v6135_v9 = vor.u32 %v7946_v0, %v6134_v62  ;;  %v6139_v11 = vor.u32 %v7944_v6, %v6136_v7  ;;  %v6259_v44 = vor.u32 %v7973_v40, %v6256_v42  ;;  %v7969_v61 = vld [vmem:[#allocation8 + $0xcc] sm:$0xf]  ;;  %v6240_v62 = vld [vmem:[#allocation8 + $0xd8] sm:$0xf0]  ;;  %v7999_v25 = vld [vmem:[#allocation8 + $0x1b4] sm:$0xf0] }
 0x169   :  { %v354_v48 = vadd.f32 %v353_v34, %v352_v18  ;;  %v404_v53 = vrot.slane %v403_v38, 1  ;;  %v367_v54 = vadd.f32 %v366_v39, %v365_v20  ;;  %v417_v57 = vrot.slane %v416_v30, 1  ;;  %v7975_v20 = vld [vmem:[#allocation8 + $0xf4] sm:$0xf0] }
 0x16a   :  { %928 = vmatpush.bf16.msrb.mxu3 %v6135_v9  ;;  %957 = vmatpush.bf16.msrb.mxu0 %v6263_v10  ;;  %v6255_v23 = vor.u32 %v7975_v20, %v6254_v19  ;;  %v6243_v0 = vor.u32 %v7969_v61, %v6240_v62 }
 0x16b   :  { %v8807_v8 = vmul.f32 %v8804_v43, %v354_v48  ;;  %v405_v2 = vadd.f32 %v404_v53, %v403_v38  ;;  %v8810_v3 = vmul.f32 %v8804_v43, %v367_v54  ;;  %v418_v4 = vadd.f32 %v417_v57, %v416_v30  ;;  %986 = vmatpush.bf16.msrb.mxu1 %v6139_v11  ;;  %v8001_v48 = vld [vmem:[#allocation8 + $0x1cc] sm:$0xf]  ;;  %v6368_v54 = vld [vmem:[#allocation8 + $0x1d8] sm:$0xf0]  ;;  %v6366_v57 = vld [vmem:[#allocation8 + $0x1c8] sm:$0xf] }
 0x16c   :  { %v6383_v30 = vor.u32 %v8007_v33, %v6382_v32  ;;  %1124 = vmatpush.bf16.msra.mxu2 %v6387_v31  ;;  %v6239_v53 = vor.u32 %v7971_v46, %v6238_v45  ;;  %v6371_v59 = vor.u32 %v8001_v48, %v6368_v54  ;;  %v6367_v60 = vor.u32 %v8003_v58, %v6366_v57  ;;  %v7965_v32 = vld [vmem:[#allocation8 + $0xac] sm:$0xf]  ;;  %v6224_v33 = vld [vmem:[#allocation8 + $0xb8] sm:$0xf0] }
 0x16d   :  { %v419_v12 = vmul.f32 %v405_v2, %v8804_v43  ;;  %v421_v13 = vmul.f32 %v8807_v8, %v8807_v8  ;;  %v420_v14 = vmul.f32 %v418_v4, %v8804_v43  ;;  %v422_v15 = vmul.f32 %v8810_v3, %v8810_v3  ;;  %v7993_v45 = vld [vmem:[#allocation8 + $0x18c] sm:$0xf]  ;;  %v6336_v46 = vld [vmem:[#allocation8 + $0x198] sm:$0xf0] }
 0x16e   :  { %v439_v34 = vsub.f32 %v8765_v28, %v8807_v8  ;;  %v440_v38 = vsub.f32 %v8767_v29, %v8810_v3  ;;  %1037 = vmatpush.bf16.msra.mxu3 %v6255_v23  ;;  %1066 = vmatpush.bf16.msra.mxu0 %v6383_v30  ;;  %v441_v10 = vsub.f32 %v8787_v22, %v8807_v8  ;;  %v6350_v23 = vld [vmem:[#allocation8 + $0x1a8] sm:$0xf]  ;;  %v7987_v28 = vld [vmem:[#allocation8 + $0x154] sm:$0xf0] }
 0x16f   :  { %v423_v16 = vsub.f32 %v419_v12, %v421_v13  ;;  %v424_v17 = vsub.f32 %v420_v14, %v422_v15  ;;  %1095 = vmatpush.bf16.msra.mxu1 %v6259_v44  ;;  %v6222_v12 = vld [vmem:[#allocation8 + $0xa8] sm:$0xf]  ;;  %v7967_v13 = vld [vmem:[#allocation8 + $0xb4] sm:$0xf0]  ;;  %v442_v15 = vsub.f32 %v8790_v24, %v8810_v3  ;;  %v427_v22 = vsub.f32 %v8716_v37, %v8807_v8 }
 0x170   :  { %1125 = vmatpush.bf16.msra.mxu2 %v6371_v59  ;;  %v428_v24 = vsub.f32 %v8712_v35, %v8810_v3  ;;  %v6351_v31 = vor.u32 %v7999_v25, %v6350_v23  ;;  %v6206_v30 = vld [vmem:[#allocation8 + $0x88] sm:$0xf]  ;;  %v430_v37 = vsub.f32 %v8714_v36, %v8810_v3  ;;  %v6227_v42 = vor.u32 %v7965_v32, %v6224_v33  ;;  %v7963_v44 = vld [vmem:[#allocation8 + $0x94] sm:$0xf0] }
 0x171   :  { %v425_v18 = vmax.f32 %v423_v16, 0.0  ;;  %v426_v21 = vmax.f32 %v424_v17, 0.0  ;;  %v6223_v16 = vor.u32 %v7967_v13, %v6222_v12  ;;  %v7997_v17 = vld [vmem:[#allocation8 + $0x1ac] sm:$0xf]  ;;  %v431_v35 = vsub.f32 %v8724_v50, %v8807_v8  ;;  %v6208_v13 = vld [vmem:[#allocation8 + $0x98] sm:$0xf0] }
 0x172   :  { %1038 = vmatpush.bf16.msra.mxu3 %v6239_v53  ;;  %1067 = vmatpush.bf16.msra.mxu0 %v6367_v60  ;;  %v6207_v48 = vor.u32 %v7963_v44, %v6206_v30  ;;  %v433_v57 = vsub.f32 %v8742_v63, %v8807_v8  ;;  %v432_v50 = vsub.f32 %v8718_v41, %v8810_v3  ;;  %v7961_v12 = vld [vmem:[#allocation8 + $0x8c] sm:$0xf]  ;;  %v7959_v30 = vld [vmem:[#allocation8 + $0x74] sm:$0xf0] }
 0x173   :  { %v443_v27 = vadd.f32 0.8, %v425_v18  ;;  %v8822_v39 = vadd.f32 0.8, %v426_v21  ;;  %1096 = vmatpush.bf16.msra.mxu1 %v6243_v0  ;;  %v6352_v18 = vld [vmem:[#allocation8 + $0x1b8] sm:$0xf0]  ;;  %v434_v60 = vsub.f32 %v8722_v49, %v8810_v3  ;;  %v435_v63 = vsub.f32 %v8726_v51, %v8807_v8 }
 0x174   :  { %v6355_v21 = vor.u32 %v7997_v17, %v6352_v18  ;;  %v437_v62 = vsub.f32 %v8732_v55, %v8807_v8  ;;  %v6334_v51 = vld [vmem:[#allocation8 + $0x188] sm:$0xf]  ;;  %v436_v55 = vsub.f32 %v8728_v52, %v8810_v3  ;;  %v6211_v23 = vor.u32 %v7961_v12, %v6208_v13 }
 0x175   :  { %8421 = vrsqrt.f32 %v443_v27  ;;  %vm451_vm11 = vweird.f32 %v443_v27  ;;  %vm461_vm14 = vweird.f32 %v8822_v39 }
 0x176   :  { %8423 = vrsqrt.f32 %v8822_v39  ;;  %1039 = vmatpush.bf16.msra.mxu3 %v6223_v16  ;;  %1126 = vmatpush.bf16.msra.mxu2 %v6355_v21 }
 0x177   :  { %1068 = vmatpush.bf16.msra.mxu0 %v6351_v31  ;;  %1097 = vmatpush.bf16.msra.mxu1 %v6227_v42 }
 0x17a   :  { %1040 = vmatpush.bf16.msra.mxu3 %v6207_v48  ;;  %v7991_v48 = vld [vmem:[#allocation8 + $0x174] sm:$0xf0] }
 0x17b   :  { %v8422_v1 = vpop.eup %8421  ;;  %1098 = vmatpush.bf16.msra.mxu1 %v6211_v23 }
 0x17c   :  { %v8424_v2 = vpop.eup %8423  ;;  %v446_v4 = vmul.f32 %v8422_v1, %v443_v27  ;;  %vm452_vm10 = vweird.f32 %v8422_v1  ;;  %v429_v27 = vsub.f32 %v8720_v47, %v8807_v8  ;;  %v7953_v8 = vld [vmem:[#allocation8 + $0x4c] sm:$0xf] }
 0x17d   :  { %v456_v5 = vmul.f32 %v8424_v2, %v8822_v39  ;;  %vm8830_vm12 = vmor %vm451_vm11, %vm452_vm10  ;;  %vm462_vm13 = vweird.f32 %v8424_v2  ;;  %v6339_v39 = vor.u32 %v7993_v45, %v6336_v46  ;;  %v6318_v45 = vld [vmem:[#allocation8 + $0x168] sm:$0xf] }
 0x17e   :  { %v447_v6 = vmul.f32 %v8422_v1, %v446_v4  ;;  %vm463_vm15 = vmor %vm461_vm14, %vm462_vm13 }
 0x17f   :  { %v457_v7 = vmul.f32 %v8424_v2, %v456_v5  ;;  %1127 = vmatpush.bf16.msra.mxu2 %v6339_v39 }
 0x180   :  { %v448_v9 = vmul.f32 0.5, %v447_v6 }
 0x181   :  { %v458_v11 = vmul.f32 0.5, %v457_v7  ;;  %v7995_v7 = vld [vmem:[#allocation8 + $0x194] sm:$0xf0] }
 0x182   :  { %v449_v14 = vsub.f32 1.5, %v448_v9 }
 0x183   :  { %v459_v20 = vsub.f32 1.5, %v458_v11 }
 0x184   :  { %v450_v26 = vmul.f32 %v8422_v1, %v449_v14  ;;  %v438_v14 = vsub.f32 %v8734_v56, %v8810_v3 }
 0x185   :  { %v460_v40 = vmul.f32 %v8424_v2, %v459_v20 }
 0x186   :  { %v8845_v47 = vsel %vm8830_vm12, %v8422_v1, %v450_v26 }
 0x187   :  { %v8850_v53 = vsel %vm463_vm15, %v8424_v2, %v460_v40  ;;  %v465_v36 = vmul.f32 %v8845_v47, %v427_v22  ;;  %v467_v54 = vmul.f32 %v8845_v47, %v429_v27  ;;  %v8863_v61 = vmul.f32 %v8845_v47, %v441_v10  ;;  %v7989_v40 = vld [vmem:[#allocation8 + $0x16c] sm:$0xf] }
 0x188   :  { %v466_v58 = vmul.f32 %v8850_v53, %v428_v24  ;;  %v468_v59 = vmul.f32 %v8850_v53, %v430_v37  ;;  %v8870_v0 = vmul.f32 %v8850_v53, %v442_v15  ;;  %v8873_v2 = vmul.f32 %v8845_v47, %v431_v35  ;;  %v6190_v24 = vld [vmem:[#allocation8 + $0x68] sm:$0xf]  ;;  %v6320_v37 = vld [vmem:[#allocation8 + $0x178] sm:$0xf0] }
 0x189   :  { %vm481_vm0 = vcmp.gt.f32.partialorder %v465_v36, 0.0  ;;  %vm483_vm1 = vcmp.gt.f32.partialorder %v467_v54, 0.0  ;;  %v497_v41 = vmul.f32 0.2, %v465_v36  ;;  %v499_v1 = vmul.f32 0.2, %v467_v54 }
 0x18a   :  { %vm482_vm2 = vcmp.gt.f32.partialorder %v466_v58, 0.0  ;;  %vm484_vm3 = vcmp.gt.f32.partialorder %v468_v59, 0.0  ;;  %v498_v49 = vmul.f32 0.2, %v466_v58  ;;  %v500_v5 = vmul.f32 0.2, %v468_v59 }
 0x18b   :  { %v513_v4 = vsel %vm481_vm0, %v465_v36, %v497_v41  ;;  %v8876_v6 = vmul.f32 %v8845_v47, %v433_v57  ;;  %v8881_v9 = vmul.f32 0.2, %v8863_v61  ;;  %v515_v10 = vsel %vm483_vm1, %v467_v54, %v499_v1  ;;  %v7955_v41 = vld [vmem:[#allocation8 + $0x54] sm:$0xf0] }
 0x18c   :  { %v514_v11 = vsel %vm482_vm2, %v466_v58, %v498_v49  ;;  %v8886_v15 = vmul.f32 0.2, %v8870_v0  ;;  %v8888_v16 = vpack.c.bf16 %v515_v10, %v513_v4  ;;  %v516_v17 = vsel %vm484_vm3, %v468_v59, %v500_v5  ;;  %v7957_v58 = vld [vmem:[#allocation8 + $0x6c] sm:$0xf]  ;;  %v6302_v10 = vld [vmem:[#allocation8 + $0x148] sm:$0xf] }
 0x18d   :  { %v470_v18 = vmul.f32 %v8850_v53, %v432_v50  ;;  %vm495_vm4 = vcmp.gt.f32.partialorder %v8863_v61, 0.0  ;;  %v8893_v52 = vpack.c.bf16 %v516_v17, %v514_v11  ;;  %v8896_v19 = vmul.f32 0.2, %v8873_v2 }
 0x18e   :  { %v472_v20 = vmul.f32 %v8850_v53, %v434_v60  ;;  %v6335_v22 = vor.u32 %v7995_v7, %v6334_v51  ;;  %929 = vmatmul.bf16.vlgmr.msrb.gmra.mxu3 %v8888_v16  ;;  %987 = vmatmul.bf16.vlgmr.msrb.gmra.mxu1 %v8888_v16  ;;  %vm485_vm5 = vcmp.gt.f32.partialorder %v8873_v2, 0.0  ;;  %vm487_vm6 = vcmp.gt.f32.partialorder %v8876_v6, 0.0  ;;  %v7985_v7 = vld [vmem:[#allocation8 + $0x14c] sm:$0xf] }
 0x18f   :  { %v8904_v56 = vmul.f32 0.2, %v8876_v6  ;;  %vm486_vm7 = vcmp.gt.f32.partialorder %v470_v18, 0.0  ;;  %v502_v21 = vmul.f32 0.2, %v470_v18  ;;  %vm496_vm8 = vcmp.gt.f32.partialorder %v8870_v0, 0.0  ;;  %958 = vmatmul.bf16.vlgmr.msrb.gmra.mxu0 %v8893_v52  ;;  %1016 = vmatmul.bf16.vlgmr.msrb.gmra.mxu2 %v8893_v52 }
 0x190   :  { %vm488_vm9 = vcmp.gt.f32.partialorder %v472_v20, 0.0  ;;  %v504_v25 = vmul.f32 0.2, %v472_v20  ;;  %v473_v26 = vmul.f32 %v8845_v47, %v435_v63  ;;  %v475_v27 = vmul.f32 %v8845_v47, %v437_v62  ;;  %1069 = vmatpush.bf16.msra.mxu0 %v6335_v22  ;;  %v6192_v63 = vld [vmem:[#allocation8 + $0x78] sm:$0xf0] }
 0x191   :  { %v518_v31 = vsel %vm486_vm7, %v470_v18, %v502_v21  ;;  %v474_v32 = vmul.f32 %v8850_v53, %v436_v55  ;;  %v476_v33 = vmul.f32 %v8850_v53, %v438_v14  ;;  %v6191_v57 = vor.u32 %v7959_v30, %v6190_v24  ;;  %v6174_v62 = vld [vmem:[#allocation8 + $0x48] sm:$0xf]  ;;  %v6304_v55 = vld [vmem:[#allocation8 + $0x158] sm:$0xf0]  ;;  %v7947_v30 = vld [vmem:[#allocation8 + $0x14] sm:$0xf0] }
 0x192   :  { %v520_v42 = vsel %vm488_vm9, %v472_v20, %v504_v25  ;;  %vm489_vm10 = vcmp.gt.f32.partialorder %v473_v26, 0.0  ;;  %vm491_vm11 = vcmp.gt.f32.partialorder %v475_v27, 0.0  ;;  %v505_v44 = vmul.f32 0.2, %v473_v26  ;;  %v6288_v25 = vld [vmem:[#allocation8 + $0x138] sm:$0xf0] }
 0x193   :  { %v8913_v46 = vpack.c.bf16 %v520_v42, %v518_v31  ;;  %v507_v35 = vmul.f32 0.2, %v475_v27  ;;  %vm490_vm12 = vcmp.gt.f32.partialorder %v474_v32, 0.0  ;;  %vm492_vm13 = vcmp.gt.f32.partialorder %v476_v33, 0.0  ;;  %1041 = vmatpush.bf16.msra.mxu3 %v6191_v57 }
 0x194   :  { %v521_v39 = vsel %vm489_vm10, %v473_v26, %v505_v44  ;;  %v506_v36 = vmul.f32 0.2, %v474_v32  ;;  %v508_v54 = vmul.f32 0.2, %v476_v33  ;;  %v6323_v50 = vor.u32 %v7989_v40, %v6320_v37  ;;  %v6286_v26 = vld [vmem:[#allocation8 + $0x128] sm:$0xf] }
 0x195   :  { %v523_v59 = vsel %vm491_vm11, %v475_v27, %v507_v35  ;;  %v6319_v60 = vor.u32 %v7991_v48, %v6318_v45  ;;  %v477_v1 = vmul.f32 %v8845_v47, %v439_v34  ;;  %v6195_v51 = vor.u32 %v7957_v58, %v6192_v63  ;;  %v6176_v34 = vld [vmem:[#allocation8 + $0x58] sm:$0xf0]  ;;  %v7983_v27 = vld [vmem:[#allocation8 + $0x134] sm:$0xf0]  ;;  %v7977_v40 = vld [vmem:[#allocation8 + $0x10c] sm:$0xf] }
 0x196   :  { %v8919_v49 = vpack.c.bf16 %v523_v59, %v521_v39  ;;  %v522_v4 = vsel %vm490_vm12, %v474_v32, %v506_v36  ;;  %v524_v5 = vsel %vm492_vm13, %v476_v33, %v508_v54  ;;  %1128 = vmatpush.bf16.msra.mxu2 %v6323_v50  ;;  %v6175_v12 = vor.u32 %v7955_v41, %v6174_v62  ;;  %v6142_v32 = vld [vmem:[#allocation8 + $0x8] sm:$0xf]  ;;  %v6272_v37 = vld [vmem:[#allocation8 + $0x118] sm:$0xf0]  ;;  %v7979_v35 = vld [vmem:[#allocation8 + $0x114] sm:$0xf0] }
 0x197   :  { %v8923_v11 = vpack.c.bf16 %v524_v5, %v522_v4  ;;  %1070 = vmatpush.bf16.msra.mxu0 %v6319_v60  ;;  %v6307_v13 = vor.u32 %v7985_v7, %v6304_v55  ;;  %1099 = vmatpush.bf16.msra.mxu1 %v6195_v51  ;;  %v6303_v47 = vor.u32 %v7987_v28, %v6302_v10  ;;  %vm493_vm14 = vcmp.gt.f32.partialorder %v477_v1, 0.0  ;;  %v6270_v45 = vld [vmem:[#allocation8 + $0x108] sm:$0xf]  ;;  %v7945_v48 = vld [vmem:[#allocation8 + $0xc] sm:$0xf] }
 0x198   :  { %v6179_v14 = vor.u32 %v7953_v8, %v6176_v34  ;;  %v509_v17 = vmul.f32 0.2, %v477_v1  ;;  %v527_v18 = vsel %vm495_vm4, %v8863_v61, %v8881_v9  ;;  %v478_v20 = vmul.f32 %v8850_v53, %v440_v38  ;;  %1042 = vmatpush.bf16.msra.mxu3 %v6175_v12  ;;  %v7951_v9 = vld [vmem:[#allocation8 + $0x34] sm:$0xf0]  ;;  %v6144_v36 = vld [vmem:[#allocation8 + $0x18] sm:$0xf0] }
 0x199   :  { %v517_v22 = vsel %vm485_vm5, %v8873_v2, %v8896_v19  ;;  %v519_v21 = vsel %vm487_vm6, %v8876_v6, %v8904_v56  ;;  %v528_v3 = vsel %vm496_vm8, %v8870_v0, %v8886_v15  ;;  %v6158_v6 = vld [vmem:[#allocation8 + $0x28] sm:$0xf]  ;;  %v7981_v19 = vld [vmem:[#allocation8 + $0x12c] sm:$0xf]  ;;  %v6287_v31 = vor.u32 %v7983_v27, %v6286_v26  ;;  %v6160_v15 = vld [vmem:[#allocation8 + $0x38] sm:$0xf0] }
 0x19a   :  { %v525_v23 = vsel %vm493_vm14, %v477_v1, %v509_v17  ;;  %1129 = vmatpush.bf16.msra.mxu2 %v6307_v13  ;;  %vm494_vm15 = vcmp.gt.f32.partialorder %v478_v20, 0.0  ;;  %v510_v29 = vmul.f32 0.2, %v478_v20  ;;  %v595_v38 = vpack.c.bf16 %v519_v21, %v517_v22  ;;  %v7949_v0 = vld [vmem:[#allocation8 + $0x2c] sm:$0xf] }
 0x19b   :  { %1071 = vmatpush.bf16.msra.mxu0 %v6303_v47  ;;  %v8941_v61 = vpack.c.bf16 %v527_v18, %v525_v23  ;;  %1100 = vmatpush.bf16.msra.mxu1 %v6179_v14  ;;  %v6159_v56 = vor.u32 %v7951_v9, %v6158_v6  ;;  %v6291_v24 = vor.u32 %v7981_v19, %v6288_v25 }
 0x19c   :  { %v526_v53 = vsel %vm494_vm15, %v478_v20, %v510_v29  ;;  %v6163_v33 = vor.u32 %v7949_v0, %v6160_v15  ;;  %v6143_v42 = vor.u32 %v7947_v30, %v6142_v32  ;;  %v6275_v44 = vor.u32 %v7977_v40, %v6272_v37 }
 0x19d   :  { %v600_v2 = vpack.c.bf16 %v528_v3, %v526_v53  ;;  %1043 = vmatpush.bf16.msra.mxu3 %v6159_v56  ;;  %v6271_v39 = vor.u32 %v7979_v35, %v6270_v45  ;;  %v6147_v54 = vor.u32 %v7945_v48, %v6144_v36 }
 0x19e   :  { %934 = vmatmul.bf16.gmra.mxu3 %v595_v38  ;;  %992 = vmatmul.bf16.gmra.mxu1 %v595_v38 }
 0x19f   :  { %963 = vmatmul.bf16.gmra.mxu0 %v8913_v46  ;;  %1021 = vmatmul.bf16.gmra.mxu2 %v8913_v46 }
 0x1a0   :  { %1130 = vmatpush.bf16.msra.mxu2 %v6291_v24  ;;  %1072 = vmatpush.bf16.msra.mxu0 %v6287_v31 }
 0x1a1   :  { %1101 = vmatpush.bf16.msra.mxu1 %v6163_v33  ;;  %1044 = vmatpush.bf16.msra.mxu3 %v6143_v42 }
 0x1a4   :  { %1131 = vmatpush.bf16.msra.mxu2 %v6275_v44  ;;  %1073 = vmatpush.bf16.msra.mxu0 %v6271_v39 }
 0x1a5   :  { %1102 = vmatpush.bf16.msra.mxu1 %v6147_v54 }
 0x1ae   :  { %939 = vmatmul.bf16.gmra.mxu3 %v8919_v49  ;;  %997 = vmatmul.bf16.gmra.mxu1 %v8919_v49 }
 0x1af   :  { %968 = vmatmul.bf16.gmra.mxu0 %v8923_v11  ;;  %1026 = vmatmul.bf16.gmra.mxu2 %v8923_v11 }
 0x1be   :  { %944 = vmatmul.bf16.gmra.mxu3 %v8941_v61  ;;  %1002 = vmatmul.bf16.gmra.mxu1 %v8941_v61 }
 0x1bf   :  { %973 = vmatmul.bf16.gmra.mxu0 %v600_v2  ;;  %1031 = vmatmul.bf16.gmra.mxu2 %v600_v2 }
 0x1ce   :  { %1045 = vmatmul.bf16.vlgmr.msra.gmra.mxu3 %v8888_v16  ;;  %1103 = vmatmul.bf16.vlgmr.msra.gmra.mxu1 %v8888_v16 }
 0x1cf   :  { %1074 = vmatmul.bf16.vlgmr.msra.gmra.mxu0 %v8893_v52  ;;  %1132 = vmatmul.bf16.vlgmr.msra.gmra.mxu2 %v8893_v52 }
 0x1de   :  { %1050 = vmatmul.bf16.gmra.mxu3 %v595_v38  ;;  %1108 = vmatmul.bf16.gmra.mxu1 %v595_v38 }
 0x1df   :  { %1079 = vmatmul.bf16.gmra.mxu0 %v8913_v46  ;;  %1137 = vmatmul.bf16.gmra.mxu2 %v8913_v46 }
 0x1ee   :  { %1055 = vmatmul.bf16.gmra.mxu3 %v8919_v49  ;;  %1113 = vmatmul.bf16.gmra.mxu1 %v8919_v49 }
 0x1ef   :  { %1084 = vmatmul.bf16.gmra.mxu0 %v8923_v11  ;;  %1142 = vmatmul.bf16.gmra.mxu2 %v8923_v11 }
 0x1fe   :  { %1060 = vmatmul.bf16.gmra.mxu3 %v8941_v61  ;;  %1118 = vmatmul.bf16.gmra.mxu1 %v8941_v61 }
 0x1ff   :  { %1089 = vmatmul.bf16.gmra.mxu0 %v600_v2  ;;  %1147 = vmatmul.bf16.gmra.mxu2 %v600_v2 }
 0x20b   :  { %v988_v16 = vpop.f32.mrf.mxu1 }
 0x20c   :  { %v959_v52 = vpop.f32.mrf.mxu0 }
 0x211   :  { %v930_v57 = vpop.f32.mrf.mxu3 }
 0x212   :  { %v8967_v58 = vadd.f32 %v959_v52, %v930_v57  ;;  %v1017_v46 = vpop.f32.mrf.mxu2 }
 0x213   :  { %v8969_v59 = vadd.f32 %v1017_v46, %v988_v16  ;;  %v990_v50 = vpop.f32.mrf.mxu1 }
 0x214   :  { %v961_v60 = vpop.f32.mrf.mxu0  ;;  %v1209_v4 = vmul.f32 %v8967_v58, %v8967_v58 }
 0x215   :  { %v1210_v55 = vmul.f32 %v8969_v59, %v8969_v59 }
 0x219   :  { %v932_v63 = vpop.f32.mrf.mxu3 }
 0x21a   :  { %v8971_v62 = vadd.f32 %v961_v60, %v932_v63  ;;  %v1019_v41 = vpop.f32.mrf.mxu2 }
 0x21b   :  { %v8973_v1 = vadd.f32 %v1019_v41, %v990_v50  ;;  %v993_v49 = vpop.f32.mrf.mxu1 }
 0x21c   :  { %v1153_v5 = vadd.f32 %v8971_v62, %v8967_v58  ;;  %v1213_v51 = vmul.f32 %v8971_v62, %v8971_v62  ;;  %v964_v7 = vpop.f32.mrf.mxu0 }
 0x21d   :  { %v1166_v10 = vadd.f32 %v8973_v1, %v8969_v59  ;;  %v1214_v11 = vmul.f32 %v8973_v1, %v8973_v1 }
 0x21e   :  { %v1241_v12 = vadd.f32 %v1213_v51, %v1209_v4 }
 0x21f   :  { %v1254_v13 = vadd.f32 %v1214_v11, %v1210_v55 }
 0x221   :  { %v935_v28 = vpop.f32.mrf.mxu3 }
 0x222   :  { %v8987_v8 = vadd.f32 %v964_v7, %v935_v28  ;;  %v1022_v34 = vpop.f32.mrf.mxu2 }
 0x223   :  { %v8989_v47 = vadd.f32 %v1022_v34, %v993_v49  ;;  %v995_v14 = vpop.f32.mrf.mxu1 }
 0x224   :  { %v1154_v17 = vadd.f32 %v1153_v5, %v8987_v8  ;;  %v1217_v18 = vmul.f32 %v8987_v8, %v8987_v8  ;;  %v966_v20 = vpop.f32.mrf.mxu0 }
 0x225   :  { %v1167_v22 = vadd.f32 %v1166_v10, %v8989_v47  ;;  %v1218_v21 = vmul.f32 %v8989_v47, %v8989_v47 }
 0x226   :  { %v1242_v23 = vadd.f32 %v1241_v12, %v1217_v18 }
 0x227   :  { %v1255_v61 = vadd.f32 %v1254_v13, %v1218_v21 }
 0x229   :  { %v937_v29 = vpop.f32.mrf.mxu3 }
 0x22a   :  { %v8997_v3 = vadd.f32 %v966_v20, %v937_v29  ;;  %v1024_v38 = vpop.f32.mrf.mxu2 }
 0x22b   :  { %v8999_v53 = vadd.f32 %v1024_v38, %v995_v14  ;;  %v998_v2 = vpop.f32.mrf.mxu1 }
 0x22c   :  { %v1155_v6 = vadd.f32 %v1154_v17, %v8997_v3  ;;  %v1221_v9 = vmul.f32 %v8997_v3, %v8997_v3  ;;  %v969_v19 = vpop.f32.mrf.mxu0 }
 0x22d   :  { %v1168_v56 = vadd.f32 %v1167_v22, %v8999_v53  ;;  %v1222_v25 = vmul.f32 %v8999_v53, %v8999_v53 }
 0x22e   :  { %v1243_v26 = vadd.f32 %v1242_v23, %v1221_v9 }
 0x22f   :  { %v1256_v27 = vadd.f32 %v1255_v61, %v1222_v25 }
 0x231   :  { %v940_v24 = vpop.f32.mrf.mxu3 }
 0x232   :  { %v9007_v31 = vadd.f32 %v969_v19, %v940_v24  ;;  %v1027_v0 = vpop.f32.mrf.mxu2 }
 0x233   :  { %v9009_v15 = vadd.f32 %v1027_v0, %v998_v2  ;;  %v1000_v32 = vpop.f32.mrf.mxu1 }
 0x234   :  { %v1156_v33 = vadd.f32 %v1155_v6, %v9007_v31  ;;  %v1225_v30 = vmul.f32 %v9007_v31, %v9007_v31  ;;  %v971_v40 = vpop.f32.mrf.mxu0 }
 0x235   :  { %v1169_v37 = vadd.f32 %v1168_v56, %v9009_v15  ;;  %v1226_v42 = vmul.f32 %v9009_v15, %v9009_v15 }
 0x236   :  { %v1244_v44 = vadd.f32 %v1243_v26, %v1225_v30 }
 0x237   :  { %v1257_v45 = vadd.f32 %v1256_v27, %v1226_v42 }
 0x239   :  { %v942_v35 = vpop.f32.mrf.mxu3 }
 0x23a   :  { %v9017_v48 = vadd.f32 %v971_v40, %v942_v35  ;;  %v1029_v39 = vpop.f32.mrf.mxu2 }
 0x23b   :  { %v9019_v36 = vadd.f32 %v1029_v39, %v1000_v32  ;;  %v1003_v54 = vpop.f32.mrf.mxu1 }
 0x23c   :  { %v1157_v16 = vadd.f32 %v1156_v33, %v9017_v48  ;;  %v1229_v52 = vmul.f32 %v9017_v48, %v9017_v48  ;;  %v974_v57 = vpop.f32.mrf.mxu0 }
 0x23d   :  { %v1170_v46 = vadd.f32 %v1169_v37, %v9019_v36  ;;  %v1230_v50 = vmul.f32 %v9019_v36, %v9019_v36 }
 0x23e   :  { %v1245_v60 = vadd.f32 %v1244_v44, %v1229_v52 }
 0x23f   :  { %v1258_v63 = vadd.f32 %v1257_v45, %v1230_v50 }
 0x241   :  { %v945_v41 = vpop.f32.mrf.mxu3 }
 0x242   :  { %v9027_v49 = vadd.f32 %v974_v57, %v945_v41  ;;  %v1032_v4 = vpop.f32.mrf.mxu2 }
 0x243   :  { %v9029_v5 = vadd.f32 %v1032_v4, %v1003_v54  ;;  %v1005_v51 = vpop.f32.mrf.mxu1 }
 0x244   :  { %v1158_v7 = vadd.f32 %v1157_v16, %v9027_v49  ;;  %v1233_v55 = vmul.f32 %v9027_v49, %v9027_v49  ;;  %v976_v10 = vpop.f32.mrf.mxu0 }
 0x245   :  { %v1171_v11 = vadd.f32 %v1170_v46, %v9029_v5  ;;  %v1234_v12 = vmul.f32 %v9029_v5, %v9029_v5 }
 0x246   :  { %v1246_v13 = vadd.f32 %v1245_v60, %v1233_v55 }
 0x247   :  { %v1259_v28 = vadd.f32 %v1258_v63, %v1234_v12 }
 0x249   :  { %v947_v34 = vpop.f32.mrf.mxu3 }
 0x24a   :  { %v9040_v14 = vadd.f32 %v976_v10, %v947_v34  ;;  %v1034_v17 = vpop.f32.mrf.mxu2 }
 0x24b   :  { %v9042_v18 = vadd.f32 %v1034_v17, %v1005_v51  ;;  %v9044_v20 = vpop.f32.mrf.mxu1 }
 0x24c   :  { %v1159_v22 = vadd.f32 %v1158_v7, %v9040_v14  ;;  %v1237_v21 = vmul.f32 %v9040_v14, %v9040_v14  ;;  %v9052_v23 = vpop.f32.mrf.mxu0 }
 0x24d   :  { %v1172_v61 = vadd.f32 %v1171_v11, %v9042_v18  ;;  %v1238_v29 = vmul.f32 %v9042_v18, %v9042_v18 }
 0x24e   :  { %v1160_v38 = vrot.slane %v1159_v22, 4  ;;  %v1247_v2 = vadd.f32 %v1246_v13, %v1237_v21 }
 0x24f   :  { %v1173_v6 = vrot.slane %v1172_v61, 4  ;;  %v1260_v9 = vadd.f32 %v1259_v28, %v1238_v29 }
 0x250   :  { %v1161_v19 = vadd.f32 %v1160_v38, %v1159_v22  ;;  %v1248_v56 = vrot.slane %v1247_v2, 4 }
 0x251   :  { %v1174_v25 = vadd.f32 %v1173_v6, %v1172_v61  ;;  %v1261_v26 = vrot.slane %v1260_v9, 4  ;;  %v1046_v27 = vpop.f32.mrf.mxu3 }
 0x252   :  { %v1162_v24 = vrot.slane %v1161_v19, 2  ;;  %v1249_v0 = vadd.f32 %v1248_v56, %v1247_v2  ;;  %v1133_v32 = vpop.f32.mrf.mxu2 }
 0x253   :  { %v1175_v33 = vrot.slane %v1174_v25, 2  ;;  %v1262_v30 = vadd.f32 %v1261_v26, %v1260_v9  ;;  %v1106_v40 = vpop.f32.mrf.mxu1 }
 0x254   :  { %v1163_v37 = vadd.f32 %v1162_v24, %v1161_v19  ;;  %v1250_v42 = vrot.slane %v1249_v0, 2  ;;  %v1077_v44 = vpop.f32.mrf.mxu0 }
 0x255   :  { %v1176_v45 = vadd.f32 %v1175_v33, %v1174_v25  ;;  %v1263_v35 = vrot.slane %v1262_v30, 2 }
 0x256   :  { %v1164_v39 = vrot.slane %v1163_v37, 1  ;;  %v1251_v54 = vadd.f32 %v1250_v42, %v1249_v0 }
 0x257   :  { %v1177_v16 = vrot.slane %v1176_v45, 1  ;;  %v1264_v52 = vadd.f32 %v1263_v35, %v1262_v30 }
 0x258   :  { %v1165_v57 = vadd.f32 %v1164_v39, %v1163_v37  ;;  %v1252_v46 = vrot.slane %v1251_v54, 1 }
 0x259   :  { %v1178_v50 = vadd.f32 %v1177_v16, %v1176_v45  ;;  %v1265_v60 = vrot.slane %v1264_v52, 1  ;;  %v1048_v63 = vpop.f32.mrf.mxu3 }
 0x25a   :  { %v9058_v41 = vmul.f32 %v1165_v57, %v8804_v43  ;;  %v1253_v4 = vadd.f32 %v1252_v46, %v1251_v54  ;;  %v1135_v51 = vpop.f32.mrf.mxu2  ;;  %v9104_v46 = vadd.f32 %v1077_v44, %v1048_v63 }
 0x25b   :  { %v9061_v7 = vmul.f32 %v1178_v50, %v8804_v43  ;;  %v1266_v55 = vadd.f32 %v1265_v60, %v1264_v52  ;;  %v1109_v10 = vpop.f32.mrf.mxu1  ;;  %v9106_v50 = vadd.f32 %v1135_v51, %v1106_v40  ;;  %v9109_v60 = vadd.f32 %v9052_v23, %v1046_v27 }
 0x25c   :  { %v1293_v11 = vmul.f32 %v1253_v4, %v8804_v43  ;;  %v1297_v12 = vmul.f32 %v9058_v41, %v9058_v41  ;;  %v1309_v13 = vsub.f32 %v8967_v58, %v9058_v41  ;;  %v1313_v28 = vsub.f32 %v8971_v62, %v9058_v41  ;;  %v1080_v34 = vpop.f32.mrf.mxu0 }
 0x25d   :  { %v1317_v17 = vsub.f32 %v8987_v8, %v9058_v41  ;;  %v1321_v22 = vsub.f32 %v8997_v3, %v9058_v41  ;;  %v1325_v21 = vsub.f32 %v9007_v31, %v9058_v41  ;;  %v1329_v61 = vsub.f32 %v9017_v48, %v9058_v41 }
 0x25e   :  { %v1301_v29 = vsub.f32 %v1293_v11, %v1297_v12  ;;  %v1333_v38 = vsub.f32 %v9027_v49, %v9058_v41  ;;  %v1337_v2 = vsub.f32 %v9040_v14, %v9058_v41  ;;  %v1294_v6 = vmul.f32 %v1266_v55, %v8804_v43 }
 0x25f   :  { %v1298_v9 = vmul.f32 %v9061_v7, %v9061_v7  ;;  %v1310_v19 = vsub.f32 %v8969_v59, %v9061_v7  ;;  %v9112_v11 = vadd.f32 %v1133_v32, %v9044_v20  ;;  %v1215_v44 = vmul.f32 %v9104_v46, %v9104_v46 }
 0x260   :  { %v1305_v26 = vmax.f32 %v1301_v29, 0.0  ;;  %v1216_v40 = vmul.f32 %v9106_v50, %v9106_v50  ;;  %v10777_v59 = vsub.f32 %v9019_v36, %v9061_v7 }
 0x261   :  { %v1302_v30 = vsub.f32 %v1294_v6, %v1298_v9  ;;  %v1051_v45 = vpop.f32.mrf.mxu3 }
 0x262   :  { %v1341_v35 = vadd.f32 0.8, %v1305_v26  ;;  %v1138_v39 = vpop.f32.mrf.mxu2  ;;  %v9114_v12 = vadd.f32 %v1080_v34, %v1051_v45  ;;  %v1212_v26 = vmul.f32 %v9112_v11, %v9112_v11 }
 0x263   :  { %v1306_v54 = vmax.f32 %v1302_v30, 0.0  ;;  %v1111_v16 = vpop.f32.mrf.mxu1  ;;  %v9116_v29 = vadd.f32 %v1138_v39, %v1109_v10  ;;  %v1211_v10 = vmul.f32 %v9109_v60, %v9109_v60 }
 0x264   :  { %8425 = vrsqrt.f32 %v1341_v35  ;;  %v1082_v52 = vpop.f32.mrf.mxu0  ;;  %v1219_v30 = vmul.f32 %v9114_v12, %v9114_v12  ;;  %vm1351_vm1 = vweird.f32 %v1341_v35 }
 0x265   :  { %v9101_v57 = vadd.f32 0.8, %v1306_v54  ;;  %v1220_v45 = vmul.f32 %v9116_v29, %v9116_v29  ;;  %v1179_v54 = vadd.f32 %v9104_v46, %v9109_v60 }
 0x267   :  { %8427 = vrsqrt.f32 %v9101_v57  ;;  %vm1361_vm3 = vweird.f32 %v9101_v57 }
 0x269   :  { %v1053_v4 = vpop.f32.mrf.mxu3 }
 0x26a   :  { %v8426_v55 = vpop.eup %8425  ;;  %v1140_v6 = vpop.f32.mrf.mxu2  ;;  %v9122_v23 = vadd.f32 %v1082_v52, %v1053_v4  ;;  %v1192_v52 = vadd.f32 %v9106_v50, %v9112_v11 }
 0x26b   :  { %v1346_v9 = vmul.f32 %v8426_v55, %v1341_v35  ;;  %v1114_v63 = vpop.f32.mrf.mxu1  ;;  %v9124_v27 = vadd.f32 %v1140_v6, %v1111_v16  ;;  %v1267_v16 = vadd.f32 %v1215_v44, %v1211_v10  ;;  %v1280_v6 = vadd.f32 %v1216_v40, %v1212_v26 }
 0x26c   :  { %v1085_v51 = vpop.f32.mrf.mxu0  ;;  %vm1352_vm0 = vweird.f32 %v8426_v55  ;;  %v1193_v33 = vadd.f32 %v1192_v52, %v9116_v29 }
 0x26d   :  { %v9126_v20 = vpop.eup %8427  ;;  %v1347_v32 = vmul.f32 %v8426_v55, %v1346_v9  ;;  %v1223_v9 = vmul.f32 %v9122_v23, %v9122_v23  ;;  %v1224_v42 = vmul.f32 %v9124_v27, %v9124_v27  ;;  %v1268_v10 = vadd.f32 %v1267_v16, %v1219_v30  ;;  %vm1353_vm2 = vmor %vm1351_vm1, %vm1352_vm0 }
 0x26e   :  { %v1356_v34 = vmul.f32 %v9126_v20, %v9101_v57  ;;  %v1281_v24 = vadd.f32 %v1280_v6, %v1220_v45  ;;  %v1194_v56 = vadd.f32 %v1193_v33, %v9124_v27  ;;  %vm1362_vm4 = vweird.f32 %v9126_v20 }
 0x26f   :  { %v1348_v39 = vmul.f32 0.5, %v1347_v32  ;;  %v1180_v32 = vadd.f32 %v1179_v54, %v9114_v12  ;;  %vm1363_vm13 = vmor %vm1361_vm3, %vm1362_vm4 }
 0x270   :  { %v1357_v4 = vmul.f32 %v9126_v20, %v1356_v34  ;;  %v9157_v54 = vadd.f32 %v1281_v24, %v1224_v42 }
 0x271   :  { %v1349_v37 = vsub.f32 1.5, %v1348_v39  ;;  %v1056_v0 = vpop.f32.mrf.mxu3  ;;  %v1181_v26 = vadd.f32 %v1180_v32, %v9122_v23  ;;  %v9155_v39 = vadd.f32 %v1268_v10, %v1223_v9 }
 0x272   :  { %v1358_v44 = vmul.f32 0.5, %v1357_v4  ;;  %v9149_v25 = vadd.f32 %v1085_v51, %v1056_v0  ;;  %v1143_v34 = vpop.f32.mrf.mxu2 }
 0x273   :  { %v1350_v40 = vmul.f32 %v8426_v55, %v1349_v37  ;;  %v9159_v30 = vadd.f32 %v1143_v34, %v1114_v63  ;;  %v9168_v33 = vpop.f32.mrf.mxu1 }
 0x274   :  { %v1359_v51 = vsub.f32 1.5, %v1358_v44  ;;  %v9162_v37 = vadd.f32 %v1181_v26, %v9149_v25  ;;  %v9166_v35 = vmul.f32 %v9149_v25, %v9149_v25  ;;  %v1087_v63 = vpop.f32.mrf.mxu0  ;;  %v10774_v26 = vsub.f32 %v8989_v47, %v9061_v7 }
 0x275   :  { %v1354_v0 = vsel %vm1353_vm2, %v8426_v55, %v1350_v40  ;;  %v1195_v14 = vadd.f32 %v1194_v56, %v9159_v30  ;;  %v1228_v10 = vmul.f32 %v9159_v30, %v9159_v30  ;;  %v10773_v40 = vsub.f32 %v8973_v1, %v9061_v7 }
 0x276   :  { %v1385_v45 = vmul.f32 %v1354_v0, %v1309_v13  ;;  %v1389_v24 = vmul.f32 %v1354_v0, %v1313_v28  ;;  %v1393_v42 = vmul.f32 %v1354_v0, %v1317_v17  ;;  %v1397_v55 = vmul.f32 %v1354_v0, %v1321_v22 }
 0x277   :  { %v1401_v16 = vmul.f32 %v1354_v0, %v1325_v21  ;;  %v1405_v58 = vmul.f32 %v1354_v0, %v1329_v61  ;;  %v1409_v62 = vmul.f32 %v1354_v0, %v1333_v38  ;;  %v1413_v8 = vmul.f32 %v1354_v0, %v1337_v2 }
 0x278   :  { %vm1417_vm5 = vcmp.gt.f32.partialorder %v1385_v45, 0.0  ;;  %vm1421_vm6 = vcmp.gt.f32.partialorder %v1389_v24, 0.0  ;;  %vm1425_vm7 = vcmp.gt.f32.partialorder %v1393_v42, 0.0  ;;  %vm1429_vm8 = vcmp.gt.f32.partialorder %v1397_v55, 0.0 }
 0x279   :  { %vm1433_vm9 = vcmp.gt.f32.partialorder %v1401_v16, 0.0  ;;  %vm1437_vm10 = vcmp.gt.f32.partialorder %v1405_v58, 0.0  ;;  %vm1441_vm11 = vcmp.gt.f32.partialorder %v1409_v62, 0.0  ;;  %vm1445_vm12 = vcmp.gt.f32.partialorder %v1413_v8, 0.0  ;;  %v1058_v3 = vpop.f32.mrf.mxu3 }
 0x27a   :  { %v1449_v31 = vmul.f32 0.2, %v1385_v45  ;;  %v1453_v48 = vmul.f32 0.2, %v1389_v24  ;;  %v1457_v13 = vmul.f32 0.2, %v1393_v42  ;;  %v1360_v28 = vmul.f32 %v9126_v20, %v1359_v51  ;;  %v1145_v49 = vpop.f32.mrf.mxu2 }
 0x27b   :  { %v1461_v17 = vmul.f32 0.2, %v1397_v55  ;;  %v1465_v22 = vmul.f32 0.2, %v1401_v16  ;;  %v1469_v21 = vmul.f32 0.2, %v1405_v58  ;;  %v10775_v51 = vsub.f32 %v8999_v53, %v9061_v7 }
 0x27c   :  { %v1473_v41 = vmul.f32 0.2, %v1409_v62  ;;  %v1477_v61 = vmul.f32 0.2, %v1413_v8  ;;  %v9197_v38 = vsel %vm1417_vm5, %v1385_v45, %v1449_v31  ;;  %v9200_v2 = vsel %vm1421_vm6, %v1389_v24, %v1453_v48 }
 0x27d   :  { %v9203_v52 = vsel %vm1425_vm7, %v1393_v42, %v1457_v13  ;;  %v9206_v4 = vsel %vm1429_vm8, %v1397_v55, %v1461_v17  ;;  %v9209_v6 = vsel %vm1433_vm9, %v1401_v16, %v1465_v22  ;;  %v9212_v9 = vsel %vm1437_vm10, %v1405_v58, %v1469_v21  ;;  %v1090_v58 = vpop.f32.mrf.mxu0 }
 0x27e   :  { %v9219_v56 = vsel %vm1441_vm11, %v1409_v62, %v1473_v41  ;;  %v9222_v32 = vsel %vm1445_vm12, %v1413_v8, %v1477_v61  ;;  %v1364_v44 = vsel %vm1363_vm13, %v9126_v20, %v1360_v28  ;;  %v1119_v20 = vpop.f32.mrf.mxu1  ;;  %v10776_v24 = vsub.f32 %v9009_v15, %v9061_v7 }
 0x27f   :  { %v1386_v34 = vmul.f32 %v1364_v44, %v1310_v19  ;;  %v1390_v57 = vmul.f32 %v1364_v44, %v10773_v40  ;;  %v1394_v0 = vmul.f32 %v1364_v44, %v10774_v26  ;;  %v1398_v45 = vmul.f32 %v1364_v44, %v10775_v51 }
 0x280   :  { %v1402_v42 = vmul.f32 %v1364_v44, %v10776_v24  ;;  %v1406_v19 = vmul.f32 %v1364_v44, %v10777_v59  ;;  %v10778_v1 = vsub.f32 %v9029_v5, %v9061_v7  ;;  %v10779_v47 = vsub.f32 %v9042_v18, %v9061_v7 }
 0x281   :  { %vm1418_vm14 = vcmp.gt.f32.partialorder %v1386_v34, 0.0  ;;  %vm1422_vm15 = vcmp.gt.f32.partialorder %v1390_v57, 0.0  ;;  %vm1426_vm0 = vcmp.gt.f32.partialorder %v1394_v0, 0.0  ;;  %vm1430_vm1 = vcmp.gt.f32.partialorder %v1398_v45, 0.0  ;;  %v1061_v53 = vpop.f32.mrf.mxu3 }
 0x282   :  { %v1410_v55 = vmul.f32 %v1364_v44, %v10778_v1  ;;  %v1414_v16 = vmul.f32 %v1364_v44, %v10779_v47  ;;  %vm1434_vm2 = vcmp.gt.f32.partialorder %v1402_v42, 0.0  ;;  %vm1438_vm3 = vcmp.gt.f32.partialorder %v1406_v19, 0.0  ;;  %v1148_v15 = vpop.f32.mrf.mxu2 }
 0x283   :  { %v1450_v36 = vmul.f32 0.2, %v1386_v34  ;;  %v1454_v62 = vmul.f32 0.2, %v1390_v57  ;;  %v1458_v8 = vmul.f32 0.2, %v1394_v0  ;;  %v9251_v5 = vadd.f32 %v1087_v63, %v1058_v3 }
 0x284   :  { %vm1442_vm4 = vcmp.gt.f32.partialorder %v1410_v55, 0.0  ;;  %vm1446_vm5 = vcmp.gt.f32.partialorder %v1414_v16, 0.0  ;;  %v1462_v31 = vmul.f32 0.2, %v1398_v45  ;;  %v1466_v48 = vmul.f32 0.2, %v1402_v42 }
 0x285   :  { %v1470_v18 = vmul.f32 0.2, %v1406_v19  ;;  %v9254_v7 = vadd.f32 %v1145_v49, %v9168_v33  ;;  %v1474_v13 = vmul.f32 0.2, %v1410_v55  ;;  %v1478_v28 = vmul.f32 0.2, %v1414_v16 }
 0x286   :  { %v9257_v17 = vsel %vm1418_vm14, %v1386_v34, %v1450_v36  ;;  %v9260_v22 = vsel %vm1422_vm15, %v1390_v57, %v1454_v62  ;;  %v9263_v21 = vsel %vm1426_vm0, %v1394_v0, %v1458_v8  ;;  %v9266_v63 = vsel %vm1430_vm1, %v1398_v45, %v1462_v31  ;;  %v1121_v51 = vpop.f32.mrf.mxu1 }
 0x287   :  { %v9269_v3 = vsel %vm1434_vm2, %v1402_v42, %v1466_v48  ;;  %v9272_v33 = vsel %vm1438_vm3, %v1406_v19, %v1470_v18  ;;  %v9275_v49 = vsel %vm1442_vm4, %v1410_v55, %v1474_v13  ;;  %v9278_v41 = vsel %vm1446_vm5, %v1414_v16, %v1478_v28 }
 0x288   :  { %v1270_v61 = vadd.f32 %v9155_v39, %v9166_v35  ;;  %v1231_v44 = vmul.f32 %v9251_v5, %v9251_v5  ;;  %v1183_v34 = vadd.f32 %v9162_v37, %v9251_v5  ;;  %v1232_v40 = vmul.f32 %v9254_v7, %v9254_v7  ;;  %v1092_v37 = vpop.f32.mrf.mxu0 }
 0x289   :  { %v9288_v57 = vadd.f32 %v1090_v58, %v1061_v53  ;;  %v9290_v26 = vadd.f32 %v1148_v15, %v1119_v20  ;;  %v1196_v0 = vadd.f32 %v1195_v14, %v9254_v7  ;;  %v1063_v45 = vpop.f32.mrf.mxu3  ;;  %v1283_v24 = vadd.f32 %v9157_v54, %v1228_v10 }
 0x28a   :  { %v1271_v39 = vadd.f32 %v1270_v61, %v1231_v44  ;;  %v1150_v59 = vpop.f32.mrf.mxu2  ;;  %v9300_v1 = vadd.f32 %v1092_v37, %v1063_v45 }
 0x28b   :  { %v1184_v35 = vadd.f32 %v1183_v34, %v9288_v57  ;;  %v1235_v42 = vmul.f32 %v9288_v57, %v9288_v57  ;;  %v1197_v19 = vadd.f32 %v1196_v0, %v9290_v26  ;;  %v1236_v20 = vmul.f32 %v9290_v26, %v9290_v26 }
 0x28c   :  { %v9302_v14 = vadd.f32 %v1150_v59, %v1121_v51  ;;  %v1284_v55 = vadd.f32 %v1283_v24, %v1232_v40  ;;  %v1239_v10 = vmul.f32 %v9300_v1, %v9300_v1 }
 0x28d   :  { %v1272_v47 = vadd.f32 %v1271_v39, %v1235_v42  ;;  %v1185_v54 = vadd.f32 %v1184_v35, %v9300_v1 }
 0x28e   :  { %v1198_v16 = vadd.f32 %v1197_v19, %v9302_v14  ;;  %v1285_v58 = vadd.f32 %v1284_v55, %v1236_v20  ;;  %v1240_v53 = vmul.f32 %v9302_v14, %v9302_v14 }
 0x28f   :  { %v1186_v15 = vrot.slane %v1185_v54, 4  ;;  %v1273_v36 = vadd.f32 %v1272_v47, %v1239_v10 }
 0x290   :  { %v1199_v62 = vrot.slane %v1198_v16, 4  ;;  %v1286_v8 = vadd.f32 %v1285_v58, %v1240_v53 }
 0x291   :  { %v1187_v31 = vadd.f32 %v1186_v15, %v1185_v54  ;;  %v1274_v48 = vrot.slane %v1273_v36, 4 }
 0x292   :  { %v1200_v18 = vadd.f32 %v1199_v62, %v1198_v16  ;;  %v1287_v13 = vrot.slane %v1286_v8, 4 }
 0x293   :  { %v1188_v28 = vrot.slane %v1187_v31, 2  ;;  %v1275_v61 = vadd.f32 %v1274_v48, %v1273_v36 }
 0x294   :  { %v1201_v44 = vrot.slane %v1200_v18, 2  ;;  %v1288_v34 = vadd.f32 %v1287_v13, %v1286_v8 }
 0x295   :  { %v1189_v40 = vadd.f32 %v1188_v28, %v1187_v31  ;;  %v1276_v0 = vrot.slane %v1275_v61, 2 }
 0x296   :  { %v1202_v51 = vadd.f32 %v1201_v44, %v1200_v18  ;;  %v1289_v45 = vrot.slane %v1288_v34, 2 }
 0x297   :  { %v1190_v24 = vrot.slane %v1189_v40, 1  ;;  %v1277_v39 = vadd.f32 %v1276_v0, %v1275_v61 }
 0x298   :  { %v1203_v35 = vrot.slane %v1202_v51, 1  ;;  %v1290_v42 = vadd.f32 %v1289_v45, %v1288_v34 }
 0x299   :  { %v1191_v37 = vadd.f32 %v1190_v24, %v1189_v40  ;;  %v1278_v59 = vrot.slane %v1277_v39, 1 }
 0x29a   :  { %v1204_v19 = vadd.f32 %v1203_v35, %v1202_v51  ;;  %v1291_v20 = vrot.slane %v1290_v42, 1 }
 0x29b   :  { %v1207_v55 = vmul.f32 %v1191_v37, %v8804_v43  ;;  %v1279_v47 = vadd.f32 %v1278_v59, %v1277_v39 }
 0x29c   :  { %v9312_v54 = vmul.f32 %v1204_v19, %v8804_v43  ;;  %v1292_v10 = vadd.f32 %v1291_v20, %v1290_v42 }
 0x29d   :  { %v1295_v16 = vmul.f32 %v1279_v47, %v8804_v43  ;;  %v1299_v58 = vmul.f32 %v1207_v55, %v1207_v55  ;;  %v1311_v0 = vsub.f32 %v9109_v60, %v1207_v55  ;;  %v1315_v51 = vsub.f32 %v9104_v46, %v1207_v55 }
 0x29e   :  { %v1296_v15 = vmul.f32 %v1292_v10, %v8804_v43  ;;  %v1300_v36 = vmul.f32 %v9312_v54, %v9312_v54  ;;  %v1319_v45 = vsub.f32 %v9114_v12, %v1207_v55  ;;  %v1323_v39 = vsub.f32 %v9122_v23, %v1207_v55 }
 0x29f   :  { %v1303_v53 = vsub.f32 %v1295_v16, %v1299_v58  ;;  %v1327_v35 = vsub.f32 %v9149_v25, %v1207_v55  ;;  %v1331_v37 = vsub.f32 %v9251_v5, %v1207_v55  ;;  %v1335_v59 = vsub.f32 %v9288_v57, %v1207_v55 }
 0x2a0   :  { %v1304_v8 = vsub.f32 %v1296_v15, %v1300_v36  ;;  %v1339_v19 = vsub.f32 %v9300_v1, %v1207_v55  ;;  %v1312_v46 = vsub.f32 %v9112_v11, %v9312_v54  ;;  %v1316_v12 = vsub.f32 %v9106_v50, %v9312_v54 }
 0x2a1   :  { %v1307_v62 = vmax.f32 %v1303_v53, 0.0  ;;  %v1320_v25 = vsub.f32 %v9116_v29, %v9312_v54  ;;  %v1324_v23 = vsub.f32 %v9124_v27, %v9312_v54  ;;  %v1328_v5 = vsub.f32 %v9159_v30, %v9312_v54 }
 0x2a2   :  { %v1308_v48 = vmax.f32 %v1304_v8, 0.0  ;;  %v1332_v57 = vsub.f32 %v9254_v7, %v9312_v54  ;;  %v1336_v11 = vsub.f32 %v9290_v26, %v9312_v54 }
 0x2a3   :  { %v1343_v31 = vadd.f32 0.8, %v1307_v62 }
 0x2a4   :  { %v9318_v18 = vadd.f32 0.8, %v1308_v48 }
 0x2a5   :  { %8429 = vrsqrt.f32 %v1343_v31  ;;  %vm1371_vm7 = vweird.f32 %v1343_v31 }
 0x2a6   :  { %8431 = vrsqrt.f32 %v9318_v18  ;;  %vm1381_vm2 = vweird.f32 %v9318_v18 }
 0x2ab   :  { %v8430_v13 = vpop.eup %8429 }
 0x2ac   :  { %v1366_v28 = vmul.f32 %v8430_v13, %v1343_v31  ;;  %v9321_v61 = vpop.eup %8431  ;;  %vm1372_vm6 = vweird.f32 %v8430_v13 }
 0x2ad   :  { %v1376_v34 = vmul.f32 %v9321_v61, %v9318_v18  ;;  %vm1373_vm8 = vmor %vm1371_vm7, %vm1372_vm6  ;;  %vm1382_vm9 = vweird.f32 %v9321_v61 }
 0x2ae   :  { %v1367_v44 = vmul.f32 %v8430_v13, %v1366_v28  ;;  %vm1383_vm3 = vmor %vm1381_vm2, %vm1382_vm9 }
 0x2af   :  { %v1377_v24 = vmul.f32 %v9321_v61, %v1376_v34 }
 0x2b0   :  { %v1368_v40 = vmul.f32 0.5, %v1367_v44 }
 0x2b1   :  { %v1378_v20 = vmul.f32 0.5, %v1377_v24 }
 0x2b2   :  { %v1369_v42 = vsub.f32 1.5, %v1368_v40 }
 0x2b3   :  { %v1379_v55 = vsub.f32 1.5, %v1378_v20 }
 0x2b4   :  { %v1370_v60 = vmul.f32 %v8430_v13, %v1369_v42 }
 0x2b5   :  { %v1380_v15 = vmul.f32 %v9321_v61, %v1379_v55 }
 0x2b6   :  { %v1374_v1 = vsel %vm1373_vm8, %v8430_v13, %v1370_v60 }
 0x2b7   :  { %v1387_v50 = vmul.f32 %v1374_v1, %v1311_v0  ;;  %v1391_v47 = vmul.f32 %v1374_v1, %v1315_v51  ;;  %v1395_v10 = vmul.f32 %v1374_v1, %v1319_v45  ;;  %v1399_v29 = vmul.f32 %v1374_v1, %v1323_v39 }
 0x2b8   :  { %v1403_v16 = vmul.f32 %v1374_v1, %v1327_v35  ;;  %v1407_v58 = vmul.f32 %v1374_v1, %v1331_v37  ;;  %v1411_v27 = vmul.f32 %v1374_v1, %v1335_v59  ;;  %v1415_v53 = vmul.f32 %v1374_v1, %v1339_v19 }
 0x2b9   :  { %vm1419_vm10 = vcmp.gt.f32.partialorder %v1387_v50, 0.0  ;;  %vm1423_vm11 = vcmp.gt.f32.partialorder %v1391_v47, 0.0  ;;  %vm1427_vm12 = vcmp.gt.f32.partialorder %v1395_v10, 0.0  ;;  %vm1431_vm13 = vcmp.gt.f32.partialorder %v1399_v29, 0.0 }
 0x2ba   :  { %vm1435_vm14 = vcmp.gt.f32.partialorder %v1403_v16, 0.0  ;;  %vm1439_vm15 = vcmp.gt.f32.partialorder %v1407_v58, 0.0  ;;  %vm1443_vm0 = vcmp.gt.f32.partialorder %v1411_v27, 0.0  ;;  %vm1447_vm1 = vcmp.gt.f32.partialorder %v1415_v53, 0.0 }
 0x2bb   :  { %v1451_v30 = vmul.f32 0.2, %v1387_v50  ;;  %v1455_v7 = vmul.f32 0.2, %v1391_v47  ;;  %v1459_v26 = vmul.f32 0.2, %v1395_v10  ;;  %v1340_v45 = vsub.f32 %v9302_v14, %v9312_v54 }
 0x2bc   :  { %v1463_v36 = vmul.f32 0.2, %v1399_v29  ;;  %v1467_v62 = vmul.f32 0.2, %v1403_v16  ;;  %v1471_v8 = vmul.f32 0.2, %v1407_v58  ;;  %v1384_v24 = vsel %vm1383_vm3, %v9321_v61, %v1380_v15 }
 0x2bd   :  { %v1475_v31 = vmul.f32 0.2, %v1411_v27  ;;  %v1479_v48 = vmul.f32 0.2, %v1415_v53  ;;  %v9352_v13 = vsel %vm1419_vm10, %v1387_v50, %v1451_v30  ;;  %v9355_v28 = vsel %vm1423_vm11, %v1391_v47, %v1455_v7 }
 0x2be   :  { %v9358_v44 = vsel %vm1427_vm12, %v1395_v10, %v1459_v26  ;;  %v9361_v34 = vsel %vm1431_vm13, %v1399_v29, %v1463_v36  ;;  %v9364_v40 = vsel %vm1435_vm14, %v1403_v16, %v1467_v62  ;;  %v9367_v0 = vsel %vm1439_vm15, %v1407_v58, %v1471_v8 }
 0x2bf   :  { %v9372_v18 = vsel %vm1443_vm0, %v1411_v27, %v1475_v31  ;;  %v9375_v51 = vsel %vm1447_vm1, %v1415_v53, %v1479_v48  ;;  %v1388_v39 = vmul.f32 %v1384_v24, %v1312_v46  ;;  %v1392_v35 = vmul.f32 %v1384_v24, %v1316_v12 }
 0x2c0   :  { %v1396_v42 = vmul.f32 %v1384_v24, %v1320_v25  ;;  %v1400_v37 = vmul.f32 %v1384_v24, %v1324_v23  ;;  %v1404_v59 = vmul.f32 %v1384_v24, %v1328_v5  ;;  %v1408_v19 = vmul.f32 %v1384_v24, %v1332_v57 }
 0x2c1   :  { %v1412_v20 = vmul.f32 %v1384_v24, %v1336_v11  ;;  %v1416_v60 = vmul.f32 %v1384_v24, %v1340_v45  ;;  %vm1420_vm4 = vcmp.gt.f32.partialorder %v1388_v39, 0.0  ;;  %vm1424_vm5 = vcmp.gt.f32.partialorder %v1392_v35, 0.0 }
 0x2c2   :  { %vm1428_vm6 = vcmp.gt.f32.partialorder %v1396_v42, 0.0  ;;  %vm1432_vm7 = vcmp.gt.f32.partialorder %v1400_v37, 0.0  ;;  %vm1436_vm8 = vcmp.gt.f32.partialorder %v1404_v59, 0.0  ;;  %vm1440_vm9 = vcmp.gt.f32.partialorder %v1408_v19, 0.0 }
 0x2c3   :  { %vm1444_vm10 = vcmp.gt.f32.partialorder %v1412_v20, 0.0  ;;  %vm1448_vm11 = vcmp.gt.f32.partialorder %v1416_v60, 0.0  ;;  %v1452_v1 = vmul.f32 0.2, %v1388_v39  ;;  %v1456_v14 = vmul.f32 0.2, %v1392_v35 }
 0x2c4   :  { %v1460_v54 = vmul.f32 0.2, %v1396_v42  ;;  %v1464_v61 = vmul.f32 0.2, %v1400_v37  ;;  %v1468_v46 = vmul.f32 0.2, %v1404_v59 }
 0x2c5   :  { %v1472_v12 = vmul.f32 0.2, %v1408_v19  ;;  %v1476_v25 = vmul.f32 0.2, %v1412_v20  ;;  %v1480_v23 = vmul.f32 0.2, %v1416_v60  ;;  %v9381_v5 = vsel %vm1420_vm4, %v1388_v39, %v1452_v1 }
 0x2c6   :  { %v9384_v57 = vsel %vm1424_vm5, %v1392_v35, %v1456_v14  ;;  %v9387_v11 = vsel %vm1428_vm6, %v1396_v42, %v1460_v54  ;;  %v9390_v55 = vsel %vm1432_vm7, %v1400_v37, %v1464_v61  ;;  %v9393_v50 = vsel %vm1436_vm8, %v1404_v59, %v1468_v46 }
 0x2c7   :  { %v9396_v47 = vsel %vm1440_vm9, %v1408_v19, %v1472_v12  ;;  %v9399_v10 = vsel %vm1444_vm10, %v1412_v20, %v1476_v25  ;;  %v9402_v29 = vsel %vm1448_vm11, %v1416_v60, %v1480_v23 }
 0x2c8   :  { %8605 = dma.done.wait [#allocation4], 32768 }
 0x2c9   :  { %8606 = vsyncadd [#allocation4], 4294934528  ;;  %v6614_v16 = vld [vmem:[#allocation2 + $0x1c0] sm:$0xf] }
 0x2ca   :  { %v8068_v58 = vld [vmem:[#allocation2 + $0x1dc] sm:$0xf0] }
 0x2cb   :  { %v6870_v27 = vld [vmem:[#allocation2 + $0x3c0] sm:$0xf]  ;;  %v6615_v53 = vor.u32 %v8068_v58, %v6614_v16 }
 0x2cc   :  { %v8132_v30 = vld [vmem:[#allocation2 + $0x3dc] sm:$0xf0] }
 0x2cd   :  { %v7126_v7 = vld [vmem:[#allocation2 + $0x5c0] sm:$0xf]  ;;  %v6871_v15 = vor.u32 %v8132_v30, %v6870_v27  ;;  %3069 = vmatpush.bf16.msrb.mxu3 %v6615_v53 }
 0x2ce   :  { %v8196_v26 = vld [vmem:[#allocation2 + $0x5dc] sm:$0xf0] }
 0x2cf   :  { %v7127_v36 = vor.u32 %v8196_v26, %v7126_v7  ;;  %v7382_v62 = vld [vmem:[#allocation2 + $0x7c0] sm:$0xf]  ;;  %3098 = vmatpush.bf16.msrb.mxu0 %v6871_v15 }
 0x2d0   :  { %v8260_v8 = vld [vmem:[#allocation2 + $0x7dc] sm:$0xf0] }
 0x2d1   :  { %v6582_v31 = vld [vmem:[#allocation2 + $0x180] sm:$0xf]  ;;  %v7383_v48 = vor.u32 %v8260_v8, %v7382_v62  ;;  %3127 = vmatpush.bf16.msrb.mxu1 %v7127_v36 }
 0x2d2   :  { %v8060_v45 = vld [vmem:[#allocation2 + $0x19c] sm:$0xf0] }
 0x2d3   :  { %v6838_v24 = vld [vmem:[#allocation2 + $0x380] sm:$0xf]  ;;  %v6583_v35 = vor.u32 %v8060_v45, %v6582_v31  ;;  %3156 = vmatpush.bf16.msrb.mxu2 %v7383_v48 }
 0x2d4   :  { %v8124_v39 = vld [vmem:[#allocation2 + $0x39c] sm:$0xf0] }
 0x2d5   :  { %v6839_v42 = vor.u32 %v8124_v39, %v6838_v24  ;;  %v7094_v37 = vld [vmem:[#allocation2 + $0x580] sm:$0xf]  ;;  %3070 = vmatpush.bf16.msrb.mxu3 %v6583_v35 }
 0x2d6   :  { %v8188_v59 = vld [vmem:[#allocation2 + $0x59c] sm:$0xf0] }
 0x2d7   :  { %v7350_v19 = vld [vmem:[#allocation2 + $0x780] sm:$0xf]  ;;  %v7095_v20 = vor.u32 %v8188_v59, %v7094_v37  ;;  %3099 = vmatpush.bf16.msrb.mxu0 %v6839_v42 }
 0x2d8   :  { %v8252_v60 = vld [vmem:[#allocation2 + $0x79c] sm:$0xf0] }
 0x2d9   :  { %v6550_v1 = vld [vmem:[#allocation2 + $0x140] sm:$0xf]  ;;  %v7351_v54 = vor.u32 %v8252_v60, %v7350_v19  ;;  %3128 = vmatpush.bf16.msrb.mxu1 %v7095_v20 }
 0x2da   :  { %v8052_v14 = vld [vmem:[#allocation2 + $0x15c] sm:$0xf0] }
 0x2db   :  { %v6806_v61 = vld [vmem:[#allocation2 + $0x340] sm:$0xf]  ;;  %v6551_v25 = vor.u32 %v8052_v14, %v6550_v1  ;;  %3157 = vmatpush.bf16.msrb.mxu2 %v7351_v54 }
 0x2dc   :  { %v8116_v46 = vld [vmem:[#allocation2 + $0x35c] sm:$0xf0] }
 0x2dd   :  { %v7062_v12 = vld [vmem:[#allocation2 + $0x540] sm:$0xf]  ;;  %v6807_v27 = vor.u32 %v8116_v46, %v6806_v61  ;;  %3071 = vmatpush.bf16.msrb.mxu3 %v6551_v25 }
 0x2de   :  { %v8180_v23 = vld [vmem:[#allocation2 + $0x55c] sm:$0xf0] }
 0x2df   :  { %v7318_v16 = vld [vmem:[#allocation2 + $0x740] sm:$0xf]  ;;  %v7063_v53 = vor.u32 %v8180_v23, %v7062_v12  ;;  %3100 = vmatpush.bf16.msrb.mxu0 %v6807_v27 }
 0x2e0   :  { %v8244_v58 = vld [vmem:[#allocation2 + $0x75c] sm:$0xf0] }
 0x2e1   :  { %v6518_v30 = vld [vmem:[#allocation2 + $0x100] sm:$0xf]  ;;  %v7319_v15 = vor.u32 %v8244_v58, %v7318_v16  ;;  %3129 = vmatpush.bf16.msrb.mxu1 %v7063_v53 }
 0x2e2   :  { %v8044_v7 = vld [vmem:[#allocation2 + $0x11c] sm:$0xf0] }
 0x2e3   :  { %v6774_v26 = vld [vmem:[#allocation2 + $0x300] sm:$0xf]  ;;  %v6519_v45 = vor.u32 %v8044_v7, %v6518_v30  ;;  %3158 = vmatpush.bf16.msrb.mxu2 %v7319_v15 }
 0x2e4   :  { %v8108_v36 = vld [vmem:[#allocation2 + $0x31c] sm:$0xf0] }
 0x2e5   :  { %v7030_v62 = vld [vmem:[#allocation2 + $0x500] sm:$0xf]  ;;  %v6775_v24 = vor.u32 %v8108_v36, %v6774_v26  ;;  %3072 = vmatpush.bf16.msrb.mxu3 %v6519_v45 }
 0x2e6   :  { %v8172_v8 = vld [vmem:[#allocation2 + $0x51c] sm:$0xf0] }
 0x2e7   :  { %v7286_v31 = vld [vmem:[#allocation2 + $0x700] sm:$0xf]  ;;  %v7031_v39 = vor.u32 %v8172_v8, %v7030_v62  ;;  %3101 = vmatpush.bf16.msrb.mxu0 %v6775_v24 }
 0x2e8   :  { %v8236_v48 = vld [vmem:[#allocation2 + $0x71c] sm:$0xf0] }
 0x2e9   :  { %v6486_v35 = vld [vmem:[#allocation2 + $0xc0] sm:$0xf]  ;;  %v7287_v59 = vor.u32 %v8236_v48, %v7286_v31  ;;  %3130 = vmatpush.bf16.msrb.mxu1 %v7031_v39 }
 0x2ea   :  { %v8036_v42 = vld [vmem:[#allocation2 + $0xdc] sm:$0xf0] }
 0x2eb   :  { %v6742_v37 = vld [vmem:[#allocation2 + $0x2c0] sm:$0xf]  ;;  %v6487_v54 = vor.u32 %v8036_v42, %v6486_v35  ;;  %3159 = vmatpush.bf16.msrb.mxu2 %v7287_v59 }
 0x2ec   :  { %v8100_v19 = vld [vmem:[#allocation2 + $0x2dc] sm:$0xf0] }
 0x2ed   :  { %v6998_v20 = vld [vmem:[#allocation2 + $0x4c0] sm:$0xf]  ;;  %v6743_v61 = vor.u32 %v8100_v19, %v6742_v37  ;;  %3073 = vmatpush.bf16.msrb.mxu3 %v6487_v54 }
 0x2ee   :  { %v8164_v60 = vld [vmem:[#allocation2 + $0x4dc] sm:$0xf0] }
 0x2ef   :  { %v7254_v1 = vld [vmem:[#allocation2 + $0x6c0] sm:$0xf]  ;;  %v6999_v46 = vor.u32 %v8164_v60, %v6998_v20  ;;  %3102 = vmatpush.bf16.msrb.mxu0 %v6743_v61 }
 0x2f0   :  { %v8228_v14 = vld [vmem:[#allocation2 + $0x6dc] sm:$0xf0] }
 0x2f1   :  { %v6454_v12 = vld [vmem:[#allocation2 + $0x80] sm:$0xf]  ;;  %v7255_v16 = vor.u32 %v8228_v14, %v7254_v1  ;;  %3131 = vmatpush.bf16.msrb.mxu1 %v6999_v46 }
 0x2f2   :  { %v8028_v25 = vld [vmem:[#allocation2 + $0x9c] sm:$0xf0] }
 0x2f3   :  { %v6710_v23 = vld [vmem:[#allocation2 + $0x280] sm:$0xf]  ;;  %v6455_v26 = vor.u32 %v8028_v25, %v6454_v12  ;;  %3160 = vmatpush.bf16.msrb.mxu2 %v7255_v16  ;;  %v6616_v16 = vld [vmem:[#allocation2 + $0x1e0] sm:$0xf0] }
 0x2f4   :  { %v8092_v58 = vld [vmem:[#allocation2 + $0x29c] sm:$0xf0] }
 0x2f5   :  { %v6966_v27 = vld [vmem:[#allocation2 + $0x480] sm:$0xf]  ;;  %v6711_v15 = vor.u32 %v8092_v58, %v6710_v23  ;;  %3074 = vmatpush.bf16.msrb.mxu3 %v6455_v26  ;;  %v8064_v23 = vld [vmem:[#allocation2 + $0x1c4] sm:$0xf] }
 0x2f6   :  { %v8156_v53 = vld [vmem:[#allocation2 + $0x49c] sm:$0xf0] }
 0x2f7   :  { %v7222_v30 = vld [vmem:[#allocation2 + $0x680] sm:$0xf]  ;;  %v6967_v36 = vor.u32 %v8156_v53, %v6966_v27  ;;  %3103 = vmatpush.bf16.msrb.mxu0 %v6711_v15  ;;  %v8256_v27 = vld [vmem:[#allocation2 + $0x7c4] sm:$0xf]  ;;  %v6619_v15 = vor.u32 %v8064_v23, %v6616_v16 }
 0x2f8   :  { %v8220_v7 = vld [vmem:[#allocation2 + $0x69c] sm:$0xf0]  ;;  %v7384_v53 = vld [vmem:[#allocation2 + $0x7e0] sm:$0xf0] }
 0x2f9   :  { %v6422_v62 = vld [vmem:[#allocation2 + $0x40] sm:$0xf]  ;;  %v7223_v48 = vor.u32 %v8220_v7, %v7222_v30  ;;  %3132 = vmatpush.bf16.msrb.mxu1 %v6967_v36  ;;  %v8128_v36 = vld [vmem:[#allocation2 + $0x3c4] sm:$0xf] }
 0x2fa   :  { %v8020_v8 = vld [vmem:[#allocation2 + $0x5c] sm:$0xf0]  ;;  %v8040_v23 = vld [vmem:[#allocation2 + $0x104] sm:$0xf] }
 0x2fb   :  { %v6678_v31 = vld [vmem:[#allocation2 + $0x240] sm:$0xf]  ;;  %v6423_v37 = vor.u32 %v8020_v8, %v6422_v62  ;;  %3161 = vmatpush.bf16.msrb.mxu2 %v7223_v48  ;;  %v6872_v62 = vld [vmem:[#allocation2 + $0x3e0] sm:$0xf0]  ;;  %v7387_v48 = vor.u32 %v8256_v27, %v7384_v53 }
 0x2fc   :  { %v8084_v45 = vld [vmem:[#allocation2 + $0x25c] sm:$0xf0]  ;;  %v8056_v8 = vld [vmem:[#allocation2 + $0x184] sm:$0xf] }
 0x2fd   :  { %v6934_v24 = vld [vmem:[#allocation2 + $0x440] sm:$0xf]  ;;  %v6679_v19 = vor.u32 %v8084_v45, %v6678_v31  ;;  %3075 = vmatpush.bf16.msrb.mxu3 %v6423_v37  ;;  %v9406_v31 = vpack.c.bf16 %v9200_v2, %v9197_v38  ;;  %v6584_v45 = vld [vmem:[#allocation2 + $0x1a0] sm:$0xf0]  ;;  %v9418_v38 = vpack.c.bf16 %v9384_v57, %v9381_v5  ;;  %v6875_v2 = vor.u32 %v8128_v36, %v6872_v62 }
 0x2fe   :  { %v8148_v39 = vld [vmem:[#allocation2 + $0x45c] sm:$0xf0]  ;;  %v8248_v37 = vld [vmem:[#allocation2 + $0x784] sm:$0xf] }
 0x2ff   :  { %v7190_v35 = vld [vmem:[#allocation2 + $0x640] sm:$0xf]  ;;  %v6935_v20 = vor.u32 %v8148_v39, %v6934_v24  ;;  %3104 = vmatpush.bf16.msrb.mxu0 %v6679_v19  ;;  %v8192_v24 = vld [vmem:[#allocation2 + $0x5c4] sm:$0xf]  ;;  %v6587_v19 = vor.u32 %v8056_v8, %v6584_v45 }
 0x300   :  { %v8212_v42 = vld [vmem:[#allocation2 + $0x65c] sm:$0xf0]  ;;  %v7128_v39 = vld [vmem:[#allocation2 + $0x5e0] sm:$0xf0] }
 0x301   :  { %v6390_v59 = vld [vmem:[#allocation2] sm:$0xf]  ;;  %v7191_v54 = vor.u32 %v8212_v42, %v7190_v35  ;;  %3133 = vmatpush.bf16.msrb.mxu1 %v6935_v20  ;;  %v9410_v35 = vpack.c.bf16 %v9260_v22, %v9257_v17  ;;  %v9414_v42 = vpack.c.bf16 %v9355_v28, %v9352_v13  ;;  %v7131_v20 = vor.u32 %v8192_v24, %v7128_v39  ;;  %v6840_v17 = vld [vmem:[#allocation2 + $0x3a0] sm:$0xf0] }
 0x302   :  { %v8012_v60 = vld [vmem:[#allocation2 + $0x1c] sm:$0xf0]  ;;  %v8048_v22 = vld [vmem:[#allocation2 + $0x144] sm:$0xf] }
 0x303   :  { %v6646_v1 = vld [vmem:[#allocation2 + $0x200] sm:$0xf]  ;;  %v6391_v58 = vor.u32 %v8012_v60, %v6390_v59  ;;  %3162 = vmatpush.bf16.msrb.mxu2 %v7191_v54  ;;  %v7352_v59 = vld [vmem:[#allocation2 + $0x7a0] sm:$0xf0] }
 0x304   :  { %v8076_v14 = vld [vmem:[#allocation2 + $0x21c] sm:$0xf0]  ;;  %v8120_v60 = vld [vmem:[#allocation2 + $0x384] sm:$0xf]  ;;  %v7355_v13 = vor.u32 %v8248_v37, %v7352_v59 }
 0x305   :  { %v6902_v61 = vld [vmem:[#allocation2 + $0x400] sm:$0xf]  ;;  %v6647_v30 = vor.u32 %v8076_v14, %v6646_v1  ;;  %3076 = vmatpush.bf16.msrb.mxu3 %v6391_v58  ;;  %v6552_v28 = vld [vmem:[#allocation2 + $0x160] sm:$0xf0]  ;;  %v6843_v54 = vor.u32 %v8120_v60, %v6840_v17 }
 0x306   :  { %v8140_v46 = vld [vmem:[#allocation2 + $0x41c] sm:$0xf0]  ;;  %v8184_v1 = vld [vmem:[#allocation2 + $0x584] sm:$0xf] }
 0x307   :  { %v7158_v12 = vld [vmem:[#allocation2 + $0x600] sm:$0xf]  ;;  %v6903_v7 = vor.u32 %v8140_v46, %v6902_v61  ;;  %3105 = vmatpush.bf16.msrb.mxu0 %v6647_v30  ;;  %v7096_v14 = vld [vmem:[#allocation2 + $0x5a0] sm:$0xf0]  ;;  %v6555_v61 = vor.u32 %v8048_v22, %v6552_v28  ;;  %v9426_v28 = vpack.c.bf16 %v9206_v4, %v9203_v52 }
 0x308   :  { %v8204_v25 = vld [vmem:[#allocation2 + $0x61c] sm:$0xf0]  ;;  %3077 = vmatmul.bf16.vlgmr.msrb.gmra.mxu3 %v9406_v31  ;;  %v8240_v5 = vld [vmem:[#allocation2 + $0x744] sm:$0xf]  ;;  %v7099_v46 = vor.u32 %v8184_v1, %v7096_v14 }
 0x309   :  { %v7159_v26 = vor.u32 %v8204_v25, %v7158_v12  ;;  %3134 = vmatpush.bf16.msrb.mxu1 %v6903_v7  ;;  %3185 = vmatpush.bf16.msra.mxu3 %v6619_v15  ;;  %v7320_v57 = vld [vmem:[#allocation2 + $0x760] sm:$0xf0] }
 0x30a   :  { %3106 = vmatmul.bf16.vlgmr.msrb.gmra.mxu0 %v9410_v35  ;;  %v8112_v12 = vld [vmem:[#allocation2 + $0x344] sm:$0xf]  ;;  %v7323_v16 = vor.u32 %v8240_v5, %v7320_v57 }
 0x30b   :  { %3163 = vmatpush.bf16.msrb.mxu2 %v7159_v26  ;;  %3214 = vmatpush.bf16.msra.mxu0 %v6875_v2  ;;  %v6808_v25 = vld [vmem:[#allocation2 + $0x360] sm:$0xf0] }
 0x30c   :  { %3135 = vmatmul.bf16.vlgmr.msrb.gmra.mxu1 %v9414_v42  ;;  %v6520_v58 = vld [vmem:[#allocation2 + $0x120] sm:$0xf0]  ;;  %v6811_v26 = vor.u32 %v8112_v12, %v6808_v25  ;;  %v9438_v25 = vpack.c.bf16 %v9390_v55, %v9387_v11 }
 0x30d   :  { %3186 = vmatpush.bf16.msra.mxu3 %v6587_v19  ;;  %3243 = vmatpush.bf16.msra.mxu1 %v7131_v20  ;;  %v8176_v27 = vld [vmem:[#allocation2 + $0x544] sm:$0xf]  ;;  %v6523_v15 = vor.u32 %v8040_v23, %v6520_v58 }
 0x30e   :  { %3164 = vmatmul.bf16.vlgmr.msrb.gmra.mxu2 %v9418_v38  ;;  %v7064_v53 = vld [vmem:[#allocation2 + $0x560] sm:$0xf0] }
 0x30f   :  { %3272 = vmatpush.bf16.msra.mxu2 %v7387_v48  ;;  %v8232_v30 = vld [vmem:[#allocation2 + $0x704] sm:$0xf]  ;;  %3215 = vmatpush.bf16.msra.mxu0 %v6843_v54  ;;  %v7067_v36 = vor.u32 %v8176_v27, %v7064_v53  ;;  %v9430_v54 = vpack.c.bf16 %v9266_v63, %v9263_v21 }
 0x310   :  { %v7288_v7 = vld [vmem:[#allocation2 + $0x720] sm:$0xf0] }
 0x311   :  { %3187 = vmatpush.bf16.msra.mxu3 %v6555_v61  ;;  %3244 = vmatpush.bf16.msra.mxu1 %v7099_v46  ;;  %v8104_v62 = vld [vmem:[#allocation2 + $0x304] sm:$0xf]  ;;  %v7291_v45 = vor.u32 %v8232_v30, %v7288_v7  ;;  %v9434_v61 = vpack.c.bf16 %v9361_v34, %v9358_v44 }
 0x312   :  { %v6776_v8 = vld [vmem:[#allocation2 + $0x320] sm:$0xf0] }
 0x313   :  { %3273 = vmatpush.bf16.msra.mxu2 %v7355_v13  ;;  %v8032_v48 = vld [vmem:[#allocation2 + $0xc4] sm:$0xf]  ;;  %3216 = vmatpush.bf16.msra.mxu0 %v6811_v26  ;;  %v6779_v19 = vor.u32 %v8104_v62, %v6776_v8 }
 0x314   :  { %v6488_v24 = vld [vmem:[#allocation2 + $0xe0] sm:$0xf0] }
 0x315   :  { %v8168_v39 = vld [vmem:[#allocation2 + $0x504] sm:$0xf]  ;;  %3188 = vmatpush.bf16.msra.mxu3 %v6523_v15  ;;  %3245 = vmatpush.bf16.msra.mxu1 %v7067_v36  ;;  %v6491_v20 = vor.u32 %v8032_v48, %v6488_v24 }
 0x316   :  { %v7032_v37 = vld [vmem:[#allocation2 + $0x520] sm:$0xf0] }
 0x317   :  { %3274 = vmatpush.bf16.msra.mxu2 %v7323_v16  ;;  %v8224_v59 = vld [vmem:[#allocation2 + $0x6c4] sm:$0xf]  ;;  %v7035_v60 = vor.u32 %v8168_v39, %v7032_v37  ;;  %3217 = vmatpush.bf16.msra.mxu0 %v6779_v19 }
 0x318   :  { %v7256_v2 = vld [vmem:[#allocation2 + $0x6e0] sm:$0xf0]  ;;  %3082 = vmatmul.bf16.gmra.mxu3 %v9426_v28 }
 0x319   :  { %v8096_v17 = vld [vmem:[#allocation2 + $0x2c4] sm:$0xf]  ;;  %v7259_v1 = vor.u32 %v8224_v59, %v7256_v2  ;;  %3189 = vmatpush.bf16.msra.mxu3 %v6491_v20  ;;  %3246 = vmatpush.bf16.msra.mxu1 %v7035_v60 }
 0x31a   :  { %v6744_v22 = vld [vmem:[#allocation2 + $0x2e0] sm:$0xf0]  ;;  %3111 = vmatmul.bf16.gmra.mxu0 %v9430_v54 }
 0x31b   :  { %v8024_v13 = vld [vmem:[#allocation2 + $0x84] sm:$0xf]  ;;  %3275 = vmatpush.bf16.msra.mxu2 %v7291_v45  ;;  %v6747_v52 = vor.u32 %v8096_v17, %v6744_v22 }
 0x31c   :  { %v6456_v14 = vld [vmem:[#allocation2 + $0xa0] sm:$0xf0]  ;;  %3140 = vmatmul.bf16.gmra.mxu1 %v9434_v61 }
 0x31d   :  { %v8160_v5 = vld [vmem:[#allocation2 + $0x4c4] sm:$0xf]  ;;  %v6459_v4 = vor.u32 %v8024_v13, %v6456_v14  ;;  %3218 = vmatpush.bf16.msra.mxu0 %v6747_v52  ;;  %v9446_v14 = vpack.c.bf16 %v9212_v9, %v9209_v6  ;;  %v6622_v6 = vld [vmem:[#allocation2 + $0x1c8] sm:$0xf] }
 0x31e   :  { %v7000_v57 = vld [vmem:[#allocation2 + $0x4e0] sm:$0xf0]  ;;  %3169 = vmatmul.bf16.gmra.mxu2 %v9438_v25  ;;  %v8069_v9 = vld [vmem:[#allocation2 + $0x1e4] sm:$0xf0] }
 0x31f   :  { %v8216_v46 = vld [vmem:[#allocation2 + $0x684] sm:$0xf]  ;;  %v7003_v23 = vor.u32 %v8160_v5, %v7000_v57  ;;  %3276 = vmatpush.bf16.msra.mxu2 %v7259_v1  ;;  %3190 = vmatpush.bf16.msra.mxu3 %v6459_v4  ;;  %v9450_v5 = vpack.c.bf16 %v9272_v33, %v9269_v3  ;;  %v9454_v57 = vpack.c.bf16 %v9367_v0, %v9364_v40  ;;  %v7390_v3 = vld [vmem:[#allocation2 + $0x7c8] sm:$0xf] }
 0x320   :  { %v7224_v12 = vld [vmem:[#allocation2 + $0x6a0] sm:$0xf0]  ;;  %v6623_v33 = vor.u32 %v8069_v9, %v6622_v6  ;;  %v8261_v40 = vld [vmem:[#allocation2 + $0x7e4] sm:$0xf0] }
 0x321   :  { %v8088_v16 = vld [vmem:[#allocation2 + $0x284] sm:$0xf]  ;;  %v7227_v21 = vor.u32 %v8216_v46, %v7224_v12  ;;  %3247 = vmatpush.bf16.msra.mxu1 %v7003_v23  ;;  %10780 = vst [vmem:[#allocation22_spill] sm:$0xff] %v9454_v57  ;;  %v9458_v46 = vpack.c.bf16 %v9396_v47, %v9393_v50  ;;  %v6878_v0 = vld [vmem:[#allocation2 + $0x3c8] sm:$0xf]  ;;  %v7391_v52 = vor.u32 %v8261_v40, %v7390_v3 }
 0x322   :  { %v6712_v58 = vld [vmem:[#allocation2 + $0x2a0] sm:$0xf0]  ;;  %v8133_v12 = vld [vmem:[#allocation2 + $0x3e4] sm:$0xf0] }
 0x323   :  { %v6715_v63 = vor.u32 %v8088_v16, %v6712_v58  ;;  %v8016_v44 = vld [vmem:[#allocation2 + $0x44] sm:$0xf]  ;;  %3277 = vmatpush.bf16.msra.mxu2 %v7227_v21  ;;  %v6879_v50 = vor.u32 %v8133_v12, %v6878_v0  ;;  %v6590_v47 = vld [vmem:[#allocation2 + $0x188] sm:$0xf] }
 0x324   :  { %v6424_v34 = vld [vmem:[#allocation2 + $0x60] sm:$0xf0]  ;;  %v8061_v4 = vld [vmem:[#allocation2 + $0x1a4] sm:$0xf0] }
 0x325   :  { %v8152_v11 = vld [vmem:[#allocation2 + $0x484] sm:$0xf]  ;;  %v6427_v55 = vor.u32 %v8016_v44, %v6424_v34  ;;  %3219 = vmatpush.bf16.msra.mxu0 %v6715_v63  ;;  %v7134_v23 = vld [vmem:[#allocation2 + $0x5c8] sm:$0xf]  ;;  %v6591_v16 = vor.u32 %v8061_v4, %v6590_v47 }
 0x326   :  { %v6968_v27 = vld [vmem:[#allocation2 + $0x4a0] sm:$0xf0]  ;;  %v8197_v58 = vld [vmem:[#allocation2 + $0x5e4] sm:$0xf0] }
 0x327   :  { %v8208_v53 = vld [vmem:[#allocation2 + $0x644] sm:$0xf]  ;;  %v6971_v7 = vor.u32 %v8152_v11, %v6968_v27  ;;  %3191 = vmatpush.bf16.msra.mxu3 %v6427_v55  ;;  %v7358_v21 = vld [vmem:[#allocation2 + $0x788] sm:$0xf]  ;;  %v7135_v44 = vor.u32 %v8197_v58, %v7134_v23 }
 0x328   :  { %v7192_v30 = vld [vmem:[#allocation2 + $0x660] sm:$0xf0]  ;;  %3087 = vmatmul.bf16.gmra.mxu3 %v9446_v14  ;;  %v8253_v63 = vld [vmem:[#allocation2 + $0x7a4] sm:$0xf0] }
 0x329   :  { %v7195_v26 = vor.u32 %v8208_v53, %v7192_v30  ;;  %v8080_v15 = vld [vmem:[#allocation2 + $0x244] sm:$0xf]  ;;  %3248 = vmatpush.bf16.msra.mxu1 %v6971_v7  ;;  %v7359_v34 = vor.u32 %v8253_v63, %v7358_v21  ;;  %v6846_v11 = vld [vmem:[#allocation2 + $0x388] sm:$0xf]  ;;  %v9466_v53 = vpack.c.bf16 %v9222_v32, %v9219_v56  ;;  %v9470_v30 = vpack.c.bf16 %v9278_v41, %v9275_v49 }
 0x32a   :  { %v6680_v36 = vld [vmem:[#allocation2 + $0x260] sm:$0xf0]  ;;  %3116 = vmatmul.bf16.gmra.mxu0 %v9450_v5  ;;  %v8125_v55 = vld [vmem:[#allocation2 + $0x3a4] sm:$0xf0]  ;;  %v9474_v7 = vpack.c.bf16 %v9375_v51, %v9372_v18 }
 0x32b   :  { %v8008_v62 = vld [vmem:[#allocation2 + $0x4] sm:$0xf]  ;;  %v6683_v24 = vor.u32 %v8080_v15, %v6680_v36  ;;  %3278 = vmatpush.bf16.msra.mxu2 %v7195_v26  ;;  %v6847_v27 = vor.u32 %v8125_v55, %v6846_v11  ;;  %v9478_v26 = vpack.c.bf16 %v9402_v29, %v9399_v10  ;;  %v6558_v56 = vld [vmem:[#allocation2 + $0x148] sm:$0xf] }
 0x32c   :  { %v6392_v8 = vld [vmem:[#allocation2 + $0x20] sm:$0xf0]  ;;  %3145 = vmatmul.bf16.gmra.mxu1 %v9454_v57  ;;  %v8053_v32 = vld [vmem:[#allocation2 + $0x164] sm:$0xf0] }
 0x32d   :  { %v8144_v48 = vld [vmem:[#allocation2 + $0x444] sm:$0xf]  ;;  %v6395_v59 = vor.u32 %v8008_v62, %v6392_v8  ;;  %3220 = vmatpush.bf16.msra.mxu0 %v6683_v24  ;;  %v7102_v49 = vld [vmem:[#allocation2 + $0x588] sm:$0xf]  ;;  %v6559_v41 = vor.u32 %v8053_v32, %v6558_v56 }
 0x32e   :  { %v6936_v45 = vld [vmem:[#allocation2 + $0x460] sm:$0xf0]  ;;  %3174 = vmatmul.bf16.gmra.mxu2 %v9458_v46  ;;  %v8189_v15 = vld [vmem:[#allocation2 + $0x5a4] sm:$0xf0] }
 0x32f   :  { %v8200_v39 = vld [vmem:[#allocation2 + $0x604] sm:$0xf]  ;;  %v6939_v2 = vor.u32 %v8144_v48, %v6936_v45  ;;  %3192 = vmatpush.bf16.msra.mxu3 %v6395_v59  ;;  %v7326_v36 = vld [vmem:[#allocation2 + $0x748] sm:$0xf]  ;;  %v7103_v51 = vor.u32 %v8189_v15, %v7102_v49 }
 0x330   :  { %v7160_v37 = vld [vmem:[#allocation2 + $0x620] sm:$0xf0]  ;;  %v8245_v18 = vld [vmem:[#allocation2 + $0x764] sm:$0xf0] }
 0x331   :  { %v8072_v19 = vld [vmem:[#allocation2 + $0x204] sm:$0xf]  ;;  %v7163_v60 = vor.u32 %v8200_v39, %v7160_v37  ;;  %3249 = vmatpush.bf16.msra.mxu1 %v6939_v2  ;;  %v7327_v62 = vor.u32 %v8245_v18, %v7326_v36  ;;  %v6814_v8 = vld [vmem:[#allocation2 + $0x348] sm:$0xf] }
 0x332   :  { %v6648_v20 = vld [vmem:[#allocation2 + $0x220] sm:$0xf0]  ;;  %v8117_v10 = vld [vmem:[#allocation2 + $0x364] sm:$0xf0] }
 0x333   :  { %v8136_v17 = vld [vmem:[#allocation2 + $0x404] sm:$0xf]  ;;  %v6651_v13 = vor.u32 %v8072_v19, %v6648_v20  ;;  %3279 = vmatpush.bf16.msra.mxu2 %v7163_v60  ;;  %3301 = vmatpush.bf16.msrb.mxu3 %v6623_v33  ;;  %v6526_v29 = vld [vmem:[#allocation2 + $0x108] sm:$0xf]  ;;  %v6815_v48 = vor.u32 %v8117_v10, %v6814_v8 }
 0x334   :  { %v6904_v22 = vld [vmem:[#allocation2 + $0x420] sm:$0xf0]  ;;  %v8045_v45 = vld [vmem:[#allocation2 + $0x124] sm:$0xf0] }
 0x335   :  { %v6907_v1 = vor.u32 %v8136_v17, %v6904_v22  ;;  %3221 = vmatpush.bf16.msra.mxu0 %v6651_v13  ;;  %v7070_v24 = vld [vmem:[#allocation2 + $0x548] sm:$0xf]  ;;  %v6527_v37 = vor.u32 %v8045_v45, %v6526_v29 }
 0x336   :  { %v8181_v39 = vld [vmem:[#allocation2 + $0x564] sm:$0xf0] }
 0x337   :  { %3250 = vmatpush.bf16.msra.mxu1 %v6907_v1  ;;  %3388 = vmatpush.bf16.msrb.mxu2 %v7391_v52  ;;  %v7071_v59 = vor.u32 %v8181_v39, %v7070_v24  ;;  %v7294_v2 = vld [vmem:[#allocation2 + $0x708] sm:$0xf] }
 0x338   :  { %3302 = vmatpush.bf16.msrb.mxu3 %v6591_v16  ;;  %v8237_v19 = vld [vmem:[#allocation2 + $0x724] sm:$0xf0] }
 0x339   :  { %3330 = vmatpush.bf16.msrb.mxu0 %v6879_v50  ;;  %3092 = vmatmul.bf16.gmra.mxu3 %v9466_v53  ;;  %v6782_v20 = vld [vmem:[#allocation2 + $0x308] sm:$0xf]  ;;  %v7295_v60 = vor.u32 %v8237_v19, %v7294_v2 }
 0x33a   :  { %3121 = vmatmul.bf16.gmra.mxu0 %v9470_v30  ;;  %v8109_v17 = vld [vmem:[#allocation2 + $0x324] sm:$0xf0] }
 0x33b   :  { %3359 = vmatpush.bf16.msrb.mxu1 %v7135_v44  ;;  %3389 = vmatpush.bf16.msrb.mxu2 %v7359_v34  ;;  %v6783_v22 = vor.u32 %v8109_v17, %v6782_v20  ;;  %v6494_v13 = vld [vmem:[#allocation2 + $0xc8] sm:$0xf] }
 0x33c   :  { %3150 = vmatmul.bf16.gmra.mxu1 %v9474_v7  ;;  %3303 = vmatpush.bf16.msrb.mxu3 %v6559_v41  ;;  %v8037_v1 = vld [vmem:[#allocation2 + $0xe4] sm:$0xf0] }
 0x33d   :  { %3331 = vmatpush.bf16.msrb.mxu0 %v6847_v27  ;;  %v7038_v6 = vld [vmem:[#allocation2 + $0x508] sm:$0xf]  ;;  %v6495_v9 = vor.u32 %v8037_v1, %v6494_v13 }
 0x33e   :  { %3179 = vmatmul.bf16.gmra.mxu2 %v9478_v26  ;;  %v8173_v3 = vld [vmem:[#allocation2 + $0x524] sm:$0xf0] }
 0x33f   :  { %3360 = vmatpush.bf16.msrb.mxu1 %v7103_v51  ;;  %3390 = vmatpush.bf16.msrb.mxu2 %v7327_v62  ;;  %v7262_v33 = vld [vmem:[#allocation2 + $0x6c8] sm:$0xf]  ;;  %v7039_v0 = vor.u32 %v8173_v3, %v7038_v6  ;;  %v8065_v3 = vld [vmem:[#allocation2 + $0x1cc] sm:$0xf] }
 0x340   :  { %3304 = vmatpush.bf16.msrb.mxu3 %v6527_v37  ;;  %v8229_v40 = vld [vmem:[#allocation2 + $0x6e4] sm:$0xf0] }
 0x341   :  { %3332 = vmatpush.bf16.msrb.mxu0 %v6815_v48  ;;  %v7263_v12 = vor.u32 %v8229_v40, %v7262_v33  ;;  %v6750_v52 = vld [vmem:[#allocation2 + $0x2c8] sm:$0xf]  ;;  %v6624_v33 = vld [vmem:[#allocation2 + $0x1e8] sm:$0xf0] }
 0x342   :  { %v8101_v50 = vld [vmem:[#allocation2 + $0x2e4] sm:$0xf0]  ;;  %v6627_v40 = vor.u32 %v8065_v3, %v6624_v33  ;;  %v6784_v33 = vld [vmem:[#allocation2 + $0x328] sm:$0xf0] }
 0x343   :  { %3361 = vmatpush.bf16.msrb.mxu1 %v7071_v59  ;;  %3391 = vmatpush.bf16.msrb.mxu2 %v7295_v60  ;;  %v6462_v47 = vld [vmem:[#allocation2 + $0x88] sm:$0xf]  ;;  %v6751_v4 = vor.u32 %v8101_v50, %v6750_v52  ;;  %v8129_v52 = vld [vmem:[#allocation2 + $0x3cc] sm:$0xf] }
 0x344   :  { %3305 = vmatpush.bf16.msrb.mxu3 %v6495_v9  ;;  %v8029_v23 = vld [vmem:[#allocation2 + $0xa4] sm:$0xf0] }
 0x345   :  { %3333 = vmatpush.bf16.msrb.mxu0 %v6783_v22  ;;  %v7006_v16 = vld [vmem:[#allocation2 + $0x4c8] sm:$0xf]  ;;  %v6463_v21 = vor.u32 %v8029_v23, %v6462_v47  ;;  %v6880_v47 = vld [vmem:[#allocation2 + $0x3e8] sm:$0xf0] }
 0x346   :  { %v8165_v58 = vld [vmem:[#allocation2 + $0x4e4] sm:$0xf0]  ;;  %v6592_v23 = vld [vmem:[#allocation2 + $0x1a8] sm:$0xf0] }
 0x347   :  { %3362 = vmatpush.bf16.msrb.mxu1 %v7039_v0  ;;  %3392 = vmatpush.bf16.msrb.mxu2 %v7263_v12  ;;  %v7007_v63 = vor.u32 %v8165_v58, %v7006_v16  ;;  %v7230_v44 = vld [vmem:[#allocation2 + $0x688] sm:$0xf]  ;;  %v8257_v0 = vld [vmem:[#allocation2 + $0x7cc] sm:$0xf]  ;;  %v6883_v16 = vor.u32 %v8129_v52, %v6880_v47 }
 0x348   :  { %v8221_v34 = vld [vmem:[#allocation2 + $0x6a4] sm:$0xf0]  ;;  %3306 = vmatpush.bf16.msrb.mxu3 %v6463_v21  ;;  %v7392_v12 = vld [vmem:[#allocation2 + $0x7e8] sm:$0xf0] }
 0x349   :  { %3193 = vmatmul.bf16.vlgmr.msra.gmra.mxu3 %v9406_v31  ;;  %v6718_v11 = vld [vmem:[#allocation2 + $0x288] sm:$0xf]  ;;  %3334 = vmatpush.bf16.msrb.mxu0 %v6751_v4  ;;  %v7231_v55 = vor.u32 %v8221_v34, %v7230_v44  ;;  %v7395_v50 = vor.u32 %v8257_v0, %v7392_v12  ;;  %v8057_v4 = vld [vmem:[#allocation2 + $0x18c] sm:$0xf] }
 0x34a   :  { %3222 = vmatmul.bf16.vlgmr.msra.gmra.mxu0 %v9410_v35  ;;  %v8093_v27 = vld [vmem:[#allocation2 + $0x2a4] sm:$0xf0]  ;;  %v6595_v58 = vor.u32 %v8057_v4, %v6592_v23  ;;  %v8193_v21 = vld [vmem:[#allocation2 + $0x5cc] sm:$0xf] }
 0x34b   :  { %v6719_v56 = vor.u32 %v8093_v27, %v6718_v11  ;;  %3363 = vmatpush.bf16.msrb.mxu1 %v7007_v63  ;;  %3393 = vmatpush.bf16.msrb.mxu2 %v7231_v55  ;;  %v6430_v32 = vld [vmem:[#allocation2 + $0x48] sm:$0xf]  ;;  %v7136_v63 = vld [vmem:[#allocation2 + $0x5e8] sm:$0xf0] }
 0x34c   :  { %3251 = vmatmul.bf16.vlgmr.msra.gmra.mxu1 %v9414_v42  ;;  %v8021_v49 = vld [vmem:[#allocation2 + $0x64] sm:$0xf0]  ;;  %v7139_v44 = vor.u32 %v8193_v21, %v7136_v63  ;;  %v8249_v34 = vld [vmem:[#allocation2 + $0x78c] sm:$0xf] }
 0x34d   :  { %3335 = vmatpush.bf16.msrb.mxu0 %v6719_v56  ;;  %v6974_v41 = vld [vmem:[#allocation2 + $0x488] sm:$0xf]  ;;  %v6431_v15 = vor.u32 %v8021_v49, %v6430_v32  ;;  %v7360_v11 = vld [vmem:[#allocation2 + $0x7a8] sm:$0xf0] }
 0x34e   :  { %3280 = vmatmul.bf16.vlgmr.msra.gmra.mxu2 %v9418_v38  ;;  %v8157_v36 = vld [vmem:[#allocation2 + $0x4a4] sm:$0xf0]  ;;  %v8121_v55 = vld [vmem:[#allocation2 + $0x38c] sm:$0xf]  ;;  %v7363_v27 = vor.u32 %v8249_v34, %v7360_v11 }
 0x34f   :  { %v7198_v18 = vld [vmem:[#allocation2 + $0x648] sm:$0xf]  ;;  %v6975_v62 = vor.u32 %v8157_v36, %v6974_v41  ;;  %3307 = vmatpush.bf16.msrb.mxu3 %v6431_v15  ;;  %v6848_v56 = vld [vmem:[#allocation2 + $0x3a8] sm:$0xf0] }
 0x350   :  { %v8213_v51 = vld [vmem:[#allocation2 + $0x664] sm:$0xf0]  ;;  %v8049_v32 = vld [vmem:[#allocation2 + $0x14c] sm:$0xf]  ;;  %v6851_v41 = vor.u32 %v8121_v55, %v6848_v56 }
 0x351   :  { %v7199_v8 = vor.u32 %v8213_v51, %v7198_v18  ;;  %v6686_v10 = vld [vmem:[#allocation2 + $0x248] sm:$0xf]  ;;  %3364 = vmatpush.bf16.msrb.mxu1 %v6975_v62  ;;  %v6560_v49 = vld [vmem:[#allocation2 + $0x168] sm:$0xf0] }
 0x352   :  { %v8085_v29 = vld [vmem:[#allocation2 + $0x264] sm:$0xf0]  ;;  %v6563_v15 = vor.u32 %v8049_v32, %v6560_v49  ;;  %v8185_v36 = vld [vmem:[#allocation2 + $0x58c] sm:$0xf] }
 0x353   :  { %v6398_v48 = vld [vmem:[#allocation2 + $0x8] sm:$0xf]  ;;  %v6687_v45 = vor.u32 %v8085_v29, %v6686_v10  ;;  %3394 = vmatpush.bf16.msrb.mxu2 %v7199_v8  ;;  %v7104_v18 = vld [vmem:[#allocation2 + $0x5a8] sm:$0xf0] }
 0x354   :  { %v8013_v24 = vld [vmem:[#allocation2 + $0x24] sm:$0xf0]  ;;  %v7107_v51 = vor.u32 %v8185_v36, %v7104_v18  ;;  %v8241_v62 = vld [vmem:[#allocation2 + $0x74c] sm:$0xf] }
 0x355   :  { %v6942_v39 = vld [vmem:[#allocation2 + $0x448] sm:$0xf]  ;;  %v6399_v59 = vor.u32 %v8013_v24, %v6398_v48  ;;  %3336 = vmatpush.bf16.msrb.mxu0 %v6687_v45  ;;  %v7328_v8 = vld [vmem:[#allocation2 + $0x768] sm:$0xf0] }
 0x356   :  { %v8149_v37 = vld [vmem:[#allocation2 + $0x464] sm:$0xf0]  ;;  %v8113_v10 = vld [vmem:[#allocation2 + $0x34c] sm:$0xf]  ;;  %v7331_v29 = vor.u32 %v8241_v62, %v7328_v8 }
 0x357   :  { %v6943_v2 = vor.u32 %v8149_v37, %v6942_v39  ;;  %v7166_v19 = vld [vmem:[#allocation2 + $0x608] sm:$0xf]  ;;  %3308 = vmatpush.bf16.msrb.mxu3 %v6399_v59  ;;  %v6816_v48 = vld [vmem:[#allocation2 + $0x368] sm:$0xf0] }
 0x358   :  { %v8205_v20 = vld [vmem:[#allocation2 + $0x624] sm:$0xf0]  ;;  %v8041_v45 = vld [vmem:[#allocation2 + $0x10c] sm:$0xf]  ;;  %v6819_v59 = vor.u32 %v8113_v10, %v6816_v48 }
 0x359   :  { %3198 = vmatmul.bf16.gmra.mxu3 %v9426_v28  ;;  %v7167_v60 = vor.u32 %v8205_v20, %v7166_v19  ;;  %3365 = vmatpush.bf16.msrb.mxu1 %v6943_v2  ;;  %v6654_v17 = vld [vmem:[#allocation2 + $0x208] sm:$0xf]  ;;  %v6528_v24 = vld [vmem:[#allocation2 + $0x128] sm:$0xf0] }
 0x35a   :  { %3227 = vmatmul.bf16.gmra.mxu0 %v9430_v54  ;;  %v8077_v22 = vld [vmem:[#allocation2 + $0x224] sm:$0xf0]  ;;  %v6531_v2 = vor.u32 %v8041_v45, %v6528_v24  ;;  %v8177_v19 = vld [vmem:[#allocation2 + $0x54c] sm:$0xf] }
 0x35b   :  { %3395 = vmatpush.bf16.msrb.mxu2 %v7167_v60  ;;  %v6910_v13 = vld [vmem:[#allocation2 + $0x408] sm:$0xf]  ;;  %v6655_v1 = vor.u32 %v8077_v22, %v6654_v17  ;;  %3417 = vmatpush.bf16.msra.mxu3 %v6627_v40  ;;  %v7072_v20 = vld [vmem:[#allocation2 + $0x568] sm:$0xf0] }
 0x35c   :  { %3256 = vmatmul.bf16.gmra.mxu1 %v9434_v61  ;;  %v8141_v6 = vld [vmem:[#allocation2 + $0x424] sm:$0xf0]  ;;  %v7075_v60 = vor.u32 %v8177_v19, %v7072_v20  ;;  %v8033_v40 = vld [vmem:[#allocation2 + $0xcc] sm:$0xf] }
 0x35d   :  { %v6911_v9 = vor.u32 %v8141_v6, %v6910_v13  ;;  %3337 = vmatpush.bf16.msrb.mxu0 %v6655_v1  ;;  %v8233_v13 = vld [vmem:[#allocation2 + $0x70c] sm:$0xf] }
 0x35e   :  { %3285 = vmatmul.bf16.gmra.mxu2 %v9438_v25  ;;  %v7296_v1 = vld [vmem:[#allocation2 + $0x728] sm:$0xf0] }
 0x35f   :  { %3366 = vmatpush.bf16.msrb.mxu1 %v6911_v9  ;;  %3504 = vmatpush.bf16.msra.mxu2 %v7395_v50  ;;  %v8105_v6 = vld [vmem:[#allocation2 + $0x30c] sm:$0xf]  ;;  %v7299_v3 = vor.u32 %v8233_v13, %v7296_v1 }
 0x360   :  { %3418 = vmatpush.bf16.msra.mxu3 %v6595_v58  ;;  %v6496_v0 = vld [vmem:[#allocation2 + $0xe8] sm:$0xf0]  ;;  %v6787_v47 = vor.u32 %v8105_v6, %v6784_v33 }
 0x361   :  { %3446 = vmatpush.bf16.msra.mxu0 %v6883_v16  ;;  %v6499_v4 = vor.u32 %v8033_v40, %v6496_v0  ;;  %v8169_v23 = vld [vmem:[#allocation2 + $0x50c] sm:$0xf] }
 0x362   :  { %v7040_v16 = vld [vmem:[#allocation2 + $0x528] sm:$0xf0] }
 0x363   :  { %3475 = vmatpush.bf16.msra.mxu1 %v7139_v44  ;;  %3505 = vmatpush.bf16.msra.mxu2 %v7363_v27  ;;  %v7043_v58 = vor.u32 %v8169_v23, %v7040_v16  ;;  %v8225_v34 = vld [vmem:[#allocation2 + $0x6cc] sm:$0xf] }
 0x364   :  { %3419 = vmatpush.bf16.msra.mxu3 %v6563_v15  ;;  %v7264_v11 = vld [vmem:[#allocation2 + $0x6e8] sm:$0xf0] }
 0x365   :  { %3447 = vmatpush.bf16.msra.mxu0 %v6851_v41  ;;  %v8097_v55 = vld [vmem:[#allocation2 + $0x2cc] sm:$0xf]  ;;  %v7267_v56 = vor.u32 %v8225_v34, %v7264_v11 }
 0x366   :  { %v6752_v32 = vld [vmem:[#allocation2 + $0x2e8] sm:$0xf0] }
 0x367   :  { %3476 = vmatpush.bf16.msra.mxu1 %v7107_v51  ;;  %3506 = vmatpush.bf16.msra.mxu2 %v7331_v29  ;;  %v8025_v49 = vld [vmem:[#allocation2 + $0x8c] sm:$0xf]  ;;  %v6755_v51 = vor.u32 %v8097_v55, %v6752_v32 }
 0x368   :  { %3420 = vmatpush.bf16.msra.mxu3 %v6531_v2  ;;  %v6464_v41 = vld [vmem:[#allocation2 + $0xa8] sm:$0xf0] }
 0x369   :  { %3203 = vmatmul.bf16.gmra.mxu3 %v9446_v14  ;;  %3448 = vmatpush.bf16.msra.mxu0 %v6819_v59  ;;  %v6467_v62 = vor.u32 %v8025_v49, %v6464_v41  ;;  %v8161_v8 = vld [vmem:[#allocation2 + $0x4cc] sm:$0xf] }
 0x36a   :  { %3232 = vmatmul.bf16.gmra.mxu0 %v9450_v5  ;;  %v7008_v10 = vld [vmem:[#allocation2 + $0x4e8] sm:$0xf0] }
 0x36b   :  { %3477 = vmatpush.bf16.msra.mxu1 %v7075_v60  ;;  %3507 = vmatpush.bf16.msra.mxu2 %v7299_v3  ;;  %v7011_v29 = vor.u32 %v8161_v8, %v7008_v10  ;;  %v8217_v19 = vld [vmem:[#allocation2 + $0x68c] sm:$0xf] }
 0x36c   :  { %3261 = vmatmul.bf16.gmra.mxu1 %v9454_v57  ;;  %3421 = vmatpush.bf16.msra.mxu3 %v6499_v4  ;;  %v7232_v20 = vld [vmem:[#allocation2 + $0x6a8] sm:$0xf0] }
 0x36d   :  { %3449 = vmatpush.bf16.msra.mxu0 %v6787_v47  ;;  %v8089_v60 = vld [vmem:[#allocation2 + $0x28c] sm:$0xf] }
 0x36e   :  { %3290 = vmatmul.bf16.gmra.mxu2 %v9458_v46  ;;  %v6720_v13 = vld [vmem:[#allocation2 + $0x2a8] sm:$0xf0] }
 0x36f   :  { %3478 = vmatpush.bf16.msra.mxu1 %v7043_v58  ;;  %3508 = vmatpush.bf16.msra.mxu2 %v7267_v56  ;;  %v8017_v1 = vld [vmem:[#allocation2 + $0x4c] sm:$0xf]  ;;  %v6723_v40 = vor.u32 %v8089_v60, %v6720_v13 }
 0x370   :  { %3422 = vmatpush.bf16.msra.mxu3 %v6467_v62  ;;  %v6432_v6 = vld [vmem:[#allocation2 + $0x68] sm:$0xf0] }
 0x371   :  { %3450 = vmatpush.bf16.msra.mxu0 %v6755_v51  ;;  %v6435_v0 = vor.u32 %v8017_v1, %v6432_v6  ;;  %v8209_v4 = vld [vmem:[#allocation2 + $0x64c] sm:$0xf] }
 0x372   :  { %v7200_v23 = vld [vmem:[#allocation2 + $0x668] sm:$0xf0] }
 0x373   :  { %3479 = vmatpush.bf16.msra.mxu1 %v7011_v29  ;;  %v8081_v16 = vld [vmem:[#allocation2 + $0x24c] sm:$0xf]  ;;  %v7203_v58 = vor.u32 %v8209_v4, %v7200_v23 }
 0x374   :  { %3423 = vmatpush.bf16.msra.mxu3 %v6435_v0  ;;  %v6944_v34 = vld [vmem:[#allocation2 + $0x468] sm:$0xf0] }
 0x375   :  { %3451 = vmatpush.bf16.msra.mxu0 %v6723_v40  ;;  %v8201_v29 = vld [vmem:[#allocation2 + $0x60c] sm:$0xf] }
 0x379   :  { %3208 = vmatmul.bf16.gmra.mxu3 %v9466_v53 }
 0x37a   :  { %3237 = vmatmul.bf16.gmra.mxu0 %v9470_v30 }
 0x37c   :  { %3266 = vmatmul.bf16.gmra.mxu1 %v9474_v7 }
 0x37e   :  { %3295 = vmatmul.bf16.gmra.mxu2 %v9478_v26 }
 0x387   :  { %v3107_v39 = vpop.f32.mrf.mxu0 }
 0x389   :  { %v3136_v37 = vpop.f32.mrf.mxu1  ;;  %3309 = vmatmul.bf16.vlgmr.msrb.gmra.mxu3 %v9406_v31 }
 0x38a   :  { %3338 = vmatmul.bf16.vlgmr.msrb.gmra.mxu0 %v9410_v35 }
 0x38b   :  { %v3078_v17 = vpop.f32.mrf.mxu3 }
 0x38c   :  { %3367 = vmatmul.bf16.vlgmr.msrb.gmra.mxu1 %v9414_v42  ;;  %v3108_v22 = vadd.f32 %v3107_v39, %v3078_v17 }
 0x38e   :  { %3396 = vmatmul.bf16.vlgmr.msrb.gmra.mxu2 %v9418_v38  ;;  %v3137_v12 = vadd.f32 %v3136_v37, %v3108_v22  ;;  %v7235_v22 = vor.u32 %v8217_v19, %v7232_v20  ;;  %v6912_v19 = vld [vmem:[#allocation2 + $0x428] sm:$0xf0] }
 0x38f   :  { %v3109_v52 = vpop.f32.mrf.mxu0 }
 0x390   :  { %3509 = vmatpush.bf16.msra.mxu2 %v7235_v22 }
 0x391   :  { %v3165_v9 = vpop.f32.mrf.mxu2  ;;  %v3138_v50 = vpop.f32.mrf.mxu1 }
 0x392   :  { %v9504_v21 = vadd.f32 %v3165_v9, %v3137_v12  ;;  %v8153_v12 = vld [vmem:[#allocation2 + $0x48c] sm:$0xf] }
 0x393   :  { %v3080_v63 = vpop.f32.mrf.mxu3 }
 0x394   :  { %v3110_v44 = vadd.f32 %v3109_v52, %v3080_v63  ;;  %v4109_v45 = vmul.f32 %v9504_v21, %v9504_v21  ;;  %v6976_v52 = vld [vmem:[#allocation2 + $0x4a8] sm:$0xf0]  ;;  %3510 = vmatpush.bf16.msra.mxu2 %v7203_v58 }
 0x395   :  { %v6688_v63 = vld [vmem:[#allocation2 + $0x268] sm:$0xf0] }
 0x396   :  { %v3139_v15 = vadd.f32 %v3138_v50, %v3110_v44  ;;  %v6979_v50 = vor.u32 %v8153_v12, %v6976_v52  ;;  %v8145_v44 = vld [vmem:[#allocation2 + $0x44c] sm:$0xf] }
 0x397   :  { %v3112_v36 = vpop.f32.mrf.mxu0  ;;  %v6947_v56 = vor.u32 %v8145_v44, %v6944_v34 }
 0x398   :  { %3480 = vmatpush.bf16.msra.mxu1 %v6979_v50 }
 0x399   :  { %v3167_v27 = vpop.f32.mrf.mxu2  ;;  %v3141_v18 = vpop.f32.mrf.mxu1  ;;  %3314 = vmatmul.bf16.gmra.mxu3 %v9426_v28 }
 0x39a   :  { %v9506_v48 = vadd.f32 %v3167_v27, %v3139_v15  ;;  %3343 = vmatmul.bf16.gmra.mxu0 %v9430_v54  ;;  %v6691_v27 = vor.u32 %v8081_v16, %v6688_v63  ;;  %v8009_v15 = vld [vmem:[#allocation2 + $0xc] sm:$0xf] }
 0x39b   :  { %v3083_v37 = vpop.f32.mrf.mxu3 }
 0x39c   :  { %3372 = vmatmul.bf16.gmra.mxu1 %v9434_v61  ;;  %v3997_v24 = vadd.f32 %v9506_v48, %v9504_v21  ;;  %v4117_v39 = vmul.f32 %v9506_v48, %v9506_v48  ;;  %v3113_v2 = vadd.f32 %v3112_v36, %v3083_v37  ;;  %3452 = vmatpush.bf16.msra.mxu0 %v6691_v27  ;;  %v6400_v36 = vld [vmem:[#allocation2 + $0x28] sm:$0xf0] }
 0x39d   :  { %v6403_v51 = vor.u32 %v8009_v15, %v6400_v36  ;;  %3481 = vmatpush.bf16.msra.mxu1 %v6947_v56  ;;  %v6656_v37 = vld [vmem:[#allocation2 + $0x228] sm:$0xf0] }
 0x39e   :  { %3401 = vmatmul.bf16.gmra.mxu2 %v9438_v25  ;;  %v4173_v59 = vadd.f32 %v4117_v39, %v4109_v45  ;;  %v3142_v9 = vadd.f32 %v3141_v18, %v3113_v2  ;;  %v7168_v45 = vld [vmem:[#allocation2 + $0x628] sm:$0xf0] }
 0x39f   :  { %v3114_v3 = vpop.f32.mrf.mxu0  ;;  %3424 = vmatpush.bf16.msra.mxu3 %v6403_v51  ;;  %v7171_v39 = vor.u32 %v8201_v29, %v7168_v45  ;;  %v8137_v2 = vld [vmem:[#allocation2 + $0x40c] sm:$0xf] }
 0x3a0   :  { %v6915_v60 = vor.u32 %v8137_v2, %v6912_v19 }
 0x3a1   :  { %v3170_v17 = vpop.f32.mrf.mxu2  ;;  %v3143_v33 = vpop.f32.mrf.mxu1  ;;  %3511 = vmatpush.bf16.msra.mxu2 %v7171_v39 }
 0x3a2   :  { %v9518_v47 = vadd.f32 %v3170_v17, %v3142_v9  ;;  %3482 = vmatpush.bf16.msra.mxu1 %v6915_v60  ;;  %v6630_v60 = vld [vmem:[#allocation2 + $0x1d0] sm:$0xf] }
 0x3a3   :  { %v3085_v32 = vpop.f32.mrf.mxu3 }
 0x3a4   :  { %v3998_v11 = vadd.f32 %v3997_v24, %v9518_v47  ;;  %v4125_v55 = vmul.f32 %v9518_v47, %v9518_v47  ;;  %v3115_v41 = vadd.f32 %v3114_v3, %v3085_v32  ;;  %v8073_v24 = vld [vmem:[#allocation2 + $0x20c] sm:$0xf] }
 0x3a6   :  { %v4174_v49 = vadd.f32 %v4173_v59, %v4125_v55  ;;  %v3144_v62 = vadd.f32 %v3143_v33, %v3115_v41  ;;  %v6659_v59 = vor.u32 %v8073_v24, %v6656_v37 }
 0x3a7   :  { %v3117_v8 = vpop.f32.mrf.mxu0 }
 0x3a8   :  { %3453 = vmatpush.bf16.msra.mxu0 %v6659_v59 }
 0x3a9   :  { %v3172_v18 = vpop.f32.mrf.mxu2  ;;  %v3146_v10 = vpop.f32.mrf.mxu1  ;;  %3319 = vmatmul.bf16.gmra.mxu3 %v9446_v14 }
 0x3aa   :  { %v9523_v20 = vadd.f32 %v3172_v18, %v3144_v62  ;;  %3348 = vmatmul.bf16.gmra.mxu0 %v9450_v5 }
 0x3ab   :  { %v3088_v13 = vpop.f32.mrf.mxu3 }
 0x3ac   :  { %3377 = vmatmul.bf16.gmra.mxu1 %v9454_v57  ;;  %v3999_v17 = vadd.f32 %v3998_v11, %v9523_v20  ;;  %v4133_v22 = vmul.f32 %v9523_v20, %v9523_v20  ;;  %v3118_v6 = vadd.f32 %v3117_v8, %v3088_v13 }
 0x3ae   :  { %3406 = vmatmul.bf16.gmra.mxu2 %v9458_v46  ;;  %v4175_v1 = vadd.f32 %v4174_v49, %v4133_v22  ;;  %v3147_v3 = vadd.f32 %v3146_v10, %v3118_v6  ;;  %v7398_v22 = vld [vmem:[#allocation2 + $0x7d0] sm:$0xf] }
 0x3af   :  { %v3119_v33 = vpop.f32.mrf.mxu0  ;;  %v8262_v6 = vld [vmem:[#allocation2 + $0x7ec] sm:$0xf0] }
 0x3b1   :  { %v3175_v9 = vpop.f32.mrf.mxu2  ;;  %v3148_v40 = vpop.f32.mrf.mxu1 }
 0x3b2   :  { %v9532_v0 = vadd.f32 %v3175_v9, %v3147_v3  ;;  %v6886_v9 = vld [vmem:[#allocation2 + $0x3d0] sm:$0xf] }
 0x3b3   :  { %v3090_v50 = vpop.f32.mrf.mxu3  ;;  %v8134_v3 = vld [vmem:[#allocation2 + $0x3ec] sm:$0xf0] }
 0x3b4   :  { %v4000_v12 = vadd.f32 %v3999_v17, %v9532_v0  ;;  %v4141_v52 = vmul.f32 %v9532_v0, %v9532_v0  ;;  %v3120_v23 = vadd.f32 %v3119_v33, %v3090_v50  ;;  %v8070_v17 = vld [vmem:[#allocation2 + $0x1ec] sm:$0xf0] }
 0x3b5   :  { %v6631_v13 = vor.u32 %v8070_v17, %v6630_v60  ;;  %v7142_v50 = vld [vmem:[#allocation2 + $0x5d0] sm:$0xf] }
 0x3b6   :  { %v4176_v4 = vadd.f32 %v4175_v1, %v4141_v52  ;;  %v3149_v58 = vadd.f32 %v3148_v40, %v3120_v23  ;;  %v7399_v52 = vor.u32 %v8262_v6, %v7398_v22  ;;  %v8054_v60 = vld [vmem:[#allocation2 + $0x16c] sm:$0xf0] }
 0x3b7   :  { %v3122_v63 = vpop.f32.mrf.mxu0  ;;  %3533 = vmatpush.bf16.msrb.mxu3 %v6631_v13  ;;  %v8246_v6 = vld [vmem:[#allocation2 + $0x76c] sm:$0xf0] }
 0x3b8   :  { %3620 = vmatpush.bf16.msrb.mxu2 %v7399_v52  ;;  %v8118_v52 = vld [vmem:[#allocation2 + $0x36c] sm:$0xf0] }
 0x3b9   :  { %v3177_v16 = vpop.f32.mrf.mxu2  ;;  %v3151_v44 = vpop.f32.mrf.mxu1  ;;  %3324 = vmatmul.bf16.gmra.mxu3 %v9466_v53 }
 0x3ba   :  { %v9537_v34 = vadd.f32 %v3177_v16, %v3149_v58  ;;  %3353 = vmatmul.bf16.gmra.mxu0 %v9470_v30  ;;  %v6887_v16 = vor.u32 %v8134_v3, %v6886_v9  ;;  %v6822_v9 = vld [vmem:[#allocation2 + $0x350] sm:$0xf] }
 0x3bc   :  { %3382 = vmatmul.bf16.gmra.mxu1 %v9474_v7  ;;  %v4001_v11 = vadd.f32 %v4000_v12, %v9537_v34  ;;  %v4149_v55 = vmul.f32 %v9537_v34, %v9537_v34  ;;  %v3093_v27 = vpop.f32.mrf.mxu3  ;;  %3562 = vmatpush.bf16.msrb.mxu0 %v6887_v16  ;;  %v8182_v16 = vld [vmem:[#allocation2 + $0x56c] sm:$0xf0] }
 0x3bd   :  { %v3123_v32 = vadd.f32 %v3122_v63, %v3093_v27 }
 0x3be   :  { %3411 = vmatmul.bf16.gmra.mxu2 %v9478_v26  ;;  %v4177_v56 = vadd.f32 %v4176_v4, %v4149_v55  ;;  %v8198_v4 = vld [vmem:[#allocation2 + $0x5ec] sm:$0xf0] }
 0x3bf   :  { %v3152_v41 = vadd.f32 %v3151_v44, %v3123_v32  ;;  %v3124_v15 = vpop.f32.mrf.mxu0  ;;  %v7143_v58 = vor.u32 %v8198_v4, %v7142_v50  ;;  %v8062_v32 = vld [vmem:[#allocation2 + $0x1ac] sm:$0xf0] }
 0x3c0   :  { %v7078_v50 = vld [vmem:[#allocation2 + $0x550] sm:$0xf] }
 0x3c1   :  { %v3180_v49 = vpop.f32.mrf.mxu2  ;;  %v3153_v36 = vpop.f32.mrf.mxu1  ;;  %3591 = vmatpush.bf16.msrb.mxu1 %v7143_v58 }
 0x3c2   :  { %v9546_v18 = vadd.f32 %v3180_v49, %v3152_v41  ;;  %v7366_v41 = vld [vmem:[#allocation2 + $0x790] sm:$0xf] }
 0x3c4   :  { %v4002_v51 = vadd.f32 %v4001_v11, %v9546_v18  ;;  %v4157_v62 = vmul.f32 %v9546_v18, %v9546_v18  ;;  %v3095_v8 = vpop.f32.mrf.mxu3 }
 0x3c5   :  { %v3125_v29 = vadd.f32 %v3124_v15, %v3095_v8  ;;  %v8254_v15 = vld [vmem:[#allocation2 + $0x7ac] sm:$0xf0] }
 0x3c6   :  { %v4178_v10 = vadd.f32 %v4177_v56, %v4157_v62  ;;  %v6598_v56 = vld [vmem:[#allocation2 + $0x190] sm:$0xf] }
 0x3c7   :  { %v3154_v24 = vadd.f32 %v3153_v36, %v3125_v29  ;;  %v3223_v39 = vpop.f32.mrf.mxu0  ;;  %v6599_v49 = vor.u32 %v8062_v32, %v6598_v56  ;;  %v6854_v36 = vld [vmem:[#allocation2 + $0x390] sm:$0xf] }
 0x3c8   :  { %v8126_v29 = vld [vmem:[#allocation2 + $0x3ac] sm:$0xf0] }
 0x3c9   :  { %v3182_v45 = vpop.f32.mrf.mxu2  ;;  %v3252_v37 = vpop.f32.mrf.mxu1  ;;  %3425 = vmatmul.bf16.vlgmr.msra.gmra.mxu3 %v9406_v31  ;;  %v6534_v32 = vld [vmem:[#allocation2 + $0x110] sm:$0xf] }
 0x3ca   :  { %v9551_v2 = vadd.f32 %v3182_v45, %v3154_v24  ;;  %3454 = vmatmul.bf16.vlgmr.msra.gmra.mxu0 %v9410_v35  ;;  %v7110_v45 = vld [vmem:[#allocation2 + $0x590] sm:$0xf]  ;;  %3534 = vmatpush.bf16.msrb.mxu3 %v6599_v49  ;;  %v6855_v24 = vor.u32 %v8126_v29, %v6854_v36 }
 0x3cb   :  { %v8046_v49 = vld [vmem:[#allocation2 + $0x12c] sm:$0xf0] }
 0x3cc   :  { %3483 = vmatmul.bf16.vlgmr.msra.gmra.mxu1 %v9414_v42  ;;  %v4003_v19 = vadd.f32 %v4002_v51, %v9551_v2  ;;  %v4165_v59 = vmul.f32 %v9551_v2, %v9551_v2  ;;  %v3194_v1 = vpop.f32.mrf.mxu3  ;;  %3563 = vmatpush.bf16.msrb.mxu0 %v6855_v24  ;;  %v7302_v36 = vld [vmem:[#allocation2 + $0x710] sm:$0xf] }
 0x3cd   :  { %v3224_v12 = vadd.f32 %v3223_v39, %v3194_v1  ;;  %v8190_v39 = vld [vmem:[#allocation2 + $0x5ac] sm:$0xf0] }
 0x3ce   :  { %3512 = vmatmul.bf16.vlgmr.msra.gmra.mxu2 %v9418_v38  ;;  %v4004_v33 = vrot.slane %v4003_v19, 4  ;;  %v4179_v40 = vadd.f32 %v4178_v10, %v4165_v59  ;;  %v7367_v10 = vor.u32 %v8254_v15, %v7366_v41  ;;  %v6566_v59 = vld [vmem:[#allocation2 + $0x150] sm:$0xf]  ;;  %v7111_v17 = vor.u32 %v8190_v39, %v7110_v45 }
 0x3cf   :  { %v3253_v11 = vadd.f32 %v3252_v37, %v3224_v12  ;;  %v3225_v55 = vpop.f32.mrf.mxu0  ;;  %v6567_v13 = vor.u32 %v8054_v60, %v6566_v59  ;;  %v7334_v1 = vld [vmem:[#allocation2 + $0x750] sm:$0xf]  ;;  %v7079_v41 = vor.u32 %v8182_v16, %v7078_v50  ;;  %v6535_v15 = vor.u32 %v8046_v49, %v6534_v32 }
 0x3d0   :  { %v4005_v63 = vadd.f32 %v4004_v33, %v4003_v19  ;;  %v4180_v44 = vrot.slane %v4179_v40, 4  ;;  %3621 = vmatpush.bf16.msrb.mxu2 %v7367_v10  ;;  %3592 = vmatpush.bf16.msrb.mxu1 %v7111_v17  ;;  %v7335_v12 = vor.u32 %v8246_v6, %v7334_v1  ;;  %v7046_v24 = vld [vmem:[#allocation2 + $0x510] sm:$0xf] }
 0x3d1   :  { %v3281_v23 = vpop.f32.mrf.mxu2  ;;  %v3254_v27 = vpop.f32.mrf.mxu1  ;;  %3535 = vmatpush.bf16.msrb.mxu3 %v6567_v13  ;;  %v8174_v39 = vld [vmem:[#allocation2 + $0x52c] sm:$0xf0] }
 0x3d2   :  { %v4006_v51 = vrot.slane %v4005_v63, 2  ;;  %v4181_v62 = vadd.f32 %v4180_v44, %v4179_v40  ;;  %v9560_v8 = vadd.f32 %v3281_v23, %v3253_v11  ;;  %v6823_v23 = vor.u32 %v8118_v52, %v6822_v9  ;;  %v6502_v1 = vld [vmem:[#allocation2 + $0xd0] sm:$0xf] }
 0x3d3   :  { %v7047_v59 = vor.u32 %v8174_v39, %v7046_v24  ;;  %v8038_v6 = vld [vmem:[#allocation2 + $0xec] sm:$0xf0] }
 0x3d4   :  { %v4007_v37 = vadd.f32 %v4006_v51, %v4005_v63  ;;  %v4182_v19 = vrot.slane %v4181_v62, 2  ;;  %v3196_v22 = vpop.f32.mrf.mxu3  ;;  %3622 = vmatpush.bf16.msrb.mxu2 %v7335_v12  ;;  %3564 = vmatpush.bf16.msrb.mxu0 %v6823_v23  ;;  %v8238_v51 = vld [vmem:[#allocation2 + $0x72c] sm:$0xf0] }
 0x3d5   :  { %v3226_v40 = vadd.f32 %v3225_v55, %v3196_v22  ;;  %v4110_v55 = vmul.f32 %v9560_v8, %v9560_v8  ;;  %3593 = vmatpush.bf16.msrb.mxu1 %v7079_v41  ;;  %v7270_v9 = vld [vmem:[#allocation2 + $0x6d0] sm:$0xf]  ;;  %3536 = vmatpush.bf16.msrb.mxu3 %v6535_v15 }
 0x3d6   :  { %v4008_v3 = vrot.slane %v4007_v37, 1  ;;  %v4183_v33 = vadd.f32 %v4182_v19, %v4181_v62  ;;  %v6790_v62 = vld [vmem:[#allocation2 + $0x310] sm:$0xf] }
 0x3d7   :  { %v3255_v44 = vadd.f32 %v3254_v27, %v3226_v40  ;;  %v3228_v11 = vpop.f32.mrf.mxu0  ;;  %v8110_v27 = vld [vmem:[#allocation2 + $0x32c] sm:$0xf0] }
 0x3d8   :  { %v4009_v58 = vadd.f32 %v4008_v3, %v4007_v37  ;;  %v4184_v63 = vrot.slane %v4183_v33, 1  ;;  %v7303_v37 = vor.u32 %v8238_v51, %v7302_v36  ;;  %v6791_v19 = vor.u32 %v8110_v27, %v6790_v62  ;;  %v8230_v50 = vld [vmem:[#allocation2 + $0x6ec] sm:$0xf0] }
 0x3d9   :  { %v3283_v4 = vpop.f32.mrf.mxu2  ;;  %v3257_v56 = vpop.f32.mrf.mxu1  ;;  %3430 = vmatmul.bf16.gmra.mxu3 %v9426_v28  ;;  %v8102_v23 = vld [vmem:[#allocation2 + $0x2ec] sm:$0xf0]  ;;  %v6503_v62 = vor.u32 %v8038_v6, %v6502_v1  ;;  %3594 = vmatpush.bf16.msrb.mxu1 %v7047_v59 }
 0x3da   :  { %v9565_v10 = vmul.f32 %v4009_v58, %v8804_v43  ;;  %v4185_v29 = vadd.f32 %v4184_v63, %v4183_v33  ;;  %v9567_v45 = vadd.f32 %v3283_v4, %v3255_v44  ;;  %3459 = vmatmul.bf16.gmra.mxu0 %v9430_v54  ;;  %v6758_v4 = vld [vmem:[#allocation2 + $0x2d0] sm:$0xf]  ;;  %3623 = vmatpush.bf16.msrb.mxu2 %v7303_v37 }
 0x3db   :  { %v6470_v32 = vld [vmem:[#allocation2 + $0x90] sm:$0xf]  ;;  %3565 = vmatpush.bf16.msrb.mxu0 %v6791_v19  ;;  %3537 = vmatpush.bf16.msrb.mxu3 %v6503_v62 }
 0x3dc   :  { %3488 = vmatmul.bf16.gmra.mxu1 %v9434_v61  ;;  %v4277_v60 = vmul.f32 %v4185_v29, %v8804_v43  ;;  %v4285_v17 = vmul.f32 %v9565_v10, %v9565_v10  ;;  %v4309_v22 = vsub.f32 %v9504_v21, %v9565_v10  ;;  %v4317_v13 = vsub.f32 %v9506_v48, %v9565_v10  ;;  %v3199_v52 = vpop.f32.mrf.mxu3  ;;  %v8030_v49 = vld [vmem:[#allocation2 + $0xac] sm:$0xf0] }
 0x3dd   :  { %v4325_v3 = vsub.f32 %v9518_v47, %v9565_v10  ;;  %v4010_v44 = vadd.f32 %v9567_v45, %v9560_v8  ;;  %v7014_v41 = vld [vmem:[#allocation2 + $0x4d0] sm:$0xf]  ;;  %v4118_v15 = vmul.f32 %v9567_v45, %v9567_v45  ;;  %v3229_v36 = vadd.f32 %v3228_v11, %v3199_v52 }
 0x3de   :  { %3517 = vmatmul.bf16.gmra.mxu2 %v9438_v25  ;;  %v4293_v16 = vsub.f32 %v4277_v60, %v4285_v17  ;;  %v8166_v29 = vld [vmem:[#allocation2 + $0x4ec] sm:$0xf0]  ;;  %v7271_v60 = vor.u32 %v8230_v50, %v7270_v9  ;;  %v6759_v17 = vor.u32 %v8102_v23, %v6758_v4  ;;  %v6471_v37 = vor.u32 %v8030_v49, %v6470_v32 }
 0x3df   :  { %v3230_v24 = vpop.f32.mrf.mxu0  ;;  %v4186_v63 = vadd.f32 %v4118_v15, %v4110_v55  ;;  %v3258_v58 = vadd.f32 %v3257_v56, %v3229_v36  ;;  %v7015_v12 = vor.u32 %v8166_v29, %v7014_v41  ;;  %v7238_v33 = vld [vmem:[#allocation2 + $0x690] sm:$0xf]  ;;  %v10783_v21 = vsub.f32 %v9537_v34, %v9565_v10 }
 0x3e0   :  { %v4301_v27 = vmax.f32 %v4293_v16, 0.0  ;;  %3624 = vmatpush.bf16.msrb.mxu2 %v7271_v60  ;;  %v8222_v11 = vld [vmem:[#allocation2 + $0x6ac] sm:$0xf0]  ;;  %3566 = vmatpush.bf16.msrb.mxu0 %v6759_v17  ;;  %v10784_v48 = vsub.f32 %v9546_v18, %v9565_v10  ;;  %v10785_v47 = vsub.f32 %v9551_v2, %v9565_v10 }
 0x3e1   :  { %v3286_v51 = vpop.f32.mrf.mxu2  ;;  %v3259_v39 = vpop.f32.mrf.mxu1  ;;  %3595 = vmatpush.bf16.msrb.mxu1 %v7015_v12  ;;  %v7239_v19 = vor.u32 %v8222_v11, %v7238_v33  ;;  %v6726_v59 = vld [vmem:[#allocation2 + $0x290] sm:$0xf]  ;;  %3538 = vmatpush.bf16.msrb.mxu3 %v6471_v37 }
 0x3e2   :  { %v9596_v40 = vadd.f32 0.8, %v4301_v27  ;;  %v9598_v52 = vadd.f32 %v3286_v51, %v3258_v58  ;;  %v8094_v1 = vld [vmem:[#allocation2 + $0x2ac] sm:$0xf0] }
 0x3e3   :  { %v6982_v6 = vld [vmem:[#allocation2 + $0x490] sm:$0xf]  ;;  %v6727_v55 = vor.u32 %v8094_v1, %v6726_v59 }
 0x3e4   :  { %8433 = vrsqrt.f32 %v9596_v40  ;;  %v6438_v56 = vld [vmem:[#allocation2 + $0x50] sm:$0xf]  ;;  %v4011_v4 = vadd.f32 %v4010_v44, %v9598_v52  ;;  %v4126_v23 = vmul.f32 %v9598_v52, %v9598_v52  ;;  %v3201_v16 = vpop.f32.mrf.mxu3  ;;  %3625 = vmatpush.bf16.msrb.mxu2 %v7239_v19  ;;  %vm4387_vm13 = vweird.f32 %v9596_v40 }
 0x3e5   :  { %v8022_v9 = vld [vmem:[#allocation2 + $0x6c] sm:$0xf0]  ;;  %v3231_v12 = vadd.f32 %v3230_v24, %v3201_v16  ;;  %3567 = vmatpush.bf16.msrb.mxu0 %v6727_v55 }
 0x3e6   :  { %v8158_v50 = vld [vmem:[#allocation2 + $0x4ac] sm:$0xf0]  ;;  %v6439_v58 = vor.u32 %v8022_v9, %v6438_v56  ;;  %v4187_v15 = vadd.f32 %v4186_v63, %v4126_v23 }
 0x3e7   :  { %v6983_v32 = vor.u32 %v8158_v50, %v6982_v6  ;;  %v7206_v33 = vld [vmem:[#allocation2 + $0x650] sm:$0xf]  ;;  %v3260_v27 = vadd.f32 %v3259_v39, %v3231_v12  ;;  %v3233_v60 = vpop.f32.mrf.mxu0 }
 0x3e8   :  { %v8214_v49 = vld [vmem:[#allocation2 + $0x66c] sm:$0xf0]  ;;  %3539 = vmatpush.bf16.msrb.mxu3 %v6439_v58 }
 0x3e9   :  { %v6694_v41 = vld [vmem:[#allocation2 + $0x250] sm:$0xf]  ;;  %v3288_v36 = vpop.f32.mrf.mxu2  ;;  %3596 = vmatpush.bf16.msrb.mxu1 %v6983_v32  ;;  %v7207_v51 = vor.u32 %v8214_v49, %v7206_v33  ;;  %v3262_v17 = vpop.f32.mrf.mxu1  ;;  %3435 = vmatmul.bf16.gmra.mxu3 %v9446_v14 }
 0x3ea   :  { %v8086_v62 = vld [vmem:[#allocation2 + $0x26c] sm:$0xf0]  ;;  %v8434_v1 = vpop.eup %8433  ;;  %v9604_v6 = vadd.f32 %v3288_v36, %v3260_v27  ;;  %3464 = vmatmul.bf16.gmra.mxu0 %v9450_v5 }
 0x3eb   :  { %v6406_v29 = vld [vmem:[#allocation2 + $0x10] sm:$0xf]  ;;  %v6695_v11 = vor.u32 %v8086_v62, %v6694_v41  ;;  %3626 = vmatpush.bf16.msrb.mxu2 %v7207_v51  ;;  %v4382_v9 = vmul.f32 %v8434_v1, %v9596_v40  ;;  %vm4388_vm12 = vweird.f32 %v8434_v1 }
 0x3ec   :  { %v8014_v44 = vld [vmem:[#allocation2 + $0x2c] sm:$0xf0]  ;;  %3493 = vmatmul.bf16.gmra.mxu1 %v9454_v57  ;;  %v4012_v58 = vadd.f32 %v4011_v4, %v9604_v6  ;;  %v4134_v32 = vmul.f32 %v9604_v6, %v9604_v6  ;;  %v3204_v49 = vpop.f32.mrf.mxu3  ;;  %vm4389_vm14 = vmor %vm4387_vm13, %vm4388_vm12 }
 0x3ed   :  { %v6950_v37 = vld [vmem:[#allocation2 + $0x450] sm:$0xf]  ;;  %v6407_v24 = vor.u32 %v8014_v44, %v6406_v29  ;;  %3568 = vmatpush.bf16.msrb.mxu0 %v6695_v11  ;;  %v4383_v33 = vmul.f32 %v8434_v1, %v4382_v9  ;;  %v3234_v51 = vadd.f32 %v3233_v60, %v3204_v49 }
 0x3ee   :  { %v8150_v59 = vld [vmem:[#allocation2 + $0x46c] sm:$0xf0]  ;;  %3522 = vmatmul.bf16.gmra.mxu2 %v9458_v46  ;;  %v4188_v36 = vadd.f32 %v4187_v15, %v4134_v32 }
 0x3ef   :  { %v6951_v19 = vor.u32 %v8150_v59, %v6950_v37  ;;  %v7174_v63 = vld [vmem:[#allocation2 + $0x610] sm:$0xf]  ;;  %3540 = vmatpush.bf16.msrb.mxu3 %v6407_v24  ;;  %v4384_v62 = vmul.f32 0.5, %v4383_v33  ;;  %v3263_v44 = vadd.f32 %v3262_v17, %v3234_v51  ;;  %v3235_v27 = vpop.f32.mrf.mxu0 }
 0x3f0   :  { %v8206_v55 = vld [vmem:[#allocation2 + $0x62c] sm:$0xf0] }
 0x3f1   :  { %v6662_v56 = vld [vmem:[#allocation2 + $0x210] sm:$0xf]  ;;  %v7175_v39 = vor.u32 %v8206_v55, %v7174_v63  ;;  %3597 = vmatpush.bf16.msrb.mxu1 %v6951_v19  ;;  %v3291_v29 = vpop.f32.mrf.mxu2  ;;  %v3264_v4 = vpop.f32.mrf.mxu1  ;;  %v4385_v37 = vsub.f32 1.5, %v4384_v62  ;;  %v10781_v55 = vsub.f32 %v9523_v20, %v9565_v10 }
 0x3f2   :  { %v8078_v50 = vld [vmem:[#allocation2 + $0x22c] sm:$0xf0]  ;;  %v9614_v59 = vadd.f32 %v3291_v29, %v3263_v44 }
 0x3f3   :  { %v6918_v23 = vld [vmem:[#allocation2 + $0x410] sm:$0xf]  ;;  %v6663_v12 = vor.u32 %v8078_v50, %v6662_v56  ;;  %3627 = vmatpush.bf16.msrb.mxu2 %v7175_v39  ;;  %v4386_v11 = vmul.f32 %v8434_v1, %v4385_v37  ;;  %v10782_v56 = vsub.f32 %v9532_v0, %v9565_v10 }
 0x3f4   :  { %v8142_v16 = vld [vmem:[#allocation2 + $0x42c] sm:$0xf0]  ;;  %v4013_v24 = vadd.f32 %v4012_v58, %v9614_v59  ;;  %v4142_v60 = vmul.f32 %v9614_v59, %v9614_v59  ;;  %v3206_v19 = vpop.f32.mrf.mxu3 }
 0x3f5   :  { %v6919_v41 = vor.u32 %v8142_v16, %v6918_v23  ;;  %3569 = vmatpush.bf16.msrb.mxu0 %v6663_v12  ;;  %v4390_v15 = vsel %vm4389_vm14, %v8434_v1, %v4386_v11  ;;  %v3236_v58 = vadd.f32 %v3235_v27, %v3206_v19 }
 0x3f6   :  { %v4461_v17 = vmul.f32 %v4390_v15, %v4309_v22  ;;  %v4469_v63 = vmul.f32 %v4390_v15, %v4317_v13  ;;  %v4477_v40 = vmul.f32 %v4390_v15, %v4325_v3  ;;  %v4485_v1 = vmul.f32 %v4390_v15, %v10781_v55 }
 0x3f7   :  { %3598 = vmatpush.bf16.msrb.mxu1 %v6919_v41  ;;  %v4493_v9 = vmul.f32 %v4390_v15, %v10782_v56  ;;  %v4501_v22 = vmul.f32 %v4390_v15, %v10783_v21  ;;  %v4509_v13 = vmul.f32 %v4390_v15, %v10784_v48  ;;  %v4517_v3 = vmul.f32 %v4390_v15, %v10785_v47  ;;  %v3238_v20 = vpop.f32.mrf.mxu0 }
 0x3f8   :  { %vm4525_vm15 = vcmp.gt.f32.partialorder %v4461_v17, 0.0  ;;  %vm4533_vm0 = vcmp.gt.f32.partialorder %v4469_v63, 0.0  ;;  %vm4541_vm1 = vcmp.gt.f32.partialorder %v4477_v40, 0.0  ;;  %vm4549_vm2 = vcmp.gt.f32.partialorder %v4485_v1, 0.0 }
 0x3f9   :  { %v3293_v39 = vpop.f32.mrf.mxu2  ;;  %v3267_v0 = vpop.f32.mrf.mxu1  ;;  %vm4557_vm3 = vcmp.gt.f32.partialorder %v4493_v9, 0.0  ;;  %vm4565_vm4 = vcmp.gt.f32.partialorder %v4501_v22, 0.0  ;;  %vm4573_vm5 = vcmp.gt.f32.partialorder %v4509_v13, 0.0  ;;  %vm4581_vm6 = vcmp.gt.f32.partialorder %v4517_v3, 0.0  ;;  %3440 = vmatmul.bf16.gmra.mxu3 %v9466_v53 }
 0x3fa   :  { %v4589_v34 = vmul.f32 0.2, %v4461_v17  ;;  %v4597_v50 = vmul.f32 0.2, %v4469_v63  ;;  %v4605_v23 = vmul.f32 0.2, %v4477_v40  ;;  %v4189_v18 = vadd.f32 %v4188_v36, %v4142_v60  ;;  %3469 = vmatmul.bf16.gmra.mxu0 %v9470_v30 }
 0x3fb   :  { %v4613_v16 = vmul.f32 0.2, %v4485_v1  ;;  %v4621_v2 = vmul.f32 0.2, %v4493_v9  ;;  %v4629_v10 = vmul.f32 0.2, %v4501_v22  ;;  %v3265_v37 = vadd.f32 %v3264_v4, %v3236_v58 }
 0x3fc   :  { %3498 = vmatmul.bf16.gmra.mxu1 %v9474_v7  ;;  %v4637_v32 = vmul.f32 0.2, %v4509_v13  ;;  %v4645_v12 = vmul.f32 0.2, %v4517_v3  ;;  %v9648_v33 = vsel %vm4525_vm15, %v4461_v17, %v4589_v34  ;;  %v9651_v49 = vsel %vm4533_vm0, %v4469_v63, %v4597_v50  ;;  %v3209_v29 = vpop.f32.mrf.mxu3 }
 0x3fd   :  { %10786 = vst [vmem:[#allocation23_spill] sm:$0xff] %v9648_v33  ;;  %v9655_v41 = vsel %vm4541_vm1, %v4477_v40, %v4605_v23  ;;  %v9658_v36 = vsel %vm4549_vm2, %v4485_v1, %v4613_v16  ;;  %v9661_v51 = vsel %vm4557_vm3, %v4493_v9, %v4621_v2  ;;  %v9664_v62 = vsel %vm4565_vm4, %v4501_v22, %v4629_v10  ;;  %v6632_v16 = vld [vmem:[#allocation2 + $0x1f0] sm:$0xf0] }
 0x3fe   :  { %10787 = vst [vmem:[#allocation24_spill] sm:$0xff] %v9651_v49  ;;  %3527 = vmatmul.bf16.gmra.mxu2 %v9478_v26  ;;  %v9667_v44 = vsel %vm4573_vm5, %v4509_v13, %v4637_v32  ;;  %v9670_v27 = vsel %vm4581_vm6, %v4517_v3, %v4645_v12  ;;  %v3239_v11 = vadd.f32 %v3238_v20, %v3209_v29  ;;  %v8258_v32 = vld [vmem:[#allocation2 + $0x7d4] sm:$0xf] }
 0x3ff   :  { %10788 = vst [vmem:[#allocation25_spill] sm:$0xff] %v9655_v41  ;;  %v9672_v60 = vadd.f32 %v3293_v39, %v3265_v37  ;;  %v3240_v17 = vpop.f32.mrf.mxu0  ;;  %v7400_v12 = vld [vmem:[#allocation2 + $0x7f0] sm:$0xf0] }
 0x400   :  { %10789 = vst [vmem:[#allocation26_spill] sm:$0xff] %v9658_v36  ;;  %v3268_v19 = vadd.f32 %v3267_v0, %v3239_v11  ;;  %v8130_v29 = vld [vmem:[#allocation2 + $0x3d4] sm:$0xf] }
 0x401   :  { %10790 = vst [vmem:[#allocation27_spill] sm:$0xff] %v9661_v51  ;;  %v3296_v15 = vpop.f32.mrf.mxu2  ;;  %v3269_v63 = vpop.f32.mrf.mxu1  ;;  %v4014_v40 = vadd.f32 %v4013_v24, %v9672_v60  ;;  %v4150_v55 = vmul.f32 %v9672_v60, %v9672_v60  ;;  %v6472_v51 = vld [vmem:[#allocation2 + $0xb0] sm:$0xf0] }
 0x402   :  { %10791 = vst [vmem:[#allocation28_spill] sm:$0xff] %v9664_v62  ;;  %v9677_v1 = vadd.f32 %v3296_v15, %v3268_v19  ;;  %v7403_v19 = vor.u32 %v8258_v32, %v7400_v12  ;;  %v8026_v62 = vld [vmem:[#allocation2 + $0x94] sm:$0xf] }
 0x403   :  { %10792 = vst [vmem:[#allocation29_spill] sm:$0xff] %v9667_v44  ;;  %v4190_v56 = vadd.f32 %v4189_v18, %v4150_v55  ;;  %v8066_v18 = vld [vmem:[#allocation2 + $0x1d4] sm:$0xf] }
 0x404   :  { %10793 = vst [vmem:[#allocation30_spill] sm:$0xff] %v9670_v27  ;;  %v4015_v9 = vadd.f32 %v4014_v40, %v9677_v1  ;;  %v4158_v4 = vmul.f32 %v9677_v1, %v9677_v1  ;;  %v3211_v21 = vpop.f32.mrf.mxu3  ;;  %v6635_v10 = vor.u32 %v8066_v18, %v6632_v16  ;;  %v6888_v40 = vld [vmem:[#allocation2 + $0x3f0] sm:$0xf0]  ;;  %3736 = vmatpush.bf16.msra.mxu2 %v7403_v19 }
 0x405   :  { %v3241_v48 = vadd.f32 %v3240_v17, %v3211_v21  ;;  %v8194_v55 = vld [vmem:[#allocation2 + $0x5d4] sm:$0xf] }
 0x406   :  { %v4191_v22 = vadd.f32 %v4190_v56, %v4158_v4  ;;  %3649 = vmatpush.bf16.msra.mxu3 %v6635_v10  ;;  %v6891_v56 = vor.u32 %v8130_v29, %v6888_v40  ;;  %v6856_v16 = vld [vmem:[#allocation2 + $0x3b0] sm:$0xf0] }
 0x407   :  { %v3270_v47 = vadd.f32 %v3269_v63, %v3241_v48  ;;  %v3339_v3 = vpop.f32.mrf.mxu0  ;;  %v8058_v48 = vld [vmem:[#allocation2 + $0x194] sm:$0xf] }
 0x408   :  { %3678 = vmatpush.bf16.msra.mxu0 %v6891_v56  ;;  %v7336_v56 = vld [vmem:[#allocation2 + $0x770] sm:$0xf0] }
 0x409   :  { %v3298_v13 = vpop.f32.mrf.mxu2  ;;  %v3368_v39 = vpop.f32.mrf.mxu1  ;;  %3541 = vmatmul.bf16.vlgmr.msrb.gmra.mxu3 %v9406_v31 }
 0x40a   :  { %v9682_v20 = vadd.f32 %v3298_v13, %v3270_v47  ;;  %3570 = vmatmul.bf16.vlgmr.msrb.gmra.mxu0 %v9410_v35  ;;  %v6600_v13 = vld [vmem:[#allocation2 + $0x1b0] sm:$0xf0] }
 0x40c   :  { %3599 = vmatmul.bf16.vlgmr.msrb.gmra.mxu1 %v9414_v42  ;;  %v4016_v24 = vadd.f32 %v4015_v9, %v9682_v20  ;;  %v4166_v0 = vmul.f32 %v9682_v20, %v9682_v20  ;;  %v3310_v34 = vpop.f32.mrf.mxu3  ;;  %v7144_v9 = vld [vmem:[#allocation2 + $0x5f0] sm:$0xf0] }
 0x40d   :  { %v3340_v2 = vadd.f32 %v3339_v3, %v3310_v34  ;;  %v7147_v47 = vor.u32 %v8194_v55, %v7144_v9  ;;  %v6603_v3 = vor.u32 %v8058_v48, %v6600_v13  ;;  %v8114_v9 = vld [vmem:[#allocation2 + $0x354] sm:$0xf] }
 0x40e   :  { %3628 = vmatmul.bf16.vlgmr.msrb.gmra.mxu2 %v9418_v38  ;;  %v4017_v50 = vrot.slane %v4016_v24, 4  ;;  %v4192_v23 = vadd.f32 %v4191_v22, %v4166_v0  ;;  %v8122_v0 = vld [vmem:[#allocation2 + $0x394] sm:$0xf] }
 0x40f   :  { %v3369_v15 = vadd.f32 %v3368_v39, %v3340_v2  ;;  %v3341_v17 = vpop.f32.mrf.mxu0  ;;  %v7368_v39 = vld [vmem:[#allocation2 + $0x7b0] sm:$0xf0]  ;;  %3707 = vmatpush.bf16.msra.mxu1 %v7147_v47  ;;  %3650 = vmatpush.bf16.msra.mxu3 %v6603_v3 }
 0x410   :  { %v4018_v37 = vadd.f32 %v4017_v50, %v4016_v24  ;;  %v4193_v11 = vrot.slane %v4192_v23, 4  ;;  %v8250_v24 = vld [vmem:[#allocation2 + $0x794] sm:$0xf] }
 0x411   :  { %v3397_v58 = vpop.f32.mrf.mxu2  ;;  %v3370_v63 = vpop.f32.mrf.mxu1  ;;  %v7371_v18 = vor.u32 %v8250_v24, %v7368_v39  ;;  %v8186_v2 = vld [vmem:[#allocation2 + $0x594] sm:$0xf] }
 0x412   :  { %v4019_v4 = vrot.slane %v4018_v37, 2  ;;  %v4194_v21 = vadd.f32 %v4193_v11, %v4192_v23  ;;  %v9691_v22 = vadd.f32 %v3397_v58, %v3369_v15  ;;  %v6859_v23 = vor.u32 %v8122_v0, %v6856_v16  ;;  %v7112_v58 = vld [vmem:[#allocation2 + $0x5b0] sm:$0xf0] }
 0x413   :  { %3737 = vmatpush.bf16.msra.mxu2 %v7371_v18  ;;  %v8050_v11 = vld [vmem:[#allocation2 + $0x154] sm:$0xf]  ;;  %v7115_v19 = vor.u32 %v8186_v2, %v7112_v58 }
 0x414   :  { %v4020_v34 = vadd.f32 %v4019_v4, %v4018_v37  ;;  %v4195_v50 = vrot.slane %v4194_v21, 2  ;;  %v3312_v10 = vpop.f32.mrf.mxu3  ;;  %v6568_v15 = vld [vmem:[#allocation2 + $0x170] sm:$0xf0]  ;;  %3679 = vmatpush.bf16.msra.mxu0 %v6859_v23  ;;  %v4111_v2 = vmul.f32 %v9691_v22, %v9691_v22 }
 0x415   :  { %v3342_v29 = vadd.f32 %v3341_v17, %v3312_v10  ;;  %v6571_v55 = vor.u32 %v8050_v11, %v6568_v15  ;;  %v8242_v37 = vld [vmem:[#allocation2 + $0x754] sm:$0xf]  ;;  %3708 = vmatpush.bf16.msra.mxu1 %v7115_v19 }
 0x416   :  { %v4021_v32 = vrot.slane %v4020_v34, 1  ;;  %v4196_v12 = vadd.f32 %v4195_v50, %v4194_v21  ;;  %v7339_v24 = vor.u32 %v8242_v37, %v7336_v56  ;;  %v6824_v21 = vld [vmem:[#allocation2 + $0x370] sm:$0xf0] }
 0x417   :  { %v3371_v13 = vadd.f32 %v3370_v63, %v3342_v29  ;;  %v3344_v47 = vpop.f32.mrf.mxu0  ;;  %v8178_v17 = vld [vmem:[#allocation2 + $0x554] sm:$0xf]  ;;  %3651 = vmatpush.bf16.msra.mxu3 %v6571_v55  ;;  %v6827_v39 = vor.u32 %v8114_v9, %v6824_v21 }
 0x418   :  { %v4022_v4 = vadd.f32 %v4021_v32, %v4020_v34  ;;  %v4197_v48 = vrot.slane %v4196_v12, 1  ;;  %v7080_v0 = vld [vmem:[#allocation2 + $0x570] sm:$0xf0]  ;;  %3738 = vmatpush.bf16.msra.mxu2 %v7339_v24 }
 0x419   :  { %v3399_v40 = vpop.f32.mrf.mxu2  ;;  %v9693_v3 = vpop.f32.mrf.mxu1  ;;  %3546 = vmatmul.bf16.gmra.mxu3 %v9426_v28  ;;  %v8042_v63 = vld [vmem:[#allocation2 + $0x114] sm:$0xf]  ;;  %v7083_v23 = vor.u32 %v8178_v17, %v7080_v0  ;;  %3680 = vmatpush.bf16.msra.mxu0 %v6827_v39 }
 0x41a   :  { %v9696_v50 = vmul.f32 %v4022_v4, %v8804_v43  ;;  %v4198_v18 = vadd.f32 %v4197_v48, %v4196_v12  ;;  %v9698_v16 = vadd.f32 %v3399_v40, %v3371_v13  ;;  %v6536_v34 = vld [vmem:[#allocation2 + $0x130] sm:$0xf0]  ;;  %3575 = vmatmul.bf16.gmra.mxu0 %v9430_v54 }
 0x41b   :  { %v6539_v10 = vor.u32 %v8042_v63, %v6536_v34  ;;  %v8234_v58 = vld [vmem:[#allocation2 + $0x714] sm:$0xf]  ;;  %3709 = vmatpush.bf16.msra.mxu1 %v7083_v23 }
 0x41c   :  { %3604 = vmatmul.bf16.gmra.mxu1 %v9434_v61  ;;  %v4278_v32 = vmul.f32 %v4198_v18, %v8804_v43  ;;  %v4286_v12 = vmul.f32 %v9696_v50, %v9696_v50  ;;  %v7304_v15 = vld [vmem:[#allocation2 + $0x730] sm:$0xf0]  ;;  %v3315_v4 = vpop.f32.mrf.mxu3  ;;  %v4023_v0 = vadd.f32 %v9698_v16, %v9691_v22  ;;  %v4119_v9 = vmul.f32 %v9698_v16, %v9698_v16 }
 0x41d   :  { %v8106_v19 = vld [vmem:[#allocation2 + $0x314] sm:$0xf]  ;;  %3652 = vmatpush.bf16.msra.mxu3 %v6539_v10  ;;  %v3345_v39 = vadd.f32 %v3344_v47, %v3315_v4 }
 0x41e   :  { %3633 = vmatmul.bf16.gmra.mxu2 %v9438_v25  ;;  %v6792_v40 = vld [vmem:[#allocation2 + $0x330] sm:$0xf0]  ;;  %v4294_v24 = vsub.f32 %v4278_v32, %v4286_v12  ;;  %v7307_v32 = vor.u32 %v8234_v58, %v7304_v15  ;;  %v4199_v36 = vadd.f32 %v4119_v9, %v4111_v2 }
 0x41f   :  { %v8170_v48 = vld [vmem:[#allocation2 + $0x514] sm:$0xf]  ;;  %v6795_v12 = vor.u32 %v8106_v19, %v6792_v40  ;;  %v3346_v17 = vpop.f32.mrf.mxu0  ;;  %v3374_v41 = vadd.f32 %v9693_v3, %v3345_v39  ;;  %v6475_v19 = vor.u32 %v8026_v62, %v6472_v51 }
 0x420   :  { %v7048_v13 = vld [vmem:[#allocation2 + $0x530] sm:$0xf0]  ;;  %v4302_v11 = vmax.f32 %v4294_v24, 0.0  ;;  %3739 = vmatpush.bf16.msra.mxu2 %v7307_v32 }
 0x421   :  { %v8034_v18 = vld [vmem:[#allocation2 + $0xd4] sm:$0xf]  ;;  %v3402_v56 = vpop.f32.mrf.mxu2  ;;  %v3375_v29 = vpop.f32.mrf.mxu1  ;;  %v7051_v44 = vor.u32 %v8170_v48, %v7048_v13  ;;  %3681 = vmatpush.bf16.msra.mxu0 %v6795_v12 }
 0x422   :  { %v6504_v63 = vld [vmem:[#allocation2 + $0xf0] sm:$0xf0]  ;;  %v9730_v15 = vadd.f32 0.8, %v4302_v11  ;;  %v9732_v24 = vadd.f32 %v3402_v56, %v3374_v41 }
 0x423   :  { %v8226_v34 = vld [vmem:[#allocation2 + $0x6d4] sm:$0xf]  ;;  %v6507_v27 = vor.u32 %v8034_v18, %v6504_v63  ;;  %3710 = vmatpush.bf16.msra.mxu1 %v7051_v44 }
 0x424   :  { %v7272_v37 = vld [vmem:[#allocation2 + $0x6f0] sm:$0xf0]  ;;  %8435 = vrsqrt.f32 %v9730_v15  ;;  %v4024_v2 = vadd.f32 %v4023_v0, %v9732_v24  ;;  %v3317_v11 = vpop.f32.mrf.mxu3  ;;  %vm4397_vm8 = vweird.f32 %v9730_v15 }
 0x425   :  { %v8098_v21 = vld [vmem:[#allocation2 + $0x2d4] sm:$0xf]  ;;  %v7275_v10 = vor.u32 %v8226_v34, %v7272_v37  ;;  %3653 = vmatpush.bf16.msra.mxu3 %v6507_v27  ;;  %v3347_v56 = vadd.f32 %v3346_v17, %v3317_v11 }
 0x426   :  { %v6760_v55 = vld [vmem:[#allocation2 + $0x2f0] sm:$0xf0] }
 0x427   :  { %v6763_v47 = vor.u32 %v8098_v21, %v6760_v55  ;;  %v8162_v23 = vld [vmem:[#allocation2 + $0x4d4] sm:$0xf]  ;;  %v4127_v55 = vmul.f32 %v9732_v24, %v9732_v24  ;;  %3740 = vmatpush.bf16.msra.mxu2 %v7275_v10  ;;  %v3376_v39 = vadd.f32 %v3375_v29, %v3347_v56  ;;  %v3349_v32 = vpop.f32.mrf.mxu0 }
 0x428   :  { %v7016_v58 = vld [vmem:[#allocation2 + $0x4f0] sm:$0xf0] }
 0x429   :  { %v8218_v40 = vld [vmem:[#allocation2 + $0x694] sm:$0xf]  ;;  %v7019_v37 = vor.u32 %v8162_v23, %v7016_v58  ;;  %3682 = vmatpush.bf16.msra.mxu0 %v6763_v47  ;;  %3654 = vmatpush.bf16.msra.mxu3 %v6475_v19  ;;  %v4200_v18 = vadd.f32 %v4199_v36, %v4127_v55  ;;  %v3404_v63 = vpop.f32.mrf.mxu2  ;;  %v3378_v12 = vpop.f32.mrf.mxu1 }
 0x42a   :  { %v7240_v4 = vld [vmem:[#allocation2 + $0x6b0] sm:$0xf0]  ;;  %v8436_v19 = vpop.eup %8435  ;;  %3551 = vmatmul.bf16.gmra.mxu3 %v9446_v14  ;;  %3580 = vmatmul.bf16.gmra.mxu0 %v9450_v5 }
 0x42b   :  { %v8090_v48 = vld [vmem:[#allocation2 + $0x294] sm:$0xf]  ;;  %v7243_v3 = vor.u32 %v8218_v40, %v7240_v4  ;;  %3711 = vmatpush.bf16.msra.mxu1 %v7019_v37  ;;  %v9738_v4 = vadd.f32 %v3404_v63, %v3376_v39  ;;  %v4392_v29 = vmul.f32 %v8436_v19, %v9730_v15  ;;  %vm4398_vm7 = vweird.f32 %v8436_v19 }
 0x42c   :  { %v6728_v13 = vld [vmem:[#allocation2 + $0x2b0] sm:$0xf0]  ;;  %3609 = vmatmul.bf16.gmra.mxu1 %v9454_v57  ;;  %vm4399_vm9 = vmor %vm4397_vm8, %vm4398_vm7  ;;  %v10796_v15 = vsub.f32 %v9598_v52, %v9696_v50  ;;  %v10801_v52 = vsub.f32 %v9682_v20, %v9696_v50 }
 0x42d   :  { %v6731_v51 = vor.u32 %v8090_v48, %v6728_v13  ;;  %v8018_v62 = vld [vmem:[#allocation2 + $0x54] sm:$0xf]  ;;  %3741 = vmatpush.bf16.msra.mxu2 %v7243_v3  ;;  %v4025_v11 = vadd.f32 %v4024_v2, %v9738_v4 }
 0x42e   :  { %v6440_v27 = vld [vmem:[#allocation2 + $0x70] sm:$0xf0]  ;;  %3638 = vmatmul.bf16.gmra.mxu2 %v9458_v46 }
 0x42f   :  { %v8154_v41 = vld [vmem:[#allocation2 + $0x494] sm:$0xf]  ;;  %v6443_v23 = vor.u32 %v8018_v62, %v6440_v27  ;;  %3683 = vmatpush.bf16.msra.mxu0 %v6731_v51  ;;  %v4135_v51 = vmul.f32 %v9738_v4, %v9738_v4  ;;  %v4393_v27 = vmul.f32 %v8436_v19, %v4392_v29  ;;  %v3351_v33 = vpop.f32.mrf.mxu0  ;;  %v10798_v29 = vsub.f32 %v9614_v59, %v9696_v50 }
 0x430   :  { %v6984_v44 = vld [vmem:[#allocation2 + $0x4b0] sm:$0xf0] }
 0x431   :  { %v8210_v9 = vld [vmem:[#allocation2 + $0x654] sm:$0xf]  ;;  %v6987_v10 = vor.u32 %v8154_v41, %v6984_v44  ;;  %3655 = vmatpush.bf16.msra.mxu3 %v6443_v23  ;;  %v3320_v41 = vpop.f32.mrf.mxu3  ;;  %v4394_v2 = vmul.f32 0.5, %v4393_v27  ;;  %v3407_v39 = vpop.f32.mrf.mxu2 }
 0x432   :  { %v7208_v21 = vld [vmem:[#allocation2 + $0x670] sm:$0xf0]  ;;  %v3380_v57 = vpop.f32.mrf.mxu1 }
 0x433   :  { %v8082_v34 = vld [vmem:[#allocation2 + $0x254] sm:$0xf]  ;;  %v7211_v47 = vor.u32 %v8210_v9, %v7208_v21  ;;  %3712 = vmatpush.bf16.msra.mxu1 %v6987_v10  ;;  %v4201_v9 = vadd.f32 %v4200_v18, %v4135_v51  ;;  %v3350_v21 = vadd.f32 %v3349_v32, %v3320_v41  ;;  %v4395_v23 = vsub.f32 1.5, %v4394_v2 }
 0x434   :  { %v6696_v0 = vld [vmem:[#allocation2 + $0x270] sm:$0xf0] }
 0x435   :  { %v8010_v58 = vld [vmem:[#allocation2 + $0x14] sm:$0xf]  ;;  %v6699_v36 = vor.u32 %v8082_v34, %v6696_v0  ;;  %3742 = vmatpush.bf16.msra.mxu2 %v7211_v47  ;;  %v3379_v49 = vadd.f32 %v3378_v12, %v3350_v21  ;;  %v4396_v18 = vmul.f32 %v8436_v19, %v4395_v23 }
 0x436   :  { %v6408_v40 = vld [vmem:[#allocation2 + $0x30] sm:$0xf0] }
 0x437   :  { %v8146_v17 = vld [vmem:[#allocation2 + $0x454] sm:$0xf]  ;;  %v6411_v62 = vor.u32 %v8010_v58, %v6408_v40  ;;  %3684 = vmatpush.bf16.msra.mxu0 %v6699_v36  ;;  %v9748_v47 = vadd.f32 %v3407_v39, %v3379_v49  ;;  %v4400_v58 = vsel %vm4399_vm9, %v8436_v19, %v4396_v18  ;;  %v10795_v49 = vsub.f32 %v9567_v45, %v9696_v50 }
 0x438   :  { %v6952_v37 = vld [vmem:[#allocation2 + $0x470] sm:$0xf0]  ;;  %v10797_v19 = vsub.f32 %v9604_v6, %v9696_v50  ;;  %v10800_v45 = vsub.f32 %v9677_v1, %v9696_v50  ;;  %v4518_v51 = vmul.f32 %v4400_v58, %v10801_v52  ;;  %v3354_v6 = vpop.f32.mrf.mxu0 }
 0x439   :  { %v8202_v48 = vld [vmem:[#allocation2 + $0x614] sm:$0xf]  ;;  %v6955_v56 = vor.u32 %v8146_v17, %v6952_v37  ;;  %3656 = vmatpush.bf16.msra.mxu3 %v6411_v62  ;;  %v4026_v32 = vadd.f32 %v4025_v11, %v9748_v47  ;;  %v4143_v12 = vmul.f32 %v9748_v47, %v9748_v47  ;;  %v3322_v40 = vpop.f32.mrf.mxu3  ;;  %v10794_v17 = vsub.f32 %v9560_v8, %v9696_v50  ;;  %v3409_v62 = vpop.f32.mrf.mxu2 }
 0x43a   :  { %v7176_v13 = vld [vmem:[#allocation2 + $0x630] sm:$0xf0]  ;;  %v4470_v37 = vmul.f32 %v4400_v58, %v10795_v49  ;;  %v10799_v8 = vsub.f32 %v9672_v60, %v9696_v50  ;;  %v4510_v11 = vmul.f32 %v4400_v58, %v10800_v45  ;;  %v3383_v59 = vpop.f32.mrf.mxu1  ;;  %vm4582_vm1 = vcmp.gt.f32.partialorder %v4518_v51, 0.0  ;;  %3556 = vmatmul.bf16.gmra.mxu3 %v9466_v53  ;;  %3585 = vmatmul.bf16.gmra.mxu0 %v9470_v30 }
 0x43b   :  { %v8074_v3 = vld [vmem:[#allocation2 + $0x214] sm:$0xf]  ;;  %v7179_v44 = vor.u32 %v8202_v48, %v7176_v13  ;;  %3713 = vmatpush.bf16.msra.mxu1 %v6955_v56  ;;  %v4462_v36 = vmul.f32 %v4400_v58, %v10794_v17  ;;  %v4478_v48 = vmul.f32 %v4400_v58, %v10796_v15  ;;  %v4486_v13 = vmul.f32 %v4400_v58, %v10797_v19 }
 0x43c   :  { %v6664_v55 = vld [vmem:[#allocation2 + $0x230] sm:$0xf0]  ;;  %vm4534_vm11 = vcmp.gt.f32.partialorder %v4470_v37, 0.0  ;;  %vm4574_vm0 = vcmp.gt.f32.partialorder %v4510_v11, 0.0  ;;  %v4598_v27 = vmul.f32 0.2, %v4470_v37  ;;  %v4202_v1 = vadd.f32 %v4201_v9, %v4143_v12  ;;  %3614 = vmatmul.bf16.gmra.mxu1 %v9474_v7 }
 0x43d   :  { %v6667_v63 = vor.u32 %v8074_v3, %v6664_v55  ;;  %v8138_v34 = vld [vmem:[#allocation2 + $0x414] sm:$0xf]  ;;  %3743 = vmatpush.bf16.msra.mxu2 %v7179_v44  ;;  %v4494_v3 = vmul.f32 %v4400_v58, %v10798_v29  ;;  %v4502_v55 = vmul.f32 %v4400_v58, %v10799_v8  ;;  %vm4526_vm10 = vcmp.gt.f32.partialorder %v4462_v36, 0.0 }
 0x43e   :  { %v6920_v0 = vld [vmem:[#allocation2 + $0x430] sm:$0xf0]  ;;  %vm4542_vm12 = vcmp.gt.f32.partialorder %v4478_v48, 0.0  ;;  %vm4550_vm13 = vcmp.gt.f32.partialorder %v4486_v13, 0.0  ;;  %v4590_v60 = vmul.f32 0.2, %v4462_v36  ;;  %v3352_v44 = vadd.f32 %v3351_v33, %v3322_v40  ;;  %3643 = vmatmul.bf16.gmra.mxu2 %v9478_v26 }
 0x43f   :  { %v6923_v10 = vor.u32 %v8138_v34, %v6920_v0  ;;  %3685 = vmatpush.bf16.msra.mxu0 %v6667_v63  ;;  %vm4558_vm14 = vcmp.gt.f32.partialorder %v4494_v3, 0.0  ;;  %vm4566_vm15 = vcmp.gt.f32.partialorder %v4502_v55, 0.0  ;;  %v4606_v41 = vmul.f32 0.2, %v4478_v48 }
 0x440   :  { %v4614_v56 = vmul.f32 0.2, %v4486_v13  ;;  %v4622_v20 = vmul.f32 0.2, %v4494_v3  ;;  %v4630_v50 = vmul.f32 0.2, %v4502_v55  ;;  %v9782_v34 = vsel %vm4526_vm10, %v4462_v36, %v4590_v60  ;;  %v3356_v49 = vpop.f32.mrf.mxu0 }
 0x441   :  { %3714 = vmatpush.bf16.msra.mxu1 %v6923_v10  ;;  %v4638_v21 = vmul.f32 0.2, %v4510_v11  ;;  %v4646_v63 = vmul.f32 0.2, %v4518_v51  ;;  %10802 = vst [vmem:[#allocation31_spill] sm:$0xff] %v9782_v34  ;;  %v9785_v0 = vsel %vm4534_vm11, %v4470_v37, %v4598_v27  ;;  %v9789_v9 = vsel %vm4542_vm12, %v4478_v48, %v4606_v41  ;;  %v3325_v23 = vpop.f32.mrf.mxu3  ;;  %v3412_v40 = vpop.f32.mrf.mxu2 }
 0x442   :  { %10803 = vst [vmem:[#allocation32_spill] sm:$0xff] %v9785_v0  ;;  %v9792_v2 = vsel %vm4550_vm13, %v4486_v13, %v4614_v56  ;;  %v9795_v33 = vsel %vm4558_vm14, %v4494_v3, %v4622_v20  ;;  %v9798_v39 = vsel %vm4566_vm15, %v4502_v55, %v4630_v50  ;;  %v3381_v58 = vadd.f32 %v3380_v57, %v3352_v44  ;;  %v3385_v37 = vpop.f32.mrf.mxu1  ;;  %v6638_v41 = vld [vmem:[#allocation2 + $0x1d8] sm:$0xf] }
 0x443   :  { %10804 = vst [vmem:[#allocation33_spill] sm:$0xff] %v9789_v9  ;;  %v9801_v10 = vsel %vm4574_vm0, %v4510_v11, %v4638_v21  ;;  %v9804_v18 = vsel %vm4582_vm1, %v4518_v51, %v4646_v63  ;;  %v3355_v12 = vadd.f32 %v3354_v6, %v3325_v23  ;;  %v7406_v44 = vld [vmem:[#allocation2 + $0x7d8] sm:$0xf] }
 0x444   :  { %10805 = vst [vmem:[#allocation34_spill] sm:$0xff] %v9792_v2  ;;  %v9806_v17 = vadd.f32 %v3409_v62, %v3381_v58  ;;  %v8263_v21 = vld [vmem:[#allocation2 + $0x7f4] sm:$0xf0] }
 0x445   :  { %10806 = vst [vmem:[#allocation35_spill] sm:$0xff] %v9795_v33  ;;  %v3384_v36 = vadd.f32 %v3383_v59, %v3355_v12  ;;  %v6894_v63 = vld [vmem:[#allocation2 + $0x3d8] sm:$0xf] }
 0x446   :  { %10807 = vst [vmem:[#allocation36_spill] sm:$0xff] %v9798_v39  ;;  %v4027_v15 = vadd.f32 %v4026_v32, %v9806_v17  ;;  %v4151_v48 = vmul.f32 %v9806_v17, %v9806_v17  ;;  %v8031_v39 = vld [vmem:[#allocation2 + $0xb4] sm:$0xf0] }
 0x447   :  { %10808 = vst [vmem:[#allocation37_spill] sm:$0xff] %v9801_v10  ;;  %v9811_v19 = vadd.f32 %v3412_v40, %v3384_v36  ;;  %v7407_v40 = vor.u32 %v8263_v21, %v7406_v44  ;;  %v6478_v10 = vld [vmem:[#allocation2 + $0x98] sm:$0xf] }
 0x448   :  { %10809 = vst [vmem:[#allocation38_spill] sm:$0xff] %v9804_v18  ;;  %v4203_v13 = vadd.f32 %v4202_v1, %v4151_v48  ;;  %v3455_v52 = vpop.f32.mrf.mxu0  ;;  %v8071_v1 = vld [vmem:[#allocation2 + $0x1f4] sm:$0xf0] }
 0x449   :  { %v4028_v29 = vadd.f32 %v4027_v15, %v9811_v19  ;;  %v4159_v57 = vmul.f32 %v9811_v19, %v9811_v19  ;;  %v3327_v3 = vpop.f32.mrf.mxu3  ;;  %v3414_v45 = vpop.f32.mrf.mxu2  ;;  %v6639_v20 = vor.u32 %v8071_v1, %v6638_v41  ;;  %v7150_v15 = vld [vmem:[#allocation2 + $0x5d8] sm:$0xf]  ;;  %3852 = vmatpush.bf16.msrb.mxu2 %v7407_v40 }
 0x44a   :  { %v3357_v55 = vadd.f32 %v3356_v49, %v3327_v3  ;;  %v3484_v51 = vpop.f32.mrf.mxu1  ;;  %3657 = vmatmul.bf16.vlgmr.msra.gmra.mxu3 %v9406_v31  ;;  %3686 = vmatmul.bf16.vlgmr.msra.gmra.mxu0 %v9410_v35  ;;  %v8127_v41 = vld [vmem:[#allocation2 + $0x3b4] sm:$0xf0] }
 0x44b   :  { %v4204_v8 = vadd.f32 %v4203_v13, %v4159_v57  ;;  %3765 = vmatpush.bf16.msrb.mxu3 %v6639_v20  ;;  %v8199_v13 = vld [vmem:[#allocation2 + $0x5f4] sm:$0xf0] }
 0x44c   :  { %v3386_v11 = vadd.f32 %v3385_v37, %v3357_v55  ;;  %3715 = vmatmul.bf16.vlgmr.msra.gmra.mxu1 %v9414_v42  ;;  %v8135_v37 = vld [vmem:[#allocation2 + $0x3f4] sm:$0xf0] }
 0x44d   :  { %v6895_v48 = vor.u32 %v8135_v37, %v6894_v63  ;;  %v8063_v55 = vld [vmem:[#allocation2 + $0x1b4] sm:$0xf0] }
 0x44e   :  { %v9816_v62 = vadd.f32 %v3414_v45, %v3386_v11  ;;  %3744 = vmatmul.bf16.vlgmr.msra.gmra.mxu2 %v9418_v38  ;;  %v7151_v45 = vor.u32 %v8199_v13, %v7150_v15  ;;  %v7118_v1 = vld [vmem:[#allocation2 + $0x598] sm:$0xf] }
 0x44f   :  { %3794 = vmatpush.bf16.msrb.mxu0 %v6895_v48  ;;  %v8191_v20 = vld [vmem:[#allocation2 + $0x5b4] sm:$0xf0] }
 0x450   :  { %v4029_v32 = vadd.f32 %v4028_v29, %v9816_v62  ;;  %v4167_v6 = vmul.f32 %v9816_v62, %v9816_v62  ;;  %v3457_v36 = vpop.f32.mrf.mxu0  ;;  %3823 = vmatpush.bf16.msrb.mxu1 %v7151_v45  ;;  %v6574_v63 = vld [vmem:[#allocation2 + $0x158] sm:$0xf] }
 0x451   :  { %v3426_v59 = vpop.f32.mrf.mxu3  ;;  %v3513_v50 = vpop.f32.mrf.mxu2  ;;  %v8247_v15 = vld [vmem:[#allocation2 + $0x774] sm:$0xf0] }
 0x452   :  { %v4030_v60 = vrot.slane %v4029_v32, 4  ;;  %v4205_v27 = vadd.f32 %v4204_v8, %v4167_v6  ;;  %v3456_v56 = vadd.f32 %v3455_v52, %v3426_v59  ;;  %v3486_v49 = vpop.f32.mrf.mxu1  ;;  %v6606_v8 = vld [vmem:[#allocation2 + $0x198] sm:$0xf] }
 0x453   :  { %v6607_v11 = vor.u32 %v8063_v55, %v6606_v8  ;;  %v7374_v52 = vld [vmem:[#allocation2 + $0x798] sm:$0xf] }
 0x454   :  { %v4031_v23 = vadd.f32 %v4030_v60, %v4029_v32  ;;  %v4206_v58 = vrot.slane %v4205_v27, 4  ;;  %v3485_v12 = vadd.f32 %v3484_v51, %v3456_v56  ;;  %v8255_v51 = vld [vmem:[#allocation2 + $0x7b4] sm:$0xf0] }
 0x455   :  { %v6862_v32 = vld [vmem:[#allocation2 + $0x398] sm:$0xf]  ;;  %v7375_v60 = vor.u32 %v8255_v51, %v7374_v52  ;;  %3766 = vmatpush.bf16.msrb.mxu3 %v6607_v11 }
 0x456   :  { %v4032_v29 = vrot.slane %v4031_v23, 2  ;;  %v4207_v57 = vadd.f32 %v4206_v58, %v4205_v27  ;;  %v9825_v3 = vadd.f32 %v3513_v50, %v3485_v12  ;;  %v6863_v27 = vor.u32 %v8127_v41, %v6862_v32  ;;  %v8055_v58 = vld [vmem:[#allocation2 + $0x174] sm:$0xf0] }
 0x457   :  { %3853 = vmatpush.bf16.msrb.mxu2 %v7375_v60  ;;  %v7119_v12 = vor.u32 %v8191_v20, %v7118_v1  ;;  %v6575_v37 = vor.u32 %v8055_v58, %v6574_v63  ;;  %v6830_v48 = vld [vmem:[#allocation2 + $0x358] sm:$0xf] }
 0x458   :  { %v4033_v6 = vadd.f32 %v4032_v29, %v4031_v23  ;;  %v4208_v59 = vrot.slane %v4207_v57, 2  ;;  %3795 = vmatpush.bf16.msrb.mxu0 %v6863_v27  ;;  %v7342_v23 = vld [vmem:[#allocation2 + $0x758] sm:$0xf]  ;;  %v3460_v55 = vpop.f32.mrf.mxu0  ;;  %v4112_v41 = vmul.f32 %v9825_v3, %v9825_v3 }
 0x459   :  { %v3428_v56 = vpop.f32.mrf.mxu3  ;;  %v3515_v40 = vpop.f32.mrf.mxu2  ;;  %3824 = vmatpush.bf16.msrb.mxu1 %v7119_v12  ;;  %v7343_v11 = vor.u32 %v8247_v15, %v7342_v23  ;;  %3767 = vmatpush.bf16.msrb.mxu3 %v6575_v37  ;;  %v8183_v51 = vld [vmem:[#allocation2 + $0x574] sm:$0xf0] }
 0x45a   :  { %v4034_v50 = vrot.slane %v4033_v6, 1  ;;  %v4209_v44 = vadd.f32 %v4208_v59, %v4207_v57  ;;  %v3458_v21 = vadd.f32 %v3457_v36, %v3428_v56  ;;  %v9827_v45 = vpop.f32.mrf.mxu1  ;;  %v8119_v57 = vld [vmem:[#allocation2 + $0x374] sm:$0xf0]  ;;  %3662 = vmatmul.bf16.gmra.mxu3 %v9426_v28  ;;  %3691 = vmatmul.bf16.gmra.mxu0 %v9430_v54 }
 0x45b   :  { %v7086_v36 = vld [vmem:[#allocation2 + $0x558] sm:$0xf]  ;;  %v6831_v52 = vor.u32 %v8119_v57, %v6830_v48  ;;  %3854 = vmatpush.bf16.msrb.mxu2 %v7343_v11 }
 0x45c   :  { %v4035_v13 = vadd.f32 %v4034_v50, %v4033_v6  ;;  %v4210_v29 = vrot.slane %v4209_v44, 1  ;;  %v3487_v8 = vadd.f32 %v3486_v49, %v3458_v21  ;;  %v6542_v49 = vld [vmem:[#allocation2 + $0x118] sm:$0xf]  ;;  %3720 = vmatmul.bf16.gmra.mxu1 %v9434_v61  ;;  %v7087_v56 = vor.u32 %v8183_v51, %v7086_v36 }
 0x45d   :  { %v8047_v6 = vld [vmem:[#allocation2 + $0x134] sm:$0xf0]  ;;  %3796 = vmatpush.bf16.msrb.mxu0 %v6831_v52 }
 0x45e   :  { %v9830_v32 = vmul.f32 %v4035_v13, %v8804_v43  ;;  %v4211_v59 = vadd.f32 %v4210_v29, %v4209_v44  ;;  %v9832_v60 = vadd.f32 %v3515_v40, %v3487_v8  ;;  %v6543_v1 = vor.u32 %v8047_v6, %v6542_v49  ;;  %v7310_v27 = vld [vmem:[#allocation2 + $0x718] sm:$0xf]  ;;  %3749 = vmatmul.bf16.gmra.mxu2 %v9438_v25 }
 0x45f   :  { %v8239_v63 = vld [vmem:[#allocation2 + $0x734] sm:$0xf0]  ;;  %3825 = vmatpush.bf16.msrb.mxu1 %v7087_v56 }
 0x460   :  { %v4279_v20 = vmul.f32 %v4211_v59, %v8804_v43  ;;  %v4287_v50 = vmul.f32 %v9830_v32, %v9830_v32  ;;  %v6798_v58 = vld [vmem:[#allocation2 + $0x318] sm:$0xf]  ;;  %v4036_v36 = vadd.f32 %v9832_v60, %v9825_v3  ;;  %3768 = vmatpush.bf16.msrb.mxu3 %v6543_v1  ;;  %v4120_v6 = vmul.f32 %v9832_v60, %v9832_v60  ;;  %v3462_v57 = vpop.f32.mrf.mxu0 }
 0x461   :  { %v8111_v12 = vld [vmem:[#allocation2 + $0x334] sm:$0xf0]  ;;  %v3431_v48 = vpop.f32.mrf.mxu3  ;;  %v3518_v15 = vpop.f32.mrf.mxu2 }
 0x462   :  { %v7054_v13 = vld [vmem:[#allocation2 + $0x518] sm:$0xf]  ;;  %v4295_v8 = vsub.f32 %v4279_v20, %v4287_v50  ;;  %v3461_v52 = vadd.f32 %v3460_v55, %v3431_v48  ;;  %v7311_v20 = vor.u32 %v8239_v63, %v7310_v27  ;;  %v6799_v50 = vor.u32 %v8111_v12, %v6798_v58  ;;  %v3491_v21 = vpop.f32.mrf.mxu1 }
 0x463   :  { %v8175_v29 = vld [vmem:[#allocation2 + $0x534] sm:$0xf0]  ;;  %v4212_v33 = vadd.f32 %v4120_v6, %v4112_v41  ;;  %v6479_v58 = vor.u32 %v8031_v39, %v6478_v10 }
 0x464   :  { %v6510_v51 = vld [vmem:[#allocation2 + $0xd8] sm:$0xf]  ;;  %v4303_v40 = vmax.f32 %v4295_v8, 0.0  ;;  %v7055_v18 = vor.u32 %v8175_v29, %v7054_v13  ;;  %v3490_v2 = vadd.f32 %v9827_v45, %v3461_v52  ;;  %3855 = vmatpush.bf16.msrb.mxu2 %v7311_v20  ;;  %3797 = vmatpush.bf16.msrb.mxu0 %v6799_v50 }
 0x465   :  { %v8039_v59 = vld [vmem:[#allocation2 + $0xf4] sm:$0xf0] }
 0x466   :  { %v7278_v49 = vld [vmem:[#allocation2 + $0x6d8] sm:$0xf]  ;;  %v6511_v44 = vor.u32 %v8039_v59, %v6510_v51  ;;  %v9864_v63 = vadd.f32 0.8, %v4303_v40  ;;  %v9866_v8 = vadd.f32 %v3518_v15, %v3490_v2  ;;  %3826 = vmatpush.bf16.msrb.mxu1 %v7055_v18 }
 0x467   :  { %v8231_v23 = vld [vmem:[#allocation2 + $0x6f4] sm:$0xf0] }
 0x468   :  { %v6766_v11 = vld [vmem:[#allocation2 + $0x2d8] sm:$0xf]  ;;  %v7279_v1 = vor.u32 %v8231_v23, %v7278_v49  ;;  %3769 = vmatpush.bf16.msrb.mxu3 %v6511_v44  ;;  %8437 = vrsqrt.f32 %v9864_v63  ;;  %v4037_v41 = vadd.f32 %v4036_v36, %v9866_v8  ;;  %v3465_v20 = vpop.f32.mrf.mxu0  ;;  %vm4407_vm3 = vweird.f32 %v9864_v63 }
 0x469   :  { %v8103_v37 = vld [vmem:[#allocation2 + $0x2f4] sm:$0xf0]  ;;  %v3433_v40 = vpop.f32.mrf.mxu3  ;;  %v3520_v49 = vpop.f32.mrf.mxu2 }
 0x46a   :  { %v6767_v55 = vor.u32 %v8103_v37, %v6766_v11  ;;  %v7022_v56 = vld [vmem:[#allocation2 + $0x4d8] sm:$0xf]  ;;  %v4128_v37 = vmul.f32 %v9866_v8, %v9866_v8  ;;  %3856 = vmatpush.bf16.msrb.mxu2 %v7279_v1  ;;  %v3463_v15 = vadd.f32 %v3462_v57, %v3433_v40  ;;  %v3494_v50 = vpop.f32.mrf.mxu1  ;;  %3667 = vmatmul.bf16.gmra.mxu3 %v9446_v14 }
 0x46b   :  { %v8167_v27 = vld [vmem:[#allocation2 + $0x4f4] sm:$0xf0]  ;;  %3696 = vmatmul.bf16.gmra.mxu0 %v9450_v5 }
 0x46c   :  { %v7246_v12 = vld [vmem:[#allocation2 + $0x698] sm:$0xf]  ;;  %v7023_v23 = vor.u32 %v8167_v27, %v7022_v56  ;;  %3798 = vmatpush.bf16.msrb.mxu0 %v6767_v55  ;;  %3770 = vmatpush.bf16.msrb.mxu3 %v6479_v58  ;;  %v4213_v59 = vadd.f32 %v4212_v33, %v4128_v37  ;;  %v3492_v52 = vadd.f32 %v3491_v21, %v3463_v15 }
 0x46d   :  { %v8223_v48 = vld [vmem:[#allocation2 + $0x6b4] sm:$0xf0] }
 0x46e   :  { %v6734_v13 = vld [vmem:[#allocation2 + $0x298] sm:$0xf]  ;;  %v7247_v45 = vor.u32 %v8223_v48, %v7246_v12  ;;  %3827 = vmatpush.bf16.msrb.mxu1 %v7023_v23  ;;  %v8438_v58 = vpop.eup %8437  ;;  %v9872_v48 = vadd.f32 %v3520_v49, %v3492_v52  ;;  %3754 = vmatmul.bf16.gmra.mxu2 %v9458_v46 }
 0x46f   :  { %v8095_v29 = vld [vmem:[#allocation2 + $0x2b4] sm:$0xf0]  ;;  %v4402_v21 = vmul.f32 %v8438_v58, %v9864_v63  ;;  %vm4408_vm2 = vweird.f32 %v8438_v58  ;;  %v10813_v63 = vsub.f32 %v9732_v24, %v9830_v32  ;;  %v10818_v24 = vsub.f32 %v9816_v62, %v9830_v32 }
 0x470   :  { %v6735_v39 = vor.u32 %v8095_v29, %v6734_v13  ;;  %v6446_v10 = vld [vmem:[#allocation2 + $0x58] sm:$0xf]  ;;  %3857 = vmatpush.bf16.msrb.mxu2 %v7247_v45  ;;  %v10810_v45 = vld [vmem:[#allocation22_spill] sm:$0xff]  ;;  %v3467_v34 = vpop.f32.mrf.mxu0  ;;  %vm4409_vm4 = vmor %vm4407_vm3, %vm4408_vm2 }
 0x471   :  { %v8023_v44 = vld [vmem:[#allocation2 + $0x74] sm:$0xf0]  ;;  %3725 = vmatmul.bf16.gmra.mxu1 %v10810_v45  ;;  %v3436_v15 = vpop.f32.mrf.mxu3  ;;  %v3523_v9 = vpop.f32.mrf.mxu2 }
 0x472   :  { %v6990_v2 = vld [vmem:[#allocation2 + $0x498] sm:$0xf]  ;;  %v6447_v56 = vor.u32 %v8023_v44, %v6446_v10  ;;  %3799 = vmatpush.bf16.msrb.mxu0 %v6735_v39  ;;  %v4038_v39 = vadd.f32 %v4037_v41, %v9872_v48  ;;  %v4136_v10 = vmul.f32 %v9872_v48, %v9872_v48  ;;  %v3466_v49 = vadd.f32 %v3465_v20, %v3436_v15  ;;  %v3496_v45 = vpop.f32.mrf.mxu1 }
 0x473   :  { %v8159_v18 = vld [vmem:[#allocation2 + $0x4b4] sm:$0xf0] }
 0x474   :  { %v7214_v11 = vld [vmem:[#allocation2 + $0x658] sm:$0xf]  ;;  %v6991_v1 = vor.u32 %v8159_v18, %v6990_v2  ;;  %3771 = vmatpush.bf16.msrb.mxu3 %v6447_v56  ;;  %v4403_v2 = vmul.f32 %v8438_v58, %v4402_v21  ;;  %v3495_v0 = vadd.f32 %v3494_v50, %v3466_v49 }
 0x475   :  { %v8215_v51 = vld [vmem:[#allocation2 + $0x674] sm:$0xf0] }
 0x476   :  { %v6702_v6 = vld [vmem:[#allocation2 + $0x258] sm:$0xf]  ;;  %v7215_v55 = vor.u32 %v8215_v51, %v7214_v11  ;;  %3828 = vmatpush.bf16.msrb.mxu1 %v6991_v1  ;;  %v4214_v51 = vadd.f32 %v4213_v59, %v4136_v10  ;;  %v4404_v41 = vmul.f32 0.5, %v4403_v2 }
 0x477   :  { %v8087_v36 = vld [vmem:[#allocation2 + $0x274] sm:$0xf0] }
 0x478   :  { %v6414_v27 = vld [vmem:[#allocation2 + $0x18] sm:$0xf]  ;;  %v6703_v33 = vor.u32 %v8087_v36, %v6702_v6  ;;  %3858 = vmatpush.bf16.msrb.mxu2 %v7215_v55  ;;  %v4405_v56 = vsub.f32 1.5, %v4404_v41  ;;  %v9882_v55 = vadd.f32 %v3523_v9, %v3495_v0  ;;  %v10812_v0 = vsub.f32 %v9698_v16, %v9830_v32 }
 0x479   :  { %v8015_v12 = vld [vmem:[#allocation2 + $0x34] sm:$0xf0]  ;;  %v10817_v16 = vsub.f32 %v9811_v19, %v9830_v32  ;;  %v3525_v10 = vpop.f32.mrf.mxu2 }
 0x47a   :  { %v6958_v57 = vld [vmem:[#allocation2 + $0x458] sm:$0xf]  ;;  %v6415_v44 = vor.u32 %v8015_v12, %v6414_v27  ;;  %3800 = vmatpush.bf16.msrb.mxu0 %v6703_v33  ;;  %v4406_v59 = vmul.f32 %v8438_v58, %v4405_v56  ;;  %v4039_v20 = vadd.f32 %v4038_v39, %v9882_v55  ;;  %v4144_v50 = vmul.f32 %v9882_v55, %v9882_v55  ;;  %v3438_v12 = vpop.f32.mrf.mxu3 }
 0x47b   :  { %v8151_v23 = vld [vmem:[#allocation2 + $0x474] sm:$0xf0]  ;;  %3672 = vmatmul.bf16.gmra.mxu3 %v9466_v53  ;;  %3701 = vmatmul.bf16.gmra.mxu0 %v9470_v30 }
 0x47c   :  { %v7182_v13 = vld [vmem:[#allocation2 + $0x618] sm:$0xf]  ;;  %v6959_v18 = vor.u32 %v8151_v23, %v6958_v57  ;;  %3772 = vmatpush.bf16.msrb.mxu3 %v6415_v44  ;;  %v4410_v27 = vsel %vm4409_vm4, %v8438_v58, %v4406_v59  ;;  %v10811_v57 = vsub.f32 %v9691_v22, %v9830_v32  ;;  %v10814_v58 = vsub.f32 %v9738_v4, %v9830_v32  ;;  %v3470_v4 = vpop.f32.mrf.mxu0 }
 0x47d   :  { %v8207_v29 = vld [vmem:[#allocation2 + $0x634] sm:$0xf0]  ;;  %v4471_v9 = vmul.f32 %v4410_v27, %v10812_v0  ;;  %v4479_v23 = vmul.f32 %v4410_v27, %v10813_v63  ;;  %v10816_v22 = vsub.f32 %v9806_v17, %v9830_v32  ;;  %v4519_v39 = vmul.f32 %v4410_v27, %v10818_v24 }
 0x47e   :  { %v6670_v37 = vld [vmem:[#allocation2 + $0x218] sm:$0xf]  ;;  %v7183_v11 = vor.u32 %v8207_v29, %v7182_v13  ;;  %3829 = vmatpush.bf16.msrb.mxu1 %v6959_v18  ;;  %v4463_v33 = vmul.f32 %v4410_v27, %v10811_v57  ;;  %v4487_v13 = vmul.f32 %v4410_v27, %v10814_v58  ;;  %v10815_v29 = vsub.f32 %v9748_v47, %v9830_v32  ;;  %v3499_v47 = vpop.f32.mrf.mxu1 }
 0x47f   :  { %v8079_v40 = vld [vmem:[#allocation2 + $0x234] sm:$0xf0]  ;;  %vm4535_vm6 = vcmp.gt.f32.partialorder %v4471_v9, 0.0  ;;  %vm4543_vm7 = vcmp.gt.f32.partialorder %v4479_v23, 0.0  ;;  %vm4583_vm12 = vcmp.gt.f32.partialorder %v4519_v39, 0.0  ;;  %v4215_v19 = vadd.f32 %v4214_v51, %v4144_v50  ;;  %3759 = vmatmul.bf16.gmra.mxu2 %v9478_v26 }
 0x480   :  { %v6671_v6 = vor.u32 %v8079_v40, %v6670_v37  ;;  %v6926_v36 = vld [vmem:[#allocation2 + $0x418] sm:$0xf]  ;;  %3859 = vmatpush.bf16.msrb.mxu2 %v7183_v11  ;;  %v4495_v21 = vmul.f32 %v4410_v27, %v10815_v29  ;;  %v4503_v37 = vmul.f32 %v4410_v27, %v10816_v22  ;;  %v4511_v40 = vmul.f32 %v4410_v27, %v10817_v16 }
 0x481   :  { %v8143_v52 = vld [vmem:[#allocation2 + $0x434] sm:$0xf0]  ;;  %vm4527_vm5 = vcmp.gt.f32.partialorder %v4463_v33, 0.0  ;;  %vm4551_vm8 = vcmp.gt.f32.partialorder %v4487_v13, 0.0  ;;  %v4591_v17 = vmul.f32 0.2, %v4463_v33  ;;  %v3468_v18 = vadd.f32 %v3467_v34, %v3438_v12  ;;  %3730 = vmatmul.bf16.gmra.mxu1 %v9474_v7  ;;  %v3528_v12 = vpop.f32.mrf.mxu2 }
 0x482   :  { %v6927_v1 = vor.u32 %v8143_v52, %v6926_v36  ;;  %3801 = vmatpush.bf16.msrb.mxu0 %v6671_v6  ;;  %vm4559_vm9 = vcmp.gt.f32.partialorder %v4495_v21, 0.0  ;;  %vm4567_vm10 = vcmp.gt.f32.partialorder %v4503_v37, 0.0  ;;  %vm4575_vm11 = vcmp.gt.f32.partialorder %v4511_v40, 0.0  ;;  %v3441_v56 = vpop.f32.mrf.mxu3 }
 0x483   :  { %v4599_v44 = vmul.f32 0.2, %v4471_v9  ;;  %v4607_v2 = vmul.f32 0.2, %v4479_v23  ;;  %v4615_v15 = vmul.f32 0.2, %v4487_v13  ;;  %v9916_v6 = vsel %vm4527_vm5, %v4463_v33, %v4591_v17 }
 0x484   :  { %3830 = vmatpush.bf16.msrb.mxu1 %v6927_v1  ;;  %v4623_v62 = vmul.f32 0.2, %v4495_v21  ;;  %v4631_v32 = vmul.f32 0.2, %v4503_v37  ;;  %v4639_v11 = vmul.f32 0.2, %v4511_v40  ;;  %v3497_v27 = vadd.f32 %v3496_v45, %v3468_v18  ;;  %v3472_v0 = vpop.f32.mrf.mxu0 }
 0x485   :  { %v4647_v49 = vmul.f32 0.2, %v4519_v39  ;;  %10819 = vst [vmem:[#allocation39_spill] sm:$0xff] %v9916_v6  ;;  %v9919_v36 = vsel %vm4535_vm6, %v4471_v9, %v4599_v44  ;;  %v9923_v51 = vsel %vm4543_vm7, %v4479_v23, %v4607_v2  ;;  %v9926_v52 = vsel %vm4551_vm8, %v4487_v13, %v4615_v15  ;;  %v8067_v2 = vld [vmem:[#allocation2 + $0x1dc] sm:$0xf] }
 0x486   :  { %10820 = vst [vmem:[#allocation40_spill] sm:$0xff] %v9919_v36  ;;  %v9929_v34 = vsel %vm4559_vm9, %v4495_v21, %v4623_v62  ;;  %v9932_v41 = vsel %vm4567_vm10, %v4503_v37, %v4631_v32  ;;  %v9935_v1 = vsel %vm4575_vm11, %v4511_v40, %v4639_v11  ;;  %v3471_v50 = vadd.f32 %v3470_v4, %v3441_v56  ;;  %v3501_v9 = vpop.f32.mrf.mxu1  ;;  %v8259_v18 = vld [vmem:[#allocation2 + $0x7dc] sm:$0xf] }
 0x487   :  { %10821 = vst [vmem:[#allocation41_spill] sm:$0xff] %v9923_v51  ;;  %v9938_v59 = vsel %vm4583_vm12, %v4519_v39, %v4647_v49  ;;  %v9940_v57 = vadd.f32 %v3525_v10, %v3497_v27  ;;  %v7408_v11 = vld [vmem:[#allocation2 + $0x7f8] sm:$0xf0] }
 0x488   :  { %10822 = vst [vmem:[#allocation42_spill] sm:$0xff] %v9926_v52  ;;  %v3500_v33 = vadd.f32 %v3499_v47, %v3471_v50  ;;  %v8131_v49 = vld [vmem:[#allocation2 + $0x3dc] sm:$0xf] }
 0x489   :  { %10823 = vst [vmem:[#allocation43_spill] sm:$0xff] %v9929_v34  ;;  %v4040_v63 = vadd.f32 %v4039_v20, %v9940_v57  ;;  %v4152_v23 = vmul.f32 %v9940_v57, %v9940_v57  ;;  %v3530_v16 = vpop.f32.mrf.mxu2 }
 0x48a   :  { %10824 = vst [vmem:[#allocation44_spill] sm:$0xff] %v9932_v41  ;;  %v9945_v58 = vadd.f32 %v3528_v12, %v3500_v33  ;;  %v3443_v21 = vpop.f32.mrf.mxu3  ;;  %v7411_v12 = vor.u32 %v8259_v18, %v7408_v11  ;;  %v6480_v41 = vld [vmem:[#allocation2 + $0xb8] sm:$0xf0] }
 0x48b   :  { %10825 = vst [vmem:[#allocation45_spill] sm:$0xff] %v9935_v1  ;;  %v4216_v13 = vadd.f32 %v4215_v19, %v4152_v23  ;;  %v3473_v37 = vadd.f32 %v3472_v0, %v3443_v21  ;;  %3773 = vmatmul.bf16.vlgmr.msrb.gmra.mxu3 %v9406_v31  ;;  %3802 = vmatmul.bf16.vlgmr.msrb.gmra.mxu0 %v9410_v35  ;;  %v6640_v19 = vld [vmem:[#allocation2 + $0x1f8] sm:$0xf0] }
 0x48c   :  { %10826 = vst [vmem:[#allocation46_spill] sm:$0xff] %v9938_v59  ;;  %v4041_v29 = vadd.f32 %v4040_v63, %v9945_v58  ;;  %v4160_v45 = vmul.f32 %v9945_v58, %v9945_v58  ;;  %v3571_v24 = vpop.f32.mrf.mxu0  ;;  %v6643_v62 = vor.u32 %v8067_v2, %v6640_v19  ;;  %v8195_v63 = vld [vmem:[#allocation2 + $0x5dc] sm:$0xf]  ;;  %3968 = vmatpush.bf16.msra.mxu2 %v7411_v12 }
 0x48d   :  { %v3502_v40 = vadd.f32 %v3501_v9, %v3473_v37  ;;  %v6896_v9 = vld [vmem:[#allocation2 + $0x3f8] sm:$0xf0] }
 0x48e   :  { %v4217_v22 = vadd.f32 %v4216_v13, %v4160_v45  ;;  %v3600_v39 = vpop.f32.mrf.mxu1  ;;  %3881 = vmatpush.bf16.msra.mxu3 %v6643_v62  ;;  %v6899_v23 = vor.u32 %v8131_v49, %v6896_v9  ;;  %v7152_v13 = vld [vmem:[#allocation2 + $0x5f8] sm:$0xf0] }
 0x48f   :  { %v9950_v10 = vadd.f32 %v3530_v16, %v3502_v40  ;;  %3860 = vmatmul.bf16.vlgmr.msrb.gmra.mxu2 %v9418_v38  ;;  %v6608_v37 = vld [vmem:[#allocation2 + $0x1b8] sm:$0xf0]  ;;  %v7155_v16 = vor.u32 %v8195_v63, %v7152_v13 }
 0x490   :  { %3910 = vmatpush.bf16.msra.mxu0 %v6899_v23  ;;  %v6864_v2 = vld [vmem:[#allocation2 + $0x3b8] sm:$0xf0] }
 0x491   :  { %3831 = vmatmul.bf16.vlgmr.msrb.gmra.mxu1 %v9414_v42  ;;  %v4042_v20 = vadd.f32 %v4041_v29, %v9950_v10  ;;  %v4168_v4 = vmul.f32 %v9950_v10, %v9950_v10  ;;  %v3629_v32 = vpop.f32.mrf.mxu2  ;;  %v8187_v19 = vld [vmem:[#allocation2 + $0x59c] sm:$0xf] }
 0x492   :  { %v3542_v47 = vpop.f32.mrf.mxu3  ;;  %3939 = vmatpush.bf16.msra.mxu1 %v7155_v16  ;;  %v7120_v62 = vld [vmem:[#allocation2 + $0x5b8] sm:$0xf0] }
 0x493   :  { %v4043_v17 = vrot.slane %v4042_v20, 4  ;;  %v4218_v44 = vadd.f32 %v4217_v22, %v4168_v4  ;;  %v3572_v15 = vadd.f32 %v3571_v24, %v3542_v47  ;;  %v8059_v22 = vld [vmem:[#allocation2 + $0x19c] sm:$0xf] }
 0x494   :  { %v3573_v33 = vpop.f32.mrf.mxu0  ;;  %v6611_v40 = vor.u32 %v8059_v22, %v6608_v37  ;;  %v8251_v24 = vld [vmem:[#allocation2 + $0x79c] sm:$0xf] }
 0x495   :  { %v4044_v56 = vadd.f32 %v4043_v17, %v4042_v20  ;;  %v4219_v27 = vrot.slane %v4218_v44, 4  ;;  %v3601_v50 = vadd.f32 %v3600_v39, %v3572_v15  ;;  %v7376_v39 = vld [vmem:[#allocation2 + $0x7b8] sm:$0xf0] }
 0x496   :  { %v3602_v0 = vpop.f32.mrf.mxu1  ;;  %v8123_v20 = vld [vmem:[#allocation2 + $0x39c] sm:$0xf]  ;;  %v7379_v17 = vor.u32 %v8251_v24, %v7376_v39  ;;  %3882 = vmatpush.bf16.msra.mxu3 %v6611_v40 }
 0x497   :  { %v4045_v29 = vrot.slane %v4044_v56, 2  ;;  %v4220_v45 = vadd.f32 %v4219_v27, %v4218_v44  ;;  %v9959_v21 = vadd.f32 %v3629_v32, %v3601_v50  ;;  %v6867_v44 = vor.u32 %v8123_v20, %v6864_v2  ;;  %v8051_v49 = vld [vmem:[#allocation2 + $0x15c] sm:$0xf] }
 0x498   :  { %3969 = vmatpush.bf16.msra.mxu2 %v7379_v17  ;;  %v6576_v27 = vld [vmem:[#allocation2 + $0x178] sm:$0xf0]  ;;  %v7123_v50 = vor.u32 %v8187_v19, %v7120_v62 }
 0x499   :  { %v4046_v4 = vadd.f32 %v4045_v29, %v4044_v56  ;;  %v4221_v47 = vrot.slane %v4220_v45, 2  ;;  %v3631_v12 = vpop.f32.mrf.mxu2  ;;  %3911 = vmatpush.bf16.msra.mxu0 %v6867_v44  ;;  %v6579_v9 = vor.u32 %v8051_v49, %v6576_v27  ;;  %v8243_v56 = vld [vmem:[#allocation2 + $0x75c] sm:$0xf]  ;;  %v4113_v2 = vmul.f32 %v9959_v21, %v9959_v21 }
 0x49a   :  { %v3544_v15 = vpop.f32.mrf.mxu3  ;;  %v7344_v63 = vld [vmem:[#allocation2 + $0x778] sm:$0xf0]  ;;  %3940 = vmatpush.bf16.msra.mxu1 %v7123_v50 }
 0x49b   :  { %v4047_v32 = vrot.slane %v4046_v4, 1  ;;  %v4222_v18 = vadd.f32 %v4221_v47, %v4220_v45  ;;  %v3574_v11 = vadd.f32 %v3573_v33, %v3544_v15  ;;  %v8115_v23 = vld [vmem:[#allocation2 + $0x35c] sm:$0xf]  ;;  %v7347_v40 = vor.u32 %v8243_v56, %v7344_v63  ;;  %3883 = vmatpush.bf16.msra.mxu3 %v6579_v9  ;;  %3807 = vmatmul.bf16.gmra.mxu0 %v9430_v54 }
 0x49c   :  { %v3576_v37 = vpop.f32.mrf.mxu0  ;;  %v6832_v45 = vld [vmem:[#allocation2 + $0x378] sm:$0xf0]  ;;  %3778 = vmatmul.bf16.gmra.mxu3 %v9426_v28 }
 0x49d   :  { %v4048_v13 = vadd.f32 %v4047_v32, %v4046_v4  ;;  %v4223_v29 = vrot.slane %v4222_v18, 1  ;;  %v3603_v22 = vadd.f32 %v3602_v0, %v3574_v11  ;;  %v8179_v33 = vld [vmem:[#allocation2 + $0x55c] sm:$0xf]  ;;  %v6835_v24 = vor.u32 %v8115_v23, %v6832_v45  ;;  %3970 = vmatpush.bf16.msra.mxu2 %v7347_v40 }
 0x49e   :  { %v9961_v16 = vpop.f32.mrf.mxu1  ;;  %v7088_v39 = vld [vmem:[#allocation2 + $0x578] sm:$0xf0] }
 0x49f   :  { %v9964_v20 = vmul.f32 %v4048_v13, %v8804_v43  ;;  %v4224_v47 = vadd.f32 %v4223_v29, %v4222_v18  ;;  %v9966_v17 = vadd.f32 %v3631_v12, %v3603_v22  ;;  %v8043_v0 = vld [vmem:[#allocation2 + $0x11c] sm:$0xf]  ;;  %v7091_v15 = vor.u32 %v8179_v33, %v7088_v39  ;;  %3865 = vmatmul.bf16.gmra.mxu2 %v9438_v25 }
 0x4a0   :  { %v6544_v4 = vld [vmem:[#allocation2 + $0x138] sm:$0xf0]  ;;  %3912 = vmatpush.bf16.msra.mxu0 %v6835_v24 }
 0x4a1   :  { %3836 = vmatmul.bf16.gmra.mxu1 %v9434_v61  ;;  %v6547_v19 = vor.u32 %v8043_v0, %v6544_v4  ;;  %v8235_v44 = vld [vmem:[#allocation2 + $0x71c] sm:$0xf]  ;;  %v4280_v62 = vmul.f32 %v4224_v47, %v8804_v43  ;;  %v4288_v32 = vmul.f32 %v9964_v20, %v9964_v20  ;;  %v4049_v33 = vadd.f32 %v9966_v17, %v9959_v21  ;;  %v3634_v63 = vpop.f32.mrf.mxu2 }
 0x4a2   :  { %v7312_v49 = vld [vmem:[#allocation2 + $0x738] sm:$0xf0]  ;;  %v3547_v23 = vpop.f32.mrf.mxu3  ;;  %v4121_v4 = vmul.f32 %v9966_v17, %v9966_v17  ;;  %3941 = vmatpush.bf16.msra.mxu1 %v7091_v15 }
 0x4a3   :  { %v8107_v27 = vld [vmem:[#allocation2 + $0x31c] sm:$0xf]  ;;  %v4296_v22 = vsub.f32 %v4280_v62, %v4288_v32  ;;  %3884 = vmatpush.bf16.msra.mxu3 %v6547_v19  ;;  %v3577_v24 = vadd.f32 %v3576_v37, %v3547_v23  ;;  %v7315_v62 = vor.u32 %v8235_v44, %v7312_v49 }
 0x4a4   :  { %v6800_v50 = vld [vmem:[#allocation2 + $0x338] sm:$0xf0]  ;;  %v3578_v45 = vpop.f32.mrf.mxu0  ;;  %v4225_v34 = vadd.f32 %v4121_v4, %v4113_v2 }
 0x4a5   :  { %v8171_v13 = vld [vmem:[#allocation2 + $0x51c] sm:$0xf]  ;;  %v6803_v32 = vor.u32 %v8107_v27, %v6800_v50  ;;  %v4304_v12 = vmax.f32 %v4296_v22, 0.0  ;;  %v3606_v52 = vadd.f32 %v9961_v16, %v3577_v24  ;;  %3971 = vmatpush.bf16.msra.mxu2 %v7315_v62 }
 0x4a6   :  { %v7056_v29 = vld [vmem:[#allocation2 + $0x538] sm:$0xf0]  ;;  %v3607_v11 = vpop.f32.mrf.mxu1 }
 0x4a7   :  { %v8035_v39 = vld [vmem:[#allocation2 + $0xdc] sm:$0xf]  ;;  %v7059_v59 = vor.u32 %v8171_v13, %v7056_v29  ;;  %3913 = vmatpush.bf16.msra.mxu0 %v6803_v32  ;;  %v9998_v49 = vadd.f32 0.8, %v4304_v12  ;;  %v10000_v22 = vadd.f32 %v3634_v63, %v3606_v52 }
 0x4a8   :  { %v6512_v47 = vld [vmem:[#allocation2 + $0xf8] sm:$0xf0] }
 0x4a9   :  { %v8227_v0 = vld [vmem:[#allocation2 + $0x6dc] sm:$0xf]  ;;  %v6515_v18 = vor.u32 %v8035_v39, %v6512_v47  ;;  %3942 = vmatpush.bf16.msra.mxu1 %v7059_v59  ;;  %8439 = vrsqrt.f32 %v9998_v49  ;;  %v4050_v2 = vadd.f32 %v4049_v33, %v10000_v22  ;;  %vm4417_vm14 = vweird.f32 %v9998_v49 }
 0x4aa   :  { %v7280_v56 = vld [vmem:[#allocation2 + $0x6f8] sm:$0xf0]  ;;  %v3549_v12 = vpop.f32.mrf.mxu3 }
 0x4ab   :  { %v8099_v40 = vld [vmem:[#allocation2 + $0x2dc] sm:$0xf]  ;;  %v7283_v19 = vor.u32 %v8227_v0, %v7280_v56  ;;  %3885 = vmatpush.bf16.msra.mxu3 %v6515_v18  ;;  %v3579_v63 = vadd.f32 %v3578_v45, %v3549_v12  ;;  %v3636_v0 = vpop.f32.mrf.mxu2  ;;  %3812 = vmatmul.bf16.gmra.mxu0 %v9450_v5 }
 0x4ac   :  { %v6768_v9 = vld [vmem:[#allocation2 + $0x2f8] sm:$0xf0]  ;;  %v3581_v62 = vpop.f32.mrf.mxu0  ;;  %3783 = vmatmul.bf16.gmra.mxu3 %v9446_v14 }
 0x4ad   :  { %v8027_v1 = vld [vmem:[#allocation2 + $0x9c] sm:$0xf]  ;;  %v6771_v37 = vor.u32 %v8099_v40, %v6768_v9  ;;  %v4129_v9 = vmul.f32 %v10000_v22, %v10000_v22  ;;  %3972 = vmatpush.bf16.msra.mxu2 %v7283_v19  ;;  %v3608_v24 = vadd.f32 %v3607_v11, %v3579_v63 }
 0x4ae   :  { %v8163_v15 = vld [vmem:[#allocation2 + $0x4dc] sm:$0xf]  ;;  %v6483_v27 = vor.u32 %v8027_v1, %v6480_v41  ;;  %v3610_v32 = vpop.f32.mrf.mxu1 }
 0x4af   :  { %v7024_v44 = vld [vmem:[#allocation2 + $0x4f8] sm:$0xf0]  ;;  %3914 = vmatpush.bf16.msra.mxu0 %v6771_v37  ;;  %v4226_v47 = vadd.f32 %v4225_v34, %v4129_v9  ;;  %3870 = vmatmul.bf16.gmra.mxu2 %v9458_v46 }
 0x4b0   :  { %v8219_v50 = vld [vmem:[#allocation2 + $0x69c] sm:$0xf]  ;;  %v7027_v56 = vor.u32 %v8163_v15, %v7024_v44  ;;  %3886 = vmatpush.bf16.msra.mxu3 %v6483_v27  ;;  %v8440_v27 = vpop.eup %8439 }
 0x4b1   :  { %v7248_v23 = vld [vmem:[#allocation2 + $0x6b8] sm:$0xf0]  ;;  %v4412_v11 = vmul.f32 %v8440_v27, %v9998_v49  ;;  %vm4418_vm13 = vweird.f32 %v8440_v27  ;;  %v10830_v49 = vsub.f32 %v9866_v8, %v9964_v20  ;;  %v10835_v8 = vsub.f32 %v9950_v10, %v9964_v20 }
 0x4b2   :  { %v8091_v13 = vld [vmem:[#allocation2 + $0x29c] sm:$0xf]  ;;  %v7251_v16 = vor.u32 %v8219_v50, %v7248_v23  ;;  %3943 = vmatpush.bf16.msra.mxu1 %v7027_v56  ;;  %v10006_v23 = vadd.f32 %v3636_v0, %v3608_v24  ;;  %v3552_v63 = vpop.f32.mrf.mxu3  ;;  %vm4419_vm15 = vmor %vm4417_vm14, %vm4418_vm13 }
 0x4b3   :  { %v6736_v29 = vld [vmem:[#allocation2 + $0x2b8] sm:$0xf0]  ;;  %v3582_v0 = vadd.f32 %v3581_v62, %v3552_v63  ;;  %v3639_v51 = vpop.f32.mrf.mxu2 }
 0x4b4   :  { %v6739_v41 = vor.u32 %v8091_v13, %v6736_v29  ;;  %v8019_v1 = vld [vmem:[#allocation2 + $0x5c] sm:$0xf]  ;;  %3973 = vmatpush.bf16.msra.mxu2 %v7251_v16  ;;  %v10827_v16 = vld [vmem:[#allocation22_spill] sm:$0xff]  ;;  %v3583_v6 = vpop.f32.mrf.mxu0 }
 0x4b5   :  { %v6448_v18 = vld [vmem:[#allocation2 + $0x78] sm:$0xf0]  ;;  %3841 = vmatmul.bf16.gmra.mxu1 %v10827_v16  ;;  %v3611_v36 = vadd.f32 %v3610_v32, %v3582_v0 }
 0x4b6   :  { %v8155_v52 = vld [vmem:[#allocation2 + $0x49c] sm:$0xf]  ;;  %v6451_v15 = vor.u32 %v8019_v1, %v6448_v18  ;;  %3915 = vmatpush.bf16.msra.mxu0 %v6739_v41  ;;  %v4051_v41 = vadd.f32 %v4050_v2, %v10006_v23  ;;  %v4137_v1 = vmul.f32 %v10006_v23, %v10006_v23  ;;  %v3612_v16 = vpop.f32.mrf.mxu1 }
 0x4b7   :  { %v6992_v59 = vld [vmem:[#allocation2 + $0x4b8] sm:$0xf0] }
 0x4b8   :  { %v8211_v40 = vld [vmem:[#allocation2 + $0x65c] sm:$0xf]  ;;  %v6995_v19 = vor.u32 %v8155_v52, %v6992_v59  ;;  %3887 = vmatpush.bf16.msra.mxu3 %v6451_v15  ;;  %v4413_v52 = vmul.f32 %v8440_v27, %v4412_v11 }
 0x4b9   :  { %v7216_v39 = vld [vmem:[#allocation2 + $0x678] sm:$0xf0] }
 0x4ba   :  { %v8083_v4 = vld [vmem:[#allocation2 + $0x25c] sm:$0xf]  ;;  %v7219_v37 = vor.u32 %v8211_v40, %v7216_v39  ;;  %3944 = vmatpush.bf16.msra.mxu1 %v6995_v19  ;;  %v4227_v39 = vadd.f32 %v4226_v47, %v4137_v1  ;;  %v4414_v2 = vmul.f32 0.5, %v4413_v52 }
 0x4bb   :  { %v6704_v33 = vld [vmem:[#allocation2 + $0x278] sm:$0xf0]  ;;  %v3641_v1 = vpop.f32.mrf.mxu2  ;;  %3817 = vmatmul.bf16.gmra.mxu0 %v9470_v30 }
 0x4bc   :  { %v8011_v44 = vld [vmem:[#allocation2 + $0x1c] sm:$0xf]  ;;  %v6707_v34 = vor.u32 %v8083_v4, %v6704_v33  ;;  %3974 = vmatpush.bf16.msra.mxu2 %v7219_v37  ;;  %v4415_v15 = vsub.f32 1.5, %v4414_v2  ;;  %v10016_v37 = vadd.f32 %v3639_v51, %v3611_v36  ;;  %v10829_v36 = vsub.f32 %v9832_v60, %v9964_v20  ;;  %3788 = vmatmul.bf16.gmra.mxu3 %v9466_v53 }
 0x4bd   :  { %v6416_v50 = vld [vmem:[#allocation2 + $0x38] sm:$0xf0]  ;;  %v10834_v60 = vsub.f32 %v9945_v58, %v9964_v20 }
 0x4be   :  { %v8147_v45 = vld [vmem:[#allocation2 + $0x45c] sm:$0xf]  ;;  %v6419_v18 = vor.u32 %v8011_v44, %v6416_v50  ;;  %3916 = vmatpush.bf16.msra.mxu0 %v6707_v34  ;;  %v4416_v47 = vmul.f32 %v8440_v27, %v4415_v15  ;;  %v4052_v62 = vadd.f32 %v4051_v41, %v10016_v37  ;;  %v4145_v32 = vmul.f32 %v10016_v37, %v10016_v37  ;;  %v3554_v50 = vpop.f32.mrf.mxu3 }
 0x4bf   :  { %v6960_v56 = vld [vmem:[#allocation2 + $0x478] sm:$0xf0]  ;;  %3875 = vmatmul.bf16.gmra.mxu2 %v9478_v26 }
 0x4c0   :  { %v8203_v13 = vld [vmem:[#allocation2 + $0x61c] sm:$0xf]  ;;  %v6963_v59 = vor.u32 %v8147_v45, %v6960_v56  ;;  %3888 = vmatpush.bf16.msra.mxu3 %v6419_v18  ;;  %v4420_v44 = vsel %vm4419_vm15, %v8440_v27, %v4416_v47  ;;  %v10828_v45 = vsub.f32 %v9825_v3, %v9964_v20  ;;  %v10831_v27 = vsub.f32 %v9872_v48, %v9964_v20  ;;  %v3586_v48 = vpop.f32.mrf.mxu0 }
 0x4c1   :  { %v7184_v29 = vld [vmem:[#allocation2 + $0x638] sm:$0xf0]  ;;  %v4472_v51 = vmul.f32 %v4420_v44, %v10829_v36  ;;  %v4480_v56 = vmul.f32 %v4420_v44, %v10830_v49  ;;  %v10833_v3 = vsub.f32 %v9940_v57, %v9964_v20  ;;  %v4520_v41 = vmul.f32 %v4420_v44, %v10835_v8 }
 0x4c2   :  { %v8075_v9 = vld [vmem:[#allocation2 + $0x21c] sm:$0xf]  ;;  %v7187_v40 = vor.u32 %v8203_v13, %v7184_v29  ;;  %3945 = vmatpush.bf16.msra.mxu1 %v6963_v59  ;;  %v4464_v34 = vmul.f32 %v4420_v44, %v10828_v45  ;;  %v4488_v13 = vmul.f32 %v4420_v44, %v10831_v27  ;;  %v10832_v29 = vsub.f32 %v9882_v55, %v9964_v20  ;;  %v3615_v55 = vpop.f32.mrf.mxu1 }
 0x4c3   :  { %v6672_v12 = vld [vmem:[#allocation2 + $0x238] sm:$0xf0]  ;;  %vm4536_vm1 = vcmp.gt.f32.partialorder %v4472_v51, 0.0  ;;  %vm4544_vm2 = vcmp.gt.f32.partialorder %v4480_v56, 0.0  ;;  %vm4584_vm7 = vcmp.gt.f32.partialorder %v4520_v41, 0.0  ;;  %v4228_v58 = vadd.f32 %v4227_v39, %v4145_v32 }
 0x4c4   :  { %v6675_v4 = vor.u32 %v8075_v9, %v6672_v12  ;;  %v8139_v33 = vld [vmem:[#allocation2 + $0x41c] sm:$0xf]  ;;  %3975 = vmatpush.bf16.msra.mxu2 %v7187_v40  ;;  %v4496_v11 = vmul.f32 %v4420_v44, %v10832_v29  ;;  %v4504_v9 = vmul.f32 %v4420_v44, %v10833_v3  ;;  %v4512_v12 = vmul.f32 %v4420_v44, %v10834_v60 }
 0x4c5   :  { %v6928_v24 = vld [vmem:[#allocation2 + $0x438] sm:$0xf0]  ;;  %vm4528_vm0 = vcmp.gt.f32.partialorder %v4464_v34, 0.0  ;;  %vm4552_vm3 = vcmp.gt.f32.partialorder %v4488_v13, 0.0  ;;  %v4592_v57 = vmul.f32 0.2, %v4464_v34  ;;  %v3584_v59 = vadd.f32 %v3583_v6, %v3554_v50  ;;  %3846 = vmatmul.bf16.gmra.mxu1 %v9474_v7  ;;  %v3644_v50 = vpop.f32.mrf.mxu2 }
 0x4c6   :  { %v6931_v19 = vor.u32 %v8139_v33, %v6928_v24  ;;  %3917 = vmatpush.bf16.msra.mxu0 %v6675_v4  ;;  %vm4560_vm4 = vcmp.gt.f32.partialorder %v4496_v11, 0.0  ;;  %vm4568_vm5 = vcmp.gt.f32.partialorder %v4504_v9, 0.0  ;;  %vm4576_vm6 = vcmp.gt.f32.partialorder %v4512_v12, 0.0  ;;  %v3557_v15 = vpop.f32.mrf.mxu3 }
 0x4c7   :  { %v4600_v18 = vmul.f32 0.2, %v4472_v51  ;;  %v4608_v52 = vmul.f32 0.2, %v4480_v56  ;;  %v4616_v63 = vmul.f32 0.2, %v4488_v13  ;;  %v10050_v4 = vsel %vm4528_vm0, %v4464_v34, %v4592_v57 }
 0x4c8   :  { %3946 = vmatpush.bf16.msra.mxu1 %v6931_v19  ;;  %v4624_v10 = vmul.f32 0.2, %v4496_v11  ;;  %v4632_v20 = vmul.f32 0.2, %v4504_v9  ;;  %v4640_v40 = vmul.f32 0.2, %v4512_v12  ;;  %v3613_v44 = vadd.f32 %v3612_v16, %v3584_v59  ;;  %v3588_v36 = vpop.f32.mrf.mxu0 }
 0x4c9   :  { %v4648_v0 = vmul.f32 0.2, %v4520_v41  ;;  %v10053_v33 = vsel %vm4536_vm1, %v4472_v51, %v4600_v18  ;;  %v10057_v39 = vsel %vm4544_vm2, %v4480_v56, %v4608_v52  ;;  %v10060_v24 = vsel %vm4552_vm3, %v4488_v13, %v4616_v63 }
 0x4ca   :  { %v10063_v6 = vsel %vm4560_vm4, %v4496_v11, %v4624_v10  ;;  %v10066_v2 = vsel %vm4568_vm5, %v4504_v9, %v4632_v20  ;;  %v10069_v19 = vsel %vm4576_vm6, %v4512_v12, %v4640_v40  ;;  %v3587_v32 = vadd.f32 %v3586_v48, %v3557_v15  ;;  %v3617_v51 = vpop.f32.mrf.mxu1 }
 0x4cb   :  { %v10072_v47 = vsel %vm4584_vm7, %v4520_v41, %v4648_v0  ;;  %v10074_v45 = vadd.f32 %v3641_v1, %v3613_v44  ;;  %3918 = vmatmul.bf16.vlgmr.msra.gmra.mxu0 %v9410_v35 }
 0x4cc   :  { %v3616_v34 = vadd.f32 %v3615_v55, %v3587_v32  ;;  %3889 = vmatmul.bf16.vlgmr.msra.gmra.mxu3 %v9406_v31 }
 0x4cd   :  { %v4053_v49 = vadd.f32 %v4052_v62, %v10074_v45  ;;  %v4153_v56 = vmul.f32 %v10074_v45, %v10074_v45  ;;  %v3646_v60 = vpop.f32.mrf.mxu2 }
 0x4ce   :  { %v10079_v27 = vadd.f32 %v3644_v50, %v3616_v34  ;;  %v3559_v11 = vpop.f32.mrf.mxu3 }
 0x4cf   :  { %v4229_v13 = vadd.f32 %v4228_v58, %v4153_v56  ;;  %v3589_v9 = vadd.f32 %v3588_v36, %v3559_v11  ;;  %3976 = vmatmul.bf16.vlgmr.msra.gmra.mxu2 %v9418_v38 }
 0x4d0   :  { %v4054_v29 = vadd.f32 %v4053_v49, %v10079_v27  ;;  %v4161_v16 = vmul.f32 %v10079_v27, %v10079_v27  ;;  %v3687_v8 = vpop.f32.mrf.mxu0 }
 0x4d1   :  { %v3618_v12 = vadd.f32 %v3617_v51, %v3589_v9 }
 0x4d2   :  { %v4230_v3 = vadd.f32 %v4229_v13, %v4161_v16  ;;  %v3716_v41 = vpop.f32.mrf.mxu1 }
 0x4d3   :  { %v10084_v1 = vadd.f32 %v3646_v60, %v3618_v12 }
 0x4d5   :  { %3947 = vmatmul.bf16.vlgmr.msra.gmra.mxu1 %v9414_v42  ;;  %v4055_v62 = vadd.f32 %v4054_v29, %v10084_v1  ;;  %v4169_v48 = vmul.f32 %v10084_v1, %v10084_v1  ;;  %v3745_v58 = vpop.f32.mrf.mxu2 }
 0x4d6   :  { %v3658_v55 = vpop.f32.mrf.mxu3 }
 0x4d7   :  { %v4056_v57 = vrot.slane %v4055_v62, 4  ;;  %v4231_v18 = vadd.f32 %v4230_v3, %v4169_v48  ;;  %v3688_v52 = vadd.f32 %v3687_v8, %v3658_v55 }
 0x4d8   :  { %v3689_v31 = vpop.f32.mrf.mxu0 }
 0x4d9   :  { %v4057_v63 = vadd.f32 %v4056_v57, %v4055_v62  ;;  %v4232_v10 = vrot.slane %v4231_v18, 4  ;;  %v3717_v20 = vadd.f32 %v3716_v41, %v3688_v52 }
 0x4da   :  { %v3718_v59 = vpop.f32.mrf.mxu1 }
 0x4db   :  { %v4058_v35 = vrot.slane %v4057_v63, 2  ;;  %v4233_v40 = vadd.f32 %v4232_v10, %v4231_v18  ;;  %v10093_v42 = vadd.f32 %v3745_v58, %v3717_v20  ;;  %3923 = vmatmul.bf16.gmra.mxu0 %v9430_v54 }
 0x4dc   :  { %3894 = vmatmul.bf16.gmra.mxu3 %v9426_v28 }
 0x4dd   :  { %v4059_v0 = vadd.f32 %v4058_v35, %v4057_v63  ;;  %v4234_v15 = vrot.slane %v4233_v40, 2  ;;  %v3747_v34 = vpop.f32.mrf.mxu2 }
 0x4de   :  { %v3660_v44 = vpop.f32.mrf.mxu3 }
 0x4df   :  { %v4060_v32 = vrot.slane %v4059_v0, 1  ;;  %v4235_v50 = vadd.f32 %v4234_v15, %v4233_v40  ;;  %v3690_v38 = vadd.f32 %v3689_v31, %v3660_v44  ;;  %3981 = vmatmul.bf16.gmra.mxu2 %v9438_v25 }
 0x4e0   :  { %v3692_v56 = vpop.f32.mrf.mxu0 }
 0x4e1   :  { %v4061_v36 = vadd.f32 %v4060_v32, %v4059_v0  ;;  %v4236_v51 = vrot.slane %v4235_v50, 1  ;;  %v3719_v49 = vadd.f32 %v3718_v59, %v3690_v38 }
 0x4e2   :  { %v3721_v13 = vpop.f32.mrf.mxu1 }
 0x4e3   :  { %v10096_v29 = vmul.f32 %v4061_v36, %v8804_v43  ;;  %v4237_v16 = vadd.f32 %v4236_v51, %v4235_v50  ;;  %v10098_v11 = vadd.f32 %v3747_v34, %v3719_v49  ;;  %v10836_v50 = vld [vmem:[#allocation22_spill] sm:$0xff] }
 0x4e5   :  { %3952 = vmatmul.bf16.gmra.mxu1 %v9434_v61  ;;  %v4281_v3 = vmul.f32 %v4237_v16, %v8804_v43  ;;  %v4289_v9 = vmul.f32 %v10096_v29, %v10096_v29  ;;  %v4313_v60 = vsub.f32 %v9959_v21, %v10096_v29  ;;  %v4321_v12 = vsub.f32 %v9966_v17, %v10096_v29  ;;  %v3750_v48 = vpop.f32.mrf.mxu2 }
 0x4e6   :  { %v4329_v28 = vsub.f32 %v10000_v22, %v10096_v29  ;;  %v4337_v54 = vsub.f32 %v10006_v23, %v10096_v29  ;;  %v4345_v61 = vsub.f32 %v10016_v37, %v10096_v29  ;;  %v4353_v8 = vsub.f32 %v10074_v45, %v10096_v29  ;;  %v3663_v41 = vpop.f32.mrf.mxu3 }
 0x4e7   :  { %v4297_v62 = vsub.f32 %v4281_v3, %v4289_v9  ;;  %v4361_v21 = vsub.f32 %v10079_v27, %v10096_v29  ;;  %v4369_v25 = vsub.f32 %v10084_v1, %v10096_v29  ;;  %v4062_v17 = vadd.f32 %v10098_v11, %v10093_v42 }
 0x4e8   :  { %v4114_v22 = vmul.f32 %v10093_v42, %v10093_v42  ;;  %v4122_v23 = vmul.f32 %v10098_v11, %v10098_v11  ;;  %v3693_v37 = vadd.f32 %v3692_v56, %v3663_v41  ;;  %v3694_v55 = vpop.f32.mrf.mxu0 }
 0x4e9   :  { %v4305_v45 = vmax.f32 %v4297_v62, 0.0 }
 0x4ea   :  { %v3723_v57 = vpop.f32.mrf.mxu1  ;;  %v4238_v18 = vadd.f32 %v4122_v23, %v4114_v22  ;;  %v3722_v52 = vadd.f32 %v3721_v13, %v3693_v37 }
 0x4eb   :  { %v4377_v27 = vadd.f32 0.8, %v4305_v45  ;;  %3928 = vmatmul.bf16.gmra.mxu0 %v9450_v5 }
 0x4ec   :  { %v10129_v58 = vadd.f32 %v3750_v48, %v3722_v52  ;;  %3899 = vmatmul.bf16.gmra.mxu3 %v9446_v14 }
 0x4ed   :  { %8441 = vrsqrt.f32 %v4377_v27  ;;  %v3752_v59 = vpop.f32.mrf.mxu2  ;;  %vm4427_vm9 = vweird.f32 %v4377_v27 }
 0x4ee   :  { %v4063_v1 = vadd.f32 %v4062_v17, %v10129_v58  ;;  %v4130_v63 = vmul.f32 %v10129_v58, %v10129_v58  ;;  %v3665_v10 = vpop.f32.mrf.mxu3 }
 0x4ef   :  { %v3695_v20 = vadd.f32 %v3694_v55, %v3665_v10  ;;  %3986 = vmatmul.bf16.gmra.mxu2 %v9458_v46 }
 0x4f0   :  { %v4239_v31 = vadd.f32 %v4238_v18, %v4130_v63  ;;  %v3697_v40 = vpop.f32.mrf.mxu0 }
 0x4f1   :  { %v3724_v35 = vadd.f32 %v3723_v57, %v3695_v20 }
 0x4f2   :  { %v3726_v0 = vpop.f32.mrf.mxu1 }
 0x4f3   :  { %v8442_v15 = vpop.eup %8441  ;;  %v10134_v44 = vadd.f32 %v3752_v59, %v3724_v35 }
 0x4f4   :  { %v4422_v32 = vmul.f32 %v8442_v15, %v4377_v27  ;;  %vm4428_vm8 = vweird.f32 %v8442_v15 }
 0x4f5   :  { %3957 = vmatmul.bf16.gmra.mxu1 %v10836_v50  ;;  %v4064_v38 = vadd.f32 %v4063_v1, %v10134_v44  ;;  %v4138_v34 = vmul.f32 %v10134_v44, %v10134_v44  ;;  %v3755_v29 = vpop.f32.mrf.mxu2  ;;  %vm4429_vm10 = vmor %vm4427_vm9, %vm4428_vm8 }
 0x4f6   :  { %v4423_v36 = vmul.f32 %v8442_v15, %v4422_v32  ;;  %v3668_v51 = vpop.f32.mrf.mxu3 }
 0x4f7   :  { %v4240_v49 = vadd.f32 %v4239_v31, %v4138_v34  ;;  %v3698_v56 = vadd.f32 %v3697_v40, %v3668_v51 }
 0x4f8   :  { %v4424_v13 = vmul.f32 0.5, %v4423_v36  ;;  %v3699_v14 = vpop.f32.mrf.mxu0 }
 0x4f9   :  { %v3727_v16 = vadd.f32 %v3726_v0, %v3698_v56 }
 0x4fa   :  { %v3728_v3 = vpop.f32.mrf.mxu1  ;;  %v4425_v9 = vsub.f32 1.5, %v4424_v13 }
 0x4fb   :  { %v10143_v5 = vadd.f32 %v3755_v29, %v3727_v16  ;;  %3933 = vmatmul.bf16.gmra.mxu0 %v9470_v30 }
 0x4fc   :  { %v4426_v41 = vmul.f32 %v8442_v15, %v4425_v9  ;;  %3904 = vmatmul.bf16.gmra.mxu3 %v9466_v53 }
 0x4fd   :  { %v4065_v62 = vadd.f32 %v4064_v38, %v10143_v5  ;;  %v4146_v46 = vmul.f32 %v10143_v5, %v10143_v5  ;;  %v3757_v1 = vpop.f32.mrf.mxu2 }
 0x4fe   :  { %v4430_v17 = vsel %vm4429_vm10, %v8442_v15, %v4426_v41  ;;  %v3670_v22 = vpop.f32.mrf.mxu3 }
 0x4ff   :  { %v4465_v23 = vmul.f32 %v4430_v17, %v4313_v60  ;;  %v4473_v37 = vmul.f32 %v4430_v17, %v4321_v12  ;;  %v4481_v48 = vmul.f32 %v4430_v17, %v4329_v28  ;;  %v4489_v45 = vmul.f32 %v4430_v17, %v4337_v54  ;;  %3991 = vmatmul.bf16.gmra.mxu2 %v9478_v26 }
 0x500   :  { %v4497_v55 = vmul.f32 %v4430_v17, %v4345_v61  ;;  %v4505_v57 = vmul.f32 %v4430_v17, %v4353_v8  ;;  %v4513_v18 = vmul.f32 %v4430_v17, %v4361_v21  ;;  %v4521_v52 = vmul.f32 %v4430_v17, %v4369_v25  ;;  %v3702_v27 = vpop.f32.mrf.mxu0 }
 0x501   :  { %vm4529_vm11 = vcmp.gt.f32.partialorder %v4465_v23, 0.0  ;;  %vm4537_vm12 = vcmp.gt.f32.partialorder %v4473_v37, 0.0  ;;  %vm4545_vm13 = vcmp.gt.f32.partialorder %v4481_v48, 0.0  ;;  %vm4553_vm14 = vcmp.gt.f32.partialorder %v4489_v45, 0.0 }
 0x502   :  { %v3731_v63 = vpop.f32.mrf.mxu1  ;;  %vm4561_vm15 = vcmp.gt.f32.partialorder %v4497_v55, 0.0  ;;  %vm4569_vm0 = vcmp.gt.f32.partialorder %v4505_v57, 0.0  ;;  %vm4577_vm1 = vcmp.gt.f32.partialorder %v4513_v18, 0.0  ;;  %vm4585_vm2 = vcmp.gt.f32.partialorder %v4521_v52, 0.0 }
 0x503   :  { %v4593_v10 = vmul.f32 0.2, %v4465_v23  ;;  %v4601_v60 = vmul.f32 0.2, %v4473_v37  ;;  %v4609_v12 = vmul.f32 0.2, %v4481_v48  ;;  %v4241_v28 = vadd.f32 %v4240_v49, %v4146_v46 }
 0x504   :  { %v4617_v54 = vmul.f32 0.2, %v4489_v45  ;;  %v4625_v61 = vmul.f32 0.2, %v4497_v55  ;;  %v4633_v8 = vmul.f32 0.2, %v4505_v57  ;;  %v3700_v21 = vadd.f32 %v3699_v14, %v3670_v22 }
 0x505   :  { %3962 = vmatmul.bf16.gmra.mxu1 %v9474_v7  ;;  %v4641_v25 = vmul.f32 0.2, %v4513_v18  ;;  %v4649_v20 = vmul.f32 0.2, %v4521_v52  ;;  %v10152_v31 = vsel %vm4529_vm11, %v4465_v23, %v4593_v10  ;;  %v10155_v59 = vsel %vm4537_vm12, %v4473_v37, %v4601_v60  ;;  %v3760_v50 = vpop.f32.mrf.mxu2 }
 0x506   :  { %v10159_v53 = vsel %vm4545_vm13, %v4481_v48, %v4609_v12  ;;  %v10162_v35 = vsel %vm4553_vm14, %v4489_v45, %v4617_v54  ;;  %v10165_v30 = vsel %vm4561_vm15, %v4497_v55, %v4625_v61  ;;  %v10168_v7 = vsel %vm4569_vm0, %v4505_v57, %v4633_v8  ;;  %v3673_v40 = vpop.f32.mrf.mxu3 }
 0x507   :  { %v10171_v0 = vsel %vm4577_vm1, %v4513_v18, %v4641_v25  ;;  %v10174_v15 = vsel %vm4585_vm2, %v4521_v52, %v4649_v20  ;;  %v3729_v26 = vadd.f32 %v3728_v3, %v3700_v21  ;;  %v3703_v32 = vadd.f32 %v3702_v27, %v3673_v40 }
 0x508   :  { %10837 = vst [vmem:[#allocation22_spill] sm:$0xff] %v10171_v0  ;;  %v3704_v36 = vpop.f32.mrf.mxu0 }
 0x509   :  { %10838 = vst [vmem:[#allocation47_spill] sm:$0xff] %v10174_v15  ;;  %v10176_v38 = vadd.f32 %v3757_v1, %v3729_v26  ;;  %v3732_v34 = vadd.f32 %v3731_v63, %v3703_v32 }
 0x50a   :  { %v3733_v51 = vpop.f32.mrf.mxu1 }
 0x50b   :  { %v4066_v49 = vadd.f32 %v4065_v62, %v10176_v38  ;;  %v4154_v56 = vmul.f32 %v10176_v38, %v10176_v38  ;;  %v10181_v13 = vadd.f32 %v3760_v50, %v3732_v34 }
 0x50d   :  { %v4242_v29 = vadd.f32 %v4241_v28, %v4154_v56  ;;  %v4067_v16 = vadd.f32 %v4066_v49, %v10181_v13  ;;  %v4162_v14 = vmul.f32 %v10181_v13, %v10181_v13  ;;  %v3762_v17 = vpop.f32.mrf.mxu2 }
 0x50e   :  { %v3675_v3 = vpop.f32.mrf.mxu3 }
 0x50f   :  { %v4243_v9 = vadd.f32 %v4242_v29, %v4162_v14  ;;  %v3705_v41 = vadd.f32 %v3704_v36, %v3675_v3 }
 0x510   :  { %v3803_v22 = vpop.f32.mrf.mxu0 }
 0x511   :  { %v3734_v46 = vadd.f32 %v3733_v51, %v3705_v41 }
 0x512   :  { %v3832_v23 = vpop.f32.mrf.mxu1 }
 0x513   :  { %v10186_v37 = vadd.f32 %v3762_v17, %v3734_v46 }
 0x515   :  { %v4068_v62 = vadd.f32 %v4067_v16, %v10186_v37  ;;  %v4170_v48 = vmul.f32 %v10186_v37, %v10186_v37  ;;  %v3861_v52 = vpop.f32.mrf.mxu2 }
 0x516   :  { %v3774_v45 = vpop.f32.mrf.mxu3 }
 0x517   :  { %v4069_v55 = vrot.slane %v4068_v62, 4  ;;  %v4244_v57 = vadd.f32 %v4243_v9, %v4170_v48  ;;  %v3804_v18 = vadd.f32 %v3803_v22, %v3774_v45 }
 0x518   :  { %v3805_v10 = vpop.f32.mrf.mxu0 }
 0x519   :  { %v4070_v1 = vadd.f32 %v4069_v55, %v4068_v62  ;;  %v4245_v27 = vrot.slane %v4244_v57, 4  ;;  %v3833_v63 = vadd.f32 %v3832_v23, %v3804_v18 }
 0x51a   :  { %v3834_v60 = vpop.f32.mrf.mxu1 }
 0x51b   :  { %v4071_v12 = vrot.slane %v4070_v1, 2  ;;  %v4246_v28 = vadd.f32 %v4245_v27, %v4244_v57  ;;  %v10191_v54 = vadd.f32 %v3861_v52, %v3833_v63 }
 0x51d   :  { %v4072_v61 = vadd.f32 %v4071_v12, %v4070_v1  ;;  %v4247_v8 = vrot.slane %v4246_v28, 2  ;;  %v3863_v26 = vpop.f32.mrf.mxu2 }
 0x51e   :  { %v3776_v21 = vpop.f32.mrf.mxu3 }
 0x51f   :  { %v4073_v25 = vrot.slane %v4072_v61, 1  ;;  %v4248_v20 = vadd.f32 %v4247_v8, %v4246_v28  ;;  %v3806_v40 = vadd.f32 %v3805_v10, %v3776_v21 }
 0x520   :  { %v3808_v36 = vpop.f32.mrf.mxu0 }
 0x521   :  { %v4074_v32 = vadd.f32 %v4073_v25, %v4072_v61  ;;  %v4249_v50 = vrot.slane %v4248_v20, 1  ;;  %v3835_v34 = vadd.f32 %v3834_v60, %v3806_v40 }
 0x522   :  { %v3837_v51 = vpop.f32.mrf.mxu1 }
 0x523   :  { %v10194_v49 = vmul.f32 %v4074_v32, %v8804_v43  ;;  %v4250_v56 = vadd.f32 %v4249_v50, %v4248_v20  ;;  %v10196_v29 = vadd.f32 %v3863_v26, %v3835_v34 }
 0x525   :  { %v4282_v16 = vmul.f32 %v4250_v56, %v8804_v43  ;;  %v4290_v14 = vmul.f32 %v10194_v49, %v10194_v49  ;;  %v4314_v3 = vsub.f32 %v10093_v42, %v10194_v49  ;;  %v4322_v9 = vsub.f32 %v10098_v11, %v10194_v49  ;;  %v3866_v45 = vpop.f32.mrf.mxu2 }
 0x526   :  { %v4330_v41 = vsub.f32 %v10129_v58, %v10194_v49  ;;  %v4338_v17 = vsub.f32 %v10134_v44, %v10194_v49  ;;  %v4346_v46 = vsub.f32 %v10143_v5, %v10194_v49  ;;  %v4354_v22 = vsub.f32 %v10176_v38, %v10194_v49  ;;  %v3779_v23 = vpop.f32.mrf.mxu3 }
 0x527   :  { %v4298_v62 = vsub.f32 %v4282_v16, %v4290_v14  ;;  %v4362_v42 = vsub.f32 %v10181_v13, %v10194_v49  ;;  %v4370_v11 = vsub.f32 %v10186_v37, %v10194_v49  ;;  %v4075_v58 = vadd.f32 %v10196_v29, %v10191_v54 }
 0x528   :  { %v4115_v44 = vmul.f32 %v10191_v54, %v10191_v54  ;;  %v4123_v5 = vmul.f32 %v10196_v29, %v10196_v29  ;;  %v3809_v48 = vadd.f32 %v3808_v36, %v3779_v23  ;;  %v3810_v55 = vpop.f32.mrf.mxu0 }
 0x529   :  { %v4306_v38 = vmax.f32 %v4298_v62, 0.0 }
 0x52a   :  { %v3839_v57 = vpop.f32.mrf.mxu1  ;;  %v4251_v18 = vadd.f32 %v4123_v5, %v4115_v44  ;;  %v3838_v52 = vadd.f32 %v3837_v51, %v3809_v48 }
 0x52b   :  { %v4378_v13 = vadd.f32 0.8, %v4306_v38 }
 0x52c   :  { %v10223_v1 = vadd.f32 %v3866_v45, %v3838_v52 }
 0x52d   :  { %8443 = vrsqrt.f32 %v4378_v13  ;;  %v3868_v12 = vpop.f32.mrf.mxu2  ;;  %vm4437_vm4 = vweird.f32 %v4378_v13 }
 0x52e   :  { %v4076_v37 = vadd.f32 %v4075_v58, %v10223_v1  ;;  %v4131_v27 = vmul.f32 %v10223_v1, %v10223_v1  ;;  %v3781_v63 = vpop.f32.mrf.mxu3 }
 0x52f   :  { %v3811_v10 = vadd.f32 %v3810_v55, %v3781_v63 }
 0x530   :  { %v4252_v60 = vadd.f32 %v4251_v18, %v4131_v27  ;;  %v3813_v61 = vpop.f32.mrf.mxu0 }
 0x531   :  { %v3840_v28 = vadd.f32 %v3839_v57, %v3811_v10 }
 0x532   :  { %v3842_v8 = vpop.f32.mrf.mxu1 }
 0x533   :  { %v8444_v21 = vpop.eup %8443  ;;  %v10228_v25 = vadd.f32 %v3868_v12, %v3840_v28 }
 0x534   :  { %v4432_v20 = vmul.f32 %v8444_v21, %v4378_v13  ;;  %vm4438_vm3 = vweird.f32 %v8444_v21 }
 0x535   :  { %v4077_v40 = vadd.f32 %v4076_v37, %v10228_v25  ;;  %v4139_v26 = vmul.f32 %v10228_v25, %v10228_v25  ;;  %v3871_v49 = vpop.f32.mrf.mxu2  ;;  %vm4439_vm5 = vmor %vm4437_vm4, %vm4438_vm3 }
 0x536   :  { %v4433_v32 = vmul.f32 %v8444_v21, %v4432_v20  ;;  %v3784_v50 = vpop.f32.mrf.mxu3 }
 0x537   :  { %v4253_v34 = vadd.f32 %v4252_v60, %v4139_v26  ;;  %v3814_v36 = vadd.f32 %v3813_v61, %v3784_v50 }
 0x538   :  { %v4434_v51 = vmul.f32 0.5, %v4433_v32  ;;  %v3815_v16 = vpop.f32.mrf.mxu0 }
 0x539   :  { %v3843_v56 = vadd.f32 %v3842_v8, %v3814_v36 }
 0x53a   :  { %v3844_v14 = vpop.f32.mrf.mxu1  ;;  %v4435_v23 = vsub.f32 1.5, %v4434_v51 }
 0x53b   :  { %v10233_v62 = vadd.f32 %v3871_v49, %v3843_v56 }
 0x53c   :  { %v4436_v58 = vmul.f32 %v8444_v21, %v4435_v23 }
 0x53d   :  { %v4078_v44 = vadd.f32 %v4077_v40, %v10233_v62  ;;  %v4147_v48 = vmul.f32 %v10233_v62, %v10233_v62  ;;  %v3873_v10 = vpop.f32.mrf.mxu2 }
 0x53e   :  { %v4440_v5 = vsel %vm4439_vm5, %v8444_v21, %v4436_v58  ;;  %v3786_v45 = vpop.f32.mrf.mxu3 }
 0x53f   :  { %v4466_v38 = vmul.f32 %v4440_v5, %v4314_v3  ;;  %v4474_v55 = vmul.f32 %v4440_v5, %v4322_v9  ;;  %v4482_v57 = vmul.f32 %v4440_v5, %v4330_v41  ;;  %v4490_v18 = vmul.f32 %v4440_v5, %v4338_v17 }
 0x540   :  { %v4498_v52 = vmul.f32 %v4440_v5, %v4346_v46  ;;  %v4506_v37 = vmul.f32 %v4440_v5, %v4354_v22  ;;  %v4514_v27 = vmul.f32 %v4440_v5, %v4362_v42  ;;  %v4522_v63 = vmul.f32 %v4440_v5, %v4370_v11  ;;  %v3818_v13 = vpop.f32.mrf.mxu0 }
 0x541   :  { %vm4530_vm6 = vcmp.gt.f32.partialorder %v4466_v38, 0.0  ;;  %vm4538_vm7 = vcmp.gt.f32.partialorder %v4474_v55, 0.0  ;;  %vm4546_vm8 = vcmp.gt.f32.partialorder %v4482_v57, 0.0  ;;  %vm4554_vm9 = vcmp.gt.f32.partialorder %v4490_v18, 0.0 }
 0x542   :  { %v3847_v60 = vpop.f32.mrf.mxu1  ;;  %vm4562_vm10 = vcmp.gt.f32.partialorder %v4498_v52, 0.0  ;;  %vm4570_vm11 = vcmp.gt.f32.partialorder %v4506_v37, 0.0  ;;  %vm4578_vm12 = vcmp.gt.f32.partialorder %v4514_v27, 0.0  ;;  %vm4586_vm13 = vcmp.gt.f32.partialorder %v4522_v63, 0.0 }
 0x543   :  { %v4594_v12 = vmul.f32 0.2, %v4466_v38  ;;  %v4602_v3 = vmul.f32 0.2, %v4474_v55  ;;  %v4610_v9 = vmul.f32 0.2, %v4482_v57  ;;  %v4254_v41 = vadd.f32 %v4253_v34, %v4147_v48 }
 0x544   :  { %v4618_v17 = vmul.f32 0.2, %v4490_v18  ;;  %v4626_v46 = vmul.f32 0.2, %v4498_v52  ;;  %v4634_v22 = vmul.f32 0.2, %v4506_v37  ;;  %v3816_v42 = vadd.f32 %v3815_v16, %v3786_v45 }
 0x545   :  { %v4642_v11 = vmul.f32 0.2, %v4514_v27  ;;  %v4650_v28 = vmul.f32 0.2, %v4522_v63  ;;  %v10239_v61 = vsel %vm4530_vm6, %v4466_v38, %v4594_v12  ;;  %v10242_v8 = vsel %vm4538_vm7, %v4474_v55, %v4602_v3  ;;  %v3876_v49 = vpop.f32.mrf.mxu2 }
 0x546   :  { %v10245_v21 = vsel %vm4546_vm8, %v4482_v57, %v4610_v9  ;;  %v10248_v20 = vsel %vm4554_vm9, %v4490_v18, %v4618_v17  ;;  %v10251_v40 = vsel %vm4562_vm10, %v4498_v52, %v4626_v46  ;;  %v10254_v26 = vsel %vm4570_vm11, %v4506_v37, %v4634_v22  ;;  %v3789_v32 = vpop.f32.mrf.mxu3 }
 0x547   :  { %10839 = vst [vmem:[#allocation48_spill] sm:$0xff] %v10254_v26  ;;  %v10257_v50 = vsel %vm4578_vm12, %v4514_v27, %v4642_v11  ;;  %v10260_v34 = vsel %vm4586_vm13, %v4522_v63, %v4650_v28  ;;  %v3845_v36 = vadd.f32 %v3844_v14, %v3816_v42  ;;  %v3819_v51 = vadd.f32 %v3818_v13, %v3789_v32 }
 0x548   :  { %10840 = vst [vmem:[#allocation49_spill] sm:$0xff] %v10257_v50  ;;  %v3820_v23 = vpop.f32.mrf.mxu0 }
 0x549   :  { %10841 = vst [vmem:[#allocation50_spill] sm:$0xff] %v10260_v34  ;;  %v10262_v56 = vadd.f32 %v3873_v10, %v3845_v36  ;;  %v3848_v16 = vadd.f32 %v3847_v60, %v3819_v51 }
 0x54a   :  { %v3849_v58 = vpop.f32.mrf.mxu1 }
 0x54b   :  { %v4079_v5 = vadd.f32 %v4078_v44, %v10262_v56  ;;  %v4155_v48 = vmul.f32 %v10262_v56, %v10262_v56  ;;  %v10267_v45 = vadd.f32 %v3876_v49, %v3848_v16 }
 0x54d   :  { %v4255_v38 = vadd.f32 %v4254_v41, %v4155_v48  ;;  %v4080_v55 = vadd.f32 %v4079_v5, %v10267_v45  ;;  %v4163_v14 = vmul.f32 %v10267_v45, %v10267_v45  ;;  %v3878_v37 = vpop.f32.mrf.mxu2 }
 0x54e   :  { %v3791_v57 = vpop.f32.mrf.mxu3 }
 0x54f   :  { %v4256_v18 = vadd.f32 %v4255_v38, %v4163_v14  ;;  %v3821_v52 = vadd.f32 %v3820_v23, %v3791_v57 }
 0x550   :  { %v3919_v63 = vpop.f32.mrf.mxu0 }
 0x551   :  { %v3850_v27 = vadd.f32 %v3849_v58, %v3821_v52 }
 0x552   :  { %v3948_v10 = vpop.f32.mrf.mxu1 }
 0x553   :  { %v10272_v13 = vadd.f32 %v3878_v37, %v3850_v27 }
 0x555   :  { %v4081_v44 = vadd.f32 %v4080_v55, %v10272_v13  ;;  %v4171_v60 = vmul.f32 %v10272_v13, %v10272_v13  ;;  %v10277_v41 = vpop.f32.mrf.mxu2 }
 0x556   :  { %v3890_v12 = vpop.f32.mrf.mxu3 }
 0x557   :  { %v4082_v3 = vrot.slane %v4081_v44, 4  ;;  %v4257_v9 = vadd.f32 %v4256_v18, %v4171_v60 }
 0x558   :  { %v3921_v22 = vpop.f32.mrf.mxu0 }
 0x559   :  { %v4083_v17 = vadd.f32 %v4082_v3, %v4081_v44  ;;  %v4258_v46 = vrot.slane %v4257_v9, 4 }
 0x55a   :  { %v3950_v42 = vpop.f32.mrf.mxu1 }
 0x55b   :  { %v4084_v11 = vrot.slane %v4083_v17, 2  ;;  %v4259_v28 = vadd.f32 %v4258_v46, %v4257_v9 }
 0x55d   :  { %v4085_v32 = vadd.f32 %v4084_v11, %v4083_v17  ;;  %v4260_v36 = vrot.slane %v4259_v28, 2  ;;  %v3979_v23 = vpop.f32.mrf.mxu2 }
 0x55e   :  { %v3892_v51 = vpop.f32.mrf.mxu3 }
 0x55f   :  { %v4086_v49 = vrot.slane %v4085_v32, 1  ;;  %v4261_v16 = vadd.f32 %v4260_v36, %v4259_v28 }
 0x560   :  { %v3924_v48 = vpop.f32.mrf.mxu0 }
 0x561   :  { %v4087_v58 = vadd.f32 %v4086_v49, %v4085_v32  ;;  %v4262_v5 = vrot.slane %v4261_v16, 1 }
 0x562   :  { %v3953_v38 = vpop.f32.mrf.mxu1 }
 0x563   :  { %v4107_v55 = vmul.f32 %v4087_v58, %v8804_v43  ;;  %v4263_v14 = vadd.f32 %v4262_v5, %v4261_v16  ;;  %v3922_v16 = vadd.f32 %v3921_v22, %v3892_v51 }
 0x565   :  { %v4283_v57 = vmul.f32 %v4263_v14, %v8804_v43  ;;  %v4291_v18 = vmul.f32 %v4107_v55, %v4107_v55  ;;  %v4315_v52 = vsub.f32 %v10191_v54, %v4107_v55  ;;  %v4323_v37 = vsub.f32 %v10196_v29, %v4107_v55  ;;  %v3982_v28 = vpop.f32.mrf.mxu2 }
 0x566   :  { %v4331_v27 = vsub.f32 %v10223_v1, %v4107_v55  ;;  %v4339_v44 = vsub.f32 %v10228_v25, %v4107_v55  ;;  %v4347_v60 = vsub.f32 %v10233_v62, %v4107_v55  ;;  %v4355_v3 = vsub.f32 %v10262_v56, %v4107_v55  ;;  %v3895_v9 = vpop.f32.mrf.mxu3 }
 0x567   :  { %v4299_v17 = vsub.f32 %v4283_v57, %v4291_v18  ;;  %v4363_v46 = vsub.f32 %v10267_v45, %v4107_v55  ;;  %v4371_v11 = vsub.f32 %v10272_v13, %v4107_v55  ;;  %v3920_v56 = vadd.f32 %v3919_v63, %v3890_v12 }
 0x568   :  { %v3926_v36 = vpop.f32.mrf.mxu0  ;;  %v3951_v14 = vadd.f32 %v3950_v42, %v3922_v16  ;;  %v3925_v18 = vadd.f32 %v3924_v48, %v3895_v9 }
 0x569   :  { %v4307_v32 = vmax.f32 %v4299_v17, 0.0  ;;  %v3949_v17 = vadd.f32 %v3948_v10, %v3920_v56 }
 0x56a   :  { %v3955_v54 = vpop.f32.mrf.mxu1  ;;  %v10291_v50 = vadd.f32 %v3979_v23, %v3951_v14  ;;  %v3954_v15 = vadd.f32 %v3953_v38, %v3925_v18 }
 0x56b   :  { %v4379_v49 = vadd.f32 0.8, %v4307_v32  ;;  %v10294_v63 = vadd.f32 %v10277_v41, %v3949_v17 }
 0x56c   :  { %v4124_v12 = vmul.f32 %v10291_v50, %v10291_v50  ;;  %v10298_v48 = vadd.f32 %v3982_v28, %v3954_v15 }
 0x56d   :  { %8445 = vrsqrt.f32 %v4379_v49  ;;  %v3984_v1 = vpop.f32.mrf.mxu2  ;;  %vm4447_vm15 = vweird.f32 %v4379_v49 }
 0x56e   :  { %v3897_v29 = vpop.f32.mrf.mxu3 }
 0x56f   :  { %v3927_v45 = vadd.f32 %v3926_v36, %v3897_v29 }
 0x570   :  { %v3929_v25 = vpop.f32.mrf.mxu0 }
 0x571   :  { %v3956_v22 = vadd.f32 %v3955_v54, %v3927_v45 }
 0x572   :  { %v3958_v58 = vpop.f32.mrf.mxu1 }
 0x573   :  { %v8446_v62 = vpop.eup %8445  ;;  %v10300_v10 = vadd.f32 %v3984_v1, %v3956_v22  ;;  %v4116_v22 = vmul.f32 %v10294_v63, %v10294_v63 }
 0x574   :  { %v4442_v5 = vmul.f32 %v8446_v62, %v4379_v49  ;;  %vm4448_vm14 = vweird.f32 %v8446_v62 }
 0x575   :  { %v10289_v55 = vpop.f32.mrf.mxu2  ;;  %vm4449_vm0 = vmor %vm4447_vm15, %vm4448_vm14 }
 0x576   :  { %v4443_v57 = vmul.f32 %v8446_v62, %v4442_v5  ;;  %v3900_v34 = vpop.f32.mrf.mxu3 }
 0x577   :  { %v3930_v23 = vadd.f32 %v3929_v25, %v3900_v34 }
 0x578   :  { %v4444_v13 = vmul.f32 0.5, %v4443_v57  ;;  %v3931_v51 = vpop.f32.mrf.mxu0 }
 0x57a   :  { %v4445_v32 = vsub.f32 1.5, %v4444_v13  ;;  %v3960_v26 = vpop.f32.mrf.mxu1 }
 0x57c   :  { %v4446_v0 = vmul.f32 %v8446_v62, %v4445_v32 }
 0x57d   :  { %v3989_v41 = vpop.f32.mrf.mxu2 }
 0x57e   :  { %v4450_v42 = vsel %vm4449_vm0, %v8446_v62, %v4446_v0  ;;  %v3902_v9 = vpop.f32.mrf.mxu3 }
 0x57f   :  { %v4467_v38 = vmul.f32 %v4450_v42, %v4315_v52  ;;  %v4475_v36 = vmul.f32 %v4450_v42, %v4323_v37  ;;  %v4483_v54 = vmul.f32 %v4450_v42, %v4331_v27  ;;  %v4491_v29 = vmul.f32 %v4450_v42, %v4339_v44 }
 0x580   :  { %v4499_v49 = vmul.f32 %v4450_v42, %v4347_v60  ;;  %v4507_v16 = vmul.f32 %v4450_v42, %v4355_v3  ;;  %v4515_v5 = vmul.f32 %v4450_v42, %v4363_v46  ;;  %v4523_v56 = vmul.f32 %v4450_v42, %v4371_v11  ;;  %v3934_v3 = vpop.f32.mrf.mxu0 }
 0x581   :  { %vm4531_vm1 = vcmp.gt.f32.partialorder %v4467_v38, 0.0  ;;  %vm4539_vm2 = vcmp.gt.f32.partialorder %v4475_v36, 0.0  ;;  %vm4547_vm3 = vcmp.gt.f32.partialorder %v4483_v54, 0.0  ;;  %vm4555_vm4 = vcmp.gt.f32.partialorder %v4491_v29, 0.0 }
 0x582   :  { %vm4563_vm5 = vcmp.gt.f32.partialorder %v4499_v49, 0.0  ;;  %vm4571_vm6 = vcmp.gt.f32.partialorder %v4507_v16, 0.0  ;;  %vm4579_vm7 = vcmp.gt.f32.partialorder %v4515_v5, 0.0  ;;  %vm4587_vm8 = vcmp.gt.f32.partialorder %v4523_v56, 0.0  ;;  %v3963_v57 = vpop.f32.mrf.mxu1 }
 0x583   :  { %v4595_v0 = vmul.f32 0.2, %v4467_v38  ;;  %v4603_v15 = vmul.f32 0.2, %v4475_v36  ;;  %v4611_v34 = vmul.f32 0.2, %v4483_v54  ;;  %v3959_v52 = vadd.f32 %v3958_v58, %v3930_v23 }
 0x584   :  { %v4619_v37 = vmul.f32 0.2, %v4491_v29  ;;  %v4627_v27 = vmul.f32 0.2, %v4499_v49  ;;  %v4635_v44 = vmul.f32 0.2, %v4507_v16  ;;  %v3932_v60 = vadd.f32 %v3931_v51, %v3902_v9 }
 0x585   :  { %v4643_v46 = vmul.f32 0.2, %v4515_v5  ;;  %v4651_v11 = vmul.f32 0.2, %v4523_v56  ;;  %v10303_v28 = vsel %vm4531_vm1, %v4467_v38, %v4595_v0  ;;  %v10306_v1 = vsel %vm4539_vm2, %v4475_v36, %v4603_v15  ;;  %v3992_v51 = vpop.f32.mrf.mxu2 }
 0x586   :  { %v10309_v25 = vsel %vm4547_vm3, %v4483_v54, %v4611_v34  ;;  %v10312_v62 = vsel %vm4555_vm4, %v4491_v29, %v4619_v37  ;;  %v10315_v58 = vsel %vm4563_vm5, %v4499_v49, %v4627_v27  ;;  %v10318_v14 = vsel %vm4571_vm6, %v4507_v16, %v4635_v44  ;;  %v3905_v18 = vpop.f32.mrf.mxu3 }
 0x587   :  { %v10321_v45 = vsel %vm4579_vm7, %v4515_v5, %v4643_v46  ;;  %v10324_v13 = vsel %vm4587_vm8, %v4523_v56, %v4651_v11  ;;  %v3961_v17 = vadd.f32 %v3960_v26, %v3932_v60  ;;  %v3935_v32 = vadd.f32 %v3934_v3, %v3905_v18 }
 0x588   :  { %v4088_v42 = vadd.f32 %v10291_v50, %v10294_v63  ;;  %v4132_v23 = vmul.f32 %v10298_v48, %v10298_v48  ;;  %v10333_v9 = vadd.f32 %v10289_v55, %v3959_v52  ;;  %v4264_v36 = vadd.f32 %v4124_v12, %v4116_v22  ;;  %v3936_v0 = vpop.f32.mrf.mxu0 }
 0x589   :  { %v3964_v38 = vadd.f32 %v3963_v57, %v3935_v32  ;;  %v4140_v26 = vmul.f32 %v10300_v10, %v10300_v10  ;;  %v10338_v29 = vadd.f32 %v3989_v41, %v3961_v17 }
 0x58a   :  { %v4089_v54 = vadd.f32 %v4088_v42, %v10298_v48  ;;  %v4265_v49 = vadd.f32 %v4264_v36, %v4132_v23  ;;  %v4148_v5 = vmul.f32 %v10333_v9, %v10333_v9  ;;  %v3965_v37 = vpop.f32.mrf.mxu1 }
 0x58b   :  { %v10343_v56 = vadd.f32 %v3992_v51, %v3964_v38  ;;  %v4156_v34 = vmul.f32 %v10338_v29, %v10338_v29 }
 0x58c   :  { %v4090_v16 = vadd.f32 %v4089_v54, %v10300_v10  ;;  %v4266_v15 = vadd.f32 %v4265_v49, %v4140_v26 }
 0x58d   :  { %v4164_v44 = vmul.f32 %v10343_v56, %v10343_v56  ;;  %v3994_v3 = vpop.f32.mrf.mxu2 }
 0x58e   :  { %v3907_v55 = vpop.f32.mrf.mxu3  ;;  %v4091_v12 = vadd.f32 %v4090_v16, %v10333_v9  ;;  %v4267_v41 = vadd.f32 %v4266_v15, %v4148_v5 }
 0x58f   :  { %v3937_v52 = vadd.f32 %v3936_v0, %v3907_v55 }
 0x590   :  { %v4092_v27 = vadd.f32 %v4091_v12, %v10338_v29  ;;  %v4268_v46 = vadd.f32 %v4267_v41, %v4156_v34 }
 0x591   :  { %v3966_v60 = vadd.f32 %v3965_v37, %v3937_v52 }
 0x592   :  { %v4093_v11 = vadd.f32 %v4092_v27, %v10343_v56  ;;  %v4269_v18 = vadd.f32 %v4268_v46, %v4164_v44 }
 0x593   :  { %v3995_v57 = vadd.f32 %v3994_v3, %v3966_v60 }
 0x595   :  { %v4094_v17 = vadd.f32 %v4093_v11, %v3995_v57  ;;  %v4172_v32 = vmul.f32 %v3995_v57, %v3995_v57 }
 0x597   :  { %v4095_v22 = vrot.slane %v4094_v17, 4  ;;  %v4270_v51 = vadd.f32 %v4269_v18, %v4172_v32 }
 0x599   :  { %v4096_v42 = vadd.f32 %v4095_v22, %v4094_v17  ;;  %v4271_v23 = vrot.slane %v4270_v51, 4 }
 0x59b   :  { %v4097_v38 = vrot.slane %v4096_v42, 2  ;;  %v4272_v36 = vadd.f32 %v4271_v23, %v4270_v51 }
 0x59d   :  { %v4098_v54 = vadd.f32 %v4097_v38, %v4096_v42  ;;  %v4273_v26 = vrot.slane %v4272_v36, 2 }
 0x59f   :  { %v4099_v49 = vrot.slane %v4098_v54, 1  ;;  %v4274_v16 = vadd.f32 %v4273_v26, %v4272_v36 }
 0x5a1   :  { %v4100_v5 = vadd.f32 %v4099_v49, %v4098_v54  ;;  %v4275_v0 = vrot.slane %v4274_v16, 1 }
 0x5a3   :  { %v4108_v55 = vmul.f32 %v4100_v5, %v8804_v43  ;;  %v4276_v15 = vadd.f32 %v4275_v0, %v4274_v16 }
 0x5a5   :  { %v4284_v12 = vmul.f32 %v4276_v15, %v8804_v43  ;;  %v4292_v34 = vmul.f32 %v4108_v55, %v4108_v55  ;;  %v4316_v11 = vsub.f32 %v10294_v63, %v4108_v55  ;;  %v4324_v17 = vsub.f32 %v10291_v50, %v4108_v55 }
 0x5a6   :  { %v4332_v32 = vsub.f32 %v10298_v48, %v4108_v55  ;;  %v4340_v43 = vsub.f32 %v10300_v10, %v4108_v55  ;;  %v4348_v22 = vsub.f32 %v10333_v9, %v4108_v55  ;;  %v4356_v51 = vsub.f32 %v10338_v29, %v4108_v55 }
 0x5a7   :  { %v4300_v52 = vsub.f32 %v4284_v12, %v4292_v34  ;;  %v4364_v42 = vsub.f32 %v10343_v56, %v4108_v55  ;;  %v4372_v23 = vsub.f32 %v3995_v57, %v4108_v55 }
 0x5a9   :  { %v4308_v37 = vmax.f32 %v4300_v52, 0.0 }
 0x5ab   :  { %v4380_v41 = vadd.f32 0.8, %v4308_v37 }
 0x5ad   :  { %8447 = vrsqrt.f32 %v4380_v41  ;;  %vm4457_vm10 = vweird.f32 %v4380_v41 }
 0x5b3   :  { %v8448_v27 = vpop.eup %8447 }
 0x5b4   :  { %v4452_v44 = vmul.f32 %v8448_v27, %v4380_v41  ;;  %vm4458_vm9 = vweird.f32 %v8448_v27 }
 0x5b5   :  { %vm4459_vm11 = vmor %vm4457_vm10, %vm4458_vm9 }
 0x5b6   :  { %v4453_v60 = vmul.f32 %v8448_v27, %v4452_v44 }
 0x5b8   :  { %v4454_v3 = vmul.f32 0.5, %v4453_v60 }
 0x5ba   :  { %v4455_v46 = vsub.f32 1.5, %v4454_v3 }
 0x5bc   :  { %v4456_v18 = vmul.f32 %v8448_v27, %v4455_v46 }
 0x5be   :  { %v4460_v38 = vsel %vm4459_vm11, %v8448_v27, %v4456_v18 }
 0x5bf   :  { %v4468_v36 = vmul.f32 %v4460_v38, %v4316_v11  ;;  %v4476_v54 = vmul.f32 %v4460_v38, %v4324_v17  ;;  %v4484_v63 = vmul.f32 %v4460_v38, %v4332_v32  ;;  %v4492_v26 = vmul.f32 %v4460_v38, %v4340_v43 }
 0x5c0   :  { %v4500_v49 = vmul.f32 %v4460_v38, %v4348_v22  ;;  %v4508_v16 = vmul.f32 %v4460_v38, %v4356_v51  ;;  %v4516_v50 = vmul.f32 %v4460_v38, %v4364_v42  ;;  %v4524_v5 = vmul.f32 %v4460_v38, %v4372_v23 }
 0x5c1   :  { %vm4532_vm12 = vcmp.gt.f32.partialorder %v4468_v36, 0.0  ;;  %vm4540_vm13 = vcmp.gt.f32.partialorder %v4476_v54, 0.0  ;;  %vm4548_vm14 = vcmp.gt.f32.partialorder %v4484_v63, 0.0  ;;  %vm4556_vm15 = vcmp.gt.f32.partialorder %v4492_v26, 0.0 }
 0x5c2   :  { %vm4564_vm0 = vcmp.gt.f32.partialorder %v4500_v49, 0.0  ;;  %vm4572_vm1 = vcmp.gt.f32.partialorder %v4508_v16, 0.0  ;;  %vm4580_vm2 = vcmp.gt.f32.partialorder %v4516_v50, 0.0  ;;  %vm4588_vm3 = vcmp.gt.f32.partialorder %v4524_v5, 0.0 }
 0x5c3   :  { %v4596_v48 = vmul.f32 0.2, %v4468_v36  ;;  %v4604_v10 = vmul.f32 0.2, %v4476_v54  ;;  %v4612_v9 = vmul.f32 0.2, %v4484_v63 }
 0x5c4   :  { %v4620_v29 = vmul.f32 0.2, %v4492_v26  ;;  %v4628_v56 = vmul.f32 0.2, %v4500_v49  ;;  %v4636_v57 = vmul.f32 0.2, %v4508_v16 }
 0x5c5   :  { %v4644_v0 = vmul.f32 0.2, %v4516_v50  ;;  %v4652_v55 = vmul.f32 0.2, %v4524_v5  ;;  %v10362_v15 = vsel %vm4532_vm12, %v4468_v36, %v4596_v48  ;;  %v10365_v12 = vsel %vm4540_vm13, %v4476_v54, %v4604_v10 }
 0x5c6   :  { %v10368_v34 = vsel %vm4548_vm14, %v4484_v63, %v4612_v9  ;;  %v10371_v52 = vsel %vm4556_vm15, %v4492_v26, %v4620_v29  ;;  %v10374_v37 = vsel %vm4564_vm0, %v4500_v49, %v4628_v56  ;;  %v10377_v41 = vsel %vm4572_vm1, %v4508_v16, %v4636_v57 }
 0x5c7   :  { %v10380_v27 = vsel %vm4580_vm2, %v4516_v50, %v4644_v0  ;;  %v10383_v44 = vsel %vm4588_vm3, %v4524_v5, %v4652_v55 }
 0x5c8   :  { %8607 = dma.done.wait [#allocation4 + $0x1], 16384 }
 0x5c9   :  { %8608 = vsyncadd [#allocation4 + $0x1], 4294950912  ;;  %v7470_v60 = vld [vmem:[#allocation3 + $0x70] sm:$0xf]  ;;  %v8279_v3 = vld [vmem:[#allocation3 + $0x74] sm:$0xf0] }
 0x5ca   :  { %v7598_v46 = vld [vmem:[#allocation3 + $0x170] sm:$0xf]  ;;  %v7471_v11 = vor.u32 %v8279_v3, %v7470_v60  ;;  %v8311_v18 = vld [vmem:[#allocation3 + $0x174] sm:$0xf0]  ;;  %v7462_v17 = vld [vmem:[#allocation3 + $0x60] sm:$0xf] }
 0x5cb   :  { %v8277_v32 = vld [vmem:[#allocation3 + $0x64] sm:$0xf0]  ;;  %v7599_v43 = vor.u32 %v8311_v18, %v7598_v46  ;;  %v7534_v22 = vld [vmem:[#allocation3 + $0xf0] sm:$0xf]  ;;  %v8295_v51 = vld [vmem:[#allocation3 + $0xf4] sm:$0xf0] }
 0x5cc   :  { %v7590_v42 = vld [vmem:[#allocation3 + $0x160] sm:$0xf]  ;;  %5527 = vmatpush.bf16.msrb.mxu3 %v7471_v11  ;;  %v7463_v23 = vor.u32 %v8277_v32, %v7462_v17  ;;  %v7535_v38 = vor.u32 %v8295_v51, %v7534_v22  ;;  %v8309_v36 = vld [vmem:[#allocation3 + $0x164] sm:$0xf0]  ;;  %v7662_v54 = vld [vmem:[#allocation3 + $0x1f0] sm:$0xf] }
 0x5cd   :  { %v8327_v63 = vld [vmem:[#allocation3 + $0x1f4] sm:$0xf0]  ;;  %5585 = vmatpush.bf16.msrb.mxu1 %v7599_v43  ;;  %v7591_v26 = vor.u32 %v8309_v36, %v7590_v42  ;;  %v7454_v16 = vld [vmem:[#allocation3 + $0x50] sm:$0xf]  ;;  %v7526_v5 = vld [vmem:[#allocation3 + $0xe0] sm:$0xf] }
 0x5ce   :  { %v7663_v49 = vor.u32 %v8327_v63, %v7662_v54  ;;  %v8275_v50 = vld [vmem:[#allocation3 + $0x54] sm:$0xf0]  ;;  %5556 = vmatpush.bf16.msrb.mxu0 %v7535_v38  ;;  %v8293_v48 = vld [vmem:[#allocation3 + $0xe4] sm:$0xf0]  ;;  %v7582_v10 = vld [vmem:[#allocation3 + $0x150] sm:$0xf] }
 0x5cf   :  { %v8307_v9 = vld [vmem:[#allocation3 + $0x154] sm:$0xf0]  ;;  %v7527_v29 = vor.u32 %v8293_v48, %v7526_v5  ;;  %v7654_v56 = vld [vmem:[#allocation3 + $0x1e0] sm:$0xf]  ;;  %v8325_v57 = vld [vmem:[#allocation3 + $0x1e4] sm:$0xf0]  ;;  %v7455_v0 = vor.u32 %v8275_v50, %v7454_v16 }
 0x5d0   :  { %5614 = vmatpush.bf16.msrb.mxu2 %v7663_v49  ;;  %5528 = vmatpush.bf16.msrb.mxu3 %v7463_v23  ;;  %v7655_v55 = vor.u32 %v8325_v57, %v7654_v56  ;;  %v7518_v60 = vld [vmem:[#allocation3 + $0xd0] sm:$0xf]  ;;  %v8291_v3 = vld [vmem:[#allocation3 + $0xd4] sm:$0xf0]  ;;  %v7583_v46 = vor.u32 %v8307_v9, %v7582_v10  ;;  %v7446_v11 = vld [vmem:[#allocation3 + $0x40] sm:$0xf] }
 0x5d1   :  { %5586 = vmatpush.bf16.msrb.mxu1 %v7591_v26  ;;  %v8273_v18 = vld [vmem:[#allocation3 + $0x44] sm:$0xf0]  ;;  %v7646_v17 = vld [vmem:[#allocation3 + $0x1d0] sm:$0xf]  ;;  %v7519_v32 = vor.u32 %v8291_v3, %v7518_v60  ;;  %v7574_v43 = vld [vmem:[#allocation3 + $0x140] sm:$0xf] }
 0x5d2   :  { %5557 = vmatpush.bf16.msrb.mxu0 %v7527_v29  ;;  %v8305_v22 = vld [vmem:[#allocation3 + $0x144] sm:$0xf0]  ;;  %v8323_v51 = vld [vmem:[#allocation3 + $0x1d4] sm:$0xf0]  ;;  %v7510_v38 = vld [vmem:[#allocation3 + $0xc0] sm:$0xf]  ;;  %v7447_v23 = vor.u32 %v8273_v18, %v7446_v11 }
 0x5d3   :  { %v7647_v42 = vor.u32 %v8323_v51, %v7646_v17  ;;  %v8289_v36 = vld [vmem:[#allocation3 + $0xc4] sm:$0xf0]  ;;  %v7638_v54 = vld [vmem:[#allocation3 + $0x1c0] sm:$0xf]  ;;  %v7575_v49 = vor.u32 %v8305_v22, %v7574_v43  ;;  %v7438_v26 = vld [vmem:[#allocation3 + $0x30] sm:$0xf] }
 0x5d4   :  { %5615 = vmatpush.bf16.msrb.mxu2 %v7655_v55  ;;  %5529 = vmatpush.bf16.msrb.mxu3 %v7455_v0  ;;  %v8321_v63 = vld [vmem:[#allocation3 + $0x1c4] sm:$0xf0]  ;;  %v8271_v16 = vld [vmem:[#allocation3 + $0x34] sm:$0xf0]  ;;  %v7511_v50 = vor.u32 %v8289_v36, %v7510_v38  ;;  %v7566_v5 = vld [vmem:[#allocation3 + $0x130] sm:$0xf] }
 0x5d5   :  { %5587 = vmatpush.bf16.msrb.mxu1 %v7583_v46  ;;  %v8303_v48 = vld [vmem:[#allocation3 + $0x134] sm:$0xf0]  ;;  %v7639_v10 = vor.u32 %v8321_v63, %v7638_v54  ;;  %v7502_v9 = vld [vmem:[#allocation3 + $0xb0] sm:$0xf]  ;;  %v7439_v56 = vor.u32 %v8271_v16, %v7438_v26  ;;  %v7430_v60 = vld [vmem:[#allocation3 + $0x20] sm:$0xf] }
 0x5d6   :  { %5558 = vmatpush.bf16.msrb.mxu0 %v7519_v32  ;;  %v8287_v29 = vld [vmem:[#allocation3 + $0xb4] sm:$0xf0]  ;;  %v7630_v57 = vld [vmem:[#allocation3 + $0x1b0] sm:$0xf]  ;;  %v7567_v0 = vor.u32 %v8303_v48, %v7566_v5  ;;  %v8269_v3 = vld [vmem:[#allocation3 + $0x24] sm:$0xf0] }
 0x5d7   :  { %v8319_v55 = vld [vmem:[#allocation3 + $0x1b4] sm:$0xf0]  ;;  %v7503_v46 = vor.u32 %v8287_v29, %v7502_v9  ;;  %v7558_v11 = vld [vmem:[#allocation3 + $0x120] sm:$0xf]  ;;  %v8301_v18 = vld [vmem:[#allocation3 + $0x124] sm:$0xf0]  ;;  %v7431_v22 = vor.u32 %v8269_v3, %v7430_v60 }
 0x5d8   :  { %5616 = vmatpush.bf16.msrb.mxu2 %v7647_v42  ;;  %5530 = vmatpush.bf16.msrb.mxu3 %v7447_v23  ;;  %v7631_v17 = vor.u32 %v8319_v55, %v7630_v57  ;;  %v7494_v32 = vld [vmem:[#allocation3 + $0xa0] sm:$0xf]  ;;  %v8285_v43 = vld [vmem:[#allocation3 + $0xa4] sm:$0xf0]  ;;  %v7559_v38 = vor.u32 %v8301_v18, %v7558_v11  ;;  %v7422_v36 = vld [vmem:[#allocation3 + $0x10] sm:$0xf] }
 0x5d9   :  { %5588 = vmatpush.bf16.msrb.mxu1 %v7575_v49  ;;  %v7622_v51 = vld [vmem:[#allocation3 + $0x1a0] sm:$0xf]  ;;  %v8317_v42 = vld [vmem:[#allocation3 + $0x1a4] sm:$0xf0]  ;;  %v8267_v23 = vld [vmem:[#allocation3 + $0x14] sm:$0xf0]  ;;  %v7495_v54 = vor.u32 %v8285_v43, %v7494_v32 }
 0x5da   :  { %5559 = vmatpush.bf16.msrb.mxu0 %v7511_v50  ;;  %v7550_v63 = vld [vmem:[#allocation3 + $0x110] sm:$0xf]  ;;  %v8299_v49 = vld [vmem:[#allocation3 + $0x114] sm:$0xf0]  ;;  %v7623_v26 = vor.u32 %v8317_v42, %v7622_v51  ;;  %v7423_v5 = vor.u32 %v8267_v23, %v7422_v36  ;;  %v7414_v48 = vld [vmem:[#allocation3] sm:$0xf] }
 0x5db   :  { %v7486_v16 = vld [vmem:[#allocation3 + $0x90] sm:$0xf]  ;;  %v8283_v50 = vld [vmem:[#allocation3 + $0x94] sm:$0xf0]  ;;  %v7551_v29 = vor.u32 %v8299_v49, %v7550_v63  ;;  %v7542_v57 = vld [vmem:[#allocation3 + $0x100] sm:$0xf] }
 0x5dc   :  { %5617 = vmatpush.bf16.msrb.mxu2 %v7639_v10  ;;  %5531 = vmatpush.bf16.msrb.mxu3 %v7439_v56  ;;  %v7614_v10 = vld [vmem:[#allocation3 + $0x190] sm:$0xf]  ;;  %v8315_v9 = vld [vmem:[#allocation3 + $0x194] sm:$0xf0]  ;;  %v8265_v56 = vld [vmem:[#allocation3 + $0x4] sm:$0xf0] }
 0x5dd   :  { %5589 = vmatpush.bf16.msrb.mxu1 %v7567_v0  ;;  %v8297_v55 = vld [vmem:[#allocation3 + $0x104] sm:$0xf0]  ;;  %v7487_v0 = vor.u32 %v8283_v50, %v7486_v16  ;;  %v7854_v60 = vld [vmem:[#allocation3 + $0x370] sm:$0xf]  ;;  %v7615_v11 = vor.u32 %v8315_v9, %v7614_v10  ;;  %v8375_v18 = vld [vmem:[#allocation3 + $0x374] sm:$0xf0]  ;;  %v7415_v43 = vor.u32 %v8265_v56, %v7414_v48 }
 0x5de   :  { %5560 = vmatpush.bf16.msrb.mxu0 %v7503_v46  ;;  %v7726_v3 = vld [vmem:[#allocation3 + $0x270] sm:$0xf]  ;;  %v8343_v46 = vld [vmem:[#allocation3 + $0x274] sm:$0xf0]  ;;  %v8281_v32 = vld [vmem:[#allocation3 + $0x84] sm:$0xf0]  ;;  %v7543_v42 = vor.u32 %v8297_v55, %v7542_v57 }
 0x5df   :  { %v8313_v51 = vld [vmem:[#allocation3 + $0x184] sm:$0xf0]  ;;  %v7790_v36 = vld [vmem:[#allocation3 + $0x2f0] sm:$0xf]  ;;  %v8359_v23 = vld [vmem:[#allocation3 + $0x2f4] sm:$0xf0] }
 0x5e0   :  { %5618 = vmatpush.bf16.msrb.mxu2 %v7631_v17  ;;  %5532 = vmatpush.bf16.msrb.mxu3 %v7431_v22  ;;  %v7478_v17 = vld [vmem:[#allocation3 + $0x80] sm:$0xf]  ;;  %v8341_v16 = vld [vmem:[#allocation3 + $0x264] sm:$0xf0]  ;;  %v10843_v50 = vld [vmem:[#allocation24_spill] sm:$0xff]  ;;  %v7791_v55 = vor.u32 %v8359_v23, %v7790_v36  ;;  %s6029_s27 = sshll.u32 %s10768_s8, 4  ;;  %s6030_s27 = int_to_ptr.hbm [resolvable:$true] %s6029_s27 }
 0x5e1   :  { %5590 = vmatpush.bf16.msrb.mxu1 %v7559_v38  ;;  %v7606_v22 = vld [vmem:[#allocation3 + $0x180] sm:$0xf]  ;;  %v7727_v38 = vor.u32 %v8343_v46, %v7726_v3  ;;  %v7479_v63 = vor.u32 %v8281_v32, %v7478_v17  ;;  %v8373_v48 = vld [vmem:[#allocation3 + $0x364] sm:$0xf0]  ;;  %v7918_v3 = vld [vmem:[#allocation3 + $0x3f0] sm:$0xf] }
 0x5e2   :  { %5561 = vmatpush.bf16.msrb.mxu0 %v7495_v54  ;;  %v7855_v54 = vor.u32 %v8375_v18, %v7854_v60  ;;  %v7718_v49 = vld [vmem:[#allocation3 + $0x260] sm:$0xf]  ;;  %v7607_v9 = vor.u32 %v8313_v51, %v7606_v22  ;;  %v10844_v56 = vld [vmem:[#allocation39_spill] sm:$0xff]  ;;  %v10847_v46 = vld [vmem:[#allocation32_spill] sm:$0xff] }
 0x5e3   :  { %v10846_v60 = vld [vmem:[#allocation31_spill] sm:$0xff]  ;;  %v7782_v17 = vld [vmem:[#allocation3 + $0x2e0] sm:$0xf]  ;;  %v7710_v51 = vld [vmem:[#allocation3 + $0x250] sm:$0xf] }
 0x5e4   :  { %5619 = vmatpush.bf16.msrb.mxu2 %v7623_v26  ;;  %5533 = vmatpush.bf16.msrb.mxu3 %v7423_v5  ;;  %v10842_v26 = vld [vmem:[#allocation23_spill] sm:$0xff]  ;;  %v7846_v5 = vld [vmem:[#allocation3 + $0x360] sm:$0xf]  ;;  %v10395_v18 = vpack.c.bf16 %v10847_v46, %v10846_v60  ;;  %v8339_v36 = vld [vmem:[#allocation3 + $0x254] sm:$0xf0] }
 0x5e5   :  { %5591 = vmatpush.bf16.msrb.mxu1 %v7551_v29  ;;  %v10387_v10 = vpack.c.bf16 %v10843_v50, %v10842_v26  ;;  %v10845_v29 = vld [vmem:[#allocation40_spill] sm:$0xff]  ;;  %v8357_v32 = vld [vmem:[#allocation3 + $0x2e4] sm:$0xf0]  ;;  %v7847_v22 = vor.u32 %v8373_v48, %v7846_v5  ;;  %v8371_v23 = vld [vmem:[#allocation3 + $0x354] sm:$0xf0] }
 0x5e6   :  { %5562 = vmatpush.bf16.msrb.mxu0 %v7487_v0  ;;  %v10391_v57 = vpack.c.bf16 %v10845_v29, %v10844_v56  ;;  %v8391_v0 = vld [vmem:[#allocation3 + $0x3f4] sm:$0xf0]  ;;  %v7702_v50 = vld [vmem:[#allocation3 + $0x240] sm:$0xf]  ;;  %v8369_v48 = vld [vmem:[#allocation3 + $0x344] sm:$0xf0] }
 0x5e7   :  { %v7919_v26 = vor.u32 %v8391_v0, %v7918_v3  ;;  %v7830_v5 = vld [vmem:[#allocation3 + $0x340] sm:$0xf]  ;;  %v8387_v3 = vld [vmem:[#allocation3 + $0x3d4] sm:$0xf0]  ;;  %v8353_v46 = vld [vmem:[#allocation3 + $0x2c4] sm:$0xf0] }
 0x5e8   :  { %5620 = vmatpush.bf16.msrb.mxu2 %v7615_v11  ;;  %5534 = vmatpush.bf16.msrb.mxu3 %v7415_v43  ;;  %v7719_v11 = vor.u32 %v8341_v16, %v7718_v49  ;;  %v10399_v43 = vpack.c.bf16 %v10053_v33, %v10050_v4  ;;  %v7910_v49 = vld [vmem:[#allocation3 + $0x3e0] sm:$0xf]  ;;  %v7774_v4 = vld [vmem:[#allocation3 + $0x2d0] sm:$0xf]  ;;  %v8355_v33 = vld [vmem:[#allocation3 + $0x2d4] sm:$0xf0] }
 0x5e9   :  { %5592 = vmatpush.bf16.msrb.mxu1 %v7543_v42  ;;  %v7838_v42 = vld [vmem:[#allocation3 + $0x350] sm:$0xf]  ;;  %v7775_v29 = vor.u32 %v8355_v33, %v7774_v4  ;;  %v7766_v60 = vld [vmem:[#allocation3 + $0x2c0] sm:$0xf]  ;;  %v8333_v4 = vld [vmem:[#allocation3 + $0x224] sm:$0xf0] }
 0x5ea   :  { %5563 = vmatpush.bf16.msrb.mxu0 %v7479_v63  ;;  %v8389_v63 = vld [vmem:[#allocation3 + $0x3e4] sm:$0xf0]  ;;  %v7839_v16 = vor.u32 %v8371_v23, %v7838_v42  ;;  %v7767_v42 = vor.u32 %v8353_v46, %v7766_v60  ;;  %v10848_v33 = vld [vmem:[#allocation25_spill] sm:$0xff]  ;;  %v10419_v46 = vpack.c.bf16 %v10060_v24, %v10057_v39 }
 0x5eb   :  { %5535 = vmatmul.bf16.vlgmr.msrb.gmra.mxu3 %v10387_v10  ;;  %v7911_v56 = vor.u32 %v8389_v63, %v7910_v49  ;;  %v10849_v63 = vld [vmem:[#allocation26_spill] sm:$0xff] }
 0x5ec   :  { %5643 = vmatpush.bf16.msra.mxu3 %v7727_v38  ;;  %5621 = vmatpush.bf16.msrb.mxu2 %v7607_v9  ;;  %v7783_v38 = vor.u32 %v8357_v32, %v7782_v17  ;;  %v8337_v9 = vld [vmem:[#allocation3 + $0x244] sm:$0xf0]  ;;  %v7694_v17 = vld [vmem:[#allocation3 + $0x230] sm:$0xf]  ;;  %v8335_v32 = vld [vmem:[#allocation3 + $0x234] sm:$0xf0] }
 0x5ed   :  { %5701 = vmatpush.bf16.msra.mxu1 %v7855_v54  ;;  %5564 = vmatmul.bf16.vlgmr.msrb.gmra.mxu0 %v10395_v18  ;;  %v7711_v54 = vor.u32 %v8339_v36, %v7710_v51  ;;  %v7703_v0 = vor.u32 %v8337_v9, %v7702_v50  ;;  %v8367_v51 = vld [vmem:[#allocation3 + $0x334] sm:$0xf0]  ;;  %v7695_v23 = vor.u32 %v8335_v32, %v7694_v17  ;;  %v7814_v50 = vld [vmem:[#allocation3 + $0x320] sm:$0xf]  ;;  %v8365_v9 = vld [vmem:[#allocation3 + $0x324] sm:$0xf0] }
 0x5ee   :  { %5593 = vmatmul.bf16.vlgmr.msrb.gmra.mxu1 %v10391_v57  ;;  %5672 = vmatpush.bf16.msra.mxu0 %v7791_v55  ;;  %v7902_v55 = vld [vmem:[#allocation3 + $0x3d0] sm:$0xf]  ;;  %v8363_v32 = vld [vmem:[#allocation3 + $0x314] sm:$0xf0] }
 0x5ef   :  { %5622 = vmatmul.bf16.vlgmr.msrb.gmra.mxu2 %v10399_v43  ;;  %v7903_v36 = vor.u32 %v8387_v3, %v7902_v55  ;;  %v10852_v55 = vld [vmem:[#allocation33_spill] sm:$0xff]  ;;  %v10853_v3 = vld [vmem:[#allocation34_spill] sm:$0xff]  ;;  %v7806_v17 = vld [vmem:[#allocation3 + $0x310] sm:$0xf] }
 0x5f0   :  { %5644 = vmatpush.bf16.msra.mxu3 %v7719_v11  ;;  %5730 = vmatpush.bf16.msra.mxu2 %v7919_v26  ;;  %v7831_v11 = vor.u32 %v8369_v48, %v7830_v5  ;;  %v7758_v26 = vld [vmem:[#allocation3 + $0x2b0] sm:$0xf]  ;;  %v10850_v5 = vld [vmem:[#allocation41_spill] sm:$0xff]  ;;  %v10851_v48 = vld [vmem:[#allocation42_spill] sm:$0xff]  ;;  %v7807_v39 = vor.u32 %v8363_v32, %v7806_v17 }
 0x5f1   :  { %5702 = vmatpush.bf16.msra.mxu1 %v7847_v22  ;;  %v7822_v22 = vld [vmem:[#allocation3 + $0x330] sm:$0xf] }
 0x5f2   :  { %5673 = vmatpush.bf16.msra.mxu0 %v7783_v38  ;;  %v8351_v38 = vld [vmem:[#allocation3 + $0x2b4] sm:$0xf0]  ;;  %v7823_v49 = vor.u32 %v8367_v51, %v7822_v22  ;;  %v7894_v22 = vld [vmem:[#allocation3 + $0x3c0] sm:$0xf]  ;;  %v8385_v51 = vld [vmem:[#allocation3 + $0x3c4] sm:$0xf0] }
 0x5f3   :  { %v7895_v24 = vor.u32 %v8385_v51, %v7894_v22  ;;  %v7870_v22 = vld [vmem:[#allocation3 + $0x390] sm:$0xf]  ;;  %v8379_v51 = vld [vmem:[#allocation3 + $0x394] sm:$0xf0] }
 0x5f4   :  { %5645 = vmatpush.bf16.msra.mxu3 %v7711_v54  ;;  %5731 = vmatpush.bf16.msra.mxu2 %v7911_v56  ;;  %v7686_v54 = vld [vmem:[#allocation3 + $0x220] sm:$0xf]  ;;  %v10411_v56 = vpack.c.bf16 %v10851_v48, %v10850_v5  ;;  %v8381_v5 = vld [vmem:[#allocation3 + $0x3a4] sm:$0xf0] }
 0x5f5   :  { %5703 = vmatpush.bf16.msra.mxu1 %v7839_v16  ;;  %v10407_v16 = vpack.c.bf16 %v10849_v63, %v10848_v33  ;;  %v7687_v60 = vor.u32 %v8333_v4, %v7686_v54  ;;  %v8383_v4 = vld [vmem:[#allocation3 + $0x3b4] sm:$0xf0]  ;;  %v7798_v33 = vld [vmem:[#allocation3 + $0x300] sm:$0xf]  ;;  %v8361_v63 = vld [vmem:[#allocation3 + $0x304] sm:$0xf0] }
 0x5f6   :  { %5674 = vmatpush.bf16.msra.mxu0 %v7775_v29  ;;  %v7759_v29 = vor.u32 %v8351_v38, %v7758_v26  ;;  %v7750_v26 = vld [vmem:[#allocation3 + $0x2a0] sm:$0xf]  ;;  %v8349_v38 = vld [vmem:[#allocation3 + $0x2a4] sm:$0xf0] }
 0x5f7   :  { %v7751_v54 = vor.u32 %v8349_v38, %v7750_v26  ;;  %v7670_v48 = vld [vmem:[#allocation3 + $0x200] sm:$0xf]  ;;  %v10857_v26 = vld [vmem:[#allocation44_spill] sm:$0xff] }
 0x5f8   :  { %5646 = vmatpush.bf16.msra.mxu3 %v7703_v0  ;;  %5732 = vmatpush.bf16.msra.mxu2 %v7903_v36  ;;  %v10415_v0 = vpack.c.bf16 %v10853_v3, %v10852_v55  ;;  %v7678_v36 = vld [vmem:[#allocation3 + $0x210] sm:$0xf]  ;;  %v8347_v3 = vld [vmem:[#allocation3 + $0x294] sm:$0xf0] }
 0x5f9   :  { %5704 = vmatpush.bf16.msra.mxu1 %v7831_v11  ;;  %v7815_v11 = vor.u32 %v8365_v9, %v7814_v50  ;;  %v7878_v9 = vld [vmem:[#allocation3 + $0x3a0] sm:$0xf]  ;;  %v7742_v55 = vld [vmem:[#allocation3 + $0x290] sm:$0xf] }
 0x5fa   :  { %5675 = vmatpush.bf16.msra.mxu0 %v7767_v42  ;;  %v8331_v42 = vld [vmem:[#allocation3 + $0x214] sm:$0xf0]  ;;  %v7743_v17 = vor.u32 %v8347_v3, %v7742_v55  ;;  %v7879_v32 = vor.u32 %v8381_v5, %v7878_v9  ;;  %v8310_v5 = vld [vmem:[#allocation3 + $0x174] sm:$0xf]  ;;  %v8377_v3 = vld [vmem:[#allocation3 + $0x384] sm:$0xf0] }
 0x5fb   :  { %5540 = vmatmul.bf16.gmra.mxu3 %v10407_v16 }
 0x5fc   :  { %5647 = vmatpush.bf16.msra.mxu3 %v7695_v23  ;;  %v7679_v23 = vor.u32 %v8331_v42, %v7678_v36  ;;  %5733 = vmatpush.bf16.msra.mxu2 %v7895_v24  ;;  %v10854_v36 = vld [vmem:[#allocation27_spill] sm:$0xff]  ;;  %v10855_v42 = vld [vmem:[#allocation28_spill] sm:$0xff] }
 0x5fd   :  { %5705 = vmatpush.bf16.msra.mxu1 %v7823_v49  ;;  %5569 = vmatmul.bf16.gmra.mxu0 %v10415_v0  ;;  %v7886_v49 = vld [vmem:[#allocation3 + $0x3b0] sm:$0xf]  ;;  %v10427_v24 = vpack.c.bf16 %v10855_v42, %v10854_v36  ;;  %v7464_v36 = vld [vmem:[#allocation3 + $0x68] sm:$0xf0]  ;;  %v8294_v42 = vld [vmem:[#allocation3 + $0xf4] sm:$0xf] }
 0x5fe   :  { %5598 = vmatmul.bf16.gmra.mxu1 %v10411_v56  ;;  %5676 = vmatpush.bf16.msra.mxu0 %v7759_v29  ;;  %v7887_v50 = vor.u32 %v8383_v4, %v7886_v49  ;;  %v8329_v29 = vld [vmem:[#allocation3 + $0x204] sm:$0xf0] }
 0x5ff   :  { %5627 = vmatmul.bf16.gmra.mxu2 %v10419_v46  ;;  %v10858_v49 = vld [vmem:[#allocation35_spill] sm:$0xff] }
 0x600   :  { %5648 = vmatpush.bf16.msra.mxu3 %v7687_v60  ;;  %v7799_v60 = vor.u32 %v8361_v63, %v7798_v33  ;;  %5734 = vmatpush.bf16.msra.mxu2 %v7887_v50  ;;  %v10439_v33 = vpack.c.bf16 %v10066_v2, %v10063_v6  ;;  %v7734_v63 = vld [vmem:[#allocation3 + $0x280] sm:$0xf]  ;;  %v8345_v50 = vld [vmem:[#allocation3 + $0x284] sm:$0xf0] }
 0x601   :  { %5706 = vmatpush.bf16.msra.mxu1 %v7815_v11  ;;  %v7671_v11 = vor.u32 %v8329_v29, %v7670_v48  ;;  %v7735_v9 = vor.u32 %v8345_v50, %v7734_v63  ;;  %v7600_v48 = vld [vmem:[#allocation3 + $0x178] sm:$0xf0]  ;;  %v7862_v29 = vld [vmem:[#allocation3 + $0x380] sm:$0xf] }
 0x602   :  { %5677 = vmatpush.bf16.msra.mxu0 %v7751_v54  ;;  %v10859_v54 = vld [vmem:[#allocation36_spill] sm:$0xff]  ;;  %v7603_v55 = vor.u32 %v8310_v5, %v7600_v48  ;;  %v7863_v6 = vor.u32 %v8377_v3, %v7862_v29  ;;  %v10862_v50 = vld [vmem:[#allocation45_spill] sm:$0xff]  ;;  %v10865_v29 = vld [vmem:[#allocation38_spill] sm:$0xff]  ;;  %v10459_v3 = vpack.c.bf16 %v10072_v47, %v10069_v19 }
 0x603   :  { %v10435_v4 = vpack.c.bf16 %v10859_v54, %v10858_v49  ;;  %v10860_v49 = vld [vmem:[#allocation29_spill] sm:$0xff]  ;;  %v10861_v54 = vld [vmem:[#allocation30_spill] sm:$0xff] }
 0x604   :  { %5649 = vmatpush.bf16.msra.mxu3 %v7679_v23  ;;  %v10856_v23 = vld [vmem:[#allocation43_spill] sm:$0xff]  ;;  %5735 = vmatpush.bf16.msra.mxu2 %v7879_v32  ;;  %v10447_v63 = vpack.c.bf16 %v10861_v54, %v10860_v49  ;;  %v10864_v48 = vld [vmem:[#allocation37_spill] sm:$0xff] }
 0x605   :  { %5707 = vmatpush.bf16.msra.mxu1 %v7807_v39  ;;  %v10431_v38 = vpack.c.bf16 %v10857_v26, %v10856_v23  ;;  %v7871_v39 = vor.u32 %v8379_v51, %v7870_v22  ;;  %v7592_v32 = vld [vmem:[#allocation3 + $0x168] sm:$0xf0]  ;;  %v8276_v22 = vld [vmem:[#allocation3 + $0x64] sm:$0xf]  ;;  %v7536_v23 = vld [vmem:[#allocation3 + $0xf8] sm:$0xf0] }
 0x606   :  { %5678 = vmatpush.bf16.msra.mxu0 %v7743_v17  ;;  %v8308_v17 = vld [vmem:[#allocation3 + $0x164] sm:$0xf]  ;;  %v7467_v26 = vor.u32 %v8276_v22, %v7464_v36  ;;  %v7448_v54 = vld [vmem:[#allocation3 + $0x48] sm:$0xf0] }
 0x607   :  { %v7595_v51 = vor.u32 %v8308_v17, %v7592_v32  ;;  %v7456_v17 = vld [vmem:[#allocation3 + $0x58] sm:$0xf0]  ;;  %v8292_v32 = vld [vmem:[#allocation3 + $0xe4] sm:$0xf] }
 0x608   :  { %5650 = vmatpush.bf16.msra.mxu3 %v7671_v11  ;;  %5736 = vmatpush.bf16.msra.mxu2 %v7871_v39  ;;  %v7472_v11 = vld [vmem:[#allocation3 + $0x78] sm:$0xf0]  ;;  %v7539_v39 = vor.u32 %v8294_v42, %v7536_v23  ;;  %v8304_v36 = vld [vmem:[#allocation3 + $0x144] sm:$0xf]  ;;  %v7576_v42 = vld [vmem:[#allocation3 + $0x148] sm:$0xf0] }
 0x609   :  { %5708 = vmatpush.bf16.msra.mxu1 %v7799_v60  ;;  %v8278_v60 = vld [vmem:[#allocation3 + $0x74] sm:$0xf]  ;;  %v7579_v47 = vor.u32 %v8304_v36, %v7576_v42  ;;  %v7560_v42 = vld [vmem:[#allocation3 + $0x128] sm:$0xf0] }
 0x60a   :  { %5679 = vmatpush.bf16.msra.mxu0 %v7735_v9  ;;  %v7475_v2 = vor.u32 %v8278_v60, %v7472_v11  ;;  %v10863_v9 = vld [vmem:[#allocation46_spill] sm:$0xff]  ;;  %v8306_v60 = vld [vmem:[#allocation3 + $0x154] sm:$0xf]  ;;  %v7584_v11 = vld [vmem:[#allocation3 + $0x158] sm:$0xf0] }
 0x60b   :  { %5545 = vmatmul.bf16.gmra.mxu3 %v10427_v24  ;;  %v10451_v5 = vpack.c.bf16 %v10863_v9, %v10862_v50  ;;  %v8326_v23 = vld [vmem:[#allocation3 + $0x1f4] sm:$0xf]  ;;  %v7520_v9 = vld [vmem:[#allocation3 + $0xd8] sm:$0xf0] }
 0x60c   :  { %5737 = vmatpush.bf16.msra.mxu2 %v7863_v6  ;;  %5759 = vmatpush.bf16.msrb.mxu3 %v7475_v2  ;;  %v7587_v6 = vor.u32 %v8306_v60, %v7584_v11  ;;  %v8274_v2 = vld [vmem:[#allocation3 + $0x54] sm:$0xf]  ;;  %v10467_v60 = vpack.c.bf16 %v10155_v59, %v10152_v31  ;;  %v10471_v11 = vpack.c.bf16 %v10306_v1, %v10303_v28  ;;  %v8324_v31 = vld [vmem:[#allocation3 + $0x1e4] sm:$0xf]  ;;  %v7656_v28 = vld [vmem:[#allocation3 + $0x1e8] sm:$0xf0] }
 0x60d   :  { %5574 = vmatmul.bf16.gmra.mxu0 %v10435_v4  ;;  %5817 = vmatpush.bf16.msrb.mxu1 %v7603_v55  ;;  %v10455_v55 = vpack.c.bf16 %v10865_v29, %v10864_v48  ;;  %v7459_v22 = vor.u32 %v8274_v2, %v7456_v17  ;;  %v8290_v50 = vld [vmem:[#allocation3 + $0xd4] sm:$0xf]  ;;  %v10479_v2 = vpack.c.bf16 %v10365_v12, %v10362_v15  ;;  %v7512_v15 = vld [vmem:[#allocation3 + $0xc8] sm:$0xf0]  ;;  %v8300_v12 = vld [vmem:[#allocation3 + $0x124] sm:$0xf] }
 0x60e   :  { %5603 = vmatmul.bf16.gmra.mxu1 %v10431_v38  ;;  %5788 = vmatpush.bf16.msrb.mxu0 %v7539_v39  ;;  %v8272_v39 = vld [vmem:[#allocation3 + $0x44] sm:$0xf]  ;;  %v7523_v29 = vor.u32 %v8290_v50, %v7520_v9  ;;  %v8302_v17 = vld [vmem:[#allocation3 + $0x134] sm:$0xf]  ;;  %v7504_v9 = vld [vmem:[#allocation3 + $0xb8] sm:$0xf0] }
 0x60f   :  { %5632 = vmatmul.bf16.gmra.mxu2 %v10439_v33  ;;  %v7451_v48 = vor.u32 %v8272_v39, %v7448_v54  ;;  %v8270_v1 = vld [vmem:[#allocation3 + $0x34] sm:$0xf]  ;;  %v8268_v39 = vld [vmem:[#allocation3 + $0x24] sm:$0xf] }
 0x610   :  { %5760 = vmatpush.bf16.msrb.mxu3 %v7467_v26  ;;  %v7664_v26 = vld [vmem:[#allocation3 + $0x1f8] sm:$0xf0]  ;;  %v8286_v54 = vld [vmem:[#allocation3 + $0xb4] sm:$0xf] }
 0x611   :  { %5818 = vmatpush.bf16.msrb.mxu1 %v7595_v51  ;;  %v7528_v51 = vld [vmem:[#allocation3 + $0xe8] sm:$0xf0]  ;;  %v7667_v49 = vor.u32 %v8326_v23, %v7664_v26  ;;  %v7563_v23 = vor.u32 %v8300_v12, %v7560_v42  ;;  %v8316_v42 = vld [vmem:[#allocation3 + $0x1a4] sm:$0xf] }
 0x612   :  { %v7531_v19 = vor.u32 %v8292_v32, %v7528_v51  ;;  %v7568_v32 = vld [vmem:[#allocation3 + $0x138] sm:$0xf0]  ;;  %v8288_v51 = vld [vmem:[#allocation3 + $0xc4] sm:$0xf] }
 0x613   :  { %5846 = vmatpush.bf16.msrb.mxu2 %v7667_v49  ;;  %v7571_v59 = vor.u32 %v8302_v17, %v7568_v32  ;;  %v7515_v36 = vor.u32 %v8288_v51, %v7512_v15  ;;  %v7432_v49 = vld [vmem:[#allocation3 + $0x28] sm:$0xf0]  ;;  %v10491_v17 = vpack.c.bf16 %v10312_v62, %v10309_v25  ;;  %v10495_v32 = vpack.c.bf16 %v10248_v20, %v10245_v21  ;;  %v8266_v62 = vld [vmem:[#allocation3 + $0x14] sm:$0xf]  ;;  %v8296_v51 = vld [vmem:[#allocation3 + $0x104] sm:$0xf] }
 0x614   :  { %5761 = vmatpush.bf16.msrb.mxu3 %v7459_v22  ;;  %5789 = vmatpush.bf16.msrb.mxu0 %v7531_v19  ;;  %v7440_v22 = vld [vmem:[#allocation3 + $0x38] sm:$0xf0]  ;;  %v8322_v19 = vld [vmem:[#allocation3 + $0x1d4] sm:$0xf]  ;;  %v7435_v50 = vor.u32 %v8268_v39, %v7432_v49  ;;  %v7640_v25 = vld [vmem:[#allocation3 + $0x1c8] sm:$0xf0] }
 0x615   :  { %5819 = vmatpush.bf16.msrb.mxu1 %v7587_v6  ;;  %v10475_v6 = vpack.c.bf16 %v10242_v8, %v10239_v61  ;;  %v7659_v61 = vor.u32 %v8324_v31, %v7656_v28  ;;  %v7443_v8 = vor.u32 %v8270_v1, %v7440_v22  ;;  %v10499_v31 = vpack.c.bf16 %v10371_v52, %v10368_v34  ;;  %v7552_v28 = vld [vmem:[#allocation3 + $0x118] sm:$0xf0]  ;;  %v8284_v22 = vld [vmem:[#allocation3 + $0xa4] sm:$0xf]  ;;  %v7496_v34 = vld [vmem:[#allocation3 + $0xa8] sm:$0xf0] }
 0x616   :  { %v7424_v1 = vld [vmem:[#allocation3 + $0x18] sm:$0xf0]  ;;  %v8318_v52 = vld [vmem:[#allocation3 + $0x1b4] sm:$0xf]  ;;  %v7544_v15 = vld [vmem:[#allocation3 + $0x108] sm:$0xf0] }
 0x617   :  { %5847 = vmatpush.bf16.msrb.mxu2 %v7659_v61  ;;  %v7427_v20 = vor.u32 %v8266_v62, %v7424_v1  ;;  %v7499_v61 = vor.u32 %v8284_v22, %v7496_v34  ;;  %v7488_v39 = vld [vmem:[#allocation3 + $0x98] sm:$0xf0]  ;;  %v10519_v62 = vpack.c.bf16 %v10377_v41, %v10374_v37  ;;  %v8280_v1 = vld [vmem:[#allocation3 + $0x84] sm:$0xf]  ;;  %v8342_v41 = vld [vmem:[#allocation3 + $0x274] sm:$0xf] }
 0x618   :  { %5762 = vmatpush.bf16.msrb.mxu3 %v7451_v48  ;;  %5790 = vmatpush.bf16.msrb.mxu0 %v7523_v29  ;;  %v7507_v48 = vor.u32 %v8286_v54, %v7504_v9  ;;  %v10487_v29 = vpack.c.bf16 %v10162_v35, %v10159_v53  ;;  %v8320_v53 = vld [vmem:[#allocation3 + $0x1c4] sm:$0xf]  ;;  %v10507_v9 = vpack.c.bf16 %v10168_v7, %v10165_v30  ;;  %v8374_v7 = vld [vmem:[#allocation3 + $0x374] sm:$0xf]  ;;  %v7728_v22 = vld [vmem:[#allocation3 + $0x278] sm:$0xf0] }
 0x619   :  { %5820 = vmatpush.bf16.msrb.mxu1 %v7579_v47  ;;  %v7648_v47 = vld [vmem:[#allocation3 + $0x1d8] sm:$0xf0]  ;;  %v7643_v21 = vor.u32 %v8320_v53, %v7640_v25  ;;  %v10866_v53 = vld [vmem:[#allocation48_spill] sm:$0xff]  ;;  %v8372_v34 = vld [vmem:[#allocation3 + $0x364] sm:$0xf] }
 0x61a   :  { %v7651_v26 = vor.u32 %v8322_v19, %v7648_v47  ;;  %v7624_v19 = vld [vmem:[#allocation3 + $0x1a8] sm:$0xf0]  ;;  %v8264_v47 = vld [vmem:[#allocation3 + $0x4] sm:$0xf] }
 0x61b   :  { %5550 = vmatmul.bf16.gmra.mxu3 %v10447_v63 }
 0x61c   :  { %5763 = vmatpush.bf16.msrb.mxu3 %v7443_v8  ;;  %5791 = vmatpush.bf16.msrb.mxu0 %v7515_v36  ;;  %v7632_v8 = vld [vmem:[#allocation3 + $0x1b8] sm:$0xf0]  ;;  %v7547_v36 = vor.u32 %v8296_v51, %v7544_v15  ;;  %v10867_v51 = vld [vmem:[#allocation22_spill] sm:$0xff]  ;;  %v10868_v15 = vld [vmem:[#allocation47_spill] sm:$0xff] }
 0x61d   :  { %5579 = vmatmul.bf16.gmra.mxu0 %v10455_v55  ;;  %5821 = vmatpush.bf16.msrb.mxu1 %v7571_v59  ;;  %v8298_v59 = vld [vmem:[#allocation3 + $0x114] sm:$0xf]  ;;  %v7635_v12 = vor.u32 %v8318_v52, %v7632_v8  ;;  %v7731_v52 = vor.u32 %v8342_v41, %v7728_v22  ;;  %v8336_v41 = vld [vmem:[#allocation3 + $0x244] sm:$0xf]  ;;  %v7704_v22 = vld [vmem:[#allocation3 + $0x248] sm:$0xf0] }
 0x61e   :  { %5608 = vmatmul.bf16.gmra.mxu1 %v10451_v5  ;;  %5848 = vmatpush.bf16.msrb.mxu2 %v7651_v26  ;;  %v7555_v35 = vor.u32 %v8298_v59, %v7552_v28  ;;  %v8282_v26 = vld [vmem:[#allocation3 + $0x94] sm:$0xf]  ;;  %v7616_v28 = vld [vmem:[#allocation3 + $0x198] sm:$0xf0] }
 0x61f   :  { %5637 = vmatmul.bf16.gmra.mxu2 %v10459_v3  ;;  %v7491_v54 = vor.u32 %v8282_v26, %v7488_v39  ;;  %v8314_v59 = vld [vmem:[#allocation3 + $0x194] sm:$0xf]  ;;  %v7720_v26 = vld [vmem:[#allocation3 + $0x268] sm:$0xf0] }
 0x620   :  { %5764 = vmatpush.bf16.msrb.mxu3 %v7435_v50  ;;  %5792 = vmatpush.bf16.msrb.mxu0 %v7507_v48  ;;  %v7627_v50 = vor.u32 %v8316_v42, %v7624_v19  ;;  %v10511_v48 = vpack.c.bf16 %v10318_v14, %v10315_v58  ;;  %v7619_v25 = vor.u32 %v8314_v59, %v7616_v28  ;;  %v7856_v58 = vld [vmem:[#allocation3 + $0x378] sm:$0xf0]  ;;  %v10870_v19 = vld [vmem:[#allocation50_spill] sm:$0xff]  ;;  %v8358_v39 = vld [vmem:[#allocation3 + $0x2f4] sm:$0xf] }
 0x621   :  { %5822 = vmatpush.bf16.msrb.mxu1 %v7563_v23  ;;  %v7416_v23 = vld [vmem:[#allocation3 + $0x8] sm:$0xf0]  ;;  %v7859_v14 = vor.u32 %v8374_v7, %v7856_v58  ;;  %v10869_v42 = vld [vmem:[#allocation49_spill] sm:$0xff] }
 0x622   :  { %5849 = vmatpush.bf16.msrb.mxu2 %v7643_v21  ;;  %v7419_v49 = vor.u32 %v8264_v47, %v7416_v23  ;;  %v7480_v21 = vld [vmem:[#allocation3 + $0x88] sm:$0xf0]  ;;  %v10535_v47 = vpack.c.bf16 %v10870_v19, %v10869_v42  ;;  %v8340_v23 = vld [vmem:[#allocation3 + $0x264] sm:$0xf]  ;;  %v7824_v42 = vld [vmem:[#allocation3 + $0x338] sm:$0xf0] }
 0x623   :  { %v7483_v30 = vor.u32 %v8280_v1, %v7480_v21  ;;  %v7784_v1 = vld [vmem:[#allocation3 + $0x2e8] sm:$0xf0]  ;;  %v8368_v21 = vld [vmem:[#allocation3 + $0x344] sm:$0xf] }
 0x624   :  { %5765 = vmatpush.bf16.msrb.mxu3 %v7427_v20  ;;  %5793 = vmatpush.bf16.msrb.mxu0 %v7499_v61  ;;  %v7608_v20 = vld [vmem:[#allocation3 + $0x188] sm:$0xf0] }
 0x625   :  { %5823 = vmatpush.bf16.msrb.mxu1 %v7555_v35  ;;  %v10515_v35 = vpack.c.bf16 %v10866_v53, %v10251_v40  ;;  %v8312_v40 = vld [vmem:[#allocation3 + $0x184] sm:$0xf]  ;;  %v7848_v61 = vld [vmem:[#allocation3 + $0x368] sm:$0xf0]  ;;  %v8338_v53 = vld [vmem:[#allocation3 + $0x254] sm:$0xf] }
 0x626   :  { %5850 = vmatpush.bf16.msrb.mxu2 %v7635_v12  ;;  %v7611_v37 = vor.u32 %v8312_v40, %v7608_v20  ;;  %v7851_v8 = vor.u32 %v8372_v34, %v7848_v61  ;;  %v10527_v12 = vpack.c.bf16 %v10868_v15, %v10867_v51  ;;  %v7920_v40 = vld [vmem:[#allocation3 + $0x3f8] sm:$0xf0]  ;;  %v8354_v34 = vld [vmem:[#allocation3 + $0x2d4] sm:$0xf]  ;;  %v7707_v61 = vor.u32 %v8336_v41, %v7704_v22 }
 0x627   :  { %v8366_v15 = vld [vmem:[#allocation3 + $0x334] sm:$0xf] }
 0x628   :  { %5766 = vmatpush.bf16.msrb.mxu3 %v7419_v49  ;;  %5794 = vmatpush.bf16.msrb.mxu0 %v7491_v54  ;;  %v10539_v49 = vpack.c.bf16 %v10383_v44, %v10380_v27  ;;  %v7723_v54 = vor.u32 %v8340_v23, %v7720_v26  ;;  %v7712_v27 = vld [vmem:[#allocation3 + $0x258] sm:$0xf0]  ;;  %v8356_v44 = vld [vmem:[#allocation3 + $0x2e4] sm:$0xf]  ;;  %v7827_v19 = vor.u32 %v8366_v15, %v7824_v42  ;;  %v7912_v26 = vld [vmem:[#allocation3 + $0x3e8] sm:$0xf0] }
 0x629   :  { %5824 = vmatpush.bf16.msrb.mxu1 %v7547_v36  ;;  %v10531_v36 = vpack.c.bf16 %v10324_v13, %v10321_v45  ;;  %v8370_v45 = vld [vmem:[#allocation3 + $0x354] sm:$0xf]  ;;  %v7840_v13 = vld [vmem:[#allocation3 + $0x358] sm:$0xf0]  ;;  %v7787_v7 = vor.u32 %v8356_v44, %v7784_v1  ;;  %v8388_v23 = vld [vmem:[#allocation3 + $0x3e4] sm:$0xf] }
 0x62a   :  { %5851 = vmatpush.bf16.msrb.mxu2 %v7627_v50  ;;  %v7792_v50 = vld [vmem:[#allocation3 + $0x2f8] sm:$0xf0]  ;;  %v7843_v28 = vor.u32 %v8370_v45, %v7840_v13  ;;  %v8350_v41 = vld [vmem:[#allocation3 + $0x2b4] sm:$0xf] }
 0x62b   :  { %5651 = vmatmul.bf16.vlgmr.msra.gmra.mxu3 %v10467_v60  ;;  %v7795_v59 = vor.u32 %v8358_v39, %v7792_v50  ;;  %v8334_v50 = vld [vmem:[#allocation3 + $0x234] sm:$0xf]  ;;  %v7904_v1 = vld [vmem:[#allocation3 + $0x3d8] sm:$0xf0] }
 0x62c   :  { %5795 = vmatpush.bf16.msrb.mxu0 %v7483_v30  ;;  %5875 = vmatpush.bf16.msra.mxu3 %v7731_v52  ;;  %v7832_v30 = vld [vmem:[#allocation3 + $0x348] sm:$0xf0]  ;;  %v7808_v15 = vld [vmem:[#allocation3 + $0x318] sm:$0xf0] }
 0x62d   :  { %5680 = vmatmul.bf16.vlgmr.msra.gmra.mxu0 %v10475_v6  ;;  %v7835_v58 = vor.u32 %v8368_v21, %v7832_v30 }
 0x62e   :  { %5709 = vmatmul.bf16.vlgmr.msra.gmra.mxu1 %v10471_v11  ;;  %5852 = vmatpush.bf16.msrb.mxu2 %v7619_v25  ;;  %v7715_v25 = vor.u32 %v8338_v53, %v7712_v27  ;;  %v8364_v53 = vld [vmem:[#allocation3 + $0x324] sm:$0xf]  ;;  %v7816_v27 = vld [vmem:[#allocation3 + $0x328] sm:$0xf0] }
 0x62f   :  { %5738 = vmatmul.bf16.vlgmr.msra.gmra.mxu2 %v10479_v2  ;;  %5933 = vmatpush.bf16.msra.mxu1 %v7859_v14  ;;  %v8390_v14 = vld [vmem:[#allocation3 + $0x3f4] sm:$0xf]  ;;  %v7819_v44 = vor.u32 %v8364_v53, %v7816_v27  ;;  %v7752_v53 = vld [vmem:[#allocation3 + $0x2a8] sm:$0xf0]  ;;  %v8360_v27 = vld [vmem:[#allocation3 + $0x304] sm:$0xf] }
 0x630   :  { %5876 = vmatpush.bf16.msra.mxu3 %v7723_v54  ;;  %5904 = vmatpush.bf16.msra.mxu0 %v7795_v59  ;;  %v10545_v20 = vor.u32 %v8390_v14, %v7920_v40  ;;  %v10558_v54 = vor.u32 %v8388_v23, %v7912_v26  ;;  %v7696_v59 = vld [vmem:[#allocation3 + $0x238] sm:$0xf0]  ;;  %v8332_v14 = vld [vmem:[#allocation3 + $0x224] sm:$0xf]  ;;  %v7688_v40 = vld [vmem:[#allocation3 + $0x228] sm:$0xf0] }
 0x631   :  { %v7699_v13 = vor.u32 %v8334_v50, %v7696_v59  ;;  %v7896_v23 = vld [vmem:[#allocation3 + $0x3c8] sm:$0xf0] }
 0x632   :  { %5853 = vmatpush.bf16.msrb.mxu2 %v7611_v37 }
 0x633   :  { %5934 = vmatpush.bf16.msra.mxu1 %v7851_v8  ;;  %v7776_v8 = vld [vmem:[#allocation3 + $0x2d8] sm:$0xf0] }
 0x634   :  { %5877 = vmatpush.bf16.msra.mxu3 %v7715_v25  ;;  %5905 = vmatpush.bf16.msra.mxu0 %v7787_v7  ;;  %v7779_v51 = vor.u32 %v8354_v34, %v7776_v8  ;;  %v8386_v25 = vld [vmem:[#allocation3 + $0x3d4] sm:$0xf]  ;;  %v7691_v34 = vor.u32 %v8332_v14, %v7688_v40 }
 0x635   :  { %v10569_v30 = vor.u32 %v8386_v25, %v7904_v1  ;;  %v7888_v1 = vld [vmem:[#allocation3 + $0x3b8] sm:$0xf0] }
 0x636   :  { %8400 = vmatpush.bf16.msra.mxu2 %v10545_v20 }
 0x637   :  { %5935 = vmatpush.bf16.msra.mxu1 %v7843_v28  ;;  %v7768_v28 = vld [vmem:[#allocation3 + $0x2c8] sm:$0xf0] }
 0x638   :  { %5878 = vmatpush.bf16.msra.mxu3 %v7707_v61  ;;  %5906 = vmatpush.bf16.msra.mxu0 %v7779_v51  ;;  %v7760_v61 = vld [vmem:[#allocation3 + $0x2b8] sm:$0xf0]  ;;  %v8362_v51 = vld [vmem:[#allocation3 + $0x314] sm:$0xf] }
 0x639   :  { %v7763_v8 = vor.u32 %v8350_v41, %v7760_v61  ;;  %v7811_v42 = vor.u32 %v8362_v51, %v7808_v15  ;;  %v8328_v41 = vld [vmem:[#allocation3 + $0x204] sm:$0xf]  ;;  %v8346_v61 = vld [vmem:[#allocation3 + $0x294] sm:$0xf]  ;;  %v7744_v51 = vld [vmem:[#allocation3 + $0x298] sm:$0xf0] }
 0x63a   :  { %8401 = vmatpush.bf16.msra.mxu2 %v10558_v54  ;;  %v7747_v15 = vor.u32 %v8346_v61, %v7744_v51 }
 0x63b   :  { %5656 = vmatmul.bf16.gmra.mxu3 %v10487_v29  ;;  %5936 = vmatpush.bf16.msra.mxu1 %v7835_v58 }
 0x63c   :  { %5879 = vmatpush.bf16.msra.mxu3 %v7699_v13  ;;  %v8348_v13 = vld [vmem:[#allocation3 + $0x2a4] sm:$0xf] }
 0x63d   :  { %5685 = vmatmul.bf16.gmra.mxu0 %v10495_v32 }
 0x63e   :  { %5714 = vmatmul.bf16.gmra.mxu1 %v10491_v17  ;;  %8402 = vmatpush.bf16.msra.mxu2 %v10569_v30 }
 0x63f   :  { %5743 = vmatmul.bf16.gmra.mxu2 %v10499_v31  ;;  %5937 = vmatpush.bf16.msra.mxu1 %v7827_v19  ;;  %v8384_v19 = vld [vmem:[#allocation3 + $0x3c4] sm:$0xf] }
 0x640   :  { %5880 = vmatpush.bf16.msra.mxu3 %v7691_v34  ;;  %v7899_v50 = vor.u32 %v8384_v19, %v7896_v23  ;;  %v7672_v34 = vld [vmem:[#allocation3 + $0x208] sm:$0xf0] }
 0x642   :  { %8403 = vmatpush.bf16.msra.mxu2 %v7899_v50 }
 0x643   :  { %5938 = vmatpush.bf16.msra.mxu1 %v7819_v44  ;;  %v7755_v44 = vor.u32 %v8348_v13, %v7752_v53 }
 0x647   :  { %5939 = vmatpush.bf16.msra.mxu1 %v7811_v42 }
 0x64b   :  { %5661 = vmatmul.bf16.gmra.mxu3 %v10507_v9 }
 0x64d   :  { %5690 = vmatmul.bf16.gmra.mxu0 %v10515_v35 }
 0x64e   :  { %5719 = vmatmul.bf16.gmra.mxu1 %v10511_v48 }
 0x64f   :  { %5748 = vmatmul.bf16.gmra.mxu2 %v10519_v62 }
 0x65b   :  { %5666 = vmatmul.bf16.gmra.mxu3 %v10527_v12 }
 0x65d   :  { %5695 = vmatmul.bf16.gmra.mxu0 %v10535_v47 }
 0x65e   :  { %5724 = vmatmul.bf16.gmra.mxu1 %v10531_v36 }
 0x65f   :  { %5753 = vmatmul.bf16.gmra.mxu2 %v10539_v49 }
 0x66a   :  { %v10550_v52 = vpop.f32.mrf.mxu0 }
 0x66b   :  { %v10548_v37 = vpop.f32.mrf.mxu1  ;;  %5767 = vmatmul.bf16.vlgmr.msrb.gmra.mxu3 %v10387_v10 }
 0x66d   :  { %5796 = vmatmul.bf16.vlgmr.msrb.gmra.mxu0 %v10395_v18  ;;  %v8352_v18 = vld [vmem:[#allocation3 + $0x2c4] sm:$0xf] }
 0x66e   :  { %5825 = vmatmul.bf16.vlgmr.msrb.gmra.mxu1 %v10391_v57  ;;  %v10555_v39 = vpop.f32.mrf.mxu3 }
 0x66f   :  { %5854 = vmatmul.bf16.vlgmr.msrb.gmra.mxu2 %v10399_v43  ;;  %v7771_v43 = vor.u32 %v8352_v18, %v7768_v28  ;;  %v7680_v18 = vld [vmem:[#allocation3 + $0x218] sm:$0xf0] }
 0x671   :  { %5907 = vmatpush.bf16.msra.mxu0 %v7771_v43  ;;  %v7800_v43 = vld [vmem:[#allocation3 + $0x308] sm:$0xf0] }
 0x672   :  { %v10563_v57 = vpop.f32.mrf.mxu2  ;;  %v10565_v45 = vpop.f32.mrf.mxu0  ;;  %v7803_v25 = vor.u32 %v8360_v27, %v7800_v43 }
 0x673   :  { %v10561_v10 = vpop.f32.mrf.mxu1 }
 0x674   :  { %5940 = vmatpush.bf16.msra.mxu1 %v7803_v25 }
 0x675   :  { %5908 = vmatpush.bf16.msra.mxu0 %v7763_v8  ;;  %v7675_v8 = vor.u32 %v8328_v41, %v7672_v34  ;;  %v10622_v34 = vld [vmem:[%s10767_s7] sm:$0x3]  ;;  %s8620_s7 = smov [#allocation10]  }
 0x676   :  { %v10567_v21 = vpop.f32.mrf.mxu3  ;;  %s6027_s24 = sshll.u32 %s8620_s7, 4  ;;  %s6028_s24 = int_to_ptr.vmem [resolvable:$true] %s6027_s24 }
 0x678   :  { %5962 = vmatpush.bf16.msrb.mxu1 %v10545_v20  ;;  %v8380_v20 = vld [vmem:[#allocation3 + $0x3a4] sm:$0xf] }
 0x679   :  { %5909 = vmatpush.bf16.msra.mxu0 %v7755_v44 }
 0x67a   :  { %v10574_v58 = vpop.f32.mrf.mxu2  ;;  %v10576_v22 = vpop.f32.mrf.mxu0 }
 0x67b   :  { %v10572_v7 = vpop.f32.mrf.mxu1  ;;  %5772 = vmatmul.bf16.gmra.mxu3 %v10407_v16 }
 0x67c   :  { %5963 = vmatpush.bf16.msrb.mxu1 %v10558_v54 }
 0x67d   :  { %5801 = vmatmul.bf16.gmra.mxu0 %v10415_v0 }
 0x67e   :  { %5830 = vmatmul.bf16.gmra.mxu1 %v10411_v56  ;;  %v10581_v26 = vpop.f32.mrf.mxu3  ;;  %v8330_v56 = vld [vmem:[#allocation3 + $0x214] sm:$0xf]  ;;  %5910 = vmatpush.bf16.msra.mxu0 %v7747_v15 }
 0x67f   :  { %5859 = vmatmul.bf16.gmra.mxu2 %v10419_v46  ;;  %v7683_v0 = vor.u32 %v8330_v56, %v7680_v18  ;;  %v8382_v46 = vld [vmem:[#allocation3 + $0x3b4] sm:$0xf]  ;;  %v8344_v56 = vld [vmem:[#allocation3 + $0x284] sm:$0xf]  ;;  %v7736_v18 = vld [vmem:[#allocation3 + $0x288] sm:$0xf0] }
 0x680   :  { %v7891_v40 = vor.u32 %v8382_v46, %v7888_v1  ;;  %v7739_v13 = vor.u32 %v8344_v56, %v7736_v18  ;;  %5964 = vmatpush.bf16.msrb.mxu1 %v10569_v30  ;;  %v7864_v46 = vld [vmem:[#allocation3 + $0x388] sm:$0xf0] }
 0x681   :  { %5881 = vmatpush.bf16.msra.mxu3 %v7683_v0  ;;  %v7880_v0 = vld [vmem:[#allocation3 + $0x3a8] sm:$0xf0] }
 0x682   :  { %v10586_v59 = vpop.f32.mrf.mxu2  ;;  %v10588_v28 = vpop.f32.mrf.mxu0  ;;  %8404 = vmatpush.bf16.msra.mxu2 %v7891_v40  ;;  %5911 = vmatpush.bf16.msra.mxu0 %v7739_v13  ;;  %v7883_v27 = vor.u32 %v8380_v20, %v7880_v0 }
 0x683   :  { %v10584_v16 = vpop.f32.mrf.mxu1 }
 0x684   :  { %5965 = vmatpush.bf16.msrb.mxu1 %v7899_v50 }
 0x685   :  { %5882 = vmatpush.bf16.msra.mxu3 %v7675_v8 }
 0x686   :  { %v10590_v14 = vpop.f32.mrf.mxu3  ;;  %8405 = vmatpush.bf16.msra.mxu2 %v7883_v27 }
 0x688   :  { %5966 = vmatpush.bf16.msrb.mxu1 %v7891_v40  ;;  %v10629_v40 = vperm.slane %v10622_v34, 0 }
 0x68a   :  { %v10595_v19 = vpop.f32.mrf.mxu2  ;;  %v10597_v23 = vpop.f32.mrf.mxu0  ;;  %v5537_v8 = vadd.f32 %v10555_v39, %v10629_v40 }
 0x68b   :  { %v10593_v42 = vpop.f32.mrf.mxu1  ;;  %5777 = vmatmul.bf16.gmra.mxu3 %v10427_v24 }
 0x68c   :  { %5967 = vmatpush.bf16.msrb.mxu1 %v7883_v27  ;;  %v5542_v27 = vadd.f32 %v10581_v26, %v10629_v40 }
 0x68d   :  { %5806 = vmatmul.bf16.gmra.mxu0 %v10435_v4  ;;  %v7872_v4 = vld [vmem:[#allocation3 + $0x398] sm:$0xf0] }
 0x68e   :  { %5835 = vmatmul.bf16.gmra.mxu1 %v10431_v38  ;;  %v10603_v53 = vpop.f32.mrf.mxu3  ;;  %v8378_v38 = vld [vmem:[#allocation3 + $0x394] sm:$0xf] }
 0x68f   :  { %5864 = vmatmul.bf16.gmra.mxu2 %v10439_v33  ;;  %v7875_v44 = vor.u32 %v8378_v38, %v7872_v4  ;;  %v8376_v33 = vld [vmem:[#allocation3 + $0x384] sm:$0xf] }
 0x690   :  { %v7867_v41 = vor.u32 %v8376_v33, %v7864_v46 }
 0x691   :  { %8406 = vmatpush.bf16.msra.mxu2 %v7875_v44  ;;  %5968 = vmatpush.bf16.msrb.mxu1 %v7875_v44 }
 0x692   :  { %v10609_v54 = vpop.f32.mrf.mxu2  ;;  %v10611_v24 = vpop.f32.mrf.mxu0 }
 0x693   :  { %v10607_v43 = vpop.f32.mrf.mxu1 }
 0x695   :  { %8407 = vmatpush.bf16.msra.mxu2 %v7867_v41  ;;  %5969 = vmatpush.bf16.msrb.mxu1 %v7867_v41 }
 0x696   :  { %v10613_v25 = vpop.f32.mrf.mxu3 }
 0x69a   :  { %v10617_v30 = vpop.f32.mrf.mxu2  ;;  %v10624_v50 = vpop.f32.mrf.mxu0 }
 0x69b   :  { %v10615_v1 = vpop.f32.mrf.mxu1  ;;  %5782 = vmatmul.bf16.gmra.mxu3 %v10447_v63 }
 0x69d   :  { %5811 = vmatmul.bf16.gmra.mxu0 %v10455_v55 }
 0x69e   :  { %5840 = vmatmul.bf16.gmra.mxu1 %v10451_v5  ;;  %v10632_v61 = vpop.f32.mrf.mxu3  ;;  %v5566_v5 = vadd.f32 %v10550_v52, %v5537_v8 }
 0x69f   :  { %5869 = vmatmul.bf16.gmra.mxu2 %v10459_v3  ;;  %v5539_v3 = vadd.f32 %v10567_v21, %v10629_v40 }
 0x6a0   :  { %v5595_v55 = vadd.f32 %v10548_v37, %v5566_v5 }
 0x6a1   :  { %v5568_v52 = vadd.f32 %v10565_v45, %v5539_v3  ;;  %v5571_v45 = vadd.f32 %v10576_v22, %v5542_v27 }
 0x6a2   :  { %v10639_v15 = vpop.f32.mrf.mxu2  ;;  %v10641_v63 = vpop.f32.mrf.mxu0  ;;  %v5624_v20 = vadd.f32 %v10563_v57, %v5595_v55 }
 0x6a3   :  { %v10637_v51 = vpop.f32.mrf.mxu1  ;;  %v5597_v21 = vadd.f32 %v10561_v10, %v5568_v52  ;;  %v5544_v10 = vadd.f32 %v10590_v14, %v10629_v40 }
 0x6a5   :  { %v5626_v57 = vadd.f32 %v10574_v58, %v5597_v21  ;;  %v5573_v3 = vadd.f32 %v10588_v28, %v5544_v10 }
 0x6a6   :  { %v10644_v56 = vpop.f32.mrf.mxu3 }
 0x6aa   :  { %v10649_v13 = vpop.f32.mrf.mxu2  ;;  %v5681_v39 = vpop.f32.mrf.mxu0 }
 0x6ab   :  { %v5710_v18 = vpop.f32.mrf.mxu1  ;;  %5883 = vmatmul.bf16.vlgmr.msra.gmra.mxu3 %v10467_v60 }
 0x6ad   :  { %5912 = vmatmul.bf16.vlgmr.msra.gmra.mxu0 %v10475_v6 }
 0x6ae   :  { %5941 = vmatmul.bf16.vlgmr.msra.gmra.mxu1 %v10471_v11  ;;  %v5652_v0 = vpop.f32.mrf.mxu3 }
 0x6af   :  { %5975 = vmatmul.bf16.vlgmr.msra.gmra.mxu2 %v10499_v31  ;;  %v5653_v37 = vadd.f32 %v5652_v0, %v5624_v20  ;;  %v5600_v31 = vadd.f32 %v10572_v7, %v5571_v45 }
 0x6b1   :  { %v5682_v38 = vadd.f32 %v5681_v39, %v5653_v37  ;;  %v5629_v22 = vadd.f32 %v10586_v59, %v5600_v31  ;;  %v5602_v39 = vadd.f32 %v10584_v16, %v5573_v3 }
 0x6b2   :  { %v5739_v60 = vpop.f32.mrf.mxu2  ;;  %v5683_v44 = vpop.f32.mrf.mxu0 }
 0x6b3   :  { %v5712_v4 = vpop.f32.mrf.mxu1  ;;  %v5711_v11 = vadd.f32 %v5710_v18, %v5682_v38  ;;  %v5631_v37 = vadd.f32 %v10595_v19, %v5602_v39 }
 0x6b5   :  { %v5740_v33 = vadd.f32 %v5739_v60, %v5711_v11 }
 0x6b6   :  { %v5654_v6 = vpop.f32.mrf.mxu3 }
 0x6b7   :  { %8449 = vtanh.f32 %v5740_v33  ;;  %v5655_v46 = vadd.f32 %v5654_v6, %v5626_v57 }
 0x6b9   :  { %v5684_v41 = vadd.f32 %v5683_v44, %v5655_v46 }
 0x6ba   :  { %v5741_v8 = vpop.f32.mrf.mxu2  ;;  %v5686_v5 = vpop.f32.mrf.mxu0 }
 0x6bb   :  { %v5715_v26 = vpop.f32.mrf.mxu1  ;;  %5888 = vmatmul.bf16.gmra.mxu3 %v10487_v29  ;;  %v5713_v55 = vadd.f32 %v5712_v4, %v5684_v41  ;;  %v5547_v29 = vadd.f32 %v10603_v53, %v10629_v40  ;;  %v5549_v53 = vadd.f32 %v10613_v25, %v10629_v40 }
 0x6bd   :  { %v8450_v58 = vpop.eup %8449  ;;  %v5742_v18 = vadd.f32 %v5741_v8, %v5713_v55  ;;  %5917 = vmatmul.bf16.gmra.mxu0 %v10495_v32  ;;  %v5576_v32 = vadd.f32 %v10597_v23, %v5547_v29  ;;  %v5578_v57 = vadd.f32 %v10611_v24, %v5549_v53 }
 0x6be   :  { %5946 = vmatmul.bf16.gmra.mxu1 %v10491_v17  ;;  %6007 = vst [vmem:[#allocation10] sm:$0xff] %v8450_v58  ;;  %v5657_v7 = vpop.f32.mrf.mxu3 }
 0x6bf   :  { %5980 = vmatmul.bf16.gmra.mxu2 %v10519_v62  ;;  %8451 = vtanh.f32 %v5742_v18  ;;  %v5658_v14 = vadd.f32 %v5657_v7, %v5629_v22  ;;  %v5605_v16 = vadd.f32 %v10593_v42, %v5576_v32  ;;  %v5607_v33 = vadd.f32 %v10607_v43, %v5578_v57 }
 0x6c1   :  { %v5687_v17 = vadd.f32 %v5686_v5, %v5658_v14  ;;  %v5634_v23 = vadd.f32 %v10609_v54, %v5605_v16  ;;  %v5636_v10 = vadd.f32 %v10617_v30, %v5607_v33 }
 0x6c2   :  { %v5744_v52 = vpop.f32.mrf.mxu2  ;;  %v5688_v59 = vpop.f32.mrf.mxu0 }
 0x6c3   :  { %v5717_v20 = vpop.f32.mrf.mxu1  ;;  %v5716_v0 = vadd.f32 %v5715_v26, %v5687_v17 }
 0x6c5   :  { %v8452_v28 = vpop.eup %8451  ;;  %v5745_v21 = vadd.f32 %v5744_v52, %v5716_v0 }
 0x6c6   :  { %6009 = vst [vmem:[#allocation10 + $0x10] sm:$0xff] %v8452_v28  ;;  %v5659_v62 = vpop.f32.mrf.mxu3 }
 0x6c7   :  { %8453 = vtanh.f32 %v5745_v21  ;;  %v5660_v27 = vadd.f32 %v5659_v62, %v5631_v37 }
 0x6c9   :  { %v5689_v38 = vadd.f32 %v5688_v59, %v5660_v27 }
 0x6ca   :  { %v5746_v60 = vpop.f32.mrf.mxu2  ;;  %v5691_v44 = vpop.f32.mrf.mxu0 }
 0x6cb   :  { %v5720_v4 = vpop.f32.mrf.mxu1  ;;  %5893 = vmatmul.bf16.gmra.mxu3 %v10507_v9  ;;  %v5718_v11 = vadd.f32 %v5717_v20, %v5689_v38  ;;  %v5552_v9 = vadd.f32 %v10632_v61, %v10629_v40  ;;  %v5554_v61 = vadd.f32 %v10644_v56, %v10629_v40 }
 0x6cd   :  { %v8454_v19 = vpop.eup %8453  ;;  %v5747_v45 = vadd.f32 %v5746_v60, %v5718_v11  ;;  %5922 = vmatmul.bf16.gmra.mxu0 %v10515_v35  ;;  %v5581_v35 = vadd.f32 %v10624_v50, %v5552_v9  ;;  %v5583_v3 = vadd.f32 %v10641_v63, %v5554_v61 }
 0x6ce   :  { %5951 = vmatmul.bf16.gmra.mxu1 %v10511_v48  ;;  %6011 = vst [vmem:[#allocation10 + $0x20] sm:$0xff] %v8454_v19  ;;  %v5662_v42 = vpop.f32.mrf.mxu3 }
 0x6cf   :  { %5985 = vmatmul.bf16.gmra.mxu2 %v10539_v49  ;;  %8455 = vtanh.f32 %v5747_v45  ;;  %v5663_v25 = vadd.f32 %v5662_v42, %v5634_v23  ;;  %v5610_v43 = vadd.f32 %v10615_v1, %v5581_v35  ;;  %v5612_v56 = vadd.f32 %v10637_v51, %v5583_v3 }
 0x6d0   :  { %v10701_v51 = vperm.slane %v10622_v34, 1 }
 0x6d1   :  { %v5692_v48 = vadd.f32 %v5691_v44, %v5663_v25  ;;  %v5639_v50 = vadd.f32 %v10639_v15, %v5610_v43  ;;  %v5641_v17 = vadd.f32 %v10649_v13, %v5612_v56 }
 0x6d2   :  { %v5749_v46 = vpop.f32.mrf.mxu2  ;;  %v5693_v54 = vpop.f32.mrf.mxu0 }
 0x6d3   :  { %v5722_v6 = vpop.f32.mrf.mxu1  ;;  %v5721_v31 = vadd.f32 %v5720_v4, %v5692_v48 }
 0x6d5   :  { %v8456_v24 = vpop.eup %8455  ;;  %v5750_v41 = vadd.f32 %v5749_v46, %v5721_v31 }
 0x6d6   :  { %6013 = vst [vmem:[#allocation10 + $0x30] sm:$0xff] %v8456_v24  ;;  %v5664_v49 = vpop.f32.mrf.mxu3 }
 0x6d7   :  { %8457 = vtanh.f32 %v5750_v41  ;;  %v5665_v26 = vadd.f32 %v5664_v49, %v5636_v10 }
 0x6d9   :  { %v5694_v8 = vadd.f32 %v5693_v54, %v5665_v26 }
 0x6da   :  { %v5751_v55 = vpop.f32.mrf.mxu2  ;;  %v5696_v58 = vpop.f32.mrf.mxu0 }
 0x6db   :  { %v5725_v5 = vpop.f32.mrf.mxu1  ;;  %5898 = vmatmul.bf16.gmra.mxu3 %v10527_v12  ;;  %v5723_v22 = vadd.f32 %v5722_v6, %v5694_v8 }
 0x6dd   :  { %v8458_v30 = vpop.eup %8457  ;;  %v5752_v18 = vadd.f32 %v5751_v55, %v5723_v22  ;;  %5927 = vmatmul.bf16.gmra.mxu0 %v10535_v47 }
 0x6de   :  { %5956 = vmatmul.bf16.gmra.mxu1 %v10531_v36  ;;  %6015 = vst [vmem:[#allocation10 + $0x40] sm:$0xff] %v8458_v30  ;;  %v5667_v1 = vpop.f32.mrf.mxu3 }
 0x6df   :  { %8459 = vtanh.f32 %v5752_v18  ;;  %v5668_v40 = vadd.f32 %v5667_v1, %v5639_v50 }
 0x6e1   :  { %v5697_v7 = vadd.f32 %v5696_v58, %v5668_v40 }
 0x6e2   :  { %v5754_v12 = vpop.f32.mrf.mxu2  ;;  %v5698_v39 = vpop.f32.mrf.mxu0 }
 0x6e3   :  { %v5727_v14 = vpop.f32.mrf.mxu1  ;;  %v5726_v29 = vadd.f32 %v5725_v5, %v5697_v7 }
 0x6e5   :  { %v8460_v36 = vpop.eup %8459  ;;  %v5755_v15 = vadd.f32 %v5754_v12, %v5726_v29 }
 0x6e6   :  { %6017 = vst [vmem:[#allocation10 + $0x50] sm:$0xff] %v8460_v36  ;;  %v5669_v63 = vpop.f32.mrf.mxu3 }
 0x6e7   :  { %8461 = vtanh.f32 %v5755_v15  ;;  %v5670_v20 = vadd.f32 %v5669_v63, %v5641_v17 }
 0x6e9   :  { %v5699_v47 = vadd.f32 %v5698_v39, %v5670_v20 }
 0x6ea   :  { %v5756_v59 = vpop.f32.mrf.mxu2  ;;  %v5797_v0 = vpop.f32.mrf.mxu0 }
 0x6eb   :  { %v5826_v52 = vpop.f32.mrf.mxu1  ;;  %v5728_v28 = vadd.f32 %v5727_v14, %v5699_v47 }
 0x6ed   :  { %v8462_v37 = vpop.eup %8461  ;;  %v5757_v32 = vadd.f32 %v5756_v59, %v5728_v28 }
 0x6ee   :  { %5970 = vmatmul.bf16.vlgmr.msrb.gmra.mxu1 %v10479_v2  ;;  %6019 = vst [vmem:[#allocation10 + $0x60] sm:$0xff] %v8462_v37  ;;  %v5768_v21 = vpop.f32.mrf.mxu3 }
 0x6ef   :  { %8463 = vtanh.f32 %v5757_v32  ;;  %v5769_v13 = vadd.f32 %v5768_v21, %v10701_v51 }
 0x6f1   :  { %v5798_v62 = vadd.f32 %v5797_v0, %v5769_v13 }
 0x6f2   :  { %v5855_v16 = vpop.f32.mrf.mxu2  ;;  %v5799_v53 = vpop.f32.mrf.mxu0 }
 0x6f3   :  { %v5828_v27 = vpop.f32.mrf.mxu1  ;;  %v5827_v38 = vadd.f32 %v5826_v52, %v5798_v62 }
 0x6f5   :  { %v8464_v4 = vpop.eup %8463  ;;  %v10705_v60 = vadd.f32 %v5855_v16, %v5827_v38 }
 0x6f6   :  { %6021 = vst [vmem:[#allocation10 + $0x70] sm:$0xff] %v8464_v4  ;;  %v5770_v34 = vpop.f32.mrf.mxu3 }
 0x6f7   :  { %v5771_v44 = vadd.f32 %v5770_v34, %v10701_v51 }
 0x6f9   :  { %v5800_v2 = vadd.f32 %v5799_v53, %v5771_v44 }
 0x6fa   :  { %v5857_v19 = vpop.f32.mrf.mxu2  ;;  %v5802_v23 = vpop.f32.mrf.mxu0 }
 0x6fb   :  { %v5831_v11 = vpop.f32.mrf.mxu1  ;;  %v5829_v57 = vadd.f32 %v5828_v27, %v5800_v2 }
 0x6fd   :  { %v10708_v45 = vadd.f32 %v5857_v19, %v5829_v57 }
 0x6fe   :  { %v5773_v42 = vpop.f32.mrf.mxu3 }
 0x6ff   :  { %v5774_v3 = vadd.f32 %v5773_v42, %v10701_v51 }
 0x701   :  { %v5803_v56 = vadd.f32 %v5802_v23, %v5774_v3 }
 0x702   :  { %v5860_v33 = vpop.f32.mrf.mxu2  ;;  %v5804_v9 = vpop.f32.mrf.mxu0 }
 0x703   :  { %v5833_v25 = vpop.f32.mrf.mxu1  ;;  %v5832_v14 = vadd.f32 %v5831_v11, %v5803_v56 }
 0x705   :  { %v5861_v17 = vadd.f32 %v5860_v33, %v5832_v14 }
 0x706   :  { %v5775_v48 = vpop.f32.mrf.mxu3 }
 0x707   :  { %v5776_v12 = vadd.f32 %v5775_v48, %v10701_v51 }
 0x709   :  { %v5805_v15 = vadd.f32 %v5804_v9, %v5776_v12 }
 0x70a   :  { %v5807_v46 = vpop.f32.mrf.mxu0  ;;  %v5862_v54 = vpop.f32.mrf.mxu2 }
 0x70b   :  { %v5836_v6 = vpop.f32.mrf.mxu1  ;;  %v5834_v47 = vadd.f32 %v5833_v25, %v5805_v15 }
 0x70d   :  { %v5863_v21 = vadd.f32 %v5862_v54, %v5834_v47 }
 0x70e   :  { %v5778_v31 = vpop.f32.mrf.mxu3 }
 0x70f   :  { %v5779_v52 = vadd.f32 %v5778_v31, %v10701_v51 }
 0x711   :  { %v5808_v13 = vadd.f32 %v5807_v46, %v5779_v52 }
 0x712   :  { %v5809_v10 = vpop.f32.mrf.mxu0  ;;  %v5865_v35 = vpop.f32.mrf.mxu2 }
 0x713   :  { %v5838_v24 = vpop.f32.mrf.mxu1  ;;  %v5837_v53 = vadd.f32 %v5836_v6, %v5808_v13 }
 0x715   :  { %v5866_v19 = vadd.f32 %v5865_v35, %v5837_v53 }
 0x716   :  { %v5780_v41 = vpop.f32.mrf.mxu3 }
 0x717   :  { %v5781_v38 = vadd.f32 %v5780_v41, %v10701_v51 }
 0x719   :  { %v5810_v23 = vadd.f32 %v5809_v10, %v5781_v38 }
 0x71a   :  { %v5812_v26 = vpop.f32.mrf.mxu0  ;;  %v5867_v43 = vpop.f32.mrf.mxu2 }
 0x71b   :  { %v10710_v49 = vpop.f32.mrf.mxu1  ;;  %v5839_v9 = vadd.f32 %v5838_v24, %v5810_v23 }
 0x71d   :  { %v5868_v3 = vadd.f32 %v5867_v43, %v5839_v9 }
 0x71e   :  { %v5783_v61 = vpop.f32.mrf.mxu3 }
 0x71f   :  { %v5784_v48 = vadd.f32 %v5783_v61, %v10701_v51 }
 0x721   :  { %v5813_v56 = vadd.f32 %v5812_v26, %v5784_v48 }
 0x722   :  { %v10714_v5 = vpop.f32.mrf.mxu0  ;;  %v10718_v58 = vpop.f32.mrf.mxu2 }
 0x723   :  { %v10712_v8 = vpop.f32.mrf.mxu1 }
 0x726   :  { %v10716_v55 = vpop.f32.mrf.mxu3 }
 0x727   :  { %v5786_v24 = vadd.f32 %v10716_v55, %v10701_v51 }
 0x729   :  { %v5815_v43 = vadd.f32 %v10714_v5, %v5786_v24 }
 0x72a   :  { %v10722_v30 = vpop.f32.mrf.mxu0  ;;  %v10729_v1 = vpop.f32.mrf.mxu2 }
 0x72b   :  { %v10720_v22 = vpop.f32.mrf.mxu1  ;;  %v5844_v52 = vadd.f32 %v10712_v8, %v5815_v43 }
 0x72d   :  { %v5873_v5 = vadd.f32 %v10729_v1, %v5844_v52 }
 0x72e   :  { %v10724_v50 = vpop.f32.mrf.mxu3 }
 0x732   :  { %v10731_v40 = vpop.f32.mrf.mxu0  ;;  %v5976_v36 = vpop.f32.mrf.mxu2 }
 0x733   :  { %v10727_v18 = vpop.f32.mrf.mxu1 }
 0x736   :  { %v10733_v7 = vpop.f32.mrf.mxu3 }
 0x737   :  { %v5887_v13 = vadd.f32 %v10733_v7, %v10708_v45 }
 0x73a   :  { %v5918_v29 = vpop.f32.mrf.mxu0  ;;  %v5978_v32 = vpop.f32.mrf.mxu2 }
 0x73b   :  { %v5947_v39 = vpop.f32.mrf.mxu1 }
 0x73e   :  { %v5889_v63 = vpop.f32.mrf.mxu3 }
 0x73f   :  { %v5890_v20 = vadd.f32 %v5889_v63, %v5861_v17 }
 0x741   :  { %v5919_v59 = vadd.f32 %v5918_v29, %v5890_v20 }
 0x742   :  { %v5920_v28 = vpop.f32.mrf.mxu0  ;;  %v5981_v25 = vpop.f32.mrf.mxu2 }
 0x743   :  { %v5949_v0 = vpop.f32.mrf.mxu1  ;;  %v5948_v37 = vadd.f32 %v5947_v39, %v5919_v59  ;;  %v5842_v39 = vadd.f32 %v10710_v49, %v5813_v56  ;;  %v5885_v49 = vadd.f32 %v10724_v50, %v10705_v60 }
 0x745   :  { %v5977_v62 = vadd.f32 %v5976_v36, %v5948_v37  ;;  %v5871_v15 = vadd.f32 %v10718_v58, %v5842_v39 }
 0x746   :  { %v5891_v27 = vpop.f32.mrf.mxu3 }
 0x747   :  { %8465 = vtanh.f32 %v5977_v62  ;;  %v5892_v16 = vadd.f32 %v5891_v27, %v5863_v21 }
 0x749   :  { %v5921_v4 = vadd.f32 %v5920_v28, %v5892_v16  ;;  %v5914_v28 = vadd.f32 %v10722_v30, %v5885_v49  ;;  %v5916_v30 = vadd.f32 %v10731_v40, %v5887_v13 }
 0x74a   :  { %v5923_v44 = vpop.f32.mrf.mxu0  ;;  %v5983_v12 = vpop.f32.mrf.mxu2 }
 0x74b   :  { %v5952_v34 = vpop.f32.mrf.mxu1  ;;  %v5950_v2 = vadd.f32 %v5949_v0, %v5921_v4  ;;  %v5943_v8 = vadd.f32 %v10720_v22, %v5914_v28  ;;  %v5945_v4 = vadd.f32 %v10727_v18, %v5916_v30 }
 0x74d   :  { %v8466_v11 = vpop.eup %8465  ;;  %v5979_v57 = vadd.f32 %v5978_v32, %v5950_v2 }
 0x74e   :  { %6012 = vst [vmem:[#allocation10 + $0x28] sm:$0xff] %v8466_v11  ;;  %v5894_v42 = vpop.f32.mrf.mxu3 }
 0x74f   :  { %8467 = vtanh.f32 %v5979_v57  ;;  %v5895_v33 = vadd.f32 %v5894_v42, %v5866_v19 }
 0x751   :  { %v5924_v46 = vadd.f32 %v5923_v44, %v5895_v33 }
 0x752   :  { %v5925_v31 = vpop.f32.mrf.mxu0  ;;  %v5986_v59 = vpop.f32.mrf.mxu2 }
 0x753   :  { %v5954_v6 = vpop.f32.mrf.mxu1  ;;  %v5953_v54 = vadd.f32 %v5952_v34, %v5924_v46 }
 0x755   :  { %v8468_v41 = vpop.eup %8467  ;;  %v5982_v14 = vadd.f32 %v5981_v25, %v5953_v54 }
 0x756   :  { %6014 = vst [vmem:[#allocation10 + $0x38] sm:$0xff] %v8468_v41  ;;  %v5896_v35 = vpop.f32.mrf.mxu3 }
 0x757   :  { %8469 = vtanh.f32 %v5982_v14  ;;  %v5897_v10 = vadd.f32 %v5896_v35, %v5868_v3 }
 0x759   :  { %v5926_v29 = vadd.f32 %v5925_v31, %v5897_v10 }
 0x75a   :  { %v5928_v63 = vpop.f32.mrf.mxu0  ;;  %v5988_v53 = vpop.f32.mrf.mxu2 }
 0x75b   :  { %v5957_v61 = vpop.f32.mrf.mxu1  ;;  %v5955_v36 = vadd.f32 %v5954_v6, %v5926_v29 }
 0x75d   :  { %v8470_v17 = vpop.eup %8469  ;;  %v5984_v26 = vadd.f32 %v5983_v12, %v5955_v36 }
 0x75e   :  { %6016 = vst [vmem:[#allocation10 + $0x48] sm:$0xff] %v8470_v17  ;;  %v5899_v20 = vpop.f32.mrf.mxu3 }
 0x75f   :  { %8471 = vtanh.f32 %v5984_v26  ;;  %v5900_v47 = vadd.f32 %v5899_v20, %v5871_v15 }
 0x761   :  { %v5929_v51 = vadd.f32 %v5928_v63, %v5900_v47 }
 0x762   :  { %v5930_v60 = vpop.f32.mrf.mxu0 }
 0x763   :  { %v5959_v55 = vpop.f32.mrf.mxu1  ;;  %v5958_v0 = vadd.f32 %v5957_v61, %v5929_v51 }
 0x765   :  { %v8472_v58 = vpop.eup %8471  ;;  %v5987_v37 = vadd.f32 %v5986_v59, %v5958_v0 }
 0x766   :  { %6018 = vst [vmem:[#allocation10 + $0x58] sm:$0xff] %v8472_v58  ;;  %v5901_v32 = vpop.f32.mrf.mxu3 }
 0x767   :  { %8473 = vtanh.f32 %v5987_v37  ;;  %v5902_v21 = vadd.f32 %v5901_v32, %v5873_v5 }
 0x769   :  { %v5931_v50 = vadd.f32 %v5930_v60, %v5902_v21 }
 0x76b   :  { %v5971_v62 = vpop.f32.mrf.mxu1  ;;  %v5960_v16 = vadd.f32 %v5959_v55, %v5931_v50 }
 0x76c   :  { %v5972_v27 = vadd.f32 %v5971_v62, %v5943_v8 }
 0x76d   :  { %v8474_v1 = vpop.eup %8473  ;;  %v5989_v38 = vadd.f32 %v5988_v53, %v5960_v16 }
 0x76e   :  { %8475 = vtanh.f32 %v5972_v27  ;;  %6020 = vst [vmem:[#allocation10 + $0x68] sm:$0xff] %v8474_v1 }
 0x76f   :  { %8477 = vtanh.f32 %v5989_v38 }
 0x773   :  { %v5973_v34 = vpop.f32.mrf.mxu1 }
 0x774   :  { %v8476_v44 = vpop.eup %8475  ;;  %v5974_v45 = vadd.f32 %v5973_v34, %v5945_v4 }
 0x775   :  { %6008 = vst [vmem:[#allocation10 + $0x8] sm:$0xff] %v8476_v44  ;;  %v8478_v22 = vpop.eup %8477 }
 0x776   :  { %8479 = vtanh.f32 %v5974_v45  ;;  %6022 = vst [vmem:[#allocation10 + $0x78] sm:$0xff] %v8478_v22 }
 0x77c   :  { %v8480_v40 = vpop.eup %8479 }
 0x77d   :  { %6010 = vst [vmem:[#allocation10 + $0x18] sm:$0xff] %v8480_v40 }
 0x77e   :  { %6035 = dma.vmem_to_hbm [thread:$0]  %s6028_s24, 2048, %s6030_s27, [#allocation7], %s8615_s17, %s8615_s17, %s8616_s18  }
 0x77f   :  { %8609 = dma.done.wait [#allocation7], 2048  }
 0x780   :  { %8610 = vsyncadd [#allocation7], 4294965248 }
 0x781   :  { %6040 = vsyncpa [#allocation6], 1 }
 0x782   :  { %6041 = vsyncpa [#allocation9], 1 }
 0x783   :  { %6042 = vsyncpa [#allocation7], 1 }
 0x784   :  { %6043 = vsyncmov [#allocation4] }
 0x787   :  { %s6044_s1 = vpop.sfrf %6043 }
 0x788   :  { %p7924_p0 = scmp.ne.s32.totalorder %s6044_s1, 0 }
 0x78a   :  { %6048 = shalt.err (%p7924_p0)  }
 0x78b   :  { %6050 = vsyncmov [#allocation4 + $0x1] }
 0x78e   :  { %s6051_s28 = vpop.sfrf %6050 }
 0x78f   :  { %p7925_p1 = scmp.ne.s32.totalorder %s6051_s28, 0 }
 0x791   :  { %6055 = shalt.err (%p7925_p1)  }

</bundles_post_ra>
